<compile_context>
chip_gen: v6e
topology: v6e:2x2x1
jax: 0.10.0
libtpu: 0.0.40
codegen_flags: <defaults>
</compile_context>

<pallas_src>
import functools

import numpy as np
import jax
import jax.numpy as jnp
from jax.experimental import pallas as pl
from jax.experimental.pallas import tpu as pltpu

ACT_DTYPE = jnp.bfloat16            # inter-layer activations / weights in HBM
VMEM_LIMIT = 32 * 1024 * 1024       # headroom over v5e's 16 MiB default, safe on v6e/v7x


# ----------------------------------------------------------------------------
# Kernel 1: stem = conv0(7x7,s2,p3) [norm0 folded in] + ReLU + maxpool(3x3,s2,p1)
# ----------------------------------------------------------------------------
def _stem_kernel(p_ref, w_ref, b_ref, o_ref, ypad_ref, rmax_ref, *, Hc, Wc, C0):
    Ho, Wo = Hc // 2, Wc // 2
    # conv0 (im2col matmul, norm0 scale folded into w, shift in b) + ReLU
    y = jnp.dot(p_ref[...], w_ref[...], preferred_element_type=jnp.float32)
    y = jnp.maximum(y + b_ref[...], 0.0)                     # (Hc*Wc, C0), y >= 0
    # maxpool 3x3/s2/p1 as a shifted-window VPU max.  Zero padding is a valid stand-in
    # for -inf ONLY because y is post-ReLU (>= 0); keep the ReLU before this pool.
    ypad_ref[...] = jnp.zeros_like(ypad_ref)
    ypad_ref[1:Hc + 1, 1:Wc + 1, :] = y.reshape(Hc, Wc, C0)
    r = ypad_ref[pl.ds(0, Ho, stride=2), :, :]               # rows 2i
    r = jnp.maximum(r, ypad_ref[pl.ds(1, Ho, stride=2), :, :])
    r = jnp.maximum(r, ypad_ref[pl.ds(2, Ho, stride=2), :, :])
    rmax_ref[...] = r                                        # (Ho, Wc+2, C0)
    m = rmax_ref[:, pl.ds(0, Wo, stride=2), :]               # cols 2j
    m = jnp.maximum(m, rmax_ref[:, pl.ds(1, Wo, stride=2), :])
    m = jnp.maximum(m, rmax_ref[:, pl.ds(2, Wo, stride=2), :])
    o_ref[...] = m.reshape(1, Ho * Wo, C0).astype(o_ref.dtype)


def _im2col(x, kh, kw, stride, pad):
    # XLA-side patch extraction; only used for the 7x7/s2 stem (cin=3, tiny expansion).
    N, H, W, C = x.shape
    xp = jnp.pad(x, ((0, 0), (pad, pad), (pad, pad), (0, 0)))
    Ho = (H + 2 * pad - kh) // stride + 1
    Wo = (W + 2 * pad - kw) // stride + 1
    cols = []
    for di in range(kh):
        for dj in range(kw):
            cols.append(xp[:, di:di + (Ho - 1) * stride + 1:stride,
                              dj:dj + (Wo - 1) * stride + 1:stride, :])
    patches = jnp.stack(cols, axis=3)                        # (N, Ho, Wo, kh*kw, C)
    return patches.reshape(N * Ho * Wo, kh * kw * C), Ho, Wo


def stem(x_nhwc, w, b):
    N = x_nhwc.shape[0]
    patches, Hc, Wc = _im2col(x_nhwc, 7, 7, 2, 3)
    patches = patches.astype(ACT_DTYPE)
    KP, C0 = w.shape
    Ho, Wo = Hc // 2, Wc // 2
    kernel = functools.partial(_stem_kernel, Hc=Hc, Wc=Wc, C0=C0)
    out = pl.pallas_call(
        kernel,
        out_shape=jax.ShapeDtypeStruct((N, Ho * Wo, C0), ACT_DTYPE),
        grid=(N,),
        in_specs=[
            pl.BlockSpec((Hc * Wc, KP), lambda n: (n, 0)),
            pl.BlockSpec((KP, C0), lambda n: (0, 0)),
            pl.BlockSpec((1, C0), lambda n: (0, 0)),
        ],
        out_specs=pl.BlockSpec((1, Ho * Wo, C0), lambda n: (n, 0, 0)),
        scratch_shapes=[
            pltpu.VMEM((Hc + 2, Wc + 2, C0), jnp.float32),   # zero-halo conv output
            pltpu.VMEM((Ho, Wc + 2, C0), jnp.float32),       # row-max intermediate
        ],
        compiler_params=pltpu.CompilerParams(
            dimension_semantics=("parallel",), vmem_limit_bytes=VMEM_LIMIT),
        cost_estimate=pl.CostEstimate(
            flops=2 * N * Hc * Wc * KP * C0 + 9 * N * Ho * Wo * C0,
            transcendentals=0,
            bytes_accessed=2 * N * Hc * Wc * KP + 2 * KP * C0 + 2 * N * Ho * Wo * C0),
    )(patches, w, b)
    return out, Ho, Wo


# ----------------------------------------------------------------------------
# Kernel 2: one whole dense block (all layers fused, concat kept in VMEM)
#   per layer: norm1+ReLU -> conv1(1x1) -> norm2+ReLU -> conv2(3x3,p1) -> channel-offset write
# ----------------------------------------------------------------------------
def _dense_block_kernel(x_ref, s1_ref, b1_ref, w1_ref, s2_ref, b2_ref, w2_ref,
                        o_ref, act_ref, zpad_ref, slab_ref, *, H, W, Cin, G, B, L):
    HW = H * W
    Cmax = Cin + L * G
    # Zero-init: channels >= Cin and the conv halo MUST be zero (garbage bits could be NaN
    # and 0*NaN would poison the matmuls even with zero-padded weights).
    act_ref[...] = jnp.zeros_like(act_ref)
    zpad_ref[...] = jnp.zeros_like(zpad_ref)
    act_ref[:, :Cin] = x_ref[0].astype(jnp.float32)
    for l in range(L):
        Cl = Cin + l * G
        # norm1+ReLU prologue over the full (zero-padded) channel slab: padded channels have
        # scale=shift=0 -> 0, and the matching w1 rows are zero, so they contribute nothing.
        h = jnp.maximum(act_ref[...] * s1_ref[l] + b1_ref[l], 0.0)            # (HW, Cmax)
        z = jnp.dot(h.astype(jnp.bfloat16), w1_ref[l],
                    preferred_element_type=jnp.float32)                       # 1x1 conv
        z = jnp.maximum(z * s2_ref[l] + b2_ref[l], 0.0)                       # norm2+ReLU
        # 3x3/p1 conv: stage z into the zero-halo buffer, gather the 9 taps into one
        # (HW, 9B) slab and issue a single MXU dot (K=9B) instead of 9 tiny K=B dots.
        zpad_ref[1:H + 1, 1:W + 1, :] = z.reshape(H, W, B)
        for di in range(3):
            for dj in range(3):
                t = di * 3 + dj
                slab_ref[:, :, t * B:(t + 1) * B] = zpad_ref[di:di + H, dj:dj + W, :]
        slab = slab_ref[...].reshape(HW, 9 * B).astype(jnp.bfloat16)
        y = jnp.dot(slab, w2_ref[l], preferred_element_type=jnp.float32)      # (HW, G)
        # DenseNet concat == write this layer's raw conv2 output at its channel offset.
        act_ref[:, Cl:Cl + G] = y
    o_ref[...] = act_ref[...].reshape(1, HW, Cmax).astype(o_ref.dtype)


def dense_block(x, H, W, s1, b1, w1, s2, b2, w2):
    N, HW, Cin = x.shape
    assert HW == H * W
    L, _, Cmax = s1.shape
    B = w1.shape[2]
    G = w2.shape[2]
    kernel = functools.partial(_dense_block_kernel, H=H, W=W, Cin=Cin, G=G, B=B, L=L)
    flops = 2 * N * HW * L * (Cmax * B + 9 * B * G)
    bytes_acc = (2 * N * HW * (Cin + Cmax) + 2 * L * (Cmax * B + 9 * B * G)
                 + 8 * L * (Cmax + B))
    # NOTE: at demo scale Cmax=32 (<128 lanes) so the output store is masked; at real
    # DenseNet121 widths (256..1024) this same layout is lane-dense.
    return pl.pallas_call(
        kernel,
        out_shape=jax.ShapeDtypeStruct((N, HW, Cmax), ACT_DTYPE),
        grid=(N,),
        in_specs=[
            pl.BlockSpec((1, HW, Cin), lambda n: (n, 0, 0)),
            pl.BlockSpec((L, 1, Cmax), lambda n: (0, 0, 0)),
            pl.BlockSpec((L, 1, Cmax), lambda n: (0, 0, 0)),
            pl.BlockSpec((L, Cmax, B), lambda n: (0, 0, 0)),
            pl.BlockSpec((L, 1, B), lambda n: (0, 0, 0)),
            pl.BlockSpec((L, 1, B), lambda n: (0, 0, 0)),
            pl.BlockSpec((L, 9 * B, G), lambda n: (0, 0, 0)),
        ],
        out_specs=pl.BlockSpec((1, HW, Cmax), lambda n: (n, 0, 0)),
        scratch_shapes=[
            pltpu.VMEM((HW, Cmax), jnp.float32),         # growing concat slab (stays in VMEM)
            pltpu.VMEM((H + 2, W + 2, B), jnp.float32),  # zero-halo buffer for the 3x3 conv
            pltpu.VMEM((H, W, 9 * B), jnp.float32),      # 9-tap slab -> single MXU dot
        ],
        compiler_params=pltpu.CompilerParams(
            dimension_semantics=("parallel",), vmem_limit_bytes=VMEM_LIMIT),
        cost_estimate=pl.CostEstimate(flops=flops, transcendentals=0,
                                      bytes_accessed=bytes_acc),
    )(x, s1, b1, w1, s2, b2, w2)


# ----------------------------------------------------------------------------
# Kernel 3: transition = norm+ReLU -> conv(1x1, C/2) -> avgpool(2x2,s2)  (fused)
# ----------------------------------------------------------------------------
def _transition_kernel(x_ref, s_ref, b_ref, w_ref, o_ref, *, H, W):
    Ch = w_ref.shape[1]
    x = jnp.maximum(x_ref[0].astype(jnp.float32) * s_ref[...] + b_ref[...], 0.0)
    y = jnp.dot(x.astype(jnp.bfloat16), w_ref[...],
                preferred_element_type=jnp.float32)                      # (HW, Ch)
    # 2x2/s2 avg-pool as a reshape + 4-tap VPU add (no pooling matmul, no extra VMEM).
    r = y.reshape(H // 2, 2, W // 2, 2, Ch)
    pooled = (r[:, 0, :, 0, :] + r[:, 0, :, 1, :] +
              r[:, 1, :, 0, :] + r[:, 1, :, 1, :]) * 0.25
    o_ref[...] = pooled.reshape(1, (H // 2) * (W // 2), Ch).astype(o_ref.dtype)


def transition(x, H, W, s, b, w):
    N, HW, C = x.shape
    Ch = w.shape[1]
    kernel = functools.partial(_transition_kernel, H=H, W=W)
    return pl.pallas_call(
        kernel,
        out_shape=jax.ShapeDtypeStruct((N, HW // 4, Ch), ACT_DTYPE),
        grid=(N,),
        in_specs=[
            pl.BlockSpec((1, HW, C), lambda n: (n, 0, 0)),
            pl.BlockSpec((1, C), lambda n: (0, 0)),
            pl.BlockSpec((1, C), lambda n: (0, 0)),
            pl.BlockSpec((C, Ch), lambda n: (0, 0)),
        ],
        out_specs=pl.BlockSpec((1, HW // 4, Ch), lambda n: (n, 0, 0)),
        compiler_params=pltpu.CompilerParams(dimension_semantics=("parallel",)),
        cost_estimate=pl.CostEstimate(
            flops=2 * N * HW * C * Ch, transcendentals=0,
            bytes_accessed=2 * N * HW * C + 2 * C * Ch + 2 * N * (HW // 4) * Ch),
    )(x, s, b, w)


# ----------------------------------------------------------------------------
# Kernel 4: head = norm5+ReLU -> GAP -> Linear(512)+ReLU -> Dropout(eval) ->
#                  Linear(num_classes) -> Sigmoid, batched over N (single launch)
# ----------------------------------------------------------------------------
def _head_kernel(x_ref, s5_ref, b5_ref, w1_ref, c1_ref, w2_ref, c2_ref, o_ref):
    x = jnp.maximum(x_ref[...].astype(jnp.float32) * s5_ref[...] + b5_ref[...], 0.0)
    g = jnp.mean(x, axis=1)                                   # GAP -> (N, C)
    h = jnp.dot(g.astype(jnp.bfloat16), w1_ref[...], preferred_element_type=jnp.float32)
    h = jnp.maximum(h + c1_ref[...], 0.0)                     # Linear(512) + ReLU
    # Dropout(0.3) is identity at inference (PyTorch eval semantics).
    u = jnp.dot(h.astype(jnp.bfloat16), w2_ref[...], preferred_element_type=jnp.float32)
    u = u + c2_ref[...]                                       # Linear(num_classes)
    o_ref[...] = 1.0 / (1.0 + jnp.exp(-u))                    # Sigmoid (f32)


def head(x, s5, b5, w1, c1, w2, c2):
    N, HW, C = x.shape
    HID, NC = w1.shape[1], w2.shape[1]
    return pl.pallas_call(
        _head_kernel,
        out_shape=jax.ShapeDtypeStruct((N, NC), jnp.float32),
        cost_estimate=pl.CostEstimate(
            flops=2 * N * (C * HID + HID * NC), transcendentals=N * NC,
            bytes_accessed=2 * N * HW * C + 2 * (C * HID + HID * NC) + 4 * N * NC),
    )(x, s5, b5, w1, c1, w2, c2)


# ----------------------------------------------------------------------------
# Deterministic synthetic parameters (same shapes / eval semantics as the module)
# ----------------------------------------------------------------------------
def _conv_init(key, kh, kw, cin, cout):
    fan_in = kh * kw * cin
    return np.asarray(jax.random.normal(key, (kh, kw, cin, cout), jnp.float32)
                      * (2.0 / fan_in) ** 0.5)


def _bn_fold(key, c, eps=1e-5):
    k1, k2, k3, k4 = jax.random.split(key, 4)
    gamma = 1.0 + 0.1 * jax.random.normal(k1, (c,), jnp.float32)
    beta = 0.1 * jax.random.normal(k2, (c,), jnp.float32)
    mean = 0.1 * jax.random.normal(k3, (c,), jnp.float32)
    var = jax.random.uniform(k4, (c,), jnp.float32, 0.5, 1.5)
    scale = gamma / jnp.sqrt(var + eps)
    shift = beta - mean * scale
    return np.asarray(scale), np.asarray(shift)


def _linear_init(key, din, dout):
    k1, k2 = jax.random.split(key)
    w = jax.random.normal(k1, (din, dout), jnp.float32) * (1.0 / din) ** 0.5
    b = 0.01 * jax.random.normal(k2, (dout,), jnp.float32)
    return w.astype(ACT_DTYPE), jnp.asarray(b).reshape(1, dout)


def init_params(key, *, growth_rate, block_config, num_init_features, bn_size,
                num_classes, hidden):
    keys = iter(jax.random.split(key, 1024))
    C0 = num_init_features
    # conv0 -> norm0 (no nonlinearity between): fold the BN scale into the conv weights and
    # keep the shift as the bias.  Intentional tolerance: the fused bf16 weight rounds
    # slightly differently from f32 conv followed by f32 BN.
    w0 = _conv_init(next(keys), 7, 7, 3, C0)
    s0, b0 = _bn_fold(next(keys), C0)
    w0 = (w0 * s0.reshape(1, 1, 1, C0)).reshape(7 * 7 * 3, C0)
    params = {"stem_w": jnp.asarray(w0, ACT_DTYPE),
              "stem_b": jnp.asarray(b0.reshape(1, C0), jnp.float32)}

    G, B = growth_rate, bn_size * growth_rate
    c = C0
    blocks = []
    for bi, L in enumerate(block_config):
        Cin, Cmax = c, c + L * G
        s1 = np.zeros((L, 1, Cmax), np.float32)
        b1 = np.zeros((L, 1, Cmax), np.float32)
        w1 = np.zeros((L, Cmax, B), np.float32)
        s2 = np.zeros((L, 1, B), np.float32)
        b2 = np.zeros((L, 1, B), np.float32)
        w2 = np.zeros((L, 9 * B, G), np.float32)
        for l in range(L):
            Cl = Cin + l * G
            sc, sh = _bn_fold(next(keys), Cl)
            s1[l, 0, :Cl], b1[l, 0, :Cl] = sc, sh
            w1[l, :Cl, :] = _conv_init(next(keys), 1, 1, Cl, B).reshape(Cl, B)
            sc2, sh2 = _bn_fold(next(keys), B)
            s2[l, 0, :], b2[l, 0, :] = sc2, sh2
            w2[l] = _conv_init(next(keys), 3, 3, B, G).reshape(9 * B, G)
        block = {"s1": jnp.asarray(s1), "b1": jnp.asarray(b1),
                 "w1": jnp.asarray(w1, ACT_DTYPE),
                 "s2": jnp.asarray(s2), "b2": jnp.asarray(b2),
                 "w2": jnp.asarray(w2, ACT_DTYPE)}
        c = Cmax
        if bi != len(block_config) - 1:
            ts, tb = _bn_fold(next(keys), c)
            tw = _conv_init(next(keys), 1, 1, c, c // 2).reshape(c, c // 2)
            block["ts"] = jnp.asarray(ts.reshape(1, c))
            block["tb"] = jnp.asarray(tb.reshape(1, c))
            block["tw"] = jnp.asarray(tw, ACT_DTYPE)
            c //= 2
        blocks.append(block)
    params["blocks"] = blocks

    s5, b5 = _bn_fold(next(keys), c)
    params["s5"] = jnp.asarray(s5.reshape(1, 1, c))
    params["b5"] = jnp.asarray(b5.reshape(1, 1, c))
    params["w_fc1"], params["b_fc1"] = _linear_init(next(keys), c, hidden)
    params["w_fc2"], params["b_fc2"] = _linear_init(next(keys), hidden, num_classes)
    return params


# ----------------------------------------------------------------------------
# Forward pass (DenseNet features -> relu -> GAP -> classifier head)
# ----------------------------------------------------------------------------
def chest_xray_forward(x_nchw, params):
    x = jnp.transpose(x_nchw, (0, 2, 3, 1)).astype(jnp.float32)       # NCHW -> NHWC
    # Stem: conv0(7x7,s2,p3)[+folded norm0] -> ReLU -> maxpool(3x3,s2,p1), one kernel.
    x, H, W = stem(x, params["stem_w"], params["stem_b"])             # (N, H*W, C0)
    for blk in params["blocks"]:
        # One kernel per dense block: all layers fused, concat held in VMEM.
        x = dense_block(x, H, W, blk["s1"], blk["b1"], blk["w1"],
                        blk["s2"], blk["b2"], blk["w2"])
        if "tw" in blk:
            # _Transition: norm -> ReLU -> conv(1x1, C/2) -> avgpool(2x2,s2), one kernel.
            x = transition(x, H, W, blk["ts"], blk["tb"], blk["tw"])
            H, W = H // 2, W // 2
    # norm5 -> ReLU -> GAP -> Linear(512) -> ReLU -> Dropout(eval) -> Linear -> Sigmoid
    return head(x, params["s5"], params["b5"], params["w_fc1"], params["b_fc1"],
                params["w_fc2"], params["b_fc2"])


# ----------------------------------------------------------------------------
if __name__ == "__main__":
    key = jax.random.PRNGKey(0)
    kp, kx = jax.random.split(key)

    params = init_params(
        kp,
        growth_rate=8,
        block_config=(2, 2, 2, 2),   # scaled-down DenseNet121 topology (demo scale)
        num_init_features=16,
        bn_size=4,
        num_classes=18,              # matches ChestXRayModel default
        hidden=512,                  # matches nn.Linear(num_features, 512)
    )

    x = jax.random.normal(kx, (2, 3, 32, 32), jnp.float32)   # NCHW, like PyTorch
    fwd = jax.jit(chest_xray_forward)
    out = jax.block_until_ready(fwd(x, params))

    assert out.shape == (2, 18), out.shape
    assert bool(jnp.all(jnp.isfinite(out)))
    assert bool(jnp.all((out >= 0.0) & (out <= 1.0)))        # sigmoid range
    print("KERNEL_OK")
</pallas_src>

<mosaic_0001>
module attributes {stable_mosaic.version = 11 : i64} {
  func.func @_stem_kernel(%arg0: i32, %arg1: memref<256x147xbf16, #tpu.memory_space<vmem>>, %arg2: memref<147x16xbf16, #tpu.memory_space<vmem>>, %arg3: memref<1x16xf32, #tpu.memory_space<vmem>>, %arg4: memref<1x64x16xbf16, #tpu.memory_space<vmem>>, %arg5: memref<18x18x16xf32, #tpu.memory_space<vmem>>, %arg6: memref<8x18x16xf32, #tpu.memory_space<vmem>>) attributes {dimension_semantics = [#tpu.dimension_semantics<parallel>], iteration_bounds = array<i64: 2>, scalar_prefetch = 0 : i64, scratch_operands = 2 : i64, tpu.core_type = #tpu.core_type<tc>, window_params = [{transform_indices = @transform_0, window_bounds = array<i64: 256, 147>}, {pipeline_mode = #tpu.pipeline_mode<synchronous>, transform_indices = @transform_1, window_bounds = array<i64: 147, 16>}, {pipeline_mode = #tpu.pipeline_mode<synchronous>, transform_indices = @transform_2, window_bounds = array<i64: 1, 16>}, {transform_indices = @transform_3, window_bounds = array<i64: 1, 64, 16>}]} {
    %c0 = arith.constant 0 : index
    %c0_0 = arith.constant 0 : index
    %0 = vector.load %arg1[%c0, %c0_0] : memref<256x147xbf16, #tpu.memory_space<vmem>>, vector<256x147xbf16>
    %c0_1 = arith.constant 0 : index
    %c0_2 = arith.constant 0 : index
    %1 = vector.load %arg2[%c0_1, %c0_2] : memref<147x16xbf16, #tpu.memory_space<vmem>>, vector<147x16xbf16>
    %cst = arith.constant dense<0.000000e+00> : vector<256x16xf32>
    %2 = tpu.matmul %0, %1, %cst {dimension_numbers = #tpu.dot_dimension_numbers<[1], [0], [0], [1], [0, 0, 1, 1], [], []>} : vector<256x147xbf16>, vector<147x16xbf16>, vector<256x16xf32> -> vector<256x16xf32>
    %c0_3 = arith.constant 0 : index
    %c0_4 = arith.constant 0 : index
    %3 = vector.load %arg3[%c0_3, %c0_4] : memref<1x16xf32, #tpu.memory_space<vmem>>, vector<1x16xf32>
    %4 = vector.broadcast %3 : vector<1x16xf32> to vector<256x16xf32>
    %5 = arith.addf %2, %4 : vector<256x16xf32>
    %cst_5 = arith.constant 0.000000e+00 : f32
    %6 = vector.broadcast %cst_5 : f32 to vector<256x16xf32>
    %7 = arith.maximumf %5, %6 : vector<256x16xf32>
    %cst_6 = arith.constant 0.000000e+00 : f32
    %8 = vector.broadcast %cst_6 : f32 to vector<18x18x16xf32>
    %c0_7 = arith.constant 0 : index
    %c0_8 = arith.constant 0 : index
    %c0_9 = arith.constant 0 : index
    %9 = vector.load %arg5[%c0_7, %c0_8, %c0_9] : memref<18x18x16xf32, #tpu.memory_space<vmem>>, vector<18x18x16xf32>
    tpu.vector_store %arg5[%c0_7, %c0_8, %c0_9], %8 {strides = array<i32>} : memref<18x18x16xf32, #tpu.memory_space<vmem>>, vector<18x18x16xf32>,
    %10 = vector.shape_cast %7 : vector<256x16xf32> to vector<16x16x16xf32>
    %c1 = arith.constant 1 : index
    %c1_10 = arith.constant 1 : index
    %c0_11 = arith.constant 0 : index
    %11 = vector.load %arg5[%c1, %c1_10, %c0_11] : memref<18x18x16xf32, #tpu.memory_space<vmem>>, vector<16x16x16xf32>
    tpu.vector_store %arg5[%c1, %c1_10, %c0_11], %10 {strides = array<i32>} : memref<18x18x16xf32, #tpu.memory_space<vmem>>, vector<16x16x16xf32>,
    %c0_12 = arith.constant 0 : index
    %c0_13 = arith.constant 0 : index
    %c0_14 = arith.constant 0 : index
    %12 = tpu.strided_load %arg5[%c0_12, %c0_13, %c0_14] {strides = array<i32: 2, 1, 1>} : memref<18x18x16xf32, #tpu.memory_space<vmem>>, vector<8x18x16xf32>
    %c1_15 = arith.constant 1 : index
    %c0_16 = arith.constant 0 : index
    %c0_17 = arith.constant 0 : index
    %13 = tpu.strided_load %arg5[%c1_15, %c0_16, %c0_17] {strides = array<i32: 2, 1, 1>} : memref<18x18x16xf32, #tpu.memory_space<vmem>>, vector<8x18x16xf32>
    %14 = arith.maximumf %12, %13 : vector<8x18x16xf32>
    %c2 = arith.constant 2 : index
    %c0_18 = arith.constant 0 : index
    %c0_19 = arith.constant 0 : index
    %15 = tpu.strided_load %arg5[%c2, %c0_18, %c0_19] {strides = array<i32: 2, 1, 1>} : memref<18x18x16xf32, #tpu.memory_space<vmem>>, vector<8x18x16xf32>
    %16 = arith.maximumf %14, %15 : vector<8x18x16xf32>
    %c0_20 = arith.constant 0 : index
    %c0_21 = arith.constant 0 : index
    %c0_22 = arith.constant 0 : index
    %17 = vector.load %arg6[%c0_20, %c0_21, %c0_22] : memref<8x18x16xf32, #tpu.memory_space<vmem>>, vector<8x18x16xf32>
    tpu.vector_store %arg6[%c0_20, %c0_21, %c0_22], %16 {strides = array<i32>} : memref<8x18x16xf32, #tpu.memory_space<vmem>>, vector<8x18x16xf32>,
    %c0_23 = arith.constant 0 : index
    %c0_24 = arith.constant 0 : index
    %c0_25 = arith.constant 0 : index
    %18 = tpu.strided_load %arg6[%c0_23, %c0_24, %c0_25] {strides = array<i32: 1, 2, 1>} : memref<8x18x16xf32, #tpu.memory_space<vmem>>, vector<8x8x16xf32>
    %c0_26 = arith.constant 0 : index
    %c1_27 = arith.constant 1 : index
    %c0_28 = arith.constant 0 : index
    %19 = tpu.strided_load %arg6[%c0_26, %c1_27, %c0_28] {strides = array<i32: 1, 2, 1>} : memref<8x18x16xf32, #tpu.memory_space<vmem>>, vector<8x8x16xf32>
    %20 = arith.maximumf %18, %19 : vector<8x8x16xf32>
    %c0_29 = arith.constant 0 : index
    %c2_30 = arith.constant 2 : index
    %c0_31 = arith.constant 0 : index
    %21 = tpu.strided_load %arg6[%c0_29, %c2_30, %c0_31] {strides = array<i32: 1, 2, 1>} : memref<8x18x16xf32, #tpu.memory_space<vmem>>, vector<8x8x16xf32>
    %22 = arith.maximumf %20, %21 : vector<8x8x16xf32>
    %23 = vector.shape_cast %22 : vector<8x8x16xf32> to vector<1x64x16xf32>
    %24 = arith.truncf %23 : vector<1x64x16xf32> to vector<1x64x16xbf16>
    %c0_32 = arith.constant 0 : index
    %c0_33 = arith.constant 0 : index
    %c0_34 = arith.constant 0 : index
    %25 = vector.load %arg4[%c0_32, %c0_33, %c0_34] : memref<1x64x16xbf16, #tpu.memory_space<vmem>>, vector<1x64x16xbf16>
    tpu.vector_store %arg4[%c0_32, %c0_33, %c0_34], %24 {strides = array<i32>} : memref<1x64x16xbf16, #tpu.memory_space<vmem>>, vector<1x64x16xbf16>,
    return
  }
  func.func @transform_0(%arg0: i32) -> (i32, i32) {
    %c0_i32 = arith.constant 0 : i32
    %c0_i32_0 = arith.constant 0 : i32
    return %arg0, %c0_i32 : i32, i32
  }
  func.func @transform_1(%arg0: i32) -> (i32, i32) {
    %c0_i32 = arith.constant 0 : i32
    %c0_i32_0 = arith.constant 0 : i32
    %c0_i32_1 = arith.constant 0 : i32
    return %c0_i32, %c0_i32_0 : i32, i32
  }
  func.func @transform_2(%arg0: i32) -> (i32, i32) {
    %c0_i32 = arith.constant 0 : i32
    %c0_i32_0 = arith.constant 0 : i32
    %c0_i32_1 = arith.constant 0 : i32
    return %c0_i32, %c0_i32_0 : i32, i32
  }
  func.func @transform_3(%arg0: i32) -> (i32, i32, i32) {
    %c0_i32 = arith.constant 0 : i32
    %c0_i32_0 = arith.constant 0 : i32
    %c0_i32_1 = arith.constant 0 : i32
    return %arg0, %c0_i32, %c0_i32_0 : i32, i32, i32
  }
}

module attributes {stable_mosaic.version = 11 : i64} {
  func.func @_dense_block_kernel(%arg0: i32, %arg1: memref<1x64x16xbf16, #tpu.memory_space<vmem>>, %arg2: memref<2x1x32xf32, #tpu.memory_space<vmem>>, %arg3: memref<2x1x32xf32, #tpu.memory_space<vmem>>, %arg4: memref<2x32x32xbf16, #tpu.memory_space<vmem>>, %arg5: memref<2x1x32xf32, #tpu.memory_space<vmem>>, %arg6: memref<2x1x32xf32, #tpu.memory_space<vmem>>, %arg7: memref<2x288x8xbf16, #tpu.memory_space<vmem>>, %arg8: memref<1x64x32xbf16, #tpu.memory_space<vmem>>, %arg9: memref<64x32xf32, #tpu.memory_space<vmem>>, %arg10: memref<10x10x32xf32, #tpu.memory_space<vmem>>, %arg11: memref<8x8x288xf32, #tpu.memory_space<vmem>>) attributes {dimension_semantics = [#tpu.dimension_semantics<parallel>], iteration_bounds = array<i64: 2>, scalar_prefetch = 0 : i64, scratch_operands = 3 : i64, tpu.core_type = #tpu.core_type<tc>, window_params = [{transform_indices = @transform_0, window_bounds = array<i64: 1, 64, 16>}, {pipeline_mode = #tpu.pipeline_mode<synchronous>, transform_indices = @transform_1, window_bounds = array<i64: 2, 1, 32>}, {pipeline_mode = #tpu.pipeline_mode<synchronous>, transform_indices = @transform_2, window_bounds = array<i64: 2, 1, 32>}, {pipeline_mode = #tpu.pipeline_mode<synchronous>, transform_indices = @transform_3, window_bounds = array<i64: 2, 32, 32>}, {pipeline_mode = #tpu.pipeline_mode<synchronous>, transform_indices = @transform_4, window_bounds = array<i64: 2, 1, 32>}, {pipeline_mode = #tpu.pipeline_mode<synchronous>, transform_indices = @transform_5, window_bounds = array<i64: 2, 1, 32>}, {pipeline_mode = #tpu.pipeline_mode<synchronous>, transform_indices = @transform_6, window_bounds = array<i64: 2, 288, 8>}, {transform_indices = @transform_7, window_bounds = array<i64: 1, 64, 32>}]} {
    %cst = arith.constant 0.000000e+00 : f32
    %0 = vector.broadcast %cst : f32 to vector<64x32xf32>
    %c0 = arith.constant 0 : index
    %c0_0 = arith.constant 0 : index
    %1 = vector.load %arg9[%c0, %c0_0] : memref<64x32xf32, #tpu.memory_space<vmem>>, vector<64x32xf32>
    tpu.vector_store %arg9[%c0, %c0_0], %0 {strides = array<i32>} : memref<64x32xf32, #tpu.memory_space<vmem>>, vector<64x32xf32>,
    %cst_1 = arith.constant 0.000000e+00 : f32
    %2 = vector.broadcast %cst_1 : f32 to vector<10x10x32xf32>
    %c0_2 = arith.constant 0 : index
    %c0_3 = arith.constant 0 : index
    %c0_4 = arith.constant 0 : index
    %3 = vector.load %arg10[%c0_2, %c0_3, %c0_4] : memref<10x10x32xf32, #tpu.memory_space<vmem>>, vector<10x10x32xf32>
    tpu.vector_store %arg10[%c0_2, %c0_3, %c0_4], %2 {strides = array<i32>} : memref<10x10x32xf32, #tpu.memory_space<vmem>>, vector<10x10x32xf32>,
    %c0_5 = arith.constant 0 : index
    %c0_6 = arith.constant 0 : index
    %c0_7 = arith.constant 0 : index
    %4 = vector.load %arg1[%c0_5, %c0_6, %c0_7] : memref<1x64x16xbf16, #tpu.memory_space<vmem>>, vector<1x64x16xbf16>
    %5 = vector.shape_cast %4 : vector<1x64x16xbf16> to vector<64x16xbf16>
    %6 = arith.extf %5 : vector<64x16xbf16> to vector<64x16xf32>
    %c0_8 = arith.constant 0 : index
    %c0_9 = arith.constant 0 : index
    %7 = vector.load %arg9[%c0_8, %c0_9] : memref<64x32xf32, #tpu.memory_space<vmem>>, vector<64x16xf32>
    tpu.vector_store %arg9[%c0_8, %c0_9], %6 {strides = array<i32>} : memref<64x32xf32, #tpu.memory_space<vmem>>, vector<64x16xf32>,
    %c0_10 = arith.constant 0 : index
    %c0_11 = arith.constant 0 : index
    %8 = vector.load %arg9[%c0_10, %c0_11] : memref<64x32xf32, #tpu.memory_space<vmem>>, vector<64x32xf32>
    %c0_12 = arith.constant 0 : index
    %c0_13 = arith.constant 0 : index
    %c0_14 = arith.constant 0 : index
    %9 = vector.load %arg2[%c0_12, %c0_13, %c0_14] : memref<2x1x32xf32, #tpu.memory_space<vmem>>, vector<1x1x32xf32>
    %10 = vector.shape_cast %9 : vector<1x1x32xf32> to vector<1x32xf32>
    %11 = vector.broadcast %10 : vector<1x32xf32> to vector<64x32xf32>
    %12 = arith.mulf %8, %11 : vector<64x32xf32>
    %c0_15 = arith.constant 0 : index
    %c0_16 = arith.constant 0 : index
    %c0_17 = arith.constant 0 : index
    %13 = vector.load %arg3[%c0_15, %c0_16, %c0_17] : memref<2x1x32xf32, #tpu.memory_space<vmem>>, vector<1x1x32xf32>
    %14 = vector.shape_cast %13 : vector<1x1x32xf32> to vector<1x32xf32>
    %15 = vector.broadcast %14 : vector<1x32xf32> to vector<64x32xf32>
    %16 = arith.addf %12, %15 : vector<64x32xf32>
    %cst_18 = arith.constant 0.000000e+00 : f32
    %17 = vector.broadcast %cst_18 : f32 to vector<64x32xf32>
    %18 = arith.maximumf %16, %17 : vector<64x32xf32>
    %19 = arith.truncf %18 : vector<64x32xf32> to vector<64x32xbf16>
    %c0_19 = arith.constant 0 : index
    %c0_20 = arith.constant 0 : index
    %c0_21 = arith.constant 0 : index
    %20 = vector.load %arg4[%c0_19, %c0_20, %c0_21] : memref<2x32x32xbf16, #tpu.memory_space<vmem>>, vector<1x32x32xbf16>
    %21 = vector.shape_cast %20 : vector<1x32x32xbf16> to vector<32x32xbf16>
    %cst_22 = arith.constant dense<0.000000e+00> : vector<64x32xf32>
    %22 = tpu.matmul %19, %21, %cst_22 {dimension_numbers = #tpu.dot_dimension_numbers<[1], [0], [0], [1], [0, 0, 1, 1], [], []>} : vector<64x32xbf16>, vector<32x32xbf16>, vector<64x32xf32> -> vector<64x32xf32>
    %c0_23 = arith.constant 0 : index
    %c0_24 = arith.constant 0 : index
    %c0_25 = arith.constant 0 : index
    %23 = vector.load %arg5[%c0_23, %c0_24, %c0_25] : memref<2x1x32xf32, #tpu.memory_space<vmem>>, vector<1x1x32xf32>
    %24 = vector.shape_cast %23 : vector<1x1x32xf32> to vector<1x32xf32>
    %25 = vector.broadcast %24 : vector<1x32xf32> to vector<64x32xf32>
    %26 = arith.mulf %22, %25 : vector<64x32xf32>
    %c0_26 = arith.constant 0 : index
    %c0_27 = arith.constant 0 : index
    %c0_28 = arith.constant 0 : index
    %27 = vector.load %arg6[%c0_26, %c0_27, %c0_28] : memref<2x1x32xf32, #tpu.memory_space<vmem>>, vector<1x1x32xf32>
    %28 = vector.shape_cast %27 : vector<1x1x32xf32> to vector<1x32xf32>
    %29 = vector.broadcast %28 : vector<1x32xf32> to vector<64x32xf32>
    %30 = arith.addf %26, %29 : vector<64x32xf32>
    %cst_29 = arith.constant 0.000000e+00 : f32
    %31 = vector.broadcast %cst_29 : f32 to vector<64x32xf32>
    %32 = arith.maximumf %30, %31 : vector<64x32xf32>
    %33 = vector.shape_cast %32 : vector<64x32xf32> to vector<8x8x32xf32>
    %c1 = arith.constant 1 : index
    %c1_30 = arith.constant 1 : index
    %c0_31 = arith.constant 0 : index
    %34 = vector.load %arg10[%c1, %c1_30, %c0_31] : memref<10x10x32xf32, #tpu.memory_space<vmem>>, vector<8x8x32xf32>
    tpu.vector_store %arg10[%c1, %c1_30, %c0_31], %33 {strides = array<i32>} : memref<10x10x32xf32, #tpu.memory_space<vmem>>, vector<8x8x32xf32>,
    %c0_32 = arith.constant 0 : index
    %c0_33 = arith.constant 0 : index
    %c0_34 = arith.constant 0 : index
    %35 = vector.load %arg10[%c0_32, %c0_33, %c0_34] : memref<10x10x32xf32, #tpu.memory_space<vmem>>, vector<8x8x32xf32>
    %c0_35 = arith.constant 0 : index
    %c0_36 = arith.constant 0 : index
    %c0_37 = arith.constant 0 : index
    %36 = vector.load %arg11[%c0_35, %c0_36, %c0_37] : memref<8x8x288xf32, #tpu.memory_space<vmem>>, vector<8x8x32xf32>
    tpu.vector_store %arg11[%c0_35, %c0_36, %c0_37], %35 {strides = array<i32>} : memref<8x8x288xf32, #tpu.memory_space<vmem>>, vector<8x8x32xf32>,
    %c0_38 = arith.constant 0 : index
    %c1_39 = arith.constant 1 : index
    %c0_40 = arith.constant 0 : index
    %37 = vector.load %arg10[%c0_38, %c1_39, %c0_40] : memref<10x10x32xf32, #tpu.memory_space<vmem>>, vector<8x8x32xf32>
    %c0_41 = arith.constant 0 : index
    %c0_42 = arith.constant 0 : index
    %c32 = arith.constant 32 : index
    %38 = vector.load %arg11[%c0_41, %c0_42, %c32] : memref<8x8x288xf32, #tpu.memory_space<vmem>>, vector<8x8x32xf32>
    tpu.vector_store %arg11[%c0_41, %c0_42, %c32], %37 {strides = array<i32>} : memref<8x8x288xf32, #tpu.memory_space<vmem>>, vector<8x8x32xf32>,
    %c0_43 = arith.constant 0 : index
    %c2 = arith.constant 2 : index
    %c0_44 = arith.constant 0 : index
    %39 = vector.load %arg10[%c0_43, %c2, %c0_44] : memref<10x10x32xf32, #tpu.memory_space<vmem>>, vector<8x8x32xf32>
    %c0_45 = arith.constant 0 : index
    %c0_46 = arith.constant 0 : index
    %c64 = arith.constant 64 : index
    %40 = vector.load %arg11[%c0_45, %c0_46, %c64] : memref<8x8x288xf32, #tpu.memory_space<vmem>>, vector<8x8x32xf32>
    tpu.vector_store %arg11[%c0_45, %c0_46, %c64], %39 {strides = array<i32>} : memref<8x8x288xf32, #tpu.memory_space<vmem>>, vector<8x8x32xf32>,
    %c1_47 = arith.constant 1 : index
    %c0_48 = arith.constant 0 : index
    %c0_49 = arith.constant 0 : index
    %41 = vector.load %arg10[%c1_47, %c0_48, %c0_49] : memref<10x10x32xf32, #tpu.memory_space<vmem>>, vector<8x8x32xf32>
    %c0_50 = arith.constant 0 : index
    %c0_51 = arith.constant 0 : index
    %c96 = arith.constant 96 : index
    %42 = vector.load %arg11[%c0_50, %c0_51, %c96] : memref<8x8x288xf32, #tpu.memory_space<vmem>>, vector<8x8x32xf32>
    tpu.vector_store %arg11[%c0_50, %c0_51, %c96], %41 {strides = array<i32>} : memref<8x8x288xf32, #tpu.memory_space<vmem>>, vector<8x8x32xf32>,
    %c1_52 = arith.constant 1 : index
    %c1_53 = arith.constant 1 : index
    %c0_54 = arith.constant 0 : index
    %43 = vector.load %arg10[%c1_52, %c1_53, %c0_54] : memref<10x10x32xf32, #tpu.memory_space<vmem>>, vector<8x8x32xf32>
    %c0_55 = arith.constant 0 : index
    %c0_56 = arith.constant 0 : index
    %c128 = arith.constant 128 : index
    %44 = vector.load %arg11[%c0_55, %c0_56, %c128] : memref<8x8x288xf32, #tpu.memory_space<vmem>>, vector<8x8x32xf32>
    tpu.vector_store %arg11[%c0_55, %c0_56, %c128], %43 {strides = array<i32>} : memref<8x8x288xf32, #tpu.memory_space<vmem>>, vector<8x8x32xf32>,
    %c1_57 = arith.constant 1 : index
    %c2_58 = arith.constant 2 : index
    %c0_59 = arith.constant 0 : index
    %45 = vector.load %arg10[%c1_57, %c2_58, %c0_59] : memref<10x10x32xf32, #tpu.memory_space<vmem>>, vector<8x8x32xf32>
    %c0_60 = arith.constant 0 : index
    %c0_61 = arith.constant 0 : index
    %c160 = arith.constant 160 : index
    %46 = vector.load %arg11[%c0_60, %c0_61, %c160] : memref<8x8x288xf32, #tpu.memory_space<vmem>>, vector<8x8x32xf32>
    tpu.vector_store %arg11[%c0_60, %c0_61, %c160], %45 {strides = array<i32>} : memref<8x8x288xf32, #tpu.memory_space<vmem>>, vector<8x8x32xf32>,
    %c2_62 = arith.constant 2 : index
    %c0_63 = arith.constant 0 : index
    %c0_64 = arith.constant 0 : index
    %47 = vector.load %arg10[%c2_62, %c0_63, %c0_64] : memref<10x10x32xf32, #tpu.memory_space<vmem>>, vector<8x8x32xf32>
    %c0_65 = arith.constant 0 : index
    %c0_66 = arith.constant 0 : index
    %c192 = arith.constant 192 : index
    %48 = vector.load %arg11[%c0_65, %c0_66, %c192] : memref<8x8x288xf32, #tpu.memory_space<vmem>>, vector<8x8x32xf32>
    tpu.vector_store %arg11[%c0_65, %c0_66, %c192], %47 {strides = array<i32>} : memref<8x8x288xf32, #tpu.memory_space<vmem>>, vector<8x8x32xf32>,
    %c2_67 = arith.constant 2 : index
    %c1_68 = arith.constant 1 : index
    %c0_69 = arith.constant 0 : index
    %49 = vector.load %arg10[%c2_67, %c1_68, %c0_69] : memref<10x10x32xf32, #tpu.memory_space<vmem>>, vector<8x8x32xf32>
    %c0_70 = arith.constant 0 : index
    %c0_71 = arith.constant 0 : index
    %c224 = arith.constant 224 : index
    %50 = vector.load %arg11[%c0_70, %c0_71, %c224] : memref<8x8x288xf32, #tpu.memory_space<vmem>>, vector<8x8x32xf32>
    tpu.vector_store %arg11[%c0_70, %c0_71, %c224], %49 {strides = array<i32>} : memref<8x8x288xf32, #tpu.memory_space<vmem>>, vector<8x8x32xf32>,
    %c2_72 = arith.constant 2 : index
    %c2_73 = arith.constant 2 : index
    %c0_74 = arith.constant 0 : index
    %51 = vector.load %arg10[%c2_72, %c2_73, %c0_74] : memref<10x10x32xf32, #tpu.memory_space<vmem>>, vector<8x8x32xf32>
    %c0_75 = arith.constant 0 : index
    %c0_76 = arith.constant 0 : index
    %c256 = arith.constant 256 : index
    %52 = vector.load %arg11[%c0_75, %c0_76, %c256] : memref<8x8x288xf32, #tpu.memory_space<vmem>>, vector<8x8x32xf32>
    tpu.vector_store %arg11[%c0_75, %c0_76, %c256], %51 {strides = array<i32>} : memref<8x8x288xf32, #tpu.memory_space<vmem>>, vector<8x8x32xf32>,
    %c0_77 = arith.constant 0 : index
    %c0_78 = arith.constant 0 : index
    %c0_79 = arith.constant 0 : index
    %53 = vector.load %arg11[%c0_77, %c0_78, %c0_79] : memref<8x8x288xf32, #tpu.memory_space<vmem>>, vector<8x8x288xf32>
    %54 = vector.shape_cast %53 : vector<8x8x288xf32> to vector<64x288xf32>
    %55 = arith.truncf %54 : vector<64x288xf32> to vector<64x288xbf16>
    %c0_80 = arith.constant 0 : index
    %c0_81 = arith.constant 0 : index
    %c0_82 = arith.constant 0 : index
    %56 = vector.load %arg7[%c0_80, %c0_81, %c0_82] : memref<2x288x8xbf16, #tpu.memory_space<vmem>>, vector<1x288x8xbf16>
    %57 = vector.shape_cast %56 : vector<1x288x8xbf16> to vector<288x8xbf16>
    %cst_83 = arith.constant dense<0.000000e+00> : vector<64x8xf32>
    %58 = tpu.matmul %55, %57, %cst_83 {dimension_numbers = #tpu.dot_dimension_numbers<[1], [0], [0], [1], [0, 0, 1, 1], [], []>} : vector<64x288xbf16>, vector<288x8xbf16>, vector<64x8xf32> -> vector<64x8xf32>
    %c0_84 = arith.constant 0 : index
    %c16 = arith.constant 16 : index
    %59 = vector.load %arg9[%c0_84, %c16] : memref<64x32xf32, #tpu.memory_space<vmem>>, vector<64x8xf32>
    tpu.vector_store %arg9[%c0_84, %c16], %58 {strides = array<i32>} : memref<64x32xf32, #tpu.memory_space<vmem>>, vector<64x8xf32>,
    %c0_85 = arith.constant 0 : index
    %c0_86 = arith.constant 0 : index
    %60 = vector.load %arg9[%c0_85, %c0_86] : memref<64x32xf32, #tpu.memory_space<vmem>>, vector<64x32xf32>
    %c1_87 = arith.constant 1 : index
    %c0_88 = arith.constant 0 : index
    %c0_89 = arith.constant 0 : index
    %61 = vector.load %arg2[%c1_87, %c0_88, %c0_89] : memref<2x1x32xf32, #tpu.memory_space<vmem>>, vector<1x1x32xf32>
    %62 = vector.shape_cast %61 : vector<1x1x32xf32> to vector<1x32xf32>
    %63 = vector.broadcast %62 : vector<1x32xf32> to vector<64x32xf32>
    %64 = arith.mulf %60, %63 : vector<64x32xf32>
    %c1_90 = arith.constant 1 : index
    %c0_91 = arith.constant 0 : index
    %c0_92 = arith.constant 0 : index
    %65 = vector.load %arg3[%c1_90, %c0_91, %c0_92] : memref<2x1x32xf32, #tpu.memory_space<vmem>>, vector<1x1x32xf32>
    %66 = vector.shape_cast %65 : vector<1x1x32xf32> to vector<1x32xf32>
    %67 = vector.broadcast %66 : vector<1x32xf32> to vector<64x32xf32>
    %68 = arith.addf %64, %67 : vector<64x32xf32>
    %cst_93 = arith.constant 0.000000e+00 : f32
    %69 = vector.broadcast %cst_93 : f32 to vector<64x32xf32>
    %70 = arith.maximumf %68, %69 : vector<64x32xf32>
    %71 = arith.truncf %70 : vector<64x32xf32> to vector<64x32xbf16>
    %c1_94 = arith.constant 1 : index
    %c0_95 = arith.constant 0 : index
    %c0_96 = arith.constant 0 : index
    %72 = vector.load %arg4[%c1_94, %c0_95, %c0_96] : memref<2x32x32xbf16, #tpu.memory_space<vmem>>, vector<1x32x32xbf16>
    %73 = vector.shape_cast %72 : vector<1x32x32xbf16> to vector<32x32xbf16>
    %cst_97 = arith.constant dense<0.000000e+00> : vector<64x32xf32>
    %74 = tpu.matmul %71, %73, %cst_97 {dimension_numbers = #tpu.dot_dimension_numbers<[1], [0], [0], [1], [0, 0, 1, 1], [], []>} : vector<64x32xbf16>, vector<32x32xbf16>, vector<64x32xf32> -> vector<64x32xf32>
    %c1_98 = arith.constant 1 : index
    %c0_99 = arith.constant 0 : index
    %c0_100 = arith.constant 0 : index
    %75 = vector.load %arg5[%c1_98, %c0_99, %c0_100] : memref<2x1x32xf32, #tpu.memory_space<vmem>>, vector<1x1x32xf32>
    %76 = vector.shape_cast %75 : vector<1x1x32xf32> to vector<1x32xf32>
    %77 = vector.broadcast %76 : vector<1x32xf32> to vector<64x32xf32>
    %78 = arith.mulf %74, %77 : vector<64x32xf32>
    %c1_101 = arith.constant 1 : index
    %c0_102 = arith.constant 0 : index
    %c0_103 = arith.constant 0 : index
    %79 = vector.load %arg6[%c1_101, %c0_102, %c0_103] : memref<2x1x32xf32, #tpu.memory_space<vmem>>, vector<1x1x32xf32>
    %80 = vector.shape_cast %79 : vector<1x1x32xf32> to vector<1x32xf32>
    %81 = vector.broadcast %80 : vector<1x32xf32> to vector<64x32xf32>
    %82 = arith.addf %78, %81 : vector<64x32xf32>
    %cst_104 = arith.constant 0.000000e+00 : f32
    %83 = vector.broadcast %cst_104 : f32 to vector<64x32xf32>
    %84 = arith.maximumf %82, %83 : vector<64x32xf32>
    %85 = vector.shape_cast %84 : vector<64x32xf32> to vector<8x8x32xf32>
    %c1_105 = arith.constant 1 : index
    %c1_106 = arith.constant 1 : index
    %c0_107 = arith.constant 0 : index
    %86 = vector.load %arg10[%c1_105, %c1_106, %c0_107] : memref<10x10x32xf32, #tpu.memory_space<vmem>>, vector<8x8x32xf32>
    tpu.vector_store %arg10[%c1_105, %c1_106, %c0_107], %85 {strides = array<i32>} : memref<10x10x32xf32, #tpu.memory_space<vmem>>, vector<8x8x32xf32>,
    %c0_108 = arith.constant 0 : index
    %c0_109 = arith.constant 0 : index
    %c0_110 = arith.constant 0 : index
    %87 = vector.load %arg10[%c0_108, %c0_109, %c0_110] : memref<10x10x32xf32, #tpu.memory_space<vmem>>, vector<8x8x32xf32>
    %c0_111 = arith.constant 0 : index
    %c0_112 = arith.constant 0 : index
    %c0_113 = arith.constant 0 : index
    %88 = vector.load %arg11[%c0_111, %c0_112, %c0_113] : memref<8x8x288xf32, #tpu.memory_space<vmem>>, vector<8x8x32xf32>
    tpu.vector_store %arg11[%c0_111, %c0_112, %c0_113], %87 {strides = array<i32>} : memref<8x8x288xf32, #tpu.memory_space<vmem>>, vector<8x8x32xf32>,
    %c0_114 = arith.constant 0 : index
    %c1_115 = arith.constant 1 : index
    %c0_116 = arith.constant 0 : index
    %89 = vector.load %arg10[%c0_114, %c1_115, %c0_116] : memref<10x10x32xf32, #tpu.memory_space<vmem>>, vector<8x8x32xf32>
    %c0_117 = arith.constant 0 : index
    %c0_118 = arith.constant 0 : index
    %c32_119 = arith.constant 32 : index
    %90 = vector.load %arg11[%c0_117, %c0_118, %c32_119] : memref<8x8x288xf32, #tpu.memory_space<vmem>>, vector<8x8x32xf32>
    tpu.vector_store %arg11[%c0_117, %c0_118, %c32_119], %89 {strides = array<i32>} : memref<8x8x288xf32, #tpu.memory_space<vmem>>, vector<8x8x32xf32>,
    %c0_120 = arith.constant 0 : index
    %c2_121 = arith.constant 2 : index
    %c0_122 = arith.constant 0 : index
    %91 = vector.load %arg10[%c0_120, %c2_121, %c0_122] : memref<10x10x32xf32, #tpu.memory_space<vmem>>, vector<8x8x32xf32>
    %c0_123 = arith.constant 0 : index
    %c0_124 = arith.constant 0 : index
    %c64_125 = arith.constant 64 : index
    %92 = vector.load %arg11[%c0_123, %c0_124, %c64_125] : memref<8x8x288xf32, #tpu.memory_space<vmem>>, vector<8x8x32xf32>
    tpu.vector_store %arg11[%c0_123, %c0_124, %c64_125], %91 {strides = array<i32>} : memref<8x8x288xf32, #tpu.memory_space<vmem>>, vector<8x8x32xf32>,
    %c1_126 = arith.constant 1 : index
    %c0_127 = arith.constant 0 : index
    %c0_128 = arith.constant 0 : index
    %93 = vector.load %arg10[%c1_126, %c0_127, %c0_128] : memref<10x10x32xf32, #tpu.memory_space<vmem>>, vector<8x8x32xf32>
    %c0_129 = arith.constant 0 : index
    %c0_130 = arith.constant 0 : index
    %c96_131 = arith.constant 96 : index
    %94 = vector.load %arg11[%c0_129, %c0_130, %c96_131] : memref<8x8x288xf32, #tpu.memory_space<vmem>>, vector<8x8x32xf32>
    tpu.vector_store %arg11[%c0_129, %c0_130, %c96_131], %93 {strides = array<i32>} : memref<8x8x288xf32, #tpu.memory_space<vmem>>, vector<8x8x32xf32>,
    %c1_132 = arith.constant 1 : index
    %c1_133 = arith.constant 1 : index
    %c0_134 = arith.constant 0 : index
    %95 = vector.load %arg10[%c1_132, %c1_133, %c0_134] : memref<10x10x32xf32, #tpu.memory_space<vmem>>, vector<8x8x32xf32>
    %c0_135 = arith.constant 0 : index
    %c0_136 = arith.constant 0 : index
    %c128_137 = arith.constant 128 : index
    %96 = vector.load %arg11[%c0_135, %c0_136, %c128_137] : memref<8x8x288xf32, #tpu.memory_space<vmem>>, vector<8x8x32xf32>
    tpu.vector_store %arg11[%c0_135, %c0_136, %c128_137], %95 {strides = array<i32>} : memref<8x8x288xf32, #tpu.memory_space<vmem>>, vector<8x8x32xf32>,
    %c1_138 = arith.constant 1 : index
    %c2_139 = arith.constant 2 : index
    %c0_140 = arith.constant 0 : index
    %97 = vector.load %arg10[%c1_138, %c2_139, %c0_140] : memref<10x10x32xf32, #tpu.memory_space<vmem>>, vector<8x8x32xf32>
    %c0_141 = arith.constant 0 : index
    %c0_142 = arith.constant 0 : index
    %c160_143 = arith.constant 160 : index
    %98 = vector.load %arg11[%c0_141, %c0_142, %c160_143] : memref<8x8x288xf32, #tpu.memory_space<vmem>>, vector<8x8x32xf32>
    tpu.vector_store %arg11[%c0_141, %c0_142, %c160_143], %97 {strides = array<i32>} : memref<8x8x288xf32, #tpu.memory_space<vmem>>, vector<8x8x32xf32>,
    %c2_144 = arith.constant 2 : index
    %c0_145 = arith.constant 0 : index
    %c0_146 = arith.constant 0 : index
    %99 = vector.load %arg10[%c2_144, %c0_145, %c0_146] : memref<10x10x32xf32, #tpu.memory_space<vmem>>, vector<8x8x32xf32>
    %c0_147 = arith.constant 0 : index
    %c0_148 = arith.constant 0 : index
    %c192_149 = arith.constant 192 : index
    %100 = vector.load %arg11[%c0_147, %c0_148, %c192_149] : memref<8x8x288xf32, #tpu.memory_space<vmem>>, vector<8x8x32xf32>
    tpu.vector_store %arg11[%c0_147, %c0_148, %c192_149], %99 {strides = array<i32>} : memref<8x8x288xf32, #tpu.memory_space<vmem>>, vector<8x8x32xf32>,
    %c2_150 = arith.constant 2 : index
    %c1_151 = arith.constant 1 : index
    %c0_152 = arith.constant 0 : index
    %101 = vector.load %arg10[%c2_150, %c1_151, %c0_152] : memref<10x10x32xf32, #tpu.memory_space<vmem>>, vector<8x8x32xf32>
    %c0_153 = arith.constant 0 : index
    %c0_154 = arith.constant 0 : index
    %c224_155 = arith.constant 224 : index
    %102 = vector.load %arg11[%c0_153, %c0_154, %c224_155] : memref<8x8x288xf32, #tpu.memory_space<vmem>>, vector<8x8x32xf32>
    tpu.vector_store %arg11[%c0_153, %c0_154, %c224_155], %101 {strides = array<i32>} : memref<8x8x288xf32, #tpu.memory_space<vmem>>, vector<8x8x32xf32>,
    %c2_156 = arith.constant 2 : index
    %c2_157 = arith.constant 2 : index
    %c0_158 = arith.constant 0 : index
    %103 = vector.load %arg10[%c2_156, %c2_157, %c0_158] : memref<10x10x32xf32, #tpu.memory_space<vmem>>, vector<8x8x32xf32>
    %c0_159 = arith.constant 0 : index
    %c0_160 = arith.constant 0 : index
    %c256_161 = arith.constant 256 : index
    %104 = vector.load %arg11[%c0_159, %c0_160, %c256_161] : memref<8x8x288xf32, #tpu.memory_space<vmem>>, vector<8x8x32xf32>
    tpu.vector_store %arg11[%c0_159, %c0_160, %c256_161], %103 {strides = array<i32>} : memref<8x8x288xf32, #tpu.memory_space<vmem>>, vector<8x8x32xf32>,
    %c0_162 = arith.constant 0 : index
    %c0_163 = arith.constant 0 : index
    %c0_164 = arith.constant 0 : index
    %105 = vector.load %arg11[%c0_162, %c0_163, %c0_164] : memref<8x8x288xf32, #tpu.memory_space<vmem>>, vector<8x8x288xf32>
    %106 = vector.shape_cast %105 : vector<8x8x288xf32> to vector<64x288xf32>
    %107 = arith.truncf %106 : vector<64x288xf32> to vector<64x288xbf16>
    %c1_165 = arith.constant 1 : index
    %c0_166 = arith.constant 0 : index
    %c0_167 = arith.constant 0 : index
    %108 = vector.load %arg7[%c1_165, %c0_166, %c0_167] : memref<2x288x8xbf16, #tpu.memory_space<vmem>>, vector<1x288x8xbf16>
    %109 = vector.shape_cast %108 : vector<1x288x8xbf16> to vector<288x8xbf16>
    %cst_168 = arith.constant dense<0.000000e+00> : vector<64x8xf32>
    %110 = tpu.matmul %107, %109, %cst_168 {dimension_numbers = #tpu.dot_dimension_numbers<[1], [0], [0], [1], [0, 0, 1, 1], [], []>} : vector<64x288xbf16>, vector<288x8xbf16>, vector<64x8xf32> -> vector<64x8xf32>
    %c0_169 = arith.constant 0 : index
    %c24 = arith.constant 24 : index
    %111 = vector.load %arg9[%c0_169, %c24] : memref<64x32xf32, #tpu.memory_space<vmem>>, vector<64x8xf32>
    tpu.vector_store %arg9[%c0_169, %c24], %110 {strides = array<i32>} : memref<64x32xf32, #tpu.memory_space<vmem>>, vector<64x8xf32>,
    %c0_170 = arith.constant 0 : index
    %c0_171 = arith.constant 0 : index
    %112 = vector.load %arg9[%c0_170, %c0_171] : memref<64x32xf32, #tpu.memory_space<vmem>>, vector<64x32xf32>
    %113 = vector.shape_cast %112 : vector<64x32xf32> to vector<1x64x32xf32>
    %114 = arith.truncf %113 : vector<1x64x32xf32> to vector<1x64x32xbf16>
    %c0_172 = arith.constant 0 : index
    %c0_173 = arith.constant 0 : index
    %c0_174 = arith.constant 0 : index
    %115 = vector.load %arg8[%c0_172, %c0_173, %c0_174] : memref<1x64x32xbf16, #tpu.memory_space<vmem>>, vector<1x64x32xbf16>
    tpu.vector_store %arg8[%c0_172, %c0_173, %c0_174], %114 {strides = array<i32>} : memref<1x64x32xbf16, #tpu.memory_space<vmem>>, vector<1x64x32xbf16>,
    return
  }
  func.func @transform_0(%arg0: i32) -> (i32, i32, i32) {
    %c0_i32 = arith.constant 0 : i32
    %c0_i32_0 = arith.constant 0 : i32
    %c0_i32_1 = arith.constant 0 : i32
    return %arg0, %c0_i32, %c0_i32_0 : i32, i32, i32
  }
  func.func @transform_1(%arg0: i32) -> (i32, i32, i32) {
    %c0_i32 = arith.constant 0 : i32
    %c0_i32_0 = arith.constant 0 : i32
    %c0_i32_1 = arith.constant 0 : i32
    %c0_i32_2 = arith.constant 0 : i32
    return %c0_i32, %c0_i32_0, %c0_i32_1 : i32, i32, i32
  }
  func.func @transform_2(%arg0: i32) -> (i32, i32, i32) {
    %c0_i32 = arith.constant 0 : i32
    %c0_i32_0 = arith.constant 0 : i32
    %c0_i32_1 = arith.constant 0 : i32
    %c0_i32_2 = arith.constant 0 : i32
    return %c0_i32, %c0_i32_0, %c0_i32_1 : i32, i32, i32
  }
  func.func @transform_3(%arg0: i32) -> (i32, i32, i32) {
    %c0_i32 = arith.constant 0 : i32
    %c0_i32_0 = arith.constant 0 : i32
    %c0_i32_1 = arith.constant 0 : i32
    %c0_i32_2 = arith.constant 0 : i32
    return %c0_i32, %c0_i32_0, %c0_i32_1 : i32, i32, i32
  }
  func.func @transform_4(%arg0: i32) -> (i32, i32, i32) {
    %c0_i32 = arith.constant 0 : i32
    %c0_i32_0 = arith.constant 0 : i32
    %c0_i32_1 = arith.constant 0 : i32
    %c0_i32_2 = arith.constant 0 : i32
    return %c0_i32, %c0_i32_0, %c0_i32_1 : i32, i32, i32
  }
  func.func @transform_5(%arg0: i32) -> (i32, i32, i32) {
    %c0_i32 = arith.constant 0 : i32
    %c0_i32_0 = arith.constant 0 : i32
    %c0_i32_1 = arith.constant 0 : i32
    %c0_i32_2 = arith.constant 0 : i32
    return %c0_i32, %c0_i32_0, %c0_i32_1 : i32, i32, i32
  }
  func.func @transform_6(%arg0: i32) -> (i32, i32, i32) {
    %c0_i32 = arith.constant 0 : i32
    %c0_i32_0 = arith.constant 0 : i32
    %c0_i32_1 = arith.constant 0 : i32
    %c0_i32_2 = arith.constant 0 : i32
    return %c0_i32, %c0_i32_0, %c0_i32_1 : i32, i32, i32
  }
  func.func @transform_7(%arg0: i32) -> (i32, i32, i32) {
    %c0_i32 = arith.constant 0 : i32
    %c0_i32_0 = arith.constant 0 : i32
    %c0_i32_1 = arith.constant 0 : i32
    return %arg0, %c0_i32, %c0_i32_0 : i32, i32, i32
  }
}

module attributes {stable_mosaic.version = 11 : i64} {
  func.func @_transition_kernel(%arg0: i32, %arg1: memref<1x64x32xbf16, #tpu.memory_space<vmem>>, %arg2: memref<1x32xf32, #tpu.memory_space<vmem>>, %arg3: memref<1x32xf32, #tpu.memory_space<vmem>>, %arg4: memref<32x16xbf16, #tpu.memory_space<vmem>>, %arg5: memref<1x16x16xbf16, #tpu.memory_space<vmem>>) attributes {dimension_semantics = [#tpu.dimension_semantics<parallel>], iteration_bounds = array<i64: 2>, scalar_prefetch = 0 : i64, scratch_operands = 0 : i64, tpu.core_type = #tpu.core_type<tc>, window_params = [{transform_indices = @transform_0, window_bounds = array<i64: 1, 64, 32>}, {pipeline_mode = #tpu.pipeline_mode<synchronous>, transform_indices = @transform_1, window_bounds = array<i64: 1, 32>}, {pipeline_mode = #tpu.pipeline_mode<synchronous>, transform_indices = @transform_2, window_bounds = array<i64: 1, 32>}, {pipeline_mode = #tpu.pipeline_mode<synchronous>, transform_indices = @transform_3, window_bounds = array<i64: 32, 16>}, {transform_indices = @transform_4, window_bounds = array<i64: 1, 16, 16>}]} {
    %c0 = arith.constant 0 : index
    %c0_0 = arith.constant 0 : index
    %c0_1 = arith.constant 0 : index
    %0 = vector.load %arg1[%c0, %c0_0, %c0_1] : memref<1x64x32xbf16, #tpu.memory_space<vmem>>, vector<1x64x32xbf16>
    %1 = vector.shape_cast %0 : vector<1x64x32xbf16> to vector<64x32xbf16>
    %2 = arith.extf %1 : vector<64x32xbf16> to vector<64x32xf32>
    %c0_2 = arith.constant 0 : index
    %c0_3 = arith.constant 0 : index
    %3 = vector.load %arg2[%c0_2, %c0_3] : memref<1x32xf32, #tpu.memory_space<vmem>>, vector<1x32xf32>
    %4 = vector.broadcast %3 : vector<1x32xf32> to vector<64x32xf32>
    %5 = arith.mulf %2, %4 : vector<64x32xf32>
    %c0_4 = arith.constant 0 : index
    %c0_5 = arith.constant 0 : index
    %6 = vector.load %arg3[%c0_4, %c0_5] : memref<1x32xf32, #tpu.memory_space<vmem>>, vector<1x32xf32>
    %7 = vector.broadcast %6 : vector<1x32xf32> to vector<64x32xf32>
    %8 = arith.addf %5, %7 : vector<64x32xf32>
    %cst = arith.constant 0.000000e+00 : f32
    %9 = vector.broadcast %cst : f32 to vector<64x32xf32>
    %10 = arith.maximumf %8, %9 : vector<64x32xf32>
    %11 = arith.truncf %10 : vector<64x32xf32> to vector<64x32xbf16>
    %c0_6 = arith.constant 0 : index
    %c0_7 = arith.constant 0 : index
    %12 = vector.load %arg4[%c0_6, %c0_7] : memref<32x16xbf16, #tpu.memory_space<vmem>>, vector<32x16xbf16>
    %cst_8 = arith.constant dense<0.000000e+00> : vector<64x16xf32>
    %13 = tpu.matmul %11, %12, %cst_8 {dimension_numbers = #tpu.dot_dimension_numbers<[1], [0], [0], [1], [0, 0, 1, 1], [], []>} : vector<64x32xbf16>, vector<32x16xbf16>, vector<64x16xf32> -> vector<64x16xf32>
    %14 = vector.shape_cast %13 : vector<64x16xf32> to vector<4x2x4x2x16xf32>
    %15 = vector.extract_strided_slice %14 {offsets = [0, 0, 0, 0, 0], sizes = [4, 1, 4, 1, 16], strides = [1, 1, 1, 1, 1]} : vector<4x2x4x2x16xf32> to vector<4x1x4x1x16xf32>
    %16 = vector.shape_cast %15 : vector<4x1x4x1x16xf32> to vector<4x4x16xf32>
    %17 = vector.extract_strided_slice %14 {offsets = [0, 0, 0, 1, 0], sizes = [4, 1, 4, 1, 16], strides = [1, 1, 1, 1, 1]} : vector<4x2x4x2x16xf32> to vector<4x1x4x1x16xf32>
    %18 = vector.shape_cast %17 : vector<4x1x4x1x16xf32> to vector<4x4x16xf32>
    %19 = arith.addf %16, %18 : vector<4x4x16xf32>
    %20 = vector.extract_strided_slice %14 {offsets = [0, 1, 0, 0, 0], sizes = [4, 1, 4, 1, 16], strides = [1, 1, 1, 1, 1]} : vector<4x2x4x2x16xf32> to vector<4x1x4x1x16xf32>
    %21 = vector.shape_cast %20 : vector<4x1x4x1x16xf32> to vector<4x4x16xf32>
    %22 = arith.addf %19, %21 : vector<4x4x16xf32>
    %23 = vector.extract_strided_slice %14 {offsets = [0, 1, 0, 1, 0], sizes = [4, 1, 4, 1, 16], strides = [1, 1, 1, 1, 1]} : vector<4x2x4x2x16xf32> to vector<4x1x4x1x16xf32>
    %24 = vector.shape_cast %23 : vector<4x1x4x1x16xf32> to vector<4x4x16xf32>
    %25 = arith.addf %22, %24 : vector<4x4x16xf32>
    %cst_9 = arith.constant 2.500000e-01 : f32
    %26 = vector.broadcast %cst_9 : f32 to vector<4x4x16xf32>
    %27 = arith.mulf %25, %26 : vector<4x4x16xf32>
    %28 = vector.shape_cast %27 : vector<4x4x16xf32> to vector<1x16x16xf32>
    %29 = arith.truncf %28 : vector<1x16x16xf32> to vector<1x16x16xbf16>
    %c0_10 = arith.constant 0 : index
    %c0_11 = arith.constant 0 : index
    %c0_12 = arith.constant 0 : index
    %30 = vector.load %arg5[%c0_10, %c0_11, %c0_12] : memref<1x16x16xbf16, #tpu.memory_space<vmem>>, vector<1x16x16xbf16>
    tpu.vector_store %arg5[%c0_10, %c0_11, %c0_12], %29 {strides = array<i32>} : memref<1x16x16xbf16, #tpu.memory_space<vmem>>, vector<1x16x16xbf16>,
    return
  }
  func.func @transform_0(%arg0: i32) -> (i32, i32, i32) {
    %c0_i32 = arith.constant 0 : i32
    %c0_i32_0 = arith.constant 0 : i32
    %c0_i32_1 = arith.constant 0 : i32
    return %arg0, %c0_i32, %c0_i32_0 : i32, i32, i32
  }
  func.func @transform_1(%arg0: i32) -> (i32, i32) {
    %c0_i32 = arith.constant 0 : i32
    %c0_i32_0 = arith.constant 0 : i32
    %c0_i32_1 = arith.constant 0 : i32
    return %c0_i32, %c0_i32_0 : i32, i32
  }
  func.func @transform_2(%arg0: i32) -> (i32, i32) {
    %c0_i32 = arith.constant 0 : i32
    %c0_i32_0 = arith.constant 0 : i32
    %c0_i32_1 = arith.constant 0 : i32
    return %c0_i32, %c0_i32_0 : i32, i32
  }
  func.func @transform_3(%arg0: i32) -> (i32, i32) {
    %c0_i32 = arith.constant 0 : i32
    %c0_i32_0 = arith.constant 0 : i32
    %c0_i32_1 = arith.constant 0 : i32
    return %c0_i32, %c0_i32_0 : i32, i32
  }
  func.func @transform_4(%arg0: i32) -> (i32, i32, i32) {
    %c0_i32 = arith.constant 0 : i32
    %c0_i32_0 = arith.constant 0 : i32
    %c0_i32_1 = arith.constant 0 : i32
    return %arg0, %c0_i32, %c0_i32_0 : i32, i32, i32
  }
}

module attributes {stable_mosaic.version = 11 : i64} {
  func.func @_dense_block_kernel(%arg0: i32, %arg1: memref<1x16x16xbf16, #tpu.memory_space<vmem>>, %arg2: memref<2x1x32xf32, #tpu.memory_space<vmem>>, %arg3: memref<2x1x32xf32, #tpu.memory_space<vmem>>, %arg4: memref<2x32x32xbf16, #tpu.memory_space<vmem>>, %arg5: memref<2x1x32xf32, #tpu.memory_space<vmem>>, %arg6: memref<2x1x32xf32, #tpu.memory_space<vmem>>, %arg7: memref<2x288x8xbf16, #tpu.memory_space<vmem>>, %arg8: memref<1x16x32xbf16, #tpu.memory_space<vmem>>, %arg9: memref<16x32xf32, #tpu.memory_space<vmem>>, %arg10: memref<6x6x32xf32, #tpu.memory_space<vmem>>, %arg11: memref<4x4x288xf32, #tpu.memory_space<vmem>>) attributes {dimension_semantics = [#tpu.dimension_semantics<parallel>], iteration_bounds = array<i64: 2>, scalar_prefetch = 0 : i64, scratch_operands = 3 : i64, tpu.core_type = #tpu.core_type<tc>, window_params = [{transform_indices = @transform_0, window_bounds = array<i64: 1, 16, 16>}, {pipeline_mode = #tpu.pipeline_mode<synchronous>, transform_indices = @transform_1, window_bounds = array<i64: 2, 1, 32>}, {pipeline_mode = #tpu.pipeline_mode<synchronous>, transform_indices = @transform_2, window_bounds = array<i64: 2, 1, 32>}, {pipeline_mode = #tpu.pipeline_mode<synchronous>, transform_indices = @transform_3, window_bounds = array<i64: 2, 32, 32>}, {pipeline_mode = #tpu.pipeline_mode<synchronous>, transform_indices = @transform_4, window_bounds = array<i64: 2, 1, 32>}, {pipeline_mode = #tpu.pipeline_mode<synchronous>, transform_indices = @transform_5, window_bounds = array<i64: 2, 1, 32>}, {pipeline_mode = #tpu.pipeline_mode<synchronous>, transform_indices = @transform_6, window_bounds = array<i64: 2, 288, 8>}, {transform_indices = @transform_7, window_bounds = array<i64: 1, 16, 32>}]} {
    %cst = arith.constant 0.000000e+00 : f32
    %0 = vector.broadcast %cst : f32 to vector<16x32xf32>
    %c0 = arith.constant 0 : index
    %c0_0 = arith.constant 0 : index
    %1 = vector.load %arg9[%c0, %c0_0] : memref<16x32xf32, #tpu.memory_space<vmem>>, vector<16x32xf32>
    tpu.vector_store %arg9[%c0, %c0_0], %0 {strides = array<i32>} : memref<16x32xf32, #tpu.memory_space<vmem>>, vector<16x32xf32>,
    %cst_1 = arith.constant 0.000000e+00 : f32
    %2 = vector.broadcast %cst_1 : f32 to vector<6x6x32xf32>
    %c0_2 = arith.constant 0 : index
    %c0_3 = arith.constant 0 : index
    %c0_4 = arith.constant 0 : index
    %3 = vector.load %arg10[%c0_2, %c0_3, %c0_4] : memref<6x6x32xf32, #tpu.memory_space<vmem>>, vector<6x6x32xf32>
    tpu.vector_store %arg10[%c0_2, %c0_3, %c0_4], %2 {strides = array<i32>} : memref<6x6x32xf32, #tpu.memory_space<vmem>>, vector<6x6x32xf32>,
    %c0_5 = arith.constant 0 : index
    %c0_6 = arith.constant 0 : index
    %c0_7 = arith.constant 0 : index
    %4 = vector.load %arg1[%c0_5, %c0_6, %c0_7] : memref<1x16x16xbf16, #tpu.memory_space<vmem>>, vector<1x16x16xbf16>
    %5 = vector.shape_cast %4 : vector<1x16x16xbf16> to vector<16x16xbf16>
    %6 = arith.extf %5 : vector<16x16xbf16> to vector<16x16xf32>
    %c0_8 = arith.constant 0 : index
    %c0_9 = arith.constant 0 : index
    %7 = vector.load %arg9[%c0_8, %c0_9] : memref<16x32xf32, #tpu.memory_space<vmem>>, vector<16x16xf32>
    tpu.vector_store %arg9[%c0_8, %c0_9], %6 {strides = array<i32>} : memref<16x32xf32, #tpu.memory_space<vmem>>, vector<16x16xf32>,
    %c0_10 = arith.constant 0 : index
    %c0_11 = arith.constant 0 : index
    %8 = vector.load %arg9[%c0_10, %c0_11] : memref<16x32xf32, #tpu.memory_space<vmem>>, vector<16x32xf32>
    %c0_12 = arith.constant 0 : index
    %c0_13 = arith.constant 0 : index
    %c0_14 = arith.constant 0 : index
    %9 = vector.load %arg2[%c0_12, %c0_13, %c0_14] : memref<2x1x32xf32, #tpu.memory_space<vmem>>, vector<1x1x32xf32>
    %10 = vector.shape_cast %9 : vector<1x1x32xf32> to vector<1x32xf32>
    %11 = vector.broadcast %10 : vector<1x32xf32> to vector<16x32xf32>
    %12 = arith.mulf %8, %11 : vector<16x32xf32>
    %c0_15 = arith.constant 0 : index
    %c0_16 = arith.constant 0 : index
    %c0_17 = arith.constant 0 : index
    %13 = vector.load %arg3[%c0_15, %c0_16, %c0_17] : memref<2x1x32xf32, #tpu.memory_space<vmem>>, vector<1x1x32xf32>
    %14 = vector.shape_cast %13 : vector<1x1x32xf32> to vector<1x32xf32>
    %15 = vector.broadcast %14 : vector<1x32xf32> to vector<16x32xf32>
    %16 = arith.addf %12, %15 : vector<16x32xf32>
    %cst_18 = arith.constant 0.000000e+00 : f32
    %17 = vector.broadcast %cst_18 : f32 to vector<16x32xf32>
    %18 = arith.maximumf %16, %17 : vector<16x32xf32>
    %19 = arith.truncf %18 : vector<16x32xf32> to vector<16x32xbf16>
    %c0_19 = arith.constant 0 : index
    %c0_20 = arith.constant 0 : index
    %c0_21 = arith.constant 0 : index
    %20 = vector.load %arg4[%c0_19, %c0_20, %c0_21] : memref<2x32x32xbf16, #tpu.memory_space<vmem>>, vector<1x32x32xbf16>
    %21 = vector.shape_cast %20 : vector<1x32x32xbf16> to vector<32x32xbf16>
    %cst_22 = arith.constant dense<0.000000e+00> : vector<16x32xf32>
    %22 = tpu.matmul %19, %21, %cst_22 {dimension_numbers = #tpu.dot_dimension_numbers<[1], [0], [0], [1], [0, 0, 1, 1], [], []>} : vector<16x32xbf16>, vector<32x32xbf16>, vector<16x32xf32> -> vector<16x32xf32>
    %c0_23 = arith.constant 0 : index
    %c0_24 = arith.constant 0 : index
    %c0_25 = arith.constant 0 : index
    %23 = vector.load %arg5[%c0_23, %c0_24, %c0_25] : memref<2x1x32xf32, #tpu.memory_space<vmem>>, vector<1x1x32xf32>
    %24 = vector.shape_cast %23 : vector<1x1x32xf32> to vector<1x32xf32>
    %25 = vector.broadcast %24 : vector<1x32xf32> to vector<16x32xf32>
    %26 = arith.mulf %22, %25 : vector<16x32xf32>
    %c0_26 = arith.constant 0 : index
    %c0_27 = arith.constant 0 : index
    %c0_28 = arith.constant 0 : index
    %27 = vector.load %arg6[%c0_26, %c0_27, %c0_28] : memref<2x1x32xf32, #tpu.memory_space<vmem>>, vector<1x1x32xf32>
    %28 = vector.shape_cast %27 : vector<1x1x32xf32> to vector<1x32xf32>
    %29 = vector.broadcast %28 : vector<1x32xf32> to vector<16x32xf32>
    %30 = arith.addf %26, %29 : vector<16x32xf32>
    %cst_29 = arith.constant 0.000000e+00 : f32
    %31 = vector.broadcast %cst_29 : f32 to vector<16x32xf32>
    %32 = arith.maximumf %30, %31 : vector<16x32xf32>
    %33 = vector.shape_cast %32 : vector<16x32xf32> to vector<4x4x32xf32>
    %c1 = arith.constant 1 : index
    %c1_30 = arith.constant 1 : index
    %c0_31 = arith.constant 0 : index
    %34 = vector.load %arg10[%c1, %c1_30, %c0_31] : memref<6x6x32xf32, #tpu.memory_space<vmem>>, vector<4x4x32xf32>
    tpu.vector_store %arg10[%c1, %c1_30, %c0_31], %33 {strides = array<i32>} : memref<6x6x32xf32, #tpu.memory_space<vmem>>, vector<4x4x32xf32>,
    %c0_32 = arith.constant 0 : index
    %c0_33 = arith.constant 0 : index
    %c0_34 = arith.constant 0 : index
    %35 = vector.load %arg10[%c0_32, %c0_33, %c0_34] : memref<6x6x32xf32, #tpu.memory_space<vmem>>, vector<4x4x32xf32>
    %c0_35 = arith.constant 0 : index
    %c0_36 = arith.constant 0 : index
    %c0_37 = arith.constant 0 : index
    %36 = vector.load %arg11[%c0_35, %c0_36, %c0_37] : memref<4x4x288xf32, #tpu.memory_space<vmem>>, vector<4x4x32xf32>
    tpu.vector_store %arg11[%c0_35, %c0_36, %c0_37], %35 {strides = array<i32>} : memref<4x4x288xf32, #tpu.memory_space<vmem>>, vector<4x4x32xf32>,
    %c0_38 = arith.constant 0 : index
    %c1_39 = arith.constant 1 : index
    %c0_40 = arith.constant 0 : index
    %37 = vector.load %arg10[%c0_38, %c1_39, %c0_40] : memref<6x6x32xf32, #tpu.memory_space<vmem>>, vector<4x4x32xf32>
    %c0_41 = arith.constant 0 : index
    %c0_42 = arith.constant 0 : index
    %c32 = arith.constant 32 : index
    %38 = vector.load %arg11[%c0_41, %c0_42, %c32] : memref<4x4x288xf32, #tpu.memory_space<vmem>>, vector<4x4x32xf32>
    tpu.vector_store %arg11[%c0_41, %c0_42, %c32], %37 {strides = array<i32>} : memref<4x4x288xf32, #tpu.memory_space<vmem>>, vector<4x4x32xf32>,
    %c0_43 = arith.constant 0 : index
    %c2 = arith.constant 2 : index
    %c0_44 = arith.constant 0 : index
    %39 = vector.load %arg10[%c0_43, %c2, %c0_44] : memref<6x6x32xf32, #tpu.memory_space<vmem>>, vector<4x4x32xf32>
    %c0_45 = arith.constant 0 : index
    %c0_46 = arith.constant 0 : index
    %c64 = arith.constant 64 : index
    %40 = vector.load %arg11[%c0_45, %c0_46, %c64] : memref<4x4x288xf32, #tpu.memory_space<vmem>>, vector<4x4x32xf32>
    tpu.vector_store %arg11[%c0_45, %c0_46, %c64], %39 {strides = array<i32>} : memref<4x4x288xf32, #tpu.memory_space<vmem>>, vector<4x4x32xf32>,
    %c1_47 = arith.constant 1 : index
    %c0_48 = arith.constant 0 : index
    %c0_49 = arith.constant 0 : index
    %41 = vector.load %arg10[%c1_47, %c0_48, %c0_49] : memref<6x6x32xf32, #tpu.memory_space<vmem>>, vector<4x4x32xf32>
    %c0_50 = arith.constant 0 : index
    %c0_51 = arith.constant 0 : index
    %c96 = arith.constant 96 : index
    %42 = vector.load %arg11[%c0_50, %c0_51, %c96] : memref<4x4x288xf32, #tpu.memory_space<vmem>>, vector<4x4x32xf32>
    tpu.vector_store %arg11[%c0_50, %c0_51, %c96], %41 {strides = array<i32>} : memref<4x4x288xf32, #tpu.memory_space<vmem>>, vector<4x4x32xf32>,
    %c1_52 = arith.constant 1 : index
    %c1_53 = arith.constant 1 : index
    %c0_54 = arith.constant 0 : index
    %43 = vector.load %arg10[%c1_52, %c1_53, %c0_54] : memref<6x6x32xf32, #tpu.memory_space<vmem>>, vector<4x4x32xf32>
    %c0_55 = arith.constant 0 : index
    %c0_56 = arith.constant 0 : index
    %c128 = arith.constant 128 : index
    %44 = vector.load %arg11[%c0_55, %c0_56, %c128] : memref<4x4x288xf32, #tpu.memory_space<vmem>>, vector<4x4x32xf32>
    tpu.vector_store %arg11[%c0_55, %c0_56, %c128], %43 {strides = array<i32>} : memref<4x4x288xf32, #tpu.memory_space<vmem>>, vector<4x4x32xf32>,
    %c1_57 = arith.constant 1 : index
    %c2_58 = arith.constant 2 : index
    %c0_59 = arith.constant 0 : index
    %45 = vector.load %arg10[%c1_57, %c2_58, %c0_59] : memref<6x6x32xf32, #tpu.memory_space<vmem>>, vector<4x4x32xf32>
    %c0_60 = arith.constant 0 : index
    %c0_61 = arith.constant 0 : index
    %c160 = arith.constant 160 : index
    %46 = vector.load %arg11[%c0_60, %c0_61, %c160] : memref<4x4x288xf32, #tpu.memory_space<vmem>>, vector<4x4x32xf32>
    tpu.vector_store %arg11[%c0_60, %c0_61, %c160], %45 {strides = array<i32>} : memref<4x4x288xf32, #tpu.memory_space<vmem>>, vector<4x4x32xf32>,
    %c2_62 = arith.constant 2 : index
    %c0_63 = arith.constant 0 : index
    %c0_64 = arith.constant 0 : index
    %47 = vector.load %arg10[%c2_62, %c0_63, %c0_64] : memref<6x6x32xf32, #tpu.memory_space<vmem>>, vector<4x4x32xf32>
    %c0_65 = arith.constant 0 : index
    %c0_66 = arith.constant 0 : index
    %c192 = arith.constant 192 : index
    %48 = vector.load %arg11[%c0_65, %c0_66, %c192] : memref<4x4x288xf32, #tpu.memory_space<vmem>>, vector<4x4x32xf32>
    tpu.vector_store %arg11[%c0_65, %c0_66, %c192], %47 {strides = array<i32>} : memref<4x4x288xf32, #tpu.memory_space<vmem>>, vector<4x4x32xf32>,
    %c2_67 = arith.constant 2 : index
    %c1_68 = arith.constant 1 : index
    %c0_69 = arith.constant 0 : index
    %49 = vector.load %arg10[%c2_67, %c1_68, %c0_69] : memref<6x6x32xf32, #tpu.memory_space<vmem>>, vector<4x4x32xf32>
    %c0_70 = arith.constant 0 : index
    %c0_71 = arith.constant 0 : index
    %c224 = arith.constant 224 : index
    %50 = vector.load %arg11[%c0_70, %c0_71, %c224] : memref<4x4x288xf32, #tpu.memory_space<vmem>>, vector<4x4x32xf32>
    tpu.vector_store %arg11[%c0_70, %c0_71, %c224], %49 {strides = array<i32>} : memref<4x4x288xf32, #tpu.memory_space<vmem>>, vector<4x4x32xf32>,
    %c2_72 = arith.constant 2 : index
    %c2_73 = arith.constant 2 : index
    %c0_74 = arith.constant 0 : index
    %51 = vector.load %arg10[%c2_72, %c2_73, %c0_74] : memref<6x6x32xf32, #tpu.memory_space<vmem>>, vector<4x4x32xf32>
    %c0_75 = arith.constant 0 : index
    %c0_76 = arith.constant 0 : index
    %c256 = arith.constant 256 : index
    %52 = vector.load %arg11[%c0_75, %c0_76, %c256] : memref<4x4x288xf32, #tpu.memory_space<vmem>>, vector<4x4x32xf32>
    tpu.vector_store %arg11[%c0_75, %c0_76, %c256], %51 {strides = array<i32>} : memref<4x4x288xf32, #tpu.memory_space<vmem>>, vector<4x4x32xf32>,
    %c0_77 = arith.constant 0 : index
    %c0_78 = arith.constant 0 : index
    %c0_79 = arith.constant 0 : index
    %53 = vector.load %arg11[%c0_77, %c0_78, %c0_79] : memref<4x4x288xf32, #tpu.memory_space<vmem>>, vector<4x4x288xf32>
    %54 = vector.shape_cast %53 : vector<4x4x288xf32> to vector<16x288xf32>
    %55 = arith.truncf %54 : vector<16x288xf32> to vector<16x288xbf16>
    %c0_80 = arith.constant 0 : index
    %c0_81 = arith.constant 0 : index
    %c0_82 = arith.constant 0 : index
    %56 = vector.load %arg7[%c0_80, %c0_81, %c0_82] : memref<2x288x8xbf16, #tpu.memory_space<vmem>>, vector<1x288x8xbf16>
    %57 = vector.shape_cast %56 : vector<1x288x8xbf16> to vector<288x8xbf16>
    %cst_83 = arith.constant dense<0.000000e+00> : vector<16x8xf32>
    %58 = tpu.matmul %55, %57, %cst_83 {dimension_numbers = #tpu.dot_dimension_numbers<[1], [0], [0], [1], [0, 0, 1, 1], [], []>} : vector<16x288xbf16>, vector<288x8xbf16>, vector<16x8xf32> -> vector<16x8xf32>
    %c0_84 = arith.constant 0 : index
    %c16 = arith.constant 16 : index
    %59 = vector.load %arg9[%c0_84, %c16] : memref<16x32xf32, #tpu.memory_space<vmem>>, vector<16x8xf32>
    tpu.vector_store %arg9[%c0_84, %c16], %58 {strides = array<i32>} : memref<16x32xf32, #tpu.memory_space<vmem>>, vector<16x8xf32>,
    %c0_85 = arith.constant 0 : index
    %c0_86 = arith.constant 0 : index
    %60 = vector.load %arg9[%c0_85, %c0_86] : memref<16x32xf32, #tpu.memory_space<vmem>>, vector<16x32xf32>
    %c1_87 = arith.constant 1 : index
    %c0_88 = arith.constant 0 : index
    %c0_89 = arith.constant 0 : index
    %61 = vector.load %arg2[%c1_87, %c0_88, %c0_89] : memref<2x1x32xf32, #tpu.memory_space<vmem>>, vector<1x1x32xf32>
    %62 = vector.shape_cast %61 : vector<1x1x32xf32> to vector<1x32xf32>
    %63 = vector.broadcast %62 : vector<1x32xf32> to vector<16x32xf32>
    %64 = arith.mulf %60, %63 : vector<16x32xf32>
    %c1_90 = arith.constant 1 : index
    %c0_91 = arith.constant 0 : index
    %c0_92 = arith.constant 0 : index
    %65 = vector.load %arg3[%c1_90, %c0_91, %c0_92] : memref<2x1x32xf32, #tpu.memory_space<vmem>>, vector<1x1x32xf32>
    %66 = vector.shape_cast %65 : vector<1x1x32xf32> to vector<1x32xf32>
    %67 = vector.broadcast %66 : vector<1x32xf32> to vector<16x32xf32>
    %68 = arith.addf %64, %67 : vector<16x32xf32>
    %cst_93 = arith.constant 0.000000e+00 : f32
    %69 = vector.broadcast %cst_93 : f32 to vector<16x32xf32>
    %70 = arith.maximumf %68, %69 : vector<16x32xf32>
    %71 = arith.truncf %70 : vector<16x32xf32> to vector<16x32xbf16>
    %c1_94 = arith.constant 1 : index
    %c0_95 = arith.constant 0 : index
    %c0_96 = arith.constant 0 : index
    %72 = vector.load %arg4[%c1_94, %c0_95, %c0_96] : memref<2x32x32xbf16, #tpu.memory_space<vmem>>, vector<1x32x32xbf16>
    %73 = vector.shape_cast %72 : vector<1x32x32xbf16> to vector<32x32xbf16>
    %cst_97 = arith.constant dense<0.000000e+00> : vector<16x32xf32>
    %74 = tpu.matmul %71, %73, %cst_97 {dimension_numbers = #tpu.dot_dimension_numbers<[1], [0], [0], [1], [0, 0, 1, 1], [], []>} : vector<16x32xbf16>, vector<32x32xbf16>, vector<16x32xf32> -> vector<16x32xf32>
    %c1_98 = arith.constant 1 : index
    %c0_99 = arith.constant 0 : index
    %c0_100 = arith.constant 0 : index
    %75 = vector.load %arg5[%c1_98, %c0_99, %c0_100] : memref<2x1x32xf32, #tpu.memory_space<vmem>>, vector<1x1x32xf32>
    %76 = vector.shape_cast %75 : vector<1x1x32xf32> to vector<1x32xf32>
    %77 = vector.broadcast %76 : vector<1x32xf32> to vector<16x32xf32>
    %78 = arith.mulf %74, %77 : vector<16x32xf32>
    %c1_101 = arith.constant 1 : index
    %c0_102 = arith.constant 0 : index
    %c0_103 = arith.constant 0 : index
    %79 = vector.load %arg6[%c1_101, %c0_102, %c0_103] : memref<2x1x32xf32, #tpu.memory_space<vmem>>, vector<1x1x32xf32>
    %80 = vector.shape_cast %79 : vector<1x1x32xf32> to vector<1x32xf32>
    %81 = vector.broadcast %80 : vector<1x32xf32> to vector<16x32xf32>
    %82 = arith.addf %78, %81 : vector<16x32xf32>
    %cst_104 = arith.constant 0.000000e+00 : f32
    %83 = vector.broadcast %cst_104 : f32 to vector<16x32xf32>
    %84 = arith.maximumf %82, %83 : vector<16x32xf32>
    %85 = vector.shape_cast %84 : vector<16x32xf32> to vector<4x4x32xf32>
    %c1_105 = arith.constant 1 : index
    %c1_106 = arith.constant 1 : index
    %c0_107 = arith.constant 0 : index
    %86 = vector.load %arg10[%c1_105, %c1_106, %c0_107] : memref<6x6x32xf32, #tpu.memory_space<vmem>>, vector<4x4x32xf32>
    tpu.vector_store %arg10[%c1_105, %c1_106, %c0_107], %85 {strides = array<i32>} : memref<6x6x32xf32, #tpu.memory_space<vmem>>, vector<4x4x32xf32>,
    %c0_108 = arith.constant 0 : index
    %c0_109 = arith.constant 0 : index
    %c0_110 = arith.constant 0 : index
    %87 = vector.load %arg10[%c0_108, %c0_109, %c0_110] : memref<6x6x32xf32, #tpu.memory_space<vmem>>, vector<4x4x32xf32>
    %c0_111 = arith.constant 0 : index
    %c0_112 = arith.constant 0 : index
    %c0_113 = arith.constant 0 : index
    %88 = vector.load %arg11[%c0_111, %c0_112, %c0_113] : memref<4x4x288xf32, #tpu.memory_space<vmem>>, vector<4x4x32xf32>
    tpu.vector_store %arg11[%c0_111, %c0_112, %c0_113], %87 {strides = array<i32>} : memref<4x4x288xf32, #tpu.memory_space<vmem>>, vector<4x4x32xf32>,
    %c0_114 = arith.constant 0 : index
    %c1_115 = arith.constant 1 : index
    %c0_116 = arith.constant 0 : index
    %89 = vector.load %arg10[%c0_114, %c1_115, %c0_116] : memref<6x6x32xf32, #tpu.memory_space<vmem>>, vector<4x4x32xf32>
    %c0_117 = arith.constant 0 : index
    %c0_118 = arith.constant 0 : index
    %c32_119 = arith.constant 32 : index
    %90 = vector.load %arg11[%c0_117, %c0_118, %c32_119] : memref<4x4x288xf32, #tpu.memory_space<vmem>>, vector<4x4x32xf32>
    tpu.vector_store %arg11[%c0_117, %c0_118, %c32_119], %89 {strides = array<i32>} : memref<4x4x288xf32, #tpu.memory_space<vmem>>, vector<4x4x32xf32>,
    %c0_120 = arith.constant 0 : index
    %c2_121 = arith.constant 2 : index
    %c0_122 = arith.constant 0 : index
    %91 = vector.load %arg10[%c0_120, %c2_121, %c0_122] : memref<6x6x32xf32, #tpu.memory_space<vmem>>, vector<4x4x32xf32>
    %c0_123 = arith.constant 0 : index
    %c0_124 = arith.constant 0 : index
    %c64_125 = arith.constant 64 : index
    %92 = vector.load %arg11[%c0_123, %c0_124, %c64_125] : memref<4x4x288xf32, #tpu.memory_space<vmem>>, vector<4x4x32xf32>
    tpu.vector_store %arg11[%c0_123, %c0_124, %c64_125], %91 {strides = array<i32>} : memref<4x4x288xf32, #tpu.memory_space<vmem>>, vector<4x4x32xf32>,
    %c1_126 = arith.constant 1 : index
    %c0_127 = arith.constant 0 : index
    %c0_128 = arith.constant 0 : index
    %93 = vector.load %arg10[%c1_126, %c0_127, %c0_128] : memref<6x6x32xf32, #tpu.memory_space<vmem>>, vector<4x4x32xf32>
    %c0_129 = arith.constant 0 : index
    %c0_130 = arith.constant 0 : index
    %c96_131 = arith.constant 96 : index
    %94 = vector.load %arg11[%c0_129, %c0_130, %c96_131] : memref<4x4x288xf32, #tpu.memory_space<vmem>>, vector<4x4x32xf32>
    tpu.vector_store %arg11[%c0_129, %c0_130, %c96_131], %93 {strides = array<i32>} : memref<4x4x288xf32, #tpu.memory_space<vmem>>, vector<4x4x32xf32>,
    %c1_132 = arith.constant 1 : index
    %c1_133 = arith.constant 1 : index
    %c0_134 = arith.constant 0 : index
    %95 = vector.load %arg10[%c1_132, %c1_133, %c0_134] : memref<6x6x32xf32, #tpu.memory_space<vmem>>, vector<4x4x32xf32>
    %c0_135 = arith.constant 0 : index
    %c0_136 = arith.constant 0 : index
    %c128_137 = arith.constant 128 : index
    %96 = vector.load %arg11[%c0_135, %c0_136, %c128_137] : memref<4x4x288xf32, #tpu.memory_space<vmem>>, vector<4x4x32xf32>
    tpu.vector_store %arg11[%c0_135, %c0_136, %c128_137], %95 {strides = array<i32>} : memref<4x4x288xf32, #tpu.memory_space<vmem>>, vector<4x4x32xf32>,
    %c1_138 = arith.constant 1 : index
    %c2_139 = arith.constant 2 : index
    %c0_140 = arith.constant 0 : index
    %97 = vector.load %arg10[%c1_138, %c2_139, %c0_140] : memref<6x6x32xf32, #tpu.memory_space<vmem>>, vector<4x4x32xf32>
    %c0_141 = arith.constant 0 : index
    %c0_142 = arith.constant 0 : index
    %c160_143 = arith.constant 160 : index
    %98 = vector.load %arg11[%c0_141, %c0_142, %c160_143] : memref<4x4x288xf32, #tpu.memory_space<vmem>>, vector<4x4x32xf32>
    tpu.vector_store %arg11[%c0_141, %c0_142, %c160_143], %97 {strides = array<i32>} : memref<4x4x288xf32, #tpu.memory_space<vmem>>, vector<4x4x32xf32>,
    %c2_144 = arith.constant 2 : index
    %c0_145 = arith.constant 0 : index
    %c0_146 = arith.constant 0 : index
    %99 = vector.load %arg10[%c2_144, %c0_145, %c0_146] : memref<6x6x32xf32, #tpu.memory_space<vmem>>, vector<4x4x32xf32>
    %c0_147 = arith.constant 0 : index
    %c0_148 = arith.constant 0 : index
    %c192_149 = arith.constant 192 : index
    %100 = vector.load %arg11[%c0_147, %c0_148, %c192_149] : memref<4x4x288xf32, #tpu.memory_space<vmem>>, vector<4x4x32xf32>
    tpu.vector_store %arg11[%c0_147, %c0_148, %c192_149], %99 {strides = array<i32>} : memref<4x4x288xf32, #tpu.memory_space<vmem>>, vector<4x4x32xf32>,
    %c2_150 = arith.constant 2 : index
    %c1_151 = arith.constant 1 : index
    %c0_152 = arith.constant 0 : index
    %101 = vector.load %arg10[%c2_150, %c1_151, %c0_152] : memref<6x6x32xf32, #tpu.memory_space<vmem>>, vector<4x4x32xf32>
    %c0_153 = arith.constant 0 : index
    %c0_154 = arith.constant 0 : index
    %c224_155 = arith.constant 224 : index
    %102 = vector.load %arg11[%c0_153, %c0_154, %c224_155] : memref<4x4x288xf32, #tpu.memory_space<vmem>>, vector<4x4x32xf32>
    tpu.vector_store %arg11[%c0_153, %c0_154, %c224_155], %101 {strides = array<i32>} : memref<4x4x288xf32, #tpu.memory_space<vmem>>, vector<4x4x32xf32>,
    %c2_156 = arith.constant 2 : index
    %c2_157 = arith.constant 2 : index
    %c0_158 = arith.constant 0 : index
    %103 = vector.load %arg10[%c2_156, %c2_157, %c0_158] : memref<6x6x32xf32, #tpu.memory_space<vmem>>, vector<4x4x32xf32>
    %c0_159 = arith.constant 0 : index
    %c0_160 = arith.constant 0 : index
    %c256_161 = arith.constant 256 : index
    %104 = vector.load %arg11[%c0_159, %c0_160, %c256_161] : memref<4x4x288xf32, #tpu.memory_space<vmem>>, vector<4x4x32xf32>
    tpu.vector_store %arg11[%c0_159, %c0_160, %c256_161], %103 {strides = array<i32>} : memref<4x4x288xf32, #tpu.memory_space<vmem>>, vector<4x4x32xf32>,
    %c0_162 = arith.constant 0 : index
    %c0_163 = arith.constant 0 : index
    %c0_164 = arith.constant 0 : index
    %105 = vector.load %arg11[%c0_162, %c0_163, %c0_164] : memref<4x4x288xf32, #tpu.memory_space<vmem>>, vector<4x4x288xf32>
    %106 = vector.shape_cast %105 : vector<4x4x288xf32> to vector<16x288xf32>
    %107 = arith.truncf %106 : vector<16x288xf32> to vector<16x288xbf16>
    %c1_165 = arith.constant 1 : index
    %c0_166 = arith.constant 0 : index
    %c0_167 = arith.constant 0 : index
    %108 = vector.load %arg7[%c1_165, %c0_166, %c0_167] : memref<2x288x8xbf16, #tpu.memory_space<vmem>>, vector<1x288x8xbf16>
    %109 = vector.shape_cast %108 : vector<1x288x8xbf16> to vector<288x8xbf16>
    %cst_168 = arith.constant dense<0.000000e+00> : vector<16x8xf32>
    %110 = tpu.matmul %107, %109, %cst_168 {dimension_numbers = #tpu.dot_dimension_numbers<[1], [0], [0], [1], [0, 0, 1, 1], [], []>} : vector<16x288xbf16>, vector<288x8xbf16>, vector<16x8xf32> -> vector<16x8xf32>
    %c0_169 = arith.constant 0 : index
    %c24 = arith.constant 24 : index
    %111 = vector.load %arg9[%c0_169, %c24] : memref<16x32xf32, #tpu.memory_space<vmem>>, vector<16x8xf32>
    tpu.vector_store %arg9[%c0_169, %c24], %110 {strides = array<i32>} : memref<16x32xf32, #tpu.memory_space<vmem>>, vector<16x8xf32>,
    %c0_170 = arith.constant 0 : index
    %c0_171 = arith.constant 0 : index
    %112 = vector.load %arg9[%c0_170, %c0_171] : memref<16x32xf32, #tpu.memory_space<vmem>>, vector<16x32xf32>
    %113 = vector.shape_cast %112 : vector<16x32xf32> to vector<1x16x32xf32>
    %114 = arith.truncf %113 : vector<1x16x32xf32> to vector<1x16x32xbf16>
    %c0_172 = arith.constant 0 : index
    %c0_173 = arith.constant 0 : index
    %c0_174 = arith.constant 0 : index
    %115 = vector.load %arg8[%c0_172, %c0_173, %c0_174] : memref<1x16x32xbf16, #tpu.memory_space<vmem>>, vector<1x16x32xbf16>
    tpu.vector_store %arg8[%c0_172, %c0_173, %c0_174], %114 {strides = array<i32>} : memref<1x16x32xbf16, #tpu.memory_space<vmem>>, vector<1x16x32xbf16>,
    return
  }
  func.func @transform_0(%arg0: i32) -> (i32, i32, i32) {
    %c0_i32 = arith.constant 0 : i32
    %c0_i32_0 = arith.constant 0 : i32
    %c0_i32_1 = arith.constant 0 : i32
    return %arg0, %c0_i32, %c0_i32_0 : i32, i32, i32
  }
  func.func @transform_1(%arg0: i32) -> (i32, i32, i32) {
    %c0_i32 = arith.constant 0 : i32
    %c0_i32_0 = arith.constant 0 : i32
    %c0_i32_1 = arith.constant 0 : i32
    %c0_i32_2 = arith.constant 0 : i32
    return %c0_i32, %c0_i32_0, %c0_i32_1 : i32, i32, i32
  }
  func.func @transform_2(%arg0: i32) -> (i32, i32, i32) {
    %c0_i32 = arith.constant 0 : i32
    %c0_i32_0 = arith.constant 0 : i32
    %c0_i32_1 = arith.constant 0 : i32
    %c0_i32_2 = arith.constant 0 : i32
    return %c0_i32, %c0_i32_0, %c0_i32_1 : i32, i32, i32
  }
  func.func @transform_3(%arg0: i32) -> (i32, i32, i32) {
    %c0_i32 = arith.constant 0 : i32
    %c0_i32_0 = arith.constant 0 : i32
    %c0_i32_1 = arith.constant 0 : i32
    %c0_i32_2 = arith.constant 0 : i32
    return %c0_i32, %c0_i32_0, %c0_i32_1 : i32, i32, i32
  }
  func.func @transform_4(%arg0: i32) -> (i32, i32, i32) {
    %c0_i32 = arith.constant 0 : i32
    %c0_i32_0 = arith.constant 0 : i32
    %c0_i32_1 = arith.constant 0 : i32
    %c0_i32_2 = arith.constant 0 : i32
    return %c0_i32, %c0_i32_0, %c0_i32_1 : i32, i32, i32
  }
  func.func @transform_5(%arg0: i32) -> (i32, i32, i32) {
    %c0_i32 = arith.constant 0 : i32
    %c0_i32_0 = arith.constant 0 : i32
    %c0_i32_1 = arith.constant 0 : i32
    %c0_i32_2 = arith.constant 0 : i32
    return %c0_i32, %c0_i32_0, %c0_i32_1 : i32, i32, i32
  }
  func.func @transform_6(%arg0: i32) -> (i32, i32, i32) {
    %c0_i32 = arith.constant 0 : i32
    %c0_i32_0 = arith.constant 0 : i32
    %c0_i32_1 = arith.constant 0 : i32
    %c0_i32_2 = arith.constant 0 : i32
    return %c0_i32, %c0_i32_0, %c0_i32_1 : i32, i32, i32
  }
  func.func @transform_7(%arg0: i32) -> (i32, i32, i32) {
    %c0_i32 = arith.constant 0 : i32
    %c0_i32_0 = arith.constant 0 : i32
    %c0_i32_1 = arith.constant 0 : i32
    return %arg0, %c0_i32, %c0_i32_0 : i32, i32, i32
  }
}

module attributes {stable_mosaic.version = 11 : i64} {
  func.func @_transition_kernel(%arg0: i32, %arg1: memref<1x16x32xbf16, #tpu.memory_space<vmem>>, %arg2: memref<1x32xf32, #tpu.memory_space<vmem>>, %arg3: memref<1x32xf32, #tpu.memory_space<vmem>>, %arg4: memref<32x16xbf16, #tpu.memory_space<vmem>>, %arg5: memref<1x4x16xbf16, #tpu.memory_space<vmem>>) attributes {dimension_semantics = [#tpu.dimension_semantics<parallel>], iteration_bounds = array<i64: 2>, scalar_prefetch = 0 : i64, scratch_operands = 0 : i64, tpu.core_type = #tpu.core_type<tc>, window_params = [{transform_indices = @transform_0, window_bounds = array<i64: 1, 16, 32>}, {pipeline_mode = #tpu.pipeline_mode<synchronous>, transform_indices = @transform_1, window_bounds = array<i64: 1, 32>}, {pipeline_mode = #tpu.pipeline_mode<synchronous>, transform_indices = @transform_2, window_bounds = array<i64: 1, 32>}, {pipeline_mode = #tpu.pipeline_mode<synchronous>, transform_indices = @transform_3, window_bounds = array<i64: 32, 16>}, {transform_indices = @transform_4, window_bounds = array<i64: 1, 4, 16>}]} {
    %c0 = arith.constant 0 : index
    %c0_0 = arith.constant 0 : index
    %c0_1 = arith.constant 0 : index
    %0 = vector.load %arg1[%c0, %c0_0, %c0_1] : memref<1x16x32xbf16, #tpu.memory_space<vmem>>, vector<1x16x32xbf16>
    %1 = vector.shape_cast %0 : vector<1x16x32xbf16> to vector<16x32xbf16>
    %2 = arith.extf %1 : vector<16x32xbf16> to vector<16x32xf32>
    %c0_2 = arith.constant 0 : index
    %c0_3 = arith.constant 0 : index
    %3 = vector.load %arg2[%c0_2, %c0_3] : memref<1x32xf32, #tpu.memory_space<vmem>>, vector<1x32xf32>
    %4 = vector.broadcast %3 : vector<1x32xf32> to vector<16x32xf32>
    %5 = arith.mulf %2, %4 : vector<16x32xf32>
    %c0_4 = arith.constant 0 : index
    %c0_5 = arith.constant 0 : index
    %6 = vector.load %arg3[%c0_4, %c0_5] : memref<1x32xf32, #tpu.memory_space<vmem>>, vector<1x32xf32>
    %7 = vector.broadcast %6 : vector<1x32xf32> to vector<16x32xf32>
    %8 = arith.addf %5, %7 : vector<16x32xf32>
    %cst = arith.constant 0.000000e+00 : f32
    %9 = vector.broadcast %cst : f32 to vector<16x32xf32>
    %10 = arith.maximumf %8, %9 : vector<16x32xf32>
    %11 = arith.truncf %10 : vector<16x32xf32> to vector<16x32xbf16>
    %c0_6 = arith.constant 0 : index
    %c0_7 = arith.constant 0 : index
    %12 = vector.load %arg4[%c0_6, %c0_7] : memref<32x16xbf16, #tpu.memory_space<vmem>>, vector<32x16xbf16>
    %cst_8 = arith.constant dense<0.000000e+00> : vector<16x16xf32>
    %13 = tpu.matmul %11, %12, %cst_8 {dimension_numbers = #tpu.dot_dimension_numbers<[1], [0], [0], [1], [0, 0, 1, 1], [], []>} : vector<16x32xbf16>, vector<32x16xbf16>, vector<16x16xf32> -> vector<16x16xf32>
    %14 = vector.shape_cast %13 : vector<16x16xf32> to vector<2x2x2x2x16xf32>
    %15 = vector.extract_strided_slice %14 {offsets = [0, 0, 0, 0, 0], sizes = [2, 1, 2, 1, 16], strides = [1, 1, 1, 1, 1]} : vector<2x2x2x2x16xf32> to vector<2x1x2x1x16xf32>
    %16 = vector.shape_cast %15 : vector<2x1x2x1x16xf32> to vector<2x2x16xf32>
    %17 = vector.extract_strided_slice %14 {offsets = [0, 0, 0, 1, 0], sizes = [2, 1, 2, 1, 16], strides = [1, 1, 1, 1, 1]} : vector<2x2x2x2x16xf32> to vector<2x1x2x1x16xf32>
    %18 = vector.shape_cast %17 : vector<2x1x2x1x16xf32> to vector<2x2x16xf32>
    %19 = arith.addf %16, %18 : vector<2x2x16xf32>
    %20 = vector.extract_strided_slice %14 {offsets = [0, 1, 0, 0, 0], sizes = [2, 1, 2, 1, 16], strides = [1, 1, 1, 1, 1]} : vector<2x2x2x2x16xf32> to vector<2x1x2x1x16xf32>
    %21 = vector.shape_cast %20 : vector<2x1x2x1x16xf32> to vector<2x2x16xf32>
    %22 = arith.addf %19, %21 : vector<2x2x16xf32>
    %23 = vector.extract_strided_slice %14 {offsets = [0, 1, 0, 1, 0], sizes = [2, 1, 2, 1, 16], strides = [1, 1, 1, 1, 1]} : vector<2x2x2x2x16xf32> to vector<2x1x2x1x16xf32>
    %24 = vector.shape_cast %23 : vector<2x1x2x1x16xf32> to vector<2x2x16xf32>
    %25 = arith.addf %22, %24 : vector<2x2x16xf32>
    %cst_9 = arith.constant 2.500000e-01 : f32
    %26 = vector.broadcast %cst_9 : f32 to vector<2x2x16xf32>
    %27 = arith.mulf %25, %26 : vector<2x2x16xf32>
    %28 = vector.shape_cast %27 : vector<2x2x16xf32> to vector<1x4x16xf32>
    %29 = arith.truncf %28 : vector<1x4x16xf32> to vector<1x4x16xbf16>
    %c0_10 = arith.constant 0 : index
    %c0_11 = arith.constant 0 : index
    %c0_12 = arith.constant 0 : index
    %30 = vector.load %arg5[%c0_10, %c0_11, %c0_12] : memref<1x4x16xbf16, #tpu.memory_space<vmem>>, vector<1x4x16xbf16>
    tpu.vector_store %arg5[%c0_10, %c0_11, %c0_12], %29 {strides = array<i32>} : memref<1x4x16xbf16, #tpu.memory_space<vmem>>, vector<1x4x16xbf16>,
    return
  }
  func.func @transform_0(%arg0: i32) -> (i32, i32, i32) {
    %c0_i32 = arith.constant 0 : i32
    %c0_i32_0 = arith.constant 0 : i32
    %c0_i32_1 = arith.constant 0 : i32
    return %arg0, %c0_i32, %c0_i32_0 : i32, i32, i32
  }
  func.func @transform_1(%arg0: i32) -> (i32, i32) {
    %c0_i32 = arith.constant 0 : i32
    %c0_i32_0 = arith.constant 0 : i32
    %c0_i32_1 = arith.constant 0 : i32
    return %c0_i32, %c0_i32_0 : i32, i32
  }
  func.func @transform_2(%arg0: i32) -> (i32, i32) {
    %c0_i32 = arith.constant 0 : i32
    %c0_i32_0 = arith.constant 0 : i32
    %c0_i32_1 = arith.constant 0 : i32
    return %c0_i32, %c0_i32_0 : i32, i32
  }
  func.func @transform_3(%arg0: i32) -> (i32, i32) {
    %c0_i32 = arith.constant 0 : i32
    %c0_i32_0 = arith.constant 0 : i32
    %c0_i32_1 = arith.constant 0 : i32
    return %c0_i32, %c0_i32_0 : i32, i32
  }
  func.func @transform_4(%arg0: i32) -> (i32, i32, i32) {
    %c0_i32 = arith.constant 0 : i32
    %c0_i32_0 = arith.constant 0 : i32
    %c0_i32_1 = arith.constant 0 : i32
    return %arg0, %c0_i32, %c0_i32_0 : i32, i32, i32
  }
}

module attributes {stable_mosaic.version = 11 : i64} {
  func.func @_transition_kernel(%arg0: i32, %arg1: memref<1x4x32xbf16, #tpu.memory_space<vmem>>, %arg2: memref<1x32xf32, #tpu.memory_space<vmem>>, %arg3: memref<1x32xf32, #tpu.memory_space<vmem>>, %arg4: memref<32x16xbf16, #tpu.memory_space<vmem>>, %arg5: memref<1x1x16xbf16, #tpu.memory_space<vmem>>) attributes {dimension_semantics = [#tpu.dimension_semantics<parallel>], iteration_bounds = array<i64: 2>, scalar_prefetch = 0 : i64, scratch_operands = 0 : i64, tpu.core_type = #tpu.core_type<tc>, window_params = [{transform_indices = @transform_0, window_bounds = array<i64: 1, 4, 32>}, {pipeline_mode = #tpu.pipeline_mode<synchronous>, transform_indices = @transform_1, window_bounds = array<i64: 1, 32>}, {pipeline_mode = #tpu.pipeline_mode<synchronous>, transform_indices = @transform_2, window_bounds = array<i64: 1, 32>}, {pipeline_mode = #tpu.pipeline_mode<synchronous>, transform_indices = @transform_3, window_bounds = array<i64: 32, 16>}, {transform_indices = @transform_4, window_bounds = array<i64: 1, 1, 16>}]} {
    %c0 = arith.constant 0 : index
    %c0_0 = arith.constant 0 : index
    %c0_1 = arith.constant 0 : index
    %0 = vector.load %arg1[%c0, %c0_0, %c0_1] : memref<1x4x32xbf16, #tpu.memory_space<vmem>>, vector<1x4x32xbf16>
    %1 = vector.shape_cast %0 : vector<1x4x32xbf16> to vector<4x32xbf16>
    %2 = arith.extf %1 : vector<4x32xbf16> to vector<4x32xf32>
    %c0_2 = arith.constant 0 : index
    %c0_3 = arith.constant 0 : index
    %3 = vector.load %arg2[%c0_2, %c0_3] : memref<1x32xf32, #tpu.memory_space<vmem>>, vector<1x32xf32>
    %4 = vector.broadcast %3 : vector<1x32xf32> to vector<4x32xf32>
    %5 = arith.mulf %2, %4 : vector<4x32xf32>
    %c0_4 = arith.constant 0 : index
    %c0_5 = arith.constant 0 : index
    %6 = vector.load %arg3[%c0_4, %c0_5] : memref<1x32xf32, #tpu.memory_space<vmem>>, vector<1x32xf32>
    %7 = vector.broadcast %6 : vector<1x32xf32> to vector<4x32xf32>
    %8 = arith.addf %5, %7 : vector<4x32xf32>
    %cst = arith.constant 0.000000e+00 : f32
    %9 = vector.broadcast %cst : f32 to vector<4x32xf32>
    %10 = arith.maximumf %8, %9 : vector<4x32xf32>
    %11 = arith.truncf %10 : vector<4x32xf32> to vector<4x32xbf16>
    %c0_6 = arith.constant 0 : index
    %c0_7 = arith.constant 0 : index
    %12 = vector.load %arg4[%c0_6, %c0_7] : memref<32x16xbf16, #tpu.memory_space<vmem>>, vector<32x16xbf16>
    %cst_8 = arith.constant dense<0.000000e+00> : vector<4x16xf32>
    %13 = tpu.matmul %11, %12, %cst_8 {dimension_numbers = #tpu.dot_dimension_numbers<[1], [0], [0], [1], [0, 0, 1, 1], [], []>} : vector<4x32xbf16>, vector<32x16xbf16>, vector<4x16xf32> -> vector<4x16xf32>
    %14 = vector.shape_cast %13 : vector<4x16xf32> to vector<1x2x1x2x16xf32>
    %15 = vector.extract_strided_slice %14 {offsets = [0, 0, 0, 0, 0], sizes = [1, 1, 1, 1, 16], strides = [1, 1, 1, 1, 1]} : vector<1x2x1x2x16xf32> to vector<1x1x1x1x16xf32>
    %16 = vector.shape_cast %15 : vector<1x1x1x1x16xf32> to vector<1x1x16xf32>
    %17 = vector.extract_strided_slice %14 {offsets = [0, 0, 0, 1, 0], sizes = [1, 1, 1, 1, 16], strides = [1, 1, 1, 1, 1]} : vector<1x2x1x2x16xf32> to vector<1x1x1x1x16xf32>
    %18 = vector.shape_cast %17 : vector<1x1x1x1x16xf32> to vector<1x1x16xf32>
    %19 = arith.addf %16, %18 : vector<1x1x16xf32>
    %20 = vector.extract_strided_slice %14 {offsets = [0, 1, 0, 0, 0], sizes = [1, 1, 1, 1, 16], strides = [1, 1, 1, 1, 1]} : vector<1x2x1x2x16xf32> to vector<1x1x1x1x16xf32>
    %21 = vector.shape_cast %20 : vector<1x1x1x1x16xf32> to vector<1x1x16xf32>
    %22 = arith.addf %19, %21 : vector<1x1x16xf32>
    %23 = vector.extract_strided_slice %14 {offsets = [0, 1, 0, 1, 0], sizes = [1, 1, 1, 1, 16], strides = [1, 1, 1, 1, 1]} : vector<1x2x1x2x16xf32> to vector<1x1x1x1x16xf32>
    %24 = vector.shape_cast %23 : vector<1x1x1x1x16xf32> to vector<1x1x16xf32>
    %25 = arith.addf %22, %24 : vector<1x1x16xf32>
    %cst_9 = arith.constant 2.500000e-01 : f32
    %26 = vector.broadcast %cst_9 : f32 to vector<1x1x16xf32>
    %27 = arith.mulf %25, %26 : vector<1x1x16xf32>
    %28 = arith.truncf %27 : vector<1x1x16xf32> to vector<1x1x16xbf16>
    %c0_10 = arith.constant 0 : index
    %c0_11 = arith.constant 0 : index
    %c0_12 = arith.constant 0 : index
    %29 = vector.load %arg5[%c0_10, %c0_11, %c0_12] : memref<1x1x16xbf16, #tpu.memory_space<vmem>>, vector<1x1x16xbf16>
    tpu.vector_store %arg5[%c0_10, %c0_11, %c0_12], %28 {strides = array<i32>} : memref<1x1x16xbf16, #tpu.memory_space<vmem>>, vector<1x1x16xbf16>,
    return
  }
  func.func @transform_0(%arg0: i32) -> (i32, i32, i32) {
    %c0_i32 = arith.constant 0 : i32
    %c0_i32_0 = arith.constant 0 : i32
    %c0_i32_1 = arith.constant 0 : i32
    return %arg0, %c0_i32, %c0_i32_0 : i32, i32, i32
  }
  func.func @transform_1(%arg0: i32) -> (i32, i32) {
    %c0_i32 = arith.constant 0 : i32
    %c0_i32_0 = arith.constant 0 : i32
    %c0_i32_1 = arith.constant 0 : i32
    return %c0_i32, %c0_i32_0 : i32, i32
  }
  func.func @transform_2(%arg0: i32) -> (i32, i32) {
    %c0_i32 = arith.constant 0 : i32
    %c0_i32_0 = arith.constant 0 : i32
    %c0_i32_1 = arith.constant 0 : i32
    return %c0_i32, %c0_i32_0 : i32, i32
  }
  func.func @transform_3(%arg0: i32) -> (i32, i32) {
    %c0_i32 = arith.constant 0 : i32
    %c0_i32_0 = arith.constant 0 : i32
    %c0_i32_1 = arith.constant 0 : i32
    return %c0_i32, %c0_i32_0 : i32, i32
  }
  func.func @transform_4(%arg0: i32) -> (i32, i32, i32) {
    %c0_i32 = arith.constant 0 : i32
    %c0_i32_0 = arith.constant 0 : i32
    %c0_i32_1 = arith.constant 0 : i32
    return %arg0, %c0_i32, %c0_i32_0 : i32, i32, i32
  }
}

module attributes {stable_mosaic.version = 11 : i64} {
  func.func @_dense_block_kernel(%arg0: i32, %arg1: memref<1x4x16xbf16, #tpu.memory_space<vmem>>, %arg2: memref<2x1x32xf32, #tpu.memory_space<vmem>>, %arg3: memref<2x1x32xf32, #tpu.memory_space<vmem>>, %arg4: memref<2x32x32xbf16, #tpu.memory_space<vmem>>, %arg5: memref<2x1x32xf32, #tpu.memory_space<vmem>>, %arg6: memref<2x1x32xf32, #tpu.memory_space<vmem>>, %arg7: memref<2x288x8xbf16, #tpu.memory_space<vmem>>, %arg8: memref<1x4x32xbf16, #tpu.memory_space<vmem>>, %arg9: memref<4x32xf32, #tpu.memory_space<vmem>>, %arg10: memref<4x4x32xf32, #tpu.memory_space<vmem>>, %arg11: memref<2x2x288xf32, #tpu.memory_space<vmem>>) attributes {dimension_semantics = [#tpu.dimension_semantics<parallel>], iteration_bounds = array<i64: 2>, scalar_prefetch = 0 : i64, scratch_operands = 3 : i64, tpu.core_type = #tpu.core_type<tc>, window_params = [{transform_indices = @transform_0, window_bounds = array<i64: 1, 4, 16>}, {pipeline_mode = #tpu.pipeline_mode<synchronous>, transform_indices = @transform_1, window_bounds = array<i64: 2, 1, 32>}, {pipeline_mode = #tpu.pipeline_mode<synchronous>, transform_indices = @transform_2, window_bounds = array<i64: 2, 1, 32>}, {pipeline_mode = #tpu.pipeline_mode<synchronous>, transform_indices = @transform_3, window_bounds = array<i64: 2, 32, 32>}, {pipeline_mode = #tpu.pipeline_mode<synchronous>, transform_indices = @transform_4, window_bounds = array<i64: 2, 1, 32>}, {pipeline_mode = #tpu.pipeline_mode<synchronous>, transform_indices = @transform_5, window_bounds = array<i64: 2, 1, 32>}, {pipeline_mode = #tpu.pipeline_mode<synchronous>, transform_indices = @transform_6, window_bounds = array<i64: 2, 288, 8>}, {transform_indices = @transform_7, window_bounds = array<i64: 1, 4, 32>}]} {
    %cst = arith.constant 0.000000e+00 : f32
    %0 = vector.broadcast %cst : f32 to vector<4x32xf32>
    %c0 = arith.constant 0 : index
    %c0_0 = arith.constant 0 : index
    %1 = vector.load %arg9[%c0, %c0_0] : memref<4x32xf32, #tpu.memory_space<vmem>>, vector<4x32xf32>
    tpu.vector_store %arg9[%c0, %c0_0], %0 {strides = array<i32>} : memref<4x32xf32, #tpu.memory_space<vmem>>, vector<4x32xf32>,
    %cst_1 = arith.constant 0.000000e+00 : f32
    %2 = vector.broadcast %cst_1 : f32 to vector<4x4x32xf32>
    %c0_2 = arith.constant 0 : index
    %c0_3 = arith.constant 0 : index
    %c0_4 = arith.constant 0 : index
    %3 = vector.load %arg10[%c0_2, %c0_3, %c0_4] : memref<4x4x32xf32, #tpu.memory_space<vmem>>, vector<4x4x32xf32>
    tpu.vector_store %arg10[%c0_2, %c0_3, %c0_4], %2 {strides = array<i32>} : memref<4x4x32xf32, #tpu.memory_space<vmem>>, vector<4x4x32xf32>,
    %c0_5 = arith.constant 0 : index
    %c0_6 = arith.constant 0 : index
    %c0_7 = arith.constant 0 : index
    %4 = vector.load %arg1[%c0_5, %c0_6, %c0_7] : memref<1x4x16xbf16, #tpu.memory_space<vmem>>, vector<1x4x16xbf16>
    %5 = vector.shape_cast %4 : vector<1x4x16xbf16> to vector<4x16xbf16>
    %6 = arith.extf %5 : vector<4x16xbf16> to vector<4x16xf32>
    %c0_8 = arith.constant 0 : index
    %c0_9 = arith.constant 0 : index
    %7 = vector.load %arg9[%c0_8, %c0_9] : memref<4x32xf32, #tpu.memory_space<vmem>>, vector<4x16xf32>
    tpu.vector_store %arg9[%c0_8, %c0_9], %6 {strides = array<i32>} : memref<4x32xf32, #tpu.memory_space<vmem>>, vector<4x16xf32>,
    %c0_10 = arith.constant 0 : index
    %c0_11 = arith.constant 0 : index
    %8 = vector.load %arg9[%c0_10, %c0_11] : memref<4x32xf32, #tpu.memory_space<vmem>>, vector<4x32xf32>
    %c0_12 = arith.constant 0 : index
    %c0_13 = arith.constant 0 : index
    %c0_14 = arith.constant 0 : index
    %9 = vector.load %arg2[%c0_12, %c0_13, %c0_14] : memref<2x1x32xf32, #tpu.memory_space<vmem>>, vector<1x1x32xf32>
    %10 = vector.shape_cast %9 : vector<1x1x32xf32> to vector<1x32xf32>
    %11 = vector.broadcast %10 : vector<1x32xf32> to vector<4x32xf32>
    %12 = arith.mulf %8, %11 : vector<4x32xf32>
    %c0_15 = arith.constant 0 : index
    %c0_16 = arith.constant 0 : index
    %c0_17 = arith.constant 0 : index
    %13 = vector.load %arg3[%c0_15, %c0_16, %c0_17] : memref<2x1x32xf32, #tpu.memory_space<vmem>>, vector<1x1x32xf32>
    %14 = vector.shape_cast %13 : vector<1x1x32xf32> to vector<1x32xf32>
    %15 = vector.broadcast %14 : vector<1x32xf32> to vector<4x32xf32>
    %16 = arith.addf %12, %15 : vector<4x32xf32>
    %cst_18 = arith.constant 0.000000e+00 : f32
    %17 = vector.broadcast %cst_18 : f32 to vector<4x32xf32>
    %18 = arith.maximumf %16, %17 : vector<4x32xf32>
    %19 = arith.truncf %18 : vector<4x32xf32> to vector<4x32xbf16>
    %c0_19 = arith.constant 0 : index
    %c0_20 = arith.constant 0 : index
    %c0_21 = arith.constant 0 : index
    %20 = vector.load %arg4[%c0_19, %c0_20, %c0_21] : memref<2x32x32xbf16, #tpu.memory_space<vmem>>, vector<1x32x32xbf16>
    %21 = vector.shape_cast %20 : vector<1x32x32xbf16> to vector<32x32xbf16>
    %cst_22 = arith.constant dense<0.000000e+00> : vector<4x32xf32>
    %22 = tpu.matmul %19, %21, %cst_22 {dimension_numbers = #tpu.dot_dimension_numbers<[1], [0], [0], [1], [0, 0, 1, 1], [], []>} : vector<4x32xbf16>, vector<32x32xbf16>, vector<4x32xf32> -> vector<4x32xf32>
    %c0_23 = arith.constant 0 : index
    %c0_24 = arith.constant 0 : index
    %c0_25 = arith.constant 0 : index
    %23 = vector.load %arg5[%c0_23, %c0_24, %c0_25] : memref<2x1x32xf32, #tpu.memory_space<vmem>>, vector<1x1x32xf32>
    %24 = vector.shape_cast %23 : vector<1x1x32xf32> to vector<1x32xf32>
    %25 = vector.broadcast %24 : vector<1x32xf32> to vector<4x32xf32>
    %26 = arith.mulf %22, %25 : vector<4x32xf32>
    %c0_26 = arith.constant 0 : index
    %c0_27 = arith.constant 0 : index
    %c0_28 = arith.constant 0 : index
    %27 = vector.load %arg6[%c0_26, %c0_27, %c0_28] : memref<2x1x32xf32, #tpu.memory_space<vmem>>, vector<1x1x32xf32>
    %28 = vector.shape_cast %27 : vector<1x1x32xf32> to vector<1x32xf32>
    %29 = vector.broadcast %28 : vector<1x32xf32> to vector<4x32xf32>
    %30 = arith.addf %26, %29 : vector<4x32xf32>
    %cst_29 = arith.constant 0.000000e+00 : f32
    %31 = vector.broadcast %cst_29 : f32 to vector<4x32xf32>
    %32 = arith.maximumf %30, %31 : vector<4x32xf32>
    %33 = vector.shape_cast %32 : vector<4x32xf32> to vector<2x2x32xf32>
    %c1 = arith.constant 1 : index
    %c1_30 = arith.constant 1 : index
    %c0_31 = arith.constant 0 : index
    %34 = vector.load %arg10[%c1, %c1_30, %c0_31] : memref<4x4x32xf32, #tpu.memory_space<vmem>>, vector<2x2x32xf32>
    tpu.vector_store %arg10[%c1, %c1_30, %c0_31], %33 {strides = array<i32>} : memref<4x4x32xf32, #tpu.memory_space<vmem>>, vector<2x2x32xf32>,
    %c0_32 = arith.constant 0 : index
    %c0_33 = arith.constant 0 : index
    %c0_34 = arith.constant 0 : index
    %35 = vector.load %arg10[%c0_32, %c0_33, %c0_34] : memref<4x4x32xf32, #tpu.memory_space<vmem>>, vector<2x2x32xf32>
    %c0_35 = arith.constant 0 : index
    %c0_36 = arith.constant 0 : index
    %c0_37 = arith.constant 0 : index
    %36 = vector.load %arg11[%c0_35, %c0_36, %c0_37] : memref<2x2x288xf32, #tpu.memory_space<vmem>>, vector<2x2x32xf32>
    tpu.vector_store %arg11[%c0_35, %c0_36, %c0_37], %35 {strides = array<i32>} : memref<2x2x288xf32, #tpu.memory_space<vmem>>, vector<2x2x32xf32>,
    %c0_38 = arith.constant 0 : index
    %c1_39 = arith.constant 1 : index
    %c0_40 = arith.constant 0 : index
    %37 = vector.load %arg10[%c0_38, %c1_39, %c0_40] : memref<4x4x32xf32, #tpu.memory_space<vmem>>, vector<2x2x32xf32>
    %c0_41 = arith.constant 0 : index
    %c0_42 = arith.constant 0 : index
    %c32 = arith.constant 32 : index
    %38 = vector.load %arg11[%c0_41, %c0_42, %c32] : memref<2x2x288xf32, #tpu.memory_space<vmem>>, vector<2x2x32xf32>
    tpu.vector_store %arg11[%c0_41, %c0_42, %c32], %37 {strides = array<i32>} : memref<2x2x288xf32, #tpu.memory_space<vmem>>, vector<2x2x32xf32>,
    %c0_43 = arith.constant 0 : index
    %c2 = arith.constant 2 : index
    %c0_44 = arith.constant 0 : index
    %39 = vector.load %arg10[%c0_43, %c2, %c0_44] : memref<4x4x32xf32, #tpu.memory_space<vmem>>, vector<2x2x32xf32>
    %c0_45 = arith.constant 0 : index
    %c0_46 = arith.constant 0 : index
    %c64 = arith.constant 64 : index
    %40 = vector.load %arg11[%c0_45, %c0_46, %c64] : memref<2x2x288xf32, #tpu.memory_space<vmem>>, vector<2x2x32xf32>
    tpu.vector_store %arg11[%c0_45, %c0_46, %c64], %39 {strides = array<i32>} : memref<2x2x288xf32, #tpu.memory_space<vmem>>, vector<2x2x32xf32>,
    %c1_47 = arith.constant 1 : index
    %c0_48 = arith.constant 0 : index
    %c0_49 = arith.constant 0 : index
    %41 = vector.load %arg10[%c1_47, %c0_48, %c0_49] : memref<4x4x32xf32, #tpu.memory_space<vmem>>, vector<2x2x32xf32>
    %c0_50 = arith.constant 0 : index
    %c0_51 = arith.constant 0 : index
    %c96 = arith.constant 96 : index
    %42 = vector.load %arg11[%c0_50, %c0_51, %c96] : memref<2x2x288xf32, #tpu.memory_space<vmem>>, vector<2x2x32xf32>
    tpu.vector_store %arg11[%c0_50, %c0_51, %c96], %41 {strides = array<i32>} : memref<2x2x288xf32, #tpu.memory_space<vmem>>, vector<2x2x32xf32>,
    %c1_52 = arith.constant 1 : index
    %c1_53 = arith.constant 1 : index
    %c0_54 = arith.constant 0 : index
    %43 = vector.load %arg10[%c1_52, %c1_53, %c0_54] : memref<4x4x32xf32, #tpu.memory_space<vmem>>, vector<2x2x32xf32>
    %c0_55 = arith.constant 0 : index
    %c0_56 = arith.constant 0 : index
    %c128 = arith.constant 128 : index
    %44 = vector.load %arg11[%c0_55, %c0_56, %c128] : memref<2x2x288xf32, #tpu.memory_space<vmem>>, vector<2x2x32xf32>
    tpu.vector_store %arg11[%c0_55, %c0_56, %c128], %43 {strides = array<i32>} : memref<2x2x288xf32, #tpu.memory_space<vmem>>, vector<2x2x32xf32>,
    %c1_57 = arith.constant 1 : index
    %c2_58 = arith.constant 2 : index
    %c0_59 = arith.constant 0 : index
    %45 = vector.load %arg10[%c1_57, %c2_58, %c0_59] : memref<4x4x32xf32, #tpu.memory_space<vmem>>, vector<2x2x32xf32>
    %c0_60 = arith.constant 0 : index
    %c0_61 = arith.constant 0 : index
    %c160 = arith.constant 160 : index
    %46 = vector.load %arg11[%c0_60, %c0_61, %c160] : memref<2x2x288xf32, #tpu.memory_space<vmem>>, vector<2x2x32xf32>
    tpu.vector_store %arg11[%c0_60, %c0_61, %c160], %45 {strides = array<i32>} : memref<2x2x288xf32, #tpu.memory_space<vmem>>, vector<2x2x32xf32>,
    %c2_62 = arith.constant 2 : index
    %c0_63 = arith.constant 0 : index
    %c0_64 = arith.constant 0 : index
    %47 = vector.load %arg10[%c2_62, %c0_63, %c0_64] : memref<4x4x32xf32, #tpu.memory_space<vmem>>, vector<2x2x32xf32>
    %c0_65 = arith.constant 0 : index
    %c0_66 = arith.constant 0 : index
    %c192 = arith.constant 192 : index
    %48 = vector.load %arg11[%c0_65, %c0_66, %c192] : memref<2x2x288xf32, #tpu.memory_space<vmem>>, vector<2x2x32xf32>
    tpu.vector_store %arg11[%c0_65, %c0_66, %c192], %47 {strides = array<i32>} : memref<2x2x288xf32, #tpu.memory_space<vmem>>, vector<2x2x32xf32>,
    %c2_67 = arith.constant 2 : index
    %c1_68 = arith.constant 1 : index
    %c0_69 = arith.constant 0 : index
    %49 = vector.load %arg10[%c2_67, %c1_68, %c0_69] : memref<4x4x32xf32, #tpu.memory_space<vmem>>, vector<2x2x32xf32>
    %c0_70 = arith.constant 0 : index
    %c0_71 = arith.constant 0 : index
    %c224 = arith.constant 224 : index
    %50 = vector.load %arg11[%c0_70, %c0_71, %c224] : memref<2x2x288xf32, #tpu.memory_space<vmem>>, vector<2x2x32xf32>
    tpu.vector_store %arg11[%c0_70, %c0_71, %c224], %49 {strides = array<i32>} : memref<2x2x288xf32, #tpu.memory_space<vmem>>, vector<2x2x32xf32>,
    %c2_72 = arith.constant 2 : index
    %c2_73 = arith.constant 2 : index
    %c0_74 = arith.constant 0 : index
    %51 = vector.load %arg10[%c2_72, %c2_73, %c0_74] : memref<4x4x32xf32, #tpu.memory_space<vmem>>, vector<2x2x32xf32>
    %c0_75 = arith.constant 0 : index
    %c0_76 = arith.constant 0 : index
    %c256 = arith.constant 256 : index
    %52 = vector.load %arg11[%c0_75, %c0_76, %c256] : memref<2x2x288xf32, #tpu.memory_space<vmem>>, vector<2x2x32xf32>
    tpu.vector_store %arg11[%c0_75, %c0_76, %c256], %51 {strides = array<i32>} : memref<2x2x288xf32, #tpu.memory_space<vmem>>, vector<2x2x32xf32>,
    %c0_77 = arith.constant 0 : index
    %c0_78 = arith.constant 0 : index
    %c0_79 = arith.constant 0 : index
    %53 = vector.load %arg11[%c0_77, %c0_78, %c0_79] : memref<2x2x288xf32, #tpu.memory_space<vmem>>, vector<2x2x288xf32>
    %54 = vector.shape_cast %53 : vector<2x2x288xf32> to vector<4x288xf32>
    %55 = arith.truncf %54 : vector<4x288xf32> to vector<4x288xbf16>
    %c0_80 = arith.constant 0 : index
    %c0_81 = arith.constant 0 : index
    %c0_82 = arith.constant 0 : index
    %56 = vector.load %arg7[%c0_80, %c0_81, %c0_82] : memref<2x288x8xbf16, #tpu.memory_space<vmem>>, vector<1x288x8xbf16>
    %57 = vector.shape_cast %56 : vector<1x288x8xbf16> to vector<288x8xbf16>
    %cst_83 = arith.constant dense<0.000000e+00> : vector<4x8xf32>
    %58 = tpu.matmul %55, %57, %cst_83 {dimension_numbers = #tpu.dot_dimension_numbers<[1], [0], [0], [1], [0, 0, 1, 1], [], []>} : vector<4x288xbf16>, vector<288x8xbf16>, vector<4x8xf32> -> vector<4x8xf32>
    %c0_84 = arith.constant 0 : index
    %c16 = arith.constant 16 : index
    %59 = vector.load %arg9[%c0_84, %c16] : memref<4x32xf32, #tpu.memory_space<vmem>>, vector<4x8xf32>
    tpu.vector_store %arg9[%c0_84, %c16], %58 {strides = array<i32>} : memref<4x32xf32, #tpu.memory_space<vmem>>, vector<4x8xf32>,
    %c0_85 = arith.constant 0 : index
    %c0_86 = arith.constant 0 : index
    %60 = vector.load %arg9[%c0_85, %c0_86] : memref<4x32xf32, #tpu.memory_space<vmem>>, vector<4x32xf32>
    %c1_87 = arith.constant 1 : index
    %c0_88 = arith.constant 0 : index
    %c0_89 = arith.constant 0 : index
    %61 = vector.load %arg2[%c1_87, %c0_88, %c0_89] : memref<2x1x32xf32, #tpu.memory_space<vmem>>, vector<1x1x32xf32>
    %62 = vector.shape_cast %61 : vector<1x1x32xf32> to vector<1x32xf32>
    %63 = vector.broadcast %62 : vector<1x32xf32> to vector<4x32xf32>
    %64 = arith.mulf %60, %63 : vector<4x32xf32>
    %c1_90 = arith.constant 1 : index
    %c0_91 = arith.constant 0 : index
    %c0_92 = arith.constant 0 : index
    %65 = vector.load %arg3[%c1_90, %c0_91, %c0_92] : memref<2x1x32xf32, #tpu.memory_space<vmem>>, vector<1x1x32xf32>
    %66 = vector.shape_cast %65 : vector<1x1x32xf32> to vector<1x32xf32>
    %67 = vector.broadcast %66 : vector<1x32xf32> to vector<4x32xf32>
    %68 = arith.addf %64, %67 : vector<4x32xf32>
    %cst_93 = arith.constant 0.000000e+00 : f32
    %69 = vector.broadcast %cst_93 : f32 to vector<4x32xf32>
    %70 = arith.maximumf %68, %69 : vector<4x32xf32>
    %71 = arith.truncf %70 : vector<4x32xf32> to vector<4x32xbf16>
    %c1_94 = arith.constant 1 : index
    %c0_95 = arith.constant 0 : index
    %c0_96 = arith.constant 0 : index
    %72 = vector.load %arg4[%c1_94, %c0_95, %c0_96] : memref<2x32x32xbf16, #tpu.memory_space<vmem>>, vector<1x32x32xbf16>
    %73 = vector.shape_cast %72 : vector<1x32x32xbf16> to vector<32x32xbf16>
    %cst_97 = arith.constant dense<0.000000e+00> : vector<4x32xf32>
    %74 = tpu.matmul %71, %73, %cst_97 {dimension_numbers = #tpu.dot_dimension_numbers<[1], [0], [0], [1], [0, 0, 1, 1], [], []>} : vector<4x32xbf16>, vector<32x32xbf16>, vector<4x32xf32> -> vector<4x32xf32>
    %c1_98 = arith.constant 1 : index
    %c0_99 = arith.constant 0 : index
    %c0_100 = arith.constant 0 : index
    %75 = vector.load %arg5[%c1_98, %c0_99, %c0_100] : memref<2x1x32xf32, #tpu.memory_space<vmem>>, vector<1x1x32xf32>
    %76 = vector.shape_cast %75 : vector<1x1x32xf32> to vector<1x32xf32>
    %77 = vector.broadcast %76 : vector<1x32xf32> to vector<4x32xf32>
    %78 = arith.mulf %74, %77 : vector<4x32xf32>
    %c1_101 = arith.constant 1 : index
    %c0_102 = arith.constant 0 : index
    %c0_103 = arith.constant 0 : index
    %79 = vector.load %arg6[%c1_101, %c0_102, %c0_103] : memref<2x1x32xf32, #tpu.memory_space<vmem>>, vector<1x1x32xf32>
    %80 = vector.shape_cast %79 : vector<1x1x32xf32> to vector<1x32xf32>
    %81 = vector.broadcast %80 : vector<1x32xf32> to vector<4x32xf32>
    %82 = arith.addf %78, %81 : vector<4x32xf32>
    %cst_104 = arith.constant 0.000000e+00 : f32
    %83 = vector.broadcast %cst_104 : f32 to vector<4x32xf32>
    %84 = arith.maximumf %82, %83 : vector<4x32xf32>
    %85 = vector.shape_cast %84 : vector<4x32xf32> to vector<2x2x32xf32>
    %c1_105 = arith.constant 1 : index
    %c1_106 = arith.constant 1 : index
    %c0_107 = arith.constant 0 : index
    %86 = vector.load %arg10[%c1_105, %c1_106, %c0_107] : memref<4x4x32xf32, #tpu.memory_space<vmem>>, vector<2x2x32xf32>
    tpu.vector_store %arg10[%c1_105, %c1_106, %c0_107], %85 {strides = array<i32>} : memref<4x4x32xf32, #tpu.memory_space<vmem>>, vector<2x2x32xf32>,
    %c0_108 = arith.constant 0 : index
    %c0_109 = arith.constant 0 : index
    %c0_110 = arith.constant 0 : index
    %87 = vector.load %arg10[%c0_108, %c0_109, %c0_110] : memref<4x4x32xf32, #tpu.memory_space<vmem>>, vector<2x2x32xf32>
    %c0_111 = arith.constant 0 : index
    %c0_112 = arith.constant 0 : index
    %c0_113 = arith.constant 0 : index
    %88 = vector.load %arg11[%c0_111, %c0_112, %c0_113] : memref<2x2x288xf32, #tpu.memory_space<vmem>>, vector<2x2x32xf32>
    tpu.vector_store %arg11[%c0_111, %c0_112, %c0_113], %87 {strides = array<i32>} : memref<2x2x288xf32, #tpu.memory_space<vmem>>, vector<2x2x32xf32>,
    %c0_114 = arith.constant 0 : index
    %c1_115 = arith.constant 1 : index
    %c0_116 = arith.constant 0 : index
    %89 = vector.load %arg10[%c0_114, %c1_115, %c0_116] : memref<4x4x32xf32, #tpu.memory_space<vmem>>, vector<2x2x32xf32>
    %c0_117 = arith.constant 0 : index
    %c0_118 = arith.constant 0 : index
    %c32_119 = arith.constant 32 : index
    %90 = vector.load %arg11[%c0_117, %c0_118, %c32_119] : memref<2x2x288xf32, #tpu.memory_space<vmem>>, vector<2x2x32xf32>
    tpu.vector_store %arg11[%c0_117, %c0_118, %c32_119], %89 {strides = array<i32>} : memref<2x2x288xf32, #tpu.memory_space<vmem>>, vector<2x2x32xf32>,
    %c0_120 = arith.constant 0 : index
    %c2_121 = arith.constant 2 : index
    %c0_122 = arith.constant 0 : index
    %91 = vector.load %arg10[%c0_120, %c2_121, %c0_122] : memref<4x4x32xf32, #tpu.memory_space<vmem>>, vector<2x2x32xf32>
    %c0_123 = arith.constant 0 : index
    %c0_124 = arith.constant 0 : index
    %c64_125 = arith.constant 64 : index
    %92 = vector.load %arg11[%c0_123, %c0_124, %c64_125] : memref<2x2x288xf32, #tpu.memory_space<vmem>>, vector<2x2x32xf32>
    tpu.vector_store %arg11[%c0_123, %c0_124, %c64_125], %91 {strides = array<i32>} : memref<2x2x288xf32, #tpu.memory_space<vmem>>, vector<2x2x32xf32>,
    %c1_126 = arith.constant 1 : index
    %c0_127 = arith.constant 0 : index
    %c0_128 = arith.constant 0 : index
    %93 = vector.load %arg10[%c1_126, %c0_127, %c0_128] : memref<4x4x32xf32, #tpu.memory_space<vmem>>, vector<2x2x32xf32>
    %c0_129 = arith.constant 0 : index
    %c0_130 = arith.constant 0 : index
    %c96_131 = arith.constant 96 : index
    %94 = vector.load %arg11[%c0_129, %c0_130, %c96_131] : memref<2x2x288xf32, #tpu.memory_space<vmem>>, vector<2x2x32xf32>
    tpu.vector_store %arg11[%c0_129, %c0_130, %c96_131], %93 {strides = array<i32>} : memref<2x2x288xf32, #tpu.memory_space<vmem>>, vector<2x2x32xf32>,
    %c1_132 = arith.constant 1 : index
    %c1_133 = arith.constant 1 : index
    %c0_134 = arith.constant 0 : index
    %95 = vector.load %arg10[%c1_132, %c1_133, %c0_134] : memref<4x4x32xf32, #tpu.memory_space<vmem>>, vector<2x2x32xf32>
    %c0_135 = arith.constant 0 : index
    %c0_136 = arith.constant 0 : index
    %c128_137 = arith.constant 128 : index
    %96 = vector.load %arg11[%c0_135, %c0_136, %c128_137] : memref<2x2x288xf32, #tpu.memory_space<vmem>>, vector<2x2x32xf32>
    tpu.vector_store %arg11[%c0_135, %c0_136, %c128_137], %95 {strides = array<i32>} : memref<2x2x288xf32, #tpu.memory_space<vmem>>, vector<2x2x32xf32>,
    %c1_138 = arith.constant 1 : index
    %c2_139 = arith.constant 2 : index
    %c0_140 = arith.constant 0 : index
    %97 = vector.load %arg10[%c1_138, %c2_139, %c0_140] : memref<4x4x32xf32, #tpu.memory_space<vmem>>, vector<2x2x32xf32>
    %c0_141 = arith.constant 0 : index
    %c0_142 = arith.constant 0 : index
    %c160_143 = arith.constant 160 : index
    %98 = vector.load %arg11[%c0_141, %c0_142, %c160_143] : memref<2x2x288xf32, #tpu.memory_space<vmem>>, vector<2x2x32xf32>
    tpu.vector_store %arg11[%c0_141, %c0_142, %c160_143], %97 {strides = array<i32>} : memref<2x2x288xf32, #tpu.memory_space<vmem>>, vector<2x2x32xf32>,
    %c2_144 = arith.constant 2 : index
    %c0_145 = arith.constant 0 : index
    %c0_146 = arith.constant 0 : index
    %99 = vector.load %arg10[%c2_144, %c0_145, %c0_146] : memref<4x4x32xf32, #tpu.memory_space<vmem>>, vector<2x2x32xf32>
    %c0_147 = arith.constant 0 : index
    %c0_148 = arith.constant 0 : index
    %c192_149 = arith.constant 192 : index
    %100 = vector.load %arg11[%c0_147, %c0_148, %c192_149] : memref<2x2x288xf32, #tpu.memory_space<vmem>>, vector<2x2x32xf32>
    tpu.vector_store %arg11[%c0_147, %c0_148, %c192_149], %99 {strides = array<i32>} : memref<2x2x288xf32, #tpu.memory_space<vmem>>, vector<2x2x32xf32>,
    %c2_150 = arith.constant 2 : index
    %c1_151 = arith.constant 1 : index
    %c0_152 = arith.constant 0 : index
    %101 = vector.load %arg10[%c2_150, %c1_151, %c0_152] : memref<4x4x32xf32, #tpu.memory_space<vmem>>, vector<2x2x32xf32>
    %c0_153 = arith.constant 0 : index
    %c0_154 = arith.constant 0 : index
    %c224_155 = arith.constant 224 : index
    %102 = vector.load %arg11[%c0_153, %c0_154, %c224_155] : memref<2x2x288xf32, #tpu.memory_space<vmem>>, vector<2x2x32xf32>
    tpu.vector_store %arg11[%c0_153, %c0_154, %c224_155], %101 {strides = array<i32>} : memref<2x2x288xf32, #tpu.memory_space<vmem>>, vector<2x2x32xf32>,
    %c2_156 = arith.constant 2 : index
    %c2_157 = arith.constant 2 : index
    %c0_158 = arith.constant 0 : index
    %103 = vector.load %arg10[%c2_156, %c2_157, %c0_158] : memref<4x4x32xf32, #tpu.memory_space<vmem>>, vector<2x2x32xf32>
    %c0_159 = arith.constant 0 : index
    %c0_160 = arith.constant 0 : index
    %c256_161 = arith.constant 256 : index
    %104 = vector.load %arg11[%c0_159, %c0_160, %c256_161] : memref<2x2x288xf32, #tpu.memory_space<vmem>>, vector<2x2x32xf32>
    tpu.vector_store %arg11[%c0_159, %c0_160, %c256_161], %103 {strides = array<i32>} : memref<2x2x288xf32, #tpu.memory_space<vmem>>, vector<2x2x32xf32>,
    %c0_162 = arith.constant 0 : index
    %c0_163 = arith.constant 0 : index
    %c0_164 = arith.constant 0 : index
    %105 = vector.load %arg11[%c0_162, %c0_163, %c0_164] : memref<2x2x288xf32, #tpu.memory_space<vmem>>, vector<2x2x288xf32>
    %106 = vector.shape_cast %105 : vector<2x2x288xf32> to vector<4x288xf32>
    %107 = arith.truncf %106 : vector<4x288xf32> to vector<4x288xbf16>
    %c1_165 = arith.constant 1 : index
    %c0_166 = arith.constant 0 : index
    %c0_167 = arith.constant 0 : index
    %108 = vector.load %arg7[%c1_165, %c0_166, %c0_167] : memref<2x288x8xbf16, #tpu.memory_space<vmem>>, vector<1x288x8xbf16>
    %109 = vector.shape_cast %108 : vector<1x288x8xbf16> to vector<288x8xbf16>
    %cst_168 = arith.constant dense<0.000000e+00> : vector<4x8xf32>
    %110 = tpu.matmul %107, %109, %cst_168 {dimension_numbers = #tpu.dot_dimension_numbers<[1], [0], [0], [1], [0, 0, 1, 1], [], []>} : vector<4x288xbf16>, vector<288x8xbf16>, vector<4x8xf32> -> vector<4x8xf32>
    %c0_169 = arith.constant 0 : index
    %c24 = arith.constant 24 : index
    %111 = vector.load %arg9[%c0_169, %c24] : memref<4x32xf32, #tpu.memory_space<vmem>>, vector<4x8xf32>
    tpu.vector_store %arg9[%c0_169, %c24], %110 {strides = array<i32>} : memref<4x32xf32, #tpu.memory_space<vmem>>, vector<4x8xf32>,
    %c0_170 = arith.constant 0 : index
    %c0_171 = arith.constant 0 : index
    %112 = vector.load %arg9[%c0_170, %c0_171] : memref<4x32xf32, #tpu.memory_space<vmem>>, vector<4x32xf32>
    %113 = vector.shape_cast %112 : vector<4x32xf32> to vector<1x4x32xf32>
    %114 = arith.truncf %113 : vector<1x4x32xf32> to vector<1x4x32xbf16>
    %c0_172 = arith.constant 0 : index
    %c0_173 = arith.constant 0 : index
    %c0_174 = arith.constant 0 : index
    %115 = vector.load %arg8[%c0_172, %c0_173, %c0_174] : memref<1x4x32xbf16, #tpu.memory_space<vmem>>, vector<1x4x32xbf16>
    tpu.vector_store %arg8[%c0_172, %c0_173, %c0_174], %114 {strides = array<i32>} : memref<1x4x32xbf16, #tpu.memory_space<vmem>>, vector<1x4x32xbf16>,
    return
  }
  func.func @transform_0(%arg0: i32) -> (i32, i32, i32) {
    %c0_i32 = arith.constant 0 : i32
    %c0_i32_0 = arith.constant 0 : i32
    %c0_i32_1 = arith.constant 0 : i32
    return %arg0, %c0_i32, %c0_i32_0 : i32, i32, i32
  }
  func.func @transform_1(%arg0: i32) -> (i32, i32, i32) {
    %c0_i32 = arith.constant 0 : i32
    %c0_i32_0 = arith.constant 0 : i32
    %c0_i32_1 = arith.constant 0 : i32
    %c0_i32_2 = arith.constant 0 : i32
    return %c0_i32, %c0_i32_0, %c0_i32_1 : i32, i32, i32
  }
  func.func @transform_2(%arg0: i32) -> (i32, i32, i32) {
    %c0_i32 = arith.constant 0 : i32
    %c0_i32_0 = arith.constant 0 : i32
    %c0_i32_1 = arith.constant 0 : i32
    %c0_i32_2 = arith.constant 0 : i32
    return %c0_i32, %c0_i32_0, %c0_i32_1 : i32, i32, i32
  }
  func.func @transform_3(%arg0: i32) -> (i32, i32, i32) {
    %c0_i32 = arith.constant 0 : i32
    %c0_i32_0 = arith.constant 0 : i32
    %c0_i32_1 = arith.constant 0 : i32
    %c0_i32_2 = arith.constant 0 : i32
    return %c0_i32, %c0_i32_0, %c0_i32_1 : i32, i32, i32
  }
  func.func @transform_4(%arg0: i32) -> (i32, i32, i32) {
    %c0_i32 = arith.constant 0 : i32
    %c0_i32_0 = arith.constant 0 : i32
    %c0_i32_1 = arith.constant 0 : i32
    %c0_i32_2 = arith.constant 0 : i32
    return %c0_i32, %c0_i32_0, %c0_i32_1 : i32, i32, i32
  }
  func.func @transform_5(%arg0: i32) -> (i32, i32, i32) {
    %c0_i32 = arith.constant 0 : i32
    %c0_i32_0 = arith.constant 0 : i32
    %c0_i32_1 = arith.constant 0 : i32
    %c0_i32_2 = arith.constant 0 : i32
    return %c0_i32, %c0_i32_0, %c0_i32_1 : i32, i32, i32
  }
  func.func @transform_6(%arg0: i32) -> (i32, i32, i32) {
    %c0_i32 = arith.constant 0 : i32
    %c0_i32_0 = arith.constant 0 : i32
    %c0_i32_1 = arith.constant 0 : i32
    %c0_i32_2 = arith.constant 0 : i32
    return %c0_i32, %c0_i32_0, %c0_i32_1 : i32, i32, i32
  }
  func.func @transform_7(%arg0: i32) -> (i32, i32, i32) {
    %c0_i32 = arith.constant 0 : i32
    %c0_i32_0 = arith.constant 0 : i32
    %c0_i32_1 = arith.constant 0 : i32
    return %arg0, %c0_i32, %c0_i32_0 : i32, i32, i32
  }
}

module attributes {stable_mosaic.version = 11 : i64} {
  func.func @_dense_block_kernel(%arg0: i32, %arg1: memref<1x1x16xbf16, #tpu.memory_space<vmem>>, %arg2: memref<2x1x32xf32, #tpu.memory_space<vmem>>, %arg3: memref<2x1x32xf32, #tpu.memory_space<vmem>>, %arg4: memref<2x32x32xbf16, #tpu.memory_space<vmem>>, %arg5: memref<2x1x32xf32, #tpu.memory_space<vmem>>, %arg6: memref<2x1x32xf32, #tpu.memory_space<vmem>>, %arg7: memref<2x288x8xbf16, #tpu.memory_space<vmem>>, %arg8: memref<1x1x32xbf16, #tpu.memory_space<vmem>>, %arg9: memref<1x32xf32, #tpu.memory_space<vmem>>, %arg10: memref<3x3x32xf32, #tpu.memory_space<vmem>>, %arg11: memref<1x1x288xf32, #tpu.memory_space<vmem>>) attributes {dimension_semantics = [#tpu.dimension_semantics<parallel>], iteration_bounds = array<i64: 2>, scalar_prefetch = 0 : i64, scratch_operands = 3 : i64, tpu.core_type = #tpu.core_type<tc>, window_params = [{transform_indices = @transform_0, window_bounds = array<i64: 1, 1, 16>}, {pipeline_mode = #tpu.pipeline_mode<synchronous>, transform_indices = @transform_1, window_bounds = array<i64: 2, 1, 32>}, {pipeline_mode = #tpu.pipeline_mode<synchronous>, transform_indices = @transform_2, window_bounds = array<i64: 2, 1, 32>}, {pipeline_mode = #tpu.pipeline_mode<synchronous>, transform_indices = @transform_3, window_bounds = array<i64: 2, 32, 32>}, {pipeline_mode = #tpu.pipeline_mode<synchronous>, transform_indices = @transform_4, window_bounds = array<i64: 2, 1, 32>}, {pipeline_mode = #tpu.pipeline_mode<synchronous>, transform_indices = @transform_5, window_bounds = array<i64: 2, 1, 32>}, {pipeline_mode = #tpu.pipeline_mode<synchronous>, transform_indices = @transform_6, window_bounds = array<i64: 2, 288, 8>}, {transform_indices = @transform_7, window_bounds = array<i64: 1, 1, 32>}]} {
    %cst = arith.constant 0.000000e+00 : f32
    %0 = vector.broadcast %cst : f32 to vector<1x32xf32>
    %c0 = arith.constant 0 : index
    %c0_0 = arith.constant 0 : index
    %1 = vector.load %arg9[%c0, %c0_0] : memref<1x32xf32, #tpu.memory_space<vmem>>, vector<1x32xf32>
    tpu.vector_store %arg9[%c0, %c0_0], %0 {strides = array<i32>} : memref<1x32xf32, #tpu.memory_space<vmem>>, vector<1x32xf32>,
    %cst_1 = arith.constant 0.000000e+00 : f32
    %2 = vector.broadcast %cst_1 : f32 to vector<3x3x32xf32>
    %c0_2 = arith.constant 0 : index
    %c0_3 = arith.constant 0 : index
    %c0_4 = arith.constant 0 : index
    %3 = vector.load %arg10[%c0_2, %c0_3, %c0_4] : memref<3x3x32xf32, #tpu.memory_space<vmem>>, vector<3x3x32xf32>
    tpu.vector_store %arg10[%c0_2, %c0_3, %c0_4], %2 {strides = array<i32>} : memref<3x3x32xf32, #tpu.memory_space<vmem>>, vector<3x3x32xf32>,
    %c0_5 = arith.constant 0 : index
    %c0_6 = arith.constant 0 : index
    %c0_7 = arith.constant 0 : index
    %4 = vector.load %arg1[%c0_5, %c0_6, %c0_7] : memref<1x1x16xbf16, #tpu.memory_space<vmem>>, vector<1x1x16xbf16>
    %5 = vector.shape_cast %4 : vector<1x1x16xbf16> to vector<1x16xbf16>
    %6 = arith.extf %5 : vector<1x16xbf16> to vector<1x16xf32>
    %c0_8 = arith.constant 0 : index
    %c0_9 = arith.constant 0 : index
    %7 = vector.load %arg9[%c0_8, %c0_9] : memref<1x32xf32, #tpu.memory_space<vmem>>, vector<1x16xf32>
    tpu.vector_store %arg9[%c0_8, %c0_9], %6 {strides = array<i32>} : memref<1x32xf32, #tpu.memory_space<vmem>>, vector<1x16xf32>,
    %c0_10 = arith.constant 0 : index
    %c0_11 = arith.constant 0 : index
    %8 = vector.load %arg9[%c0_10, %c0_11] : memref<1x32xf32, #tpu.memory_space<vmem>>, vector<1x32xf32>
    %c0_12 = arith.constant 0 : index
    %c0_13 = arith.constant 0 : index
    %c0_14 = arith.constant 0 : index
    %9 = vector.load %arg2[%c0_12, %c0_13, %c0_14] : memref<2x1x32xf32, #tpu.memory_space<vmem>>, vector<1x1x32xf32>
    %10 = vector.shape_cast %9 : vector<1x1x32xf32> to vector<1x32xf32>
    %11 = arith.mulf %8, %10 : vector<1x32xf32>
    %c0_15 = arith.constant 0 : index
    %c0_16 = arith.constant 0 : index
    %c0_17 = arith.constant 0 : index
    %12 = vector.load %arg3[%c0_15, %c0_16, %c0_17] : memref<2x1x32xf32, #tpu.memory_space<vmem>>, vector<1x1x32xf32>
    %13 = vector.shape_cast %12 : vector<1x1x32xf32> to vector<1x32xf32>
    %14 = arith.addf %11, %13 : vector<1x32xf32>
    %cst_18 = arith.constant 0.000000e+00 : f32
    %15 = vector.broadcast %cst_18 : f32 to vector<1x32xf32>
    %16 = arith.maximumf %14, %15 : vector<1x32xf32>
    %17 = arith.truncf %16 : vector<1x32xf32> to vector<1x32xbf16>
    %c0_19 = arith.constant 0 : index
    %c0_20 = arith.constant 0 : index
    %c0_21 = arith.constant 0 : index
    %18 = vector.load %arg4[%c0_19, %c0_20, %c0_21] : memref<2x32x32xbf16, #tpu.memory_space<vmem>>, vector<1x32x32xbf16>
    %19 = vector.shape_cast %18 : vector<1x32x32xbf16> to vector<32x32xbf16>
    %cst_22 = arith.constant dense<0.000000e+00> : vector<1x32xf32>
    %20 = tpu.matmul %17, %19, %cst_22 {dimension_numbers = #tpu.dot_dimension_numbers<[1], [0], [0], [1], [0, 0, 1, 1], [], []>} : vector<1x32xbf16>, vector<32x32xbf16>, vector<1x32xf32> -> vector<1x32xf32>
    %c0_23 = arith.constant 0 : index
    %c0_24 = arith.constant 0 : index
    %c0_25 = arith.constant 0 : index
    %21 = vector.load %arg5[%c0_23, %c0_24, %c0_25] : memref<2x1x32xf32, #tpu.memory_space<vmem>>, vector<1x1x32xf32>
    %22 = vector.shape_cast %21 : vector<1x1x32xf32> to vector<1x32xf32>
    %23 = arith.mulf %20, %22 : vector<1x32xf32>
    %c0_26 = arith.constant 0 : index
    %c0_27 = arith.constant 0 : index
    %c0_28 = arith.constant 0 : index
    %24 = vector.load %arg6[%c0_26, %c0_27, %c0_28] : memref<2x1x32xf32, #tpu.memory_space<vmem>>, vector<1x1x32xf32>
    %25 = vector.shape_cast %24 : vector<1x1x32xf32> to vector<1x32xf32>
    %26 = arith.addf %23, %25 : vector<1x32xf32>
    %cst_29 = arith.constant 0.000000e+00 : f32
    %27 = vector.broadcast %cst_29 : f32 to vector<1x32xf32>
    %28 = arith.maximumf %26, %27 : vector<1x32xf32>
    %29 = vector.shape_cast %28 : vector<1x32xf32> to vector<1x1x32xf32>
    %c1 = arith.constant 1 : index
    %c1_30 = arith.constant 1 : index
    %c0_31 = arith.constant 0 : index
    %30 = vector.load %arg10[%c1, %c1_30, %c0_31] : memref<3x3x32xf32, #tpu.memory_space<vmem>>, vector<1x1x32xf32>
    tpu.vector_store %arg10[%c1, %c1_30, %c0_31], %29 {strides = array<i32>} : memref<3x3x32xf32, #tpu.memory_space<vmem>>, vector<1x1x32xf32>,
    %c0_32 = arith.constant 0 : index
    %c0_33 = arith.constant 0 : index
    %c0_34 = arith.constant 0 : index
    %31 = vector.load %arg10[%c0_32, %c0_33, %c0_34] : memref<3x3x32xf32, #tpu.memory_space<vmem>>, vector<1x1x32xf32>
    %c0_35 = arith.constant 0 : index
    %c0_36 = arith.constant 0 : index
    %c0_37 = arith.constant 0 : index
    %32 = vector.load %arg11[%c0_35, %c0_36, %c0_37] : memref<1x1x288xf32, #tpu.memory_space<vmem>>, vector<1x1x32xf32>
    tpu.vector_store %arg11[%c0_35, %c0_36, %c0_37], %31 {strides = array<i32>} : memref<1x1x288xf32, #tpu.memory_space<vmem>>, vector<1x1x32xf32>,
    %c0_38 = arith.constant 0 : index
    %c1_39 = arith.constant 1 : index
    %c0_40 = arith.constant 0 : index
    %33 = vector.load %arg10[%c0_38, %c1_39, %c0_40] : memref<3x3x32xf32, #tpu.memory_space<vmem>>, vector<1x1x32xf32>
    %c0_41 = arith.constant 0 : index
    %c0_42 = arith.constant 0 : index
    %c32 = arith.constant 32 : index
    %34 = vector.load %arg11[%c0_41, %c0_42, %c32] : memref<1x1x288xf32, #tpu.memory_space<vmem>>, vector<1x1x32xf32>
    tpu.vector_store %arg11[%c0_41, %c0_42, %c32], %33 {strides = array<i32>} : memref<1x1x288xf32, #tpu.memory_space<vmem>>, vector<1x1x32xf32>,
    %c0_43 = arith.constant 0 : index
    %c2 = arith.constant 2 : index
    %c0_44 = arith.constant 0 : index
    %35 = vector.load %arg10[%c0_43, %c2, %c0_44] : memref<3x3x32xf32, #tpu.memory_space<vmem>>, vector<1x1x32xf32>
    %c0_45 = arith.constant 0 : index
    %c0_46 = arith.constant 0 : index
    %c64 = arith.constant 64 : index
    %36 = vector.load %arg11[%c0_45, %c0_46, %c64] : memref<1x1x288xf32, #tpu.memory_space<vmem>>, vector<1x1x32xf32>
    tpu.vector_store %arg11[%c0_45, %c0_46, %c64], %35 {strides = array<i32>} : memref<1x1x288xf32, #tpu.memory_space<vmem>>, vector<1x1x32xf32>,
    %c1_47 = arith.constant 1 : index
    %c0_48 = arith.constant 0 : index
    %c0_49 = arith.constant 0 : index
    %37 = vector.load %arg10[%c1_47, %c0_48, %c0_49] : memref<3x3x32xf32, #tpu.memory_space<vmem>>, vector<1x1x32xf32>
    %c0_50 = arith.constant 0 : index
    %c0_51 = arith.constant 0 : index
    %c96 = arith.constant 96 : index
    %38 = vector.load %arg11[%c0_50, %c0_51, %c96] : memref<1x1x288xf32, #tpu.memory_space<vmem>>, vector<1x1x32xf32>
    tpu.vector_store %arg11[%c0_50, %c0_51, %c96], %37 {strides = array<i32>} : memref<1x1x288xf32, #tpu.memory_space<vmem>>, vector<1x1x32xf32>,
    %c1_52 = arith.constant 1 : index
    %c1_53 = arith.constant 1 : index
    %c0_54 = arith.constant 0 : index
    %39 = vector.load %arg10[%c1_52, %c1_53, %c0_54] : memref<3x3x32xf32, #tpu.memory_space<vmem>>, vector<1x1x32xf32>
    %c0_55 = arith.constant 0 : index
    %c0_56 = arith.constant 0 : index
    %c128 = arith.constant 128 : index
    %40 = vector.load %arg11[%c0_55, %c0_56, %c128] : memref<1x1x288xf32, #tpu.memory_space<vmem>>, vector<1x1x32xf32>
    tpu.vector_store %arg11[%c0_55, %c0_56, %c128], %39 {strides = array<i32>} : memref<1x1x288xf32, #tpu.memory_space<vmem>>, vector<1x1x32xf32>,
    %c1_57 = arith.constant 1 : index
    %c2_58 = arith.constant 2 : index
    %c0_59 = arith.constant 0 : index
    %41 = vector.load %arg10[%c1_57, %c2_58, %c0_59] : memref<3x3x32xf32, #tpu.memory_space<vmem>>, vector<1x1x32xf32>
    %c0_60 = arith.constant 0 : index
    %c0_61 = arith.constant 0 : index
    %c160 = arith.constant 160 : index
    %42 = vector.load %arg11[%c0_60, %c0_61, %c160] : memref<1x1x288xf32, #tpu.memory_space<vmem>>, vector<1x1x32xf32>
    tpu.vector_store %arg11[%c0_60, %c0_61, %c160], %41 {strides = array<i32>} : memref<1x1x288xf32, #tpu.memory_space<vmem>>, vector<1x1x32xf32>,
    %c2_62 = arith.constant 2 : index
    %c0_63 = arith.constant 0 : index
    %c0_64 = arith.constant 0 : index
    %43 = vector.load %arg10[%c2_62, %c0_63, %c0_64] : memref<3x3x32xf32, #tpu.memory_space<vmem>>, vector<1x1x32xf32>
    %c0_65 = arith.constant 0 : index
    %c0_66 = arith.constant 0 : index
    %c192 = arith.constant 192 : index
    %44 = vector.load %arg11[%c0_65, %c0_66, %c192] : memref<1x1x288xf32, #tpu.memory_space<vmem>>, vector<1x1x32xf32>
    tpu.vector_store %arg11[%c0_65, %c0_66, %c192], %43 {strides = array<i32>} : memref<1x1x288xf32, #tpu.memory_space<vmem>>, vector<1x1x32xf32>,
    %c2_67 = arith.constant 2 : index
    %c1_68 = arith.constant 1 : index
    %c0_69 = arith.constant 0 : index
    %45 = vector.load %arg10[%c2_67, %c1_68, %c0_69] : memref<3x3x32xf32, #tpu.memory_space<vmem>>, vector<1x1x32xf32>
    %c0_70 = arith.constant 0 : index
    %c0_71 = arith.constant 0 : index
    %c224 = arith.constant 224 : index
    %46 = vector.load %arg11[%c0_70, %c0_71, %c224] : memref<1x1x288xf32, #tpu.memory_space<vmem>>, vector<1x1x32xf32>
    tpu.vector_store %arg11[%c0_70, %c0_71, %c224], %45 {strides = array<i32>} : memref<1x1x288xf32, #tpu.memory_space<vmem>>, vector<1x1x32xf32>,
    %c2_72 = arith.constant 2 : index
    %c2_73 = arith.constant 2 : index
    %c0_74 = arith.constant 0 : index
    %47 = vector.load %arg10[%c2_72, %c2_73, %c0_74] : memref<3x3x32xf32, #tpu.memory_space<vmem>>, vector<1x1x32xf32>
    %c0_75 = arith.constant 0 : index
    %c0_76 = arith.constant 0 : index
    %c256 = arith.constant 256 : index
    %48 = vector.load %arg11[%c0_75, %c0_76, %c256] : memref<1x1x288xf32, #tpu.memory_space<vmem>>, vector<1x1x32xf32>
    tpu.vector_store %arg11[%c0_75, %c0_76, %c256], %47 {strides = array<i32>} : memref<1x1x288xf32, #tpu.memory_space<vmem>>, vector<1x1x32xf32>,
    %c0_77 = arith.constant 0 : index
    %c0_78 = arith.constant 0 : index
    %c0_79 = arith.constant 0 : index
    %49 = vector.load %arg11[%c0_77, %c0_78, %c0_79] : memref<1x1x288xf32, #tpu.memory_space<vmem>>, vector<1x1x288xf32>
    %50 = vector.shape_cast %49 : vector<1x1x288xf32> to vector<1x288xf32>
    %51 = arith.truncf %50 : vector<1x288xf32> to vector<1x288xbf16>
    %c0_80 = arith.constant 0 : index
    %c0_81 = arith.constant 0 : index
    %c0_82 = arith.constant 0 : index
    %52 = vector.load %arg7[%c0_80, %c0_81, %c0_82] : memref<2x288x8xbf16, #tpu.memory_space<vmem>>, vector<1x288x8xbf16>
    %53 = vector.shape_cast %52 : vector<1x288x8xbf16> to vector<288x8xbf16>
    %cst_83 = arith.constant dense<0.000000e+00> : vector<1x8xf32>
    %54 = tpu.matmul %51, %53, %cst_83 {dimension_numbers = #tpu.dot_dimension_numbers<[1], [0], [0], [1], [0, 0, 1, 1], [], []>} : vector<1x288xbf16>, vector<288x8xbf16>, vector<1x8xf32> -> vector<1x8xf32>
    %c0_84 = arith.constant 0 : index
    %c16 = arith.constant 16 : index
    %55 = vector.load %arg9[%c0_84, %c16] : memref<1x32xf32, #tpu.memory_space<vmem>>, vector<1x8xf32>
    tpu.vector_store %arg9[%c0_84, %c16], %54 {strides = array<i32>} : memref<1x32xf32, #tpu.memory_space<vmem>>, vector<1x8xf32>,
    %c0_85 = arith.constant 0 : index
    %c0_86 = arith.constant 0 : index
    %56 = vector.load %arg9[%c0_85, %c0_86] : memref<1x32xf32, #tpu.memory_space<vmem>>, vector<1x32xf32>
    %c1_87 = arith.constant 1 : index
    %c0_88 = arith.constant 0 : index
    %c0_89 = arith.constant 0 : index
    %57 = vector.load %arg2[%c1_87, %c0_88, %c0_89] : memref<2x1x32xf32, #tpu.memory_space<vmem>>, vector<1x1x32xf32>
    %58 = vector.shape_cast %57 : vector<1x1x32xf32> to vector<1x32xf32>
    %59 = arith.mulf %56, %58 : vector<1x32xf32>
    %c1_90 = arith.constant 1 : index
    %c0_91 = arith.constant 0 : index
    %c0_92 = arith.constant 0 : index
    %60 = vector.load %arg3[%c1_90, %c0_91, %c0_92] : memref<2x1x32xf32, #tpu.memory_space<vmem>>, vector<1x1x32xf32>
    %61 = vector.shape_cast %60 : vector<1x1x32xf32> to vector<1x32xf32>
    %62 = arith.addf %59, %61 : vector<1x32xf32>
    %cst_93 = arith.constant 0.000000e+00 : f32
    %63 = vector.broadcast %cst_93 : f32 to vector<1x32xf32>
    %64 = arith.maximumf %62, %63 : vector<1x32xf32>
    %65 = arith.truncf %64 : vector<1x32xf32> to vector<1x32xbf16>
    %c1_94 = arith.constant 1 : index
    %c0_95 = arith.constant 0 : index
    %c0_96 = arith.constant 0 : index
    %66 = vector.load %arg4[%c1_94, %c0_95, %c0_96] : memref<2x32x32xbf16, #tpu.memory_space<vmem>>, vector<1x32x32xbf16>
    %67 = vector.shape_cast %66 : vector<1x32x32xbf16> to vector<32x32xbf16>
    %cst_97 = arith.constant dense<0.000000e+00> : vector<1x32xf32>
    %68 = tpu.matmul %65, %67, %cst_97 {dimension_numbers = #tpu.dot_dimension_numbers<[1], [0], [0], [1], [0, 0, 1, 1], [], []>} : vector<1x32xbf16>, vector<32x32xbf16>, vector<1x32xf32> -> vector<1x32xf32>
    %c1_98 = arith.constant 1 : index
    %c0_99 = arith.constant 0 : index
    %c0_100 = arith.constant 0 : index
    %69 = vector.load %arg5[%c1_98, %c0_99, %c0_100] : memref<2x1x32xf32, #tpu.memory_space<vmem>>, vector<1x1x32xf32>
    %70 = vector.shape_cast %69 : vector<1x1x32xf32> to vector<1x32xf32>
    %71 = arith.mulf %68, %70 : vector<1x32xf32>
    %c1_101 = arith.constant 1 : index
    %c0_102 = arith.constant 0 : index
    %c0_103 = arith.constant 0 : index
    %72 = vector.load %arg6[%c1_101, %c0_102, %c0_103] : memref<2x1x32xf32, #tpu.memory_space<vmem>>, vector<1x1x32xf32>
    %73 = vector.shape_cast %72 : vector<1x1x32xf32> to vector<1x32xf32>
    %74 = arith.addf %71, %73 : vector<1x32xf32>
    %cst_104 = arith.constant 0.000000e+00 : f32
    %75 = vector.broadcast %cst_104 : f32 to vector<1x32xf32>
    %76 = arith.maximumf %74, %75 : vector<1x32xf32>
    %77 = vector.shape_cast %76 : vector<1x32xf32> to vector<1x1x32xf32>
    %c1_105 = arith.constant 1 : index
    %c1_106 = arith.constant 1 : index
    %c0_107 = arith.constant 0 : index
    %78 = vector.load %arg10[%c1_105, %c1_106, %c0_107] : memref<3x3x32xf32, #tpu.memory_space<vmem>>, vector<1x1x32xf32>
    tpu.vector_store %arg10[%c1_105, %c1_106, %c0_107], %77 {strides = array<i32>} : memref<3x3x32xf32, #tpu.memory_space<vmem>>, vector<1x1x32xf32>,
    %c0_108 = arith.constant 0 : index
    %c0_109 = arith.constant 0 : index
    %c0_110 = arith.constant 0 : index
    %79 = vector.load %arg10[%c0_108, %c0_109, %c0_110] : memref<3x3x32xf32, #tpu.memory_space<vmem>>, vector<1x1x32xf32>
    %c0_111 = arith.constant 0 : index
    %c0_112 = arith.constant 0 : index
    %c0_113 = arith.constant 0 : index
    %80 = vector.load %arg11[%c0_111, %c0_112, %c0_113] : memref<1x1x288xf32, #tpu.memory_space<vmem>>, vector<1x1x32xf32>
    tpu.vector_store %arg11[%c0_111, %c0_112, %c0_113], %79 {strides = array<i32>} : memref<1x1x288xf32, #tpu.memory_space<vmem>>, vector<1x1x32xf32>,
    %c0_114 = arith.constant 0 : index
    %c1_115 = arith.constant 1 : index
    %c0_116 = arith.constant 0 : index
    %81 = vector.load %arg10[%c0_114, %c1_115, %c0_116] : memref<3x3x32xf32, #tpu.memory_space<vmem>>, vector<1x1x32xf32>
    %c0_117 = arith.constant 0 : index
    %c0_118 = arith.constant 0 : index
    %c32_119 = arith.constant 32 : index
    %82 = vector.load %arg11[%c0_117, %c0_118, %c32_119] : memref<1x1x288xf32, #tpu.memory_space<vmem>>, vector<1x1x32xf32>
    tpu.vector_store %arg11[%c0_117, %c0_118, %c32_119], %81 {strides = array<i32>} : memref<1x1x288xf32, #tpu.memory_space<vmem>>, vector<1x1x32xf32>,
    %c0_120 = arith.constant 0 : index
    %c2_121 = arith.constant 2 : index
    %c0_122 = arith.constant 0 : index
    %83 = vector.load %arg10[%c0_120, %c2_121, %c0_122] : memref<3x3x32xf32, #tpu.memory_space<vmem>>, vector<1x1x32xf32>
    %c0_123 = arith.constant 0 : index
    %c0_124 = arith.constant 0 : index
    %c64_125 = arith.constant 64 : index
    %84 = vector.load %arg11[%c0_123, %c0_124, %c64_125] : memref<1x1x288xf32, #tpu.memory_space<vmem>>, vector<1x1x32xf32>
    tpu.vector_store %arg11[%c0_123, %c0_124, %c64_125], %83 {strides = array<i32>} : memref<1x1x288xf32, #tpu.memory_space<vmem>>, vector<1x1x32xf32>,
    %c1_126 = arith.constant 1 : index
    %c0_127 = arith.constant 0 : index
    %c0_128 = arith.constant 0 : index
    %85 = vector.load %arg10[%c1_126, %c0_127, %c0_128] : memref<3x3x32xf32, #tpu.memory_space<vmem>>, vector<1x1x32xf32>
    %c0_129 = arith.constant 0 : index
    %c0_130 = arith.constant 0 : index
    %c96_131 = arith.constant 96 : index
    %86 = vector.load %arg11[%c0_129, %c0_130, %c96_131] : memref<1x1x288xf32, #tpu.memory_space<vmem>>, vector<1x1x32xf32>
    tpu.vector_store %arg11[%c0_129, %c0_130, %c96_131], %85 {strides = array<i32>} : memref<1x1x288xf32, #tpu.memory_space<vmem>>, vector<1x1x32xf32>,
    %c1_132 = arith.constant 1 : index
    %c1_133 = arith.constant 1 : index
    %c0_134 = arith.constant 0 : index
    %87 = vector.load %arg10[%c1_132, %c1_133, %c0_134] : memref<3x3x32xf32, #tpu.memory_space<vmem>>, vector<1x1x32xf32>
    %c0_135 = arith.constant 0 : index
    %c0_136 = arith.constant 0 : index
    %c128_137 = arith.constant 128 : index
    %88 = vector.load %arg11[%c0_135, %c0_136, %c128_137] : memref<1x1x288xf32, #tpu.memory_space<vmem>>, vector<1x1x32xf32>
    tpu.vector_store %arg11[%c0_135, %c0_136, %c128_137], %87 {strides = array<i32>} : memref<1x1x288xf32, #tpu.memory_space<vmem>>, vector<1x1x32xf32>,
    %c1_138 = arith.constant 1 : index
    %c2_139 = arith.constant 2 : index
    %c0_140 = arith.constant 0 : index
    %89 = vector.load %arg10[%c1_138, %c2_139, %c0_140] : memref<3x3x32xf32, #tpu.memory_space<vmem>>, vector<1x1x32xf32>
    %c0_141 = arith.constant 0 : index
    %c0_142 = arith.constant 0 : index
    %c160_143 = arith.constant 160 : index
    %90 = vector.load %arg11[%c0_141, %c0_142, %c160_143] : memref<1x1x288xf32, #tpu.memory_space<vmem>>, vector<1x1x32xf32>
    tpu.vector_store %arg11[%c0_141, %c0_142, %c160_143], %89 {strides = array<i32>} : memref<1x1x288xf32, #tpu.memory_space<vmem>>, vector<1x1x32xf32>,
    %c2_144 = arith.constant 2 : index
    %c0_145 = arith.constant 0 : index
    %c0_146 = arith.constant 0 : index
    %91 = vector.load %arg10[%c2_144, %c0_145, %c0_146] : memref<3x3x32xf32, #tpu.memory_space<vmem>>, vector<1x1x32xf32>
    %c0_147 = arith.constant 0 : index
    %c0_148 = arith.constant 0 : index
    %c192_149 = arith.constant 192 : index
    %92 = vector.load %arg11[%c0_147, %c0_148, %c192_149] : memref<1x1x288xf32, #tpu.memory_space<vmem>>, vector<1x1x32xf32>
    tpu.vector_store %arg11[%c0_147, %c0_148, %c192_149], %91 {strides = array<i32>} : memref<1x1x288xf32, #tpu.memory_space<vmem>>, vector<1x1x32xf32>,
    %c2_150 = arith.constant 2 : index
    %c1_151 = arith.constant 1 : index
    %c0_152 = arith.constant 0 : index
    %93 = vector.load %arg10[%c2_150, %c1_151, %c0_152] : memref<3x3x32xf32, #tpu.memory_space<vmem>>, vector<1x1x32xf32>
    %c0_153 = arith.constant 0 : index
    %c0_154 = arith.constant 0 : index
    %c224_155 = arith.constant 224 : index
    %94 = vector.load %arg11[%c0_153, %c0_154, %c224_155] : memref<1x1x288xf32, #tpu.memory_space<vmem>>, vector<1x1x32xf32>
    tpu.vector_store %arg11[%c0_153, %c0_154, %c224_155], %93 {strides = array<i32>} : memref<1x1x288xf32, #tpu.memory_space<vmem>>, vector<1x1x32xf32>,
    %c2_156 = arith.constant 2 : index
    %c2_157 = arith.constant 2 : index
    %c0_158 = arith.constant 0 : index
    %95 = vector.load %arg10[%c2_156, %c2_157, %c0_158] : memref<3x3x32xf32, #tpu.memory_space<vmem>>, vector<1x1x32xf32>
    %c0_159 = arith.constant 0 : index
    %c0_160 = arith.constant 0 : index
    %c256_161 = arith.constant 256 : index
    %96 = vector.load %arg11[%c0_159, %c0_160, %c256_161] : memref<1x1x288xf32, #tpu.memory_space<vmem>>, vector<1x1x32xf32>
    tpu.vector_store %arg11[%c0_159, %c0_160, %c256_161], %95 {strides = array<i32>} : memref<1x1x288xf32, #tpu.memory_space<vmem>>, vector<1x1x32xf32>,
    %c0_162 = arith.constant 0 : index
    %c0_163 = arith.constant 0 : index
    %c0_164 = arith.constant 0 : index
    %97 = vector.load %arg11[%c0_162, %c0_163, %c0_164] : memref<1x1x288xf32, #tpu.memory_space<vmem>>, vector<1x1x288xf32>
    %98 = vector.shape_cast %97 : vector<1x1x288xf32> to vector<1x288xf32>
    %99 = arith.truncf %98 : vector<1x288xf32> to vector<1x288xbf16>
    %c1_165 = arith.constant 1 : index
    %c0_166 = arith.constant 0 : index
    %c0_167 = arith.constant 0 : index
    %100 = vector.load %arg7[%c1_165, %c0_166, %c0_167] : memref<2x288x8xbf16, #tpu.memory_space<vmem>>, vector<1x288x8xbf16>
    %101 = vector.shape_cast %100 : vector<1x288x8xbf16> to vector<288x8xbf16>
    %cst_168 = arith.constant dense<0.000000e+00> : vector<1x8xf32>
    %102 = tpu.matmul %99, %101, %cst_168 {dimension_numbers = #tpu.dot_dimension_numbers<[1], [0], [0], [1], [0, 0, 1, 1], [], []>} : vector<1x288xbf16>, vector<288x8xbf16>, vector<1x8xf32> -> vector<1x8xf32>
    %c0_169 = arith.constant 0 : index
    %c24 = arith.constant 24 : index
    %103 = vector.load %arg9[%c0_169, %c24] : memref<1x32xf32, #tpu.memory_space<vmem>>, vector<1x8xf32>
    tpu.vector_store %arg9[%c0_169, %c24], %102 {strides = array<i32>} : memref<1x32xf32, #tpu.memory_space<vmem>>, vector<1x8xf32>,
    %c0_170 = arith.constant 0 : index
    %c0_171 = arith.constant 0 : index
    %104 = vector.load %arg9[%c0_170, %c0_171] : memref<1x32xf32, #tpu.memory_space<vmem>>, vector<1x32xf32>
    %105 = vector.shape_cast %104 : vector<1x32xf32> to vector<1x1x32xf32>
    %106 = arith.truncf %105 : vector<1x1x32xf32> to vector<1x1x32xbf16>
    %c0_172 = arith.constant 0 : index
    %c0_173 = arith.constant 0 : index
    %c0_174 = arith.constant 0 : index
    %107 = vector.load %arg8[%c0_172, %c0_173, %c0_174] : memref<1x1x32xbf16, #tpu.memory_space<vmem>>, vector<1x1x32xbf16>
    tpu.vector_store %arg8[%c0_172, %c0_173, %c0_174], %106 {strides = array<i32>} : memref<1x1x32xbf16, #tpu.memory_space<vmem>>, vector<1x1x32xbf16>,
    return
  }
  func.func @transform_0(%arg0: i32) -> (i32, i32, i32) {
    %c0_i32 = arith.constant 0 : i32
    %c0_i32_0 = arith.constant 0 : i32
    %c0_i32_1 = arith.constant 0 : i32
    return %arg0, %c0_i32, %c0_i32_0 : i32, i32, i32
  }
  func.func @transform_1(%arg0: i32) -> (i32, i32, i32) {
    %c0_i32 = arith.constant 0 : i32
    %c0_i32_0 = arith.constant 0 : i32
    %c0_i32_1 = arith.constant 0 : i32
    %c0_i32_2 = arith.constant 0 : i32
    return %c0_i32, %c0_i32_0, %c0_i32_1 : i32, i32, i32
  }
  func.func @transform_2(%arg0: i32) -> (i32, i32, i32) {
    %c0_i32 = arith.constant 0 : i32
    %c0_i32_0 = arith.constant 0 : i32
    %c0_i32_1 = arith.constant 0 : i32
    %c0_i32_2 = arith.constant 0 : i32
    return %c0_i32, %c0_i32_0, %c0_i32_1 : i32, i32, i32
  }
  func.func @transform_3(%arg0: i32) -> (i32, i32, i32) {
    %c0_i32 = arith.constant 0 : i32
    %c0_i32_0 = arith.constant 0 : i32
    %c0_i32_1 = arith.constant 0 : i32
    %c0_i32_2 = arith.constant 0 : i32
    return %c0_i32, %c0_i32_0, %c0_i32_1 : i32, i32, i32
  }
  func.func @transform_4(%arg0: i32) -> (i32, i32, i32) {
    %c0_i32 = arith.constant 0 : i32
    %c0_i32_0 = arith.constant 0 : i32
    %c0_i32_1 = arith.constant 0 : i32
    %c0_i32_2 = arith.constant 0 : i32
    return %c0_i32, %c0_i32_0, %c0_i32_1 : i32, i32, i32
  }
  func.func @transform_5(%arg0: i32) -> (i32, i32, i32) {
    %c0_i32 = arith.constant 0 : i32
    %c0_i32_0 = arith.constant 0 : i32
    %c0_i32_1 = arith.constant 0 : i32
    %c0_i32_2 = arith.constant 0 : i32
    return %c0_i32, %c0_i32_0, %c0_i32_1 : i32, i32, i32
  }
  func.func @transform_6(%arg0: i32) -> (i32, i32, i32) {
    %c0_i32 = arith.constant 0 : i32
    %c0_i32_0 = arith.constant 0 : i32
    %c0_i32_1 = arith.constant 0 : i32
    %c0_i32_2 = arith.constant 0 : i32
    return %c0_i32, %c0_i32_0, %c0_i32_1 : i32, i32, i32
  }
  func.func @transform_7(%arg0: i32) -> (i32, i32, i32) {
    %c0_i32 = arith.constant 0 : i32
    %c0_i32_0 = arith.constant 0 : i32
    %c0_i32_1 = arith.constant 0 : i32
    return %arg0, %c0_i32, %c0_i32_0 : i32, i32, i32
  }
}

module attributes {stable_mosaic.version = 11 : i64} {
  func.func @_head_kernel(%arg0: memref<2x1x32xbf16, #tpu.memory_space<vmem>>, %arg1: memref<1x1x32xf32, #tpu.memory_space<vmem>>, %arg2: memref<1x1x32xf32, #tpu.memory_space<vmem>>, %arg3: memref<32x512xbf16, #tpu.memory_space<vmem>>, %arg4: memref<1x512xf32, #tpu.memory_space<vmem>>, %arg5: memref<512x18xbf16, #tpu.memory_space<vmem>>, %arg6: memref<1x18xf32, #tpu.memory_space<vmem>>, %arg7: memref<2x18xf32, #tpu.memory_space<vmem>>) attributes {dimension_semantics = [], scalar_prefetch = 0 : i64, scratch_operands = 0 : i64, tpu.core_type = #tpu.core_type<tc>} {
    %c0 = arith.constant 0 : index
    %c0_0 = arith.constant 0 : index
    %c0_1 = arith.constant 0 : index
    %0 = vector.load %arg0[%c0, %c0_0, %c0_1] : memref<2x1x32xbf16, #tpu.memory_space<vmem>>, vector<2x1x32xbf16>
    %1 = arith.extf %0 : vector<2x1x32xbf16> to vector<2x1x32xf32>
    %c0_2 = arith.constant 0 : index
    %c0_3 = arith.constant 0 : index
    %c0_4 = arith.constant 0 : index
    %2 = vector.load %arg1[%c0_2, %c0_3, %c0_4] : memref<1x1x32xf32, #tpu.memory_space<vmem>>, vector<1x1x32xf32>
    %3 = vector.broadcast %2 : vector<1x1x32xf32> to vector<2x1x32xf32>
    %4 = arith.mulf %1, %3 : vector<2x1x32xf32>
    %c0_5 = arith.constant 0 : index
    %c0_6 = arith.constant 0 : index
    %c0_7 = arith.constant 0 : index
    %5 = vector.load %arg2[%c0_5, %c0_6, %c0_7] : memref<1x1x32xf32, #tpu.memory_space<vmem>>, vector<1x1x32xf32>
    %6 = vector.broadcast %5 : vector<1x1x32xf32> to vector<2x1x32xf32>
    %7 = arith.addf %4, %6 : vector<2x1x32xf32>
    %cst = arith.constant 0.000000e+00 : f32
    %8 = vector.broadcast %cst : f32 to vector<2x1x32xf32>
    %9 = arith.maximumf %7, %8 : vector<2x1x32xf32>
    %cst_8 = arith.constant dense<0.000000e+00> : vector<2x32xf32>
    %10 = vector.multi_reduction <add>, %9, %cst_8 [1] : vector<2x1x32xf32> to vector<2x32xf32>
    %cst_9 = arith.constant 1.000000e+00 : f32
    %11 = vector.broadcast %cst_9 : f32 to vector<2x32xf32>
    %12 = arith.divf %10, %11 : vector<2x32xf32>
    %13 = arith.truncf %12 : vector<2x32xf32> to vector<2x32xbf16>
    %c0_10 = arith.constant 0 : index
    %c0_11 = arith.constant 0 : index
    %14 = vector.load %arg3[%c0_10, %c0_11] : memref<32x512xbf16, #tpu.memory_space<vmem>>, vector<32x512xbf16>
    %cst_12 = arith.constant dense<0.000000e+00> : vector<2x512xf32>
    %15 = tpu.matmul %13, %14, %cst_12 {dimension_numbers = #tpu.dot_dimension_numbers<[1], [0], [0], [1], [0, 0, 1, 1], [], []>} : vector<2x32xbf16>, vector<32x512xbf16>, vector<2x512xf32> -> vector<2x512xf32>
    %c0_13 = arith.constant 0 : index
    %c0_14 = arith.constant 0 : index
    %16 = vector.load %arg4[%c0_13, %c0_14] : memref<1x512xf32, #tpu.memory_space<vmem>>, vector<1x512xf32>
    %17 = vector.broadcast %16 : vector<1x512xf32> to vector<2x512xf32>
    %18 = arith.addf %15, %17 : vector<2x512xf32>
    %cst_15 = arith.constant 0.000000e+00 : f32
    %19 = vector.broadcast %cst_15 : f32 to vector<2x512xf32>
    %20 = arith.maximumf %18, %19 : vector<2x512xf32>
    %21 = arith.truncf %20 : vector<2x512xf32> to vector<2x512xbf16>
    %c0_16 = arith.constant 0 : index
    %c0_17 = arith.constant 0 : index
    %22 = vector.load %arg5[%c0_16, %c0_17] : memref<512x18xbf16, #tpu.memory_space<vmem>>, vector<512x18xbf16>
    %cst_18 = arith.constant dense<0.000000e+00> : vector<2x18xf32>
    %23 = tpu.matmul %21, %22, %cst_18 {dimension_numbers = #tpu.dot_dimension_numbers<[1], [0], [0], [1], [0, 0, 1, 1], [], []>} : vector<2x512xbf16>, vector<512x18xbf16>, vector<2x18xf32> -> vector<2x18xf32>
    %c0_19 = arith.constant 0 : index
    %c0_20 = arith.constant 0 : index
    %24 = vector.load %arg6[%c0_19, %c0_20] : memref<1x18xf32, #tpu.memory_space<vmem>>, vector<1x18xf32>
    %25 = vector.broadcast %24 : vector<1x18xf32> to vector<2x18xf32>
    %26 = arith.addf %23, %25 : vector<2x18xf32>
    %cst_21 = arith.constant 0.000000e+00 : f32
    %27 = vector.broadcast %cst_21 : f32 to vector<2x18xf32>
    %28 = arith.subf %27, %26 : vector<2x18xf32>
    %29 = math.exp %28 : vector<2x18xf32>
    %cst_22 = arith.constant 1.000000e+00 : f32
    %30 = vector.broadcast %cst_22 : f32 to vector<2x18xf32>
    %31 = arith.addf %30, %29 : vector<2x18xf32>
    %cst_23 = arith.constant 1.000000e+00 : f32
    %32 = vector.broadcast %cst_23 : f32 to vector<2x18xf32>
    %33 = arith.divf %32, %31 : vector<2x18xf32>
    %c0_24 = arith.constant 0 : index
    %c0_25 = arith.constant 0 : index
    %34 = vector.load %arg7[%c0_24, %c0_25] : memref<2x18xf32, #tpu.memory_space<vmem>>, vector<2x18xf32>
    tpu.vector_store %arg7[%c0_24, %c0_25], %33 {strides = array<i32>} : memref<2x18xf32, #tpu.memory_space<vmem>>, vector<2x18xf32>,
    return
  }
}

</mosaic_0001>

<bundles_post_ra>
// kernel: chest_xray_forward.11
= control target key start
LH: loop header
LB: loop body
LE: loop exit
PB: predicated region body
PF: predicated region fallthrough
CT: control target
= control target key end

     0   :  { %s1035_s15 = smov 0   ;;  %s1136_s0 = inlined_call_operand.vmem [shape: bf16[2,64,32], index: 0, kind: input, shape index: {}]   ;;  %s1137_s1 = inlined_call_operand.vmem [shape: f32[1,32], index: 1, kind: input, shape index: {}]   ;;  %s1138_s2 = inlined_call_operand.vmem [shape: f32[1,32], index: 2, kind: input, shape index: {}]   ;;  %s1139_s3 = inlined_call_operand.vmem [shape: bf16[32,16], index: 3, kind: input, shape index: {}]   ;;  %s1140_s4 = inlined_call_operand.vmem [shape: bf16[2,16,16], index: 4, kind: output, shape index: {}]  }
   0x1 LB: > { %s864_s16 = sadd.s32 4294967295, %s1007_s15   ;;  %p868_p0 = scmp.ge.s32.totalorder %s1007_s15, 1  ;;  %s1007_s15 = sphi %s1035_s15, %s14_s15  }
   0x2   : > { %p162_p1 = scmp.lt.s32.totalorder %s1007_s15, 3 }
   0x4   : > { %p163_p2 = pnand %p868_p0, %p162_p1 }
   0x5   : > { %p188_p3 = scmp.lt.s32.totalorder (!%p163_p2), %s864_s16, 1 }
   0x6   : > { %166 = sbr.rel (%p163_p2) target bundleno = 276 (0x114), region = 36 }
   0xb   : > { %v999_v0 = vld [vmem:[%s1139_s3 + $0x8] sm:$0xff]   ;;  %v1000_v1 = vld [vmem:[%s1139_s3] sm:$0xff]   ;;  %s1142_s16 = smov (!%p188_p3, %s864_s16), 1  ;;  %vm273_vm0 = vcmask 261120   ;;  %v1009_v44 = vmov 1983009808   ;;  %v363_v46 = vlaneseq }
   0xc   : > { %974 = vmatprep.subr.bf16.mxu0 %v999_v0  ;;  %986 = vmatprep.subr.bf16.mxu1 %v999_v0  ;;  %s931_s21 = sshll.u32 %s1142_s16, 5  ;;  %v873_v2 = vld [vmem:[%s1137_s1] ss:$0 sm:$0xff]  ;;  %v361_v45 = vunpack.c.l.s4 %v1009_v44  ;;  %vm768_vm1 = vcmask 1041409   ;;  %vm771_vm2 = vcmask 1042434   ;;  %vm774_vm3 = vcmask 1043459  }
   0xd   : > { %975 = vmatpush3.bf16.msra.mxu0 %v999_v0  ;;  %988 = vmatpush3.bf16.msra.mxu1 %v999_v0  ;;  %s192_s24 = scalar_lea.vmem %s1136_s0, %s931_s21  ;;  %v874_v11 = vld [vmem:[%s1138_s2] ss:$0 sm:$0xff]  ;;  %v364_v48 = vshrl.u32 %v363_v46, 7  ;;  %vm777_vm4 = vcmask 1044484   ;;  %vm780_vm5 = vcmask 1045509   ;;  %vm783_vm6 = vcmask 1046534  }
   0xe   : > { %976 = vmatprep.subr.bf16.mxu0 %v1000_v1  ;;  %987 = vmatprep.subr.bf16.mxu1 %v1000_v1  ;;  %v950_v3 = vld [vmem:[%s192_s24] sm:$0xff]   ;;  %v966_v4 = vld [vmem:[%s192_s24 + $0x10] sm:$0xff]   ;;  %v965_v5 = vld [vmem:[%s192_s24 + $0x8] sm:$0xff]   ;;  %v362_v47 = vunpack.c.0.s8 %v361_v45  ;;  %vm786_vm7 = vcmask 1047559   ;;  %vm806_vm8 = vcmask 125952   ;;  %s932_s29 = sshll.u32 %s1142_s16, 3 }
   0xf   : > { %v951_v6 = vunpack.c.l.bf16 %v950_v3  ;;  %v952_v7 = vunpack.c.h.bf16 %v950_v3  ;;  %v959_v8 = vunpack.c.l.bf16 %v966_v4  ;;  %v960_v9 = vunpack.c.h.bf16 %v966_v4  ;;  %v967_v10 = vld [vmem:[%s192_s24 + $0x18] sm:$0xff]   ;;  %s197_s6 = scalar_lea.vmem %s1140_s4, %s932_s29 }
  0x10   : > { %v955_v12 = vunpack.c.l.bf16 %v965_v5  ;;  %v956_v13 = vunpack.c.h.bf16 %v965_v5  ;;  %v963_v14 = vunpack.c.l.bf16 %v967_v10  ;;  %v964_v15 = vunpack.c.h.bf16 %v967_v10 }
  0x11   : > { %977 = vmatpush3.bf16.msra.mxu0 %v1000_v1  ;;  %989 = vmatpush3.bf16.msra.mxu1 %v1000_v1  ;;  %v222_v16 = vmul.f32 %v951_v6, %v873_v2  ;;  %v223_v17 = vmul.f32 %v952_v7, %v873_v2  ;;  %v226_v18 = vmul.f32 %v959_v8, %v873_v2 }
  0x12   : > { %v227_v19 = vmul.f32 %v960_v9, %v873_v2  ;;  %v224_v20 = vmul.f32 %v955_v12, %v873_v2  ;;  %v225_v21 = vmul.f32 %v956_v13, %v873_v2  ;;  %v228_v22 = vmul.f32 %v963_v14, %v873_v2 }
  0x13   : > { %v229_v23 = vmul.f32 %v964_v15, %v873_v2  ;;  %v237_v24 = vadd.f32 %v874_v11, %v222_v16  ;;  %v238_v25 = vadd.f32 %v874_v11, %v223_v17  ;;  %v241_v26 = vadd.f32 %v874_v11, %v226_v18 }
  0x14   : > { %v242_v27 = vadd.f32 %v874_v11, %v227_v19  ;;  %v239_v28 = vadd.f32 %v874_v11, %v224_v20  ;;  %v240_v29 = vadd.f32 %v874_v11, %v225_v21  ;;  %v243_v30 = vadd.f32 %v874_v11, %v228_v22 }
  0x15   : > { %v244_v31 = vadd.f32 %v874_v11, %v229_v23  ;;  %v245_v32 = vmax.f32 %v237_v24, 0.0  ;;  %v246_v33 = vmax.f32 %v238_v25, 0.0  ;;  %v249_v34 = vmax.f32 %v241_v26, 0.0 }
  0x16   : > { %v250_v35 = vmax.f32 %v242_v27, 0.0  ;;  %v247_v36 = vmax.f32 %v239_v28, 0.0  ;;  %v248_v37 = vmax.f32 %v240_v29, 0.0  ;;  %v251_v38 = vmax.f32 %v243_v30, 0.0 }
  0x17   : > { %v252_v39 = vmax.f32 %v244_v31, 0.0  ;;  %v253_v40 = vpack.c.bf16 %v246_v33, %v245_v32  ;;  %v1065_v49 = vsub.s32 %v362_v47, %v364_v48 }
  0x18   : > { %v255_v41 = vpack.c.bf16 %v250_v35, %v249_v34  ;;  %v254_v42 = vpack.c.bf16 %v248_v37, %v247_v36 }
  0x19   : > { %v256_v43 = vpack.c.bf16 %v252_v39, %v251_v38  ;;  %978 = vmatprep.mubr.msk.bf16.mxu0 %vm273_vm0, %v253_v40 }
  0x1a   : > { %982 = vmatprep.mubr.msk.bf16.mxu1 %vm273_vm0, %v255_v41  ;;  %979 = vmatmul.mubr.msk.bf16.vlgmr.msra.gmra.mxu0 %vm273_vm0, %v254_v42 }
  0x1b   : > { %983 = vmatmul.mubr.msk.bf16.vlgmr.msra.gmra.mxu1 %vm273_vm0, %v256_v43 }
  0xda   : > { %v980_v50 = vpop.f32.mrf.mxu0 }
  0xdb   : > { %v984_v51 = vpop.f32.mrf.mxu1  ;;  %v393_v52 = vcombine.high %v980_v50, %v980_v50  ;;  %v400_v53 = vrot.slane %v980_v50, %v1065_v49 }
  0xdc   : > { %v461_v54 = vcombine.high %v984_v51, %v984_v51  ;;  %v468_v55 = vrot.slane %v984_v51, %v1065_v49  ;;  %v320_v57 = vpop.f32.mrf.mxu0 }
  0xdd   : > { %v407_v56 = vrot.slane %v393_v52, %v1065_v49  ;;  %v408_v58 = vcombine.high %v400_v53, %v400_v53  ;;  %v359_v62 = vcombine.high %v320_v57, %v320_v57  ;;  %v885_v63 = vrot.slane %v400_v53, 9  ;;  %v336_v1 = vpop.f32.mrf.mxu1 }
  0xde   : > { %v475_v59 = vrot.slane %v461_v54, %v1065_v49  ;;  %v476_v61 = vcombine.high %v468_v55, %v468_v55  ;;  %v893_v4 = vrot.slane %v468_v55, 9  ;;  %v366_v5 = vrot.slane %v320_v57, %v1065_v49  ;;  %v981_v6 = vpop.f32.mrf.mxu0 }
  0xdf   : > { %v409_v60 = vcombine.high %v407_v56, %v407_v56  ;;  %v887_v0 = vrot.slane %v407_v56, 9  ;;  %v886_v2 = vrot.slane %v408_v58, 9  ;;  %v373_v9 = vrot.slane %v359_v62, %v1065_v49  ;;  %v985_v23 = vpop.f32.mrf.mxu1 }
  0xe0   : > { %v477_v3 = vcombine.high %v475_v59, %v475_v59  ;;  %v894_v8 = vrot.slane %v476_v61, 9  ;;  %v427_v10 = vcombine.high %v336_v1, %v336_v1  ;;  %v579_v11 = vadd.f32 %v885_v63, %v400_v53  ;;  %v323_v62 = vpop.f32.mrf.mxu0 }
  0xe1   : > { %v888_v7 = vrot.slane %v409_v60, 9  ;;  %v581_v12 = vadd.f32 %v887_v0, %v407_v56  ;;  %v895_v13 = vrot.slane %v475_v59, 9  ;;  %v410_v14 = vcombine.high %v981_v6, %v981_v6 }
  0xe2   : > { %v580_v15 = vadd.f32 %v886_v2, %v408_v58  ;;  %v896_v16 = vrot.slane %v477_v3, 9  ;;  %v587_v17 = vadd.f32 %v893_v4, %v468_v55  ;;  %v374_v18 = vcombine.high %v366_v5, %v366_v5 }
  0xe3   : > { %v582_v19 = vadd.f32 %v888_v7, %v409_v60  ;;  %v588_v20 = vadd.f32 %v894_v8, %v476_v61  ;;  %v417_v21 = vrot.slane %v981_v6, %v1065_v49  ;;  %v424_v22 = vrot.slane %v410_v14, %v1065_v49 }
  0xe4   : > { %v375_v24 = vcombine.high %v373_v9, %v373_v9  ;;  %v881_v25 = vrot.slane %v366_v5, 9  ;;  %v434_v26 = vrot.slane %v336_v1, %v1065_v49  ;;  %v441_v27 = vrot.slane %v427_v10, %v1065_v49 }
  0xe5   : > { %v425_v28 = vcombine.high %v417_v21, %v417_v21  ;;  %v426_v29 = vcombine.high %v424_v22, %v424_v22  ;;  %v595_v30 = vadd.f32 %v579_v11, %v417_v21  ;;  %v597_v31 = vadd.f32 %v581_v12, %v424_v22 }
  0xe6   : > { %v882_v32 = vrot.slane %v374_v18, 9  ;;  %v883_v33 = vrot.slane %v373_v9, 9  ;;  %v901_v34 = vrot.slane %v417_v21, 9  ;;  %v478_v35 = vcombine.high %v985_v23, %v985_v23 }
  0xe7   : > { %v596_v36 = vadd.f32 %v580_v15, %v425_v28  ;;  %v598_v37 = vadd.f32 %v582_v19, %v426_v29  ;;  %v902_v38 = vrot.slane %v425_v28, 9  ;;  %v903_v39 = vrot.slane %v424_v22, 9 }
  0xe8   : > { %v884_v40 = vrot.slane %v375_v24, 9  ;;  %v904_v41 = vrot.slane %v426_v29, 9  ;;  %v659_v42 = vadd.f32 %v901_v34, %v595_v30  ;;  %v485_v43 = vrot.slane %v985_v23, %v1065_v49 }
  0xe9   : > { %v442_v44 = vcombine.high %v434_v26, %v434_v26  ;;  %v443_v45 = vcombine.high %v441_v27, %v441_v27  ;;  %v660_v46 = vadd.f32 %v902_v38, %v596_v36  ;;  %v661_v47 = vadd.f32 %v903_v39, %v597_v31 }
  0xea   : > { %v889_v48 = vrot.slane %v434_v26, 9  ;;  %v662_v50 = vadd.f32 %v904_v41, %v598_v37  ;;  %v675_v51 = vmul.f32 0.25, %v659_v42  ;;  %v492_v52 = vrot.slane %v478_v35, %v1065_v49 }
  0xeb   : > { %v589_v53 = vadd.f32 %v895_v13, %v475_v59  ;;  %v590_v54 = vadd.f32 %v896_v16, %v477_v3  ;;  %v676_v55 = vmul.f32 0.25, %v660_v46  ;;  %v677_v56 = vmul.f32 0.25, %v661_v47 }
  0xec   : > { %v575_v57 = vadd.f32 %v881_v25, %v366_v5  ;;  %v577_v58 = vadd.f32 %v883_v33, %v373_v9  ;;  %v678_v60 = vmul.f32 0.25, %v662_v50  ;;  %v493_v61 = vcombine.high %v485_v43, %v485_v43 }
  0xed   : > { %v890_v63 = vrot.slane %v442_v44, 9  ;;  %v891_v0 = vrot.slane %v441_v27, 9  ;;  %v892_v1 = vrot.slane %v443_v45, 9  ;;  %v937_v2 = vpack.c.bf16 %v675_v51, %v675_v51 }
  0xee   : > { %v576_v4 = vadd.f32 %v882_v32, %v374_v18  ;;  %v578_v6 = vadd.f32 %v884_v40, %v375_v24  ;;  %v583_v7 = vadd.f32 %v889_v48, %v434_v26  ;;  %v494_v8 = vcombine.high %v492_v52, %v492_v52  ;;  %v339_v24 = vpop.f32.mrf.mxu1 }
  0xef   : > { %v938_v10 = vpack.c.bf16 %v676_v55, %v676_v55  ;;  %v939_v11 = vpack.c.bf16 %v677_v56, %v677_v56  ;;  %v603_v12 = vadd.f32 %v587_v17, %v485_v43  ;;  %v376_v59 = vcombine.high %v323_v62, %v323_v62 }
  0xf0   : > { %v940_v3 = vpack.c.bf16 %v678_v60, %v678_v60  ;;  %v604_v13 = vadd.f32 %v588_v20, %v493_v61  ;;  %v909_v14 = vrot.slane %v485_v43, 9  ;;  %v910_v5 = vrot.slane %v493_v61, 9 }
  0xf1   : > { %v584_v9 = vadd.f32 %v890_v63, %v442_v44  ;;  %v585_v15 = vadd.f32 %v891_v0, %v441_v27  ;;  %v586_v16 = vadd.f32 %v892_v1, %v443_v45  ;;  %v1079_v19 = vunpack.c.l.b16 %v937_v2 }
  0xf2   : > { %v605_v21 = vadd.f32 %v589_v53, %v492_v52  ;;  %v606_v22 = vadd.f32 %v590_v54, %v494_v8  ;;  %v911_v23 = vrot.slane %v492_v52, 9  ;;  %v383_v18 = vrot.slane %v323_v62, %v1065_v49 }
  0xf3   : > { %v1082_v25 = vunpack.c.l.b16 %v938_v10  ;;  %v1084_v26 = vunpack.c.l.b16 %v939_v11  ;;  %v912_v17 = vrot.slane %v494_v8, 9  ;;  %v390_v20 = vrot.slane %v376_v59, %v1065_v49 }
  0xf4   : > { %v1087_v28 = vunpack.c.l.b16 %v940_v3  ;;  %v667_v29 = vadd.f32 %v909_v14, %v603_v12  ;;  %v668_v27 = vadd.f32 %v910_v5, %v604_v13  ;;  %v391_v30 = vcombine.high %v383_v18, %v383_v18 }
  0xf5   : > { %v776_v31 = vrot.slane %v1079_v19, 4  ;;  %v392_v32 = vcombine.high %v390_v20, %v390_v20  ;;  %v591_v33 = vadd.f32 %v575_v57, %v383_v18  ;;  %v444_v34 = vcombine.high %v339_v24, %v339_v24 }
  0xf6   : > { %v669_v35 = vadd.f32 %v911_v23, %v605_v21  ;;  %v592_v36 = vadd.f32 %v576_v4, %v391_v30  ;;  %v593_v37 = vadd.f32 %v577_v58, %v390_v20  ;;  %v897_v38 = vrot.slane %v383_v18, 9 }
  0xf7   : > { %v779_v39 = vrot.slane %v1082_v25, 3  ;;  %v670_v40 = vadd.f32 %v912_v17, %v606_v22  ;;  %v594_v41 = vadd.f32 %v578_v6, %v392_v32  ;;  %v898_v42 = vrot.slane %v391_v30, 9 }
  0xf8   : > { %v782_v43 = vrot.slane %v1084_v26, 2  ;;  %v1092_v44 = vmul.f32 0.25, %v667_v29  ;;  %v899_v45 = vrot.slane %v390_v20, 9  ;;  %v900_v46 = vrot.slane %v392_v32, 9 }
  0xf9   : > { %v655_v47 = vadd.f32 %v897_v38, %v591_v33  ;;  %v656_v48 = vadd.f32 %v898_v42, %v592_v36  ;;  %v451_v50 = vrot.slane %v339_v24, %v1065_v49  ;;  %v458_v51 = vrot.slane %v444_v34, %v1065_v49 }
  0xfa   : > { %v1096_v52 = vmul.f32 0.25, %v668_v27  ;;  %v1098_v53 = vmul.f32 0.25, %v669_v35  ;;  %v657_v54 = vadd.f32 %v899_v45, %v593_v37  ;;  %v658_v55 = vadd.f32 %v900_v46, %v594_v41 }
  0xfb   : > { %v671_v56 = vmul.f32 0.25, %v655_v47  ;;  %v672_v57 = vmul.f32 0.25, %v656_v48  ;;  %v459_v58 = vcombine.high %v451_v50, %v451_v50  ;;  %v460_v60 = vcombine.high %v458_v51, %v458_v51 }
  0xfc   : > { %v673_v61 = vmul.f32 0.25, %v657_v54  ;;  %v674_v62 = vmul.f32 0.25, %v658_v55  ;;  %v599_v63 = vadd.f32 %v583_v7, %v451_v50  ;;  %v601_v0 = vadd.f32 %v585_v15, %v458_v51 }
  0xfd   : > { %v933_v1 = vpack.c.bf16 %v671_v56, %v671_v56  ;;  %v934_v2 = vpack.c.bf16 %v672_v57, %v672_v57  ;;  %v600_v49 = vadd.f32 %v584_v9, %v459_v58  ;;  %v602_v4 = vadd.f32 %v586_v16, %v460_v60 }
  0xfe   : > { %v935_v6 = vpack.c.bf16 %v673_v61, %v673_v61  ;;  %v936_v8 = vpack.c.bf16 %v674_v62, %v674_v62  ;;  %v905_v10 = vrot.slane %v451_v50, 9  ;;  %v906_v11 = vrot.slane %v459_v58, 9 }
  0xff   : > { %v686_v12 = vmul.f32 0.25, %v670_v40  ;;  %v752_v59 = vunpack.c.l.b16 %v934_v2  ;;  %v907_v3 = vrot.slane %v458_v51, 9  ;;  %v908_v13 = vrot.slane %v460_v60, 9 }
 0x100   : > { %v753_v14 = vunpack.c.l.b16 %v935_v6  ;;  %v754_v5 = vunpack.c.l.b16 %v936_v8  ;;  %v663_v21 = vadd.f32 %v905_v10, %v599_v63  ;;  %v664_v22 = vadd.f32 %v906_v11, %v600_v49 }
 0x101   : > { %v751_v7 = vunpack.c.l.b16 %v933_v1  ;;  %v767_v15 = vrot.slane %v752_v59, 7  ;;  %v665_v23 = vadd.f32 %v907_v3, %v601_v0  ;;  %v666_v18 = vadd.f32 %v908_v13, %v602_v4 }
 0x102   : > { %v770_v9 = vrot.slane %v753_v14, 6  ;;  %v773_v16 = vrot.slane %v754_v5, 5  ;;  %v679_v24 = vmul.f32 0.25, %v663_v21  ;;  %v680_v17 = vmul.f32 0.25, %v664_v22 }
 0x103   : > { %v945_v20 = vpack.c.bf16 %v1092_v44, %v1092_v44  ;;  %v769_v29 = vsel %vm768_vm1, %v767_v15, %v751_v7  ;;  %v681_v27 = vmul.f32 0.25, %v665_v23  ;;  %v682_v30 = vmul.f32 0.25, %v666_v18 }
 0x104   : > { %v946_v32 = vpack.c.bf16 %v1096_v52, %v1096_v52  ;;  %v772_v33 = vsel %vm771_vm2, %v770_v9, %v769_v29  ;;  %v941_v34 = vpack.c.bf16 %v679_v24, %v679_v24  ;;  %v942_v35 = vpack.c.bf16 %v680_v17, %v680_v17 }
 0x105   : > { %v947_v36 = vpack.c.bf16 %v1098_v53, %v1098_v53  ;;  %v775_v37 = vsel %vm774_vm3, %v773_v16, %v772_v33  ;;  %v943_v38 = vpack.c.bf16 %v681_v27, %v681_v27  ;;  %v944_v40 = vpack.c.bf16 %v682_v30, %v682_v30 }
 0x106   : > { %v785_v41 = vrot.slane %v1087_v28, 1  ;;  %v948_v42 = vpack.c.bf16 %v686_v12, %v686_v12  ;;  %v778_v44 = vsel %vm777_vm4, %v776_v31, %v775_v37  ;;  %v760_v45 = vunpack.c.l.b16 %v942_v35 }
 0x107   : > { %v763_v46 = vunpack.c.l.b16 %v945_v20  ;;  %v781_v47 = vsel %vm780_vm5, %v779_v39, %v778_v44  ;;  %v761_v48 = vunpack.c.l.b16 %v943_v38  ;;  %v762_v50 = vunpack.c.l.b16 %v944_v40 }
 0x108   : > { %v764_v51 = vunpack.c.l.b16 %v946_v32  ;;  %v784_v52 = vsel %vm783_vm6, %v782_v43, %v781_v47  ;;  %v759_v53 = vunpack.c.l.b16 %v941_v34  ;;  %v788_v28 = vrot.slane %v760_v45, 7 }
 0x109   : > { %v765_v19 = vunpack.c.l.b16 %v947_v36  ;;  %v787_v31 = vsel %vm786_vm7, %v785_v41, %v784_v52  ;;  %v790_v54 = vrot.slane %v761_v48, 6  ;;  %v792_v25 = vrot.slane %v762_v50, 5 }
 0x10a   : > { %v766_v55 = vunpack.c.l.b16 %v948_v42  ;;  %v802_v39 = vpack.c.b16 %v787_v31, %v787_v31  ;;  %v789_v56 = vsel %vm768_vm1, %v788_v28, %v759_v53  ;;  %v794_v57 = vrot.slane %v763_v46, 4 }
 0x10b   : > { %v791_v26 = vsel %vm771_vm2, %v790_v54, %v789_v56  ;;  %v796_v58 = vrot.slane %v764_v51, 3  ;;  %v798_v60 = vrot.slane %v765_v19, 2 }
 0x10c   : > { %807 = vst.msk [vmem:[%s197_s6] sm:$0xf] %vm806_vm8, %v802_v39  ;;  %v793_v43 = vsel %vm774_vm3, %v792_v25, %v791_v26  ;;  %v800_v62 = vrot.slane %v766_v55, 1 }
 0x10d   : > { %v795_v61 = vsel %vm777_vm4, %v794_v57, %v793_v43 }
 0x10e   : > { %v797_v63 = vsel %vm780_vm5, %v796_v58, %v795_v61 }
 0x10f   : > { %v799_v0 = vsel %vm783_vm6, %v798_v60, %v797_v63 }
 0x110   : > { %v801_v1 = vsel %vm786_vm7, %v800_v62, %v799_v0 }
 0x111   : > { %v803_v2 = vpack.c.b16 %v801_v1, %v801_v1 }
 0x113   : > { %808 = vst.msk [vmem:[%s197_s6 + $0x4] sm:$0xf] %vm806_vm8, %v803_v2 }
 0x114 PF: > { %s14_s15 = sadd.s32 1, %s1007_s15  }
 0x115   : > { %p11_p4 = scmp.ge.s32.totalorder %s14_s15, 4  }
 0x117   :  { %13 = sbr.rel (!%p11_p4) target bundleno = 1 (0x1), region = 66 }

// kernel: chest_xray_forward.9
= control target key start
LH: loop header
LB: loop body
LE: loop exit
PB: predicated region body
PF: predicated region fallthrough
CT: control target
= control target key end

     0   :  { %8 = vsyncpa [#allocation5], 0  ;;  %s1356_s12 = smov 0   ;;  %s1757_s0 = inlined_call_operand.vmem [shape: bf16[512,147], index: 0, kind: input, shape index: {}]   ;;  %s1758_s1 = inlined_call_operand.vmem [shape: bf16[147,16], index: 1, kind: input, shape index: {}]   ;;  %s1759_s2 = inlined_call_operand.hbm [shape: f32[1,16], index: 2, kind: input, shape index: {}]   ;;  %s1760_s3 = inlined_call_operand.vmem [shape: bf16[2,64,16], index: 3, kind: output, shape index: {}]  }
   0x1 LB: > { %s1362_s13 = sadd.s32 4294967295, %s1330_s12   ;;  %p1105_p0 = scmp.ge.s32.totalorder %s1330_s12, 1  ;;  %s1330_s12 = sphi %s1356_s12, %s14_s12  }
   0x2   : > { %p113_p1 = scmp.lt.s32.totalorder %s1330_s12, 3  ;;  %p1222_p3 = scmp.eq.s32.totalorder %s1362_s13, 0 }
   0x3   : > { %s1332_s15 = smov [#allocation4]  }
   0x4   : > { %p1366_p2 = pnand %p1105_p0, %p113_p1  ;;  %s129_s16 = sshll.u32 %s1332_s15, 4  ;;  %s130_s16 = int_to_ptr.vmem [resolvable:$true] %s129_s16 }
   0x5   : > { %s1305_s17 = scalar_lea.vmem %s130_s16, 16  ;;  %s1312_s18 = scalar_lea.vmem %s130_s16, 32 }
   0x6   : > { %p1218_p4 = pneg %p1366_p2  ;;  %p1306_p7 = scmp.ne.s32.totalorder %s130_s16, %s1305_s17 }
   0x7   : > { %p1313_p10 = scmp.lt.s32.totalorder %s130_s16, %s130_s16  ;;  %p1314_p11 = scmp.lt.s32.totalorder %s1312_s18, %s1305_s17 }
   0x8   : > { %p1219_p5 = pnand %p1222_p3, %p1218_p4 }
   0x9   : > { %p1315_p12 = por %p1314_p11, %p1313_p10 }
   0xa   : > { %p1296_p6 = pneg %p1219_p5 }
   0xc   : > { %p1308_p8 = pnand %p1306_p7, %p1296_p6 }
   0xe   : > { %p1309_p9 = pneg %p1308_p8 }
  0x10   : > { %p1316_p13 = pnand %p1315_p12, %p1309_p9 }
  0x12   : > { %1319 = shalt.err (!%p1316_p13)
}
  0x13   : > { %1221 = dma.hbm_to_vmem [thread:$0]  (!%p1219_p5), %s1759_s2, 16, %s130_s16, [#allocation5]  }
  0x14   : > { %152 = sbr.rel (%p1366_p2) target bundleno = 354 (0x162), region = 32 }
  0x19   : > { %1325 = dma.done.wait (%p1222_p3), [#allocation5], 16  }
  0x1a   : > { %1327 = vsyncadd (%p1222_p3), [#allocation5], 4294967280  ;;  %vm698_vm0 = vcmask 130048   ;;  %v1333_v0 = vmov 0.0   ;;  %v1334_v1 = vmov 0   ;;  %s1110_s21 = sshll.u32 %s1362_s13, 5 }
  0x1b   : > { %699 = vst.msk [vmem:[#allocation2] sm:$0xff] %vm698_vm0, %v1333_v0  ;;  %700 = vst.msk [vmem:[#allocation2 + $0x8] sm:$0xff] %vm698_vm0, %v1333_v0  ;;  %505 = vmatprep.subr.bf16.mxu0 %v1334_v1  ;;  %1194 = vmatprep.subr.bf16.mxu1 %v1334_v1  ;;  %p178_p0 = scmp.lt.s32.totalorder %s1110_s21, 63  ;;  %v1236_v2 = vld [vmem:[%s1758_s1 + $0x38] sm:$0xff]   ;;  %v1237_v3 = vld [vmem:[%s1758_s1 + $0x30] sm:$0xff]   ;;  %vm449_vm1 = vcmask 154624  }
  0x1c   : > { %703 = vst.msk [vmem:[#allocation2 + $0x18] sm:$0xff] %vm698_vm0, %v1333_v0  ;;  %704 = vst.msk [vmem:[#allocation2 + $0x20] sm:$0xff] %vm698_vm0, %v1333_v0  ;;  %506 = vmatpush1.bf16.msra.mxu0 %v1236_v2  ;;  %1204 = vmatpush1.bf16.msra.mxu1 %v1236_v2  ;;  %v1238_v4 = vld [vmem:[%s1758_s1 + $0x28] sm:$0xff]   ;;  %v1239_v5 = vld [vmem:[%s1758_s1 + $0x20] sm:$0xff]   ;;  %vm498_vm2 = vcmask 1040384   ;;  %vm499_vm3 = vcmask 1041408  }
  0x1d   : > { %706 = vst.msk [vmem:[#allocation2 + $0x30] sm:$0xff] %vm698_vm0, %v1333_v0  ;;  %707 = vst.msk [vmem:[#allocation2 + $0x38] sm:$0xff] %vm698_vm0, %v1333_v0  ;;  %s1763_s21 = smov (!%p178_p0, %s1110_s21), 63  ;;  %507 = vmatprep.subr.bf16.mxu0 %v1334_v1  ;;  %1195 = vmatprep.subr.bf16.mxu1 %v1334_v1  ;;  %v1240_v8 = vld [vmem:[%s1758_s1 + $0x18] sm:$0xff]   ;;  %v1241_v9 = vld [vmem:[%s1758_s1 + $0x10] sm:$0xff]   ;;  %v1335_v11 = vmov 65535  }
  0x1e   : > { %709 = vst.msk [vmem:[#allocation2 + $0x48] sm:$0xff] %vm698_vm0, %v1333_v0  ;;  %710 = vst.msk [vmem:[#allocation2 + $0x50] sm:$0xff] %vm698_vm0, %v1333_v0  ;;  %s1184_s26 = sshll.u32 %s1763_s21, 3  ;;  %v1242_v10 = vld [vmem:[%s1758_s1 + $0x8] sm:$0xff]   ;;  %v500_v12 = vsel %vm498_vm2, 4294967295, %v1335_v11  ;;  %v1243_v13 = vld [vmem:[%s1758_s1] sm:$0xff]  }
  0x1f   : > { %712 = vst.msk [vmem:[#allocation2 + $0x60] sm:$0xff] %vm698_vm0, %v1333_v0  ;;  %713 = vst.msk [vmem:[#allocation2 + $0x68] sm:$0xff] %vm698_vm0, %v1333_v0  ;;  %s1471_s4 = scalar_lea.vmem %s1757_s0, %s1184_s26  ;;  %v1244_v14 = vld [vmem:[%s1758_s1 + $0x48] ss:$0 sps:$4 sm:$0x33]   ;;  %v501_v15 = vsel %vm499_vm3, %v500_v12, 0 }
  0x20   : > { %715 = vst.msk [vmem:[#allocation2 + $0x78] sm:$0xff] %vm698_vm0, %v1333_v0  ;;  %716 = vst.msk [vmem:[#allocation2 + $0x80] sm:$0xff] %vm698_vm0, %v1333_v0  ;;  %508 = vmatpush1.bf16.msra.mxu0 %v1237_v3  ;;  %1205 = vmatpush1.bf16.msra.mxu1 %v1237_v3  ;;  %v1248_v6 = vld [vmem:[%s1471_s4 + $0x4] ss:$8 sps:$4 sm:$0xff]   ;;  %v503_v16 = vand.u32 %v1244_v14, %v501_v15  ;;  %v1246_v18 = vld [vmem:[%s1471_s4] ss:$8 sps:$4 sm:$0xff]  }
  0x21   : > { %718 = vst.msk [vmem:[#allocation2 + $0x90] sm:$0xff] %vm698_vm0, %v1333_v0  ;;  %719 = vst.msk [vmem:[#allocation2 + $0x98] sm:$0xff] %vm698_vm0, %v1333_v0  ;;  %509 = vmatprep.subr.bf16.mxu0 %v1334_v1  ;;  %1196 = vmatprep.subr.bf16.mxu1 %v1334_v1  ;;  %v1251_v7 = vld [vmem:[%s1471_s4 + $0x84] ss:$8 sps:$4 sm:$0xff]   ;;  %v1249_v19 = vld [vmem:[%s1471_s4 + $0x80] ss:$8 sps:$4 sm:$0xff]  }
  0x22   : > { %721 = vst.msk [vmem:[#allocation2 + $0xa8] sm:$0xff] %vm698_vm0, %v1333_v0  ;;  %722 = vst.msk [vmem:[#allocation2 + $0xb0] sm:$0xff] %vm698_vm0, %v1333_v0  ;;  %1158 = vmatprep.mubr.msk.bf16.mxu0 %vm449_vm1, %v1248_v6  ;;  %1166 = vmatprep.mubr.msk.bf16.mxu1 %vm449_vm1, %v1251_v7  ;;  %v1245_v17 = vld [vmem:[%s1758_s1 + $0x40] sm:$0xff]   ;;  %v1252_v20 = vld [vmem:[%s1471_s4 + $0x14] ss:$8 sps:$4 sm:$0xff]   ;;  %vm701_vm4 = vcmask 123904  }
  0x23   : > { %724 = vst.msk [vmem:[#allocation2 + $0xc0] sm:$0xff] %vm698_vm0, %v1333_v0  ;;  %725 = vst.msk [vmem:[#allocation2 + $0xc8] sm:$0xff] %vm698_vm0, %v1333_v0  ;;  %v1254_v21 = vld [vmem:[%s1471_s4 + $0x94] ss:$8 sps:$4 sm:$0xff]   ;;  %v1256_v22 = vld [vmem:[%s1471_s4 + $0x10] ss:$8 sps:$4 sm:$0xff]  }
  0x24   : > { %727 = vst.msk [vmem:[#allocation2 + $0xd8] sm:$0xff] %vm698_vm0, %v1333_v0  ;;  %728 = vst.msk [vmem:[#allocation2 + $0xe0] sm:$0xff] %vm698_vm0, %v1333_v0  ;;  %510 = vmatpush1.bf16.msra.mxu0 %v1238_v4  ;;  %1206 = vmatpush1.bf16.msra.mxu1 %v1238_v4  ;;  %v1257_v23 = vld [vmem:[%s1471_s4 + $0x90] ss:$8 sps:$4 sm:$0xff]   ;;  %v1258_v24 = vld [vmem:[%s1471_s4 + $0x24] ss:$8 sps:$4 sm:$0xff]  }
  0x25   : > { %730 = vst.msk [vmem:[#allocation2 + $0xf0] sm:$0xff] %vm698_vm0, %v1333_v0  ;;  %731 = vst.msk [vmem:[#allocation2 + $0xf8] sm:$0xff] %vm698_vm0, %v1333_v0  ;;  %511 = vmatprep.subr.bf16.mxu0 %v1334_v1  ;;  %1197 = vmatprep.subr.bf16.mxu1 %v1334_v1  ;;  %v1260_v25 = vld [vmem:[%s1471_s4 + $0xa4] ss:$8 sps:$4 sm:$0xff]   ;;  %v1262_v26 = vld [vmem:[%s1471_s4 + $0x20] ss:$8 sps:$4 sm:$0xff]  }
  0x26   : > { %733 = vst.msk [vmem:[#allocation2 + $0x108] sm:$0xff] %vm698_vm0, %v1333_v0  ;;  %734 = vst.msk [vmem:[#allocation2 + $0x110] sm:$0xff] %vm698_vm0, %v1333_v0  ;;  %v1263_v27 = vld [vmem:[%s1471_s4 + $0xa0] ss:$8 sps:$4 sm:$0xff]   ;;  %v1264_v28 = vld [vmem:[%s1471_s4 + $0x34] ss:$8 sps:$4 sm:$0xff]  }
  0x27   : > { %736 = vst.msk [vmem:[#allocation2 + $0x120] sm:$0xff] %vm698_vm0, %v1333_v0  ;;  %737 = vst.msk [vmem:[#allocation2 + $0x128] sm:$0xff] %vm698_vm0, %v1333_v0  ;;  %v1266_v29 = vld [vmem:[%s1471_s4 + $0xb4] ss:$8 sps:$4 sm:$0xff]   ;;  %v1268_v30 = vld [vmem:[%s1471_s4 + $0x30] ss:$8 sps:$4 sm:$0xff]  }
  0x28   : > { %739 = vst.msk [vmem:[#allocation2 + $0x138] sm:$0xff] %vm698_vm0, %v1333_v0  ;;  %740 = vst.msk [vmem:[#allocation2 + $0x140] sm:$0xff] %vm698_vm0, %v1333_v0  ;;  %512 = vmatpush1.bf16.msra.mxu0 %v1239_v5  ;;  %1207 = vmatpush1.bf16.msra.mxu1 %v1239_v5  ;;  %v1269_v31 = vld [vmem:[%s1471_s4 + $0xb0] ss:$8 sps:$4 sm:$0xff]   ;;  %v1270_v32 = vld [vmem:[%s1471_s4 + $0x44] ss:$8 sps:$4 sm:$0xff]  }
  0x29   : > { %742 = vst.msk [vmem:[#allocation2 + $0x150] sm:$0xff] %vm698_vm0, %v1333_v0  ;;  %743 = vst.msk [vmem:[#allocation2 + $0x158] sm:$0xff] %vm698_vm0, %v1333_v0  ;;  %513 = vmatprep.subr.bf16.mxu0 %v1334_v1  ;;  %1198 = vmatprep.subr.bf16.mxu1 %v1334_v1  ;;  %v1272_v33 = vld [vmem:[%s1471_s4 + $0xc4] ss:$8 sps:$4 sm:$0xff]   ;;  %v1274_v34 = vld [vmem:[%s1471_s4 + $0x40] ss:$8 sps:$4 sm:$0xff]  }
  0x2a   : > { %745 = vst.msk [vmem:[#allocation2 + $0x168] sm:$0xff] %vm698_vm0, %v1333_v0  ;;  %746 = vst.msk [vmem:[#allocation2 + $0x170] sm:$0xff] %vm698_vm0, %v1333_v0  ;;  %v1275_v35 = vld [vmem:[%s1471_s4 + $0xc0] ss:$8 sps:$4 sm:$0xff]   ;;  %v1276_v36 = vld [vmem:[%s1471_s4 + $0x54] ss:$8 sps:$4 sm:$0xff]  }
  0x2b   : > { %748 = vst.msk [vmem:[#allocation2 + $0x180] sm:$0xff] %vm698_vm0, %v1333_v0  ;;  %749 = vst.msk [vmem:[#allocation2 + $0x188] sm:$0xff] %vm698_vm0, %v1333_v0  ;;  %v1278_v37 = vld [vmem:[%s1471_s4 + $0xd4] ss:$8 sps:$4 sm:$0xff]   ;;  %v1280_v38 = vld [vmem:[%s1471_s4 + $0x50] ss:$8 sps:$4 sm:$0xff]  }
  0x2c   : > { %514 = vmatpush1.bf16.msra.mxu0 %v1240_v8  ;;  %1208 = vmatpush1.bf16.msra.mxu1 %v1240_v8  ;;  %v1281_v39 = vld [vmem:[%s1471_s4 + $0xd0] ss:$8 sps:$4 sm:$0xff]   ;;  %v1282_v40 = vld [vmem:[%s1471_s4 + $0x64] ss:$8 sps:$4 sm:$0xff]   ;;  %v1286_v42 = vld [vmem:[%s1471_s4 + $0x60] ss:$8 sps:$4 sm:$0xff]  }
  0x2d   : > { %515 = vmatprep.subr.bf16.mxu0 %v1334_v1  ;;  %1199 = vmatprep.subr.bf16.mxu1 %v1334_v1  ;;  %v1284_v41 = vld [vmem:[%s1471_s4 + $0xe4] ss:$8 sps:$4 sm:$0xff]   ;;  %v1287_v43 = vld [vmem:[%s1471_s4 + $0xe0] ss:$8 sps:$4 sm:$0xff]   ;;  %v1288_v44 = vld [vmem:[%s1471_s4 + $0x74] ss:$8 sps:$4 sm:$0xff]  }
  0x2e   : > { %v1290_v45 = vld [vmem:[%s1471_s4 + $0xf4] ss:$8 sps:$4 sm:$0xff]   ;;  %v1292_v46 = vld [vmem:[%s1471_s4 + $0x70] ss:$8 sps:$4 sm:$0xff]   ;;  %702 = vst.msk [vmem:[#allocation2 + $0x10] sm:$0x3] %vm701_vm4, %v1333_v0 }
  0x2f   : > { %v1293_v47 = vld [vmem:[%s1471_s4 + $0xf0] ss:$8 sps:$4 sm:$0xff]   ;;  %705 = vst.msk [vmem:[#allocation2 + $0x28] sm:$0x3] %vm701_vm4, %v1333_v0  ;;  %708 = vst.msk [vmem:[#allocation2 + $0x40] sm:$0x3] %vm701_vm4, %v1333_v0 }
  0x30   : > { %516 = vmatpush1.bf16.msra.mxu0 %v1241_v9  ;;  %1209 = vmatpush1.bf16.msra.mxu1 %v1241_v9  ;;  %711 = vst.msk [vmem:[#allocation2 + $0x58] sm:$0x3] %vm701_vm4, %v1333_v0  ;;  %714 = vst.msk [vmem:[#allocation2 + $0x70] sm:$0x3] %vm701_vm4, %v1333_v0  ;;  %v1590_v48 = vld [vmem:[#allocation4] ss:$0 sm:$0xff] }
  0x31   : > { %517 = vmatprep.subr.bf16.mxu0 %v1334_v1  ;;  %1200 = vmatprep.subr.bf16.mxu1 %v1334_v1  ;;  %717 = vst.msk [vmem:[#allocation2 + $0x88] sm:$0x3] %vm701_vm4, %v1333_v0  ;;  %720 = vst.msk [vmem:[#allocation2 + $0xa0] sm:$0x3] %vm701_vm4, %v1333_v0  ;;  %p184_p1 = scmp.lt.s32.totalorder %s1362_s13, 1  ;;  %vm1027_vm5 = vcmask 125952  }
  0x32   : > { %723 = vst.msk [vmem:[#allocation2 + $0xb8] sm:$0x3] %vm701_vm4, %v1333_v0  ;;  %726 = vst.msk [vmem:[#allocation2 + $0xd0] sm:$0x3] %vm701_vm4, %v1333_v0 }
  0x33   : > { %729 = vst.msk [vmem:[#allocation2 + $0xe8] sm:$0x3] %vm701_vm4, %v1333_v0  ;;  %732 = vst.msk [vmem:[#allocation2 + $0x100] sm:$0x3] %vm701_vm4, %v1333_v0  ;;  %s1765_s13 = smov (!%p184_p1, %s1362_s13), 1 }
  0x34   : > { %518 = vmatpush1.bf16.msra.mxu0 %v1242_v10  ;;  %1210 = vmatpush1.bf16.msra.mxu1 %v1242_v10  ;;  %735 = vst.msk [vmem:[#allocation2 + $0x118] sm:$0x3] %vm701_vm4, %v1333_v0  ;;  %738 = vst.msk [vmem:[#allocation2 + $0x130] sm:$0x3] %vm701_vm4, %v1333_v0  ;;  %s1185_s21 = sshll.u32 %s1765_s13, 5 }
  0x35   : > { %519 = vmatprep.subr.bf16.mxu0 %v1334_v1  ;;  %1201 = vmatprep.subr.bf16.mxu1 %v1334_v1  ;;  %741 = vst.msk [vmem:[#allocation2 + $0x148] sm:$0x3] %vm701_vm4, %v1333_v0  ;;  %744 = vst.msk [vmem:[#allocation2 + $0x160] sm:$0x3] %vm701_vm4, %v1333_v0  ;;  %s1655_s23 = scalar_lea.vmem %s1760_s3, %s1185_s21 }
  0x36   : > { %747 = vst.msk [vmem:[#allocation2 + $0x178] sm:$0x3] %vm701_vm4, %v1333_v0  ;;  %750 = vst.msk [vmem:[#allocation2 + $0x190] sm:$0x3] %vm701_vm4, %v1333_v0 }
  0x38   : > { %520 = vmatpush1.bf16.msra.mxu0 %v1243_v13  ;;  %1211 = vmatpush1.bf16.msra.mxu1 %v1243_v13 }
  0x39   : > { %533 = vmatprep.subr.bf16.mxu0 %v1334_v1  ;;  %1202 = vmatprep.subr.bf16.mxu1 %v1334_v1 }
  0x3c   : > { %534 = vmatpush2.bf16.msra.mxu0 %v503_v16  ;;  %1212 = vmatpush2.bf16.msra.mxu1 %v503_v16 }
  0x3d   : > { %535 = vmatprep.subr.bf16.mxu0 %v1334_v1  ;;  %1203 = vmatprep.subr.bf16.mxu1 %v1334_v1 }
  0x40   : > { %536 = vmatpush2.bf16.msra.mxu0 %v1245_v17  ;;  %1213 = vmatpush2.bf16.msra.mxu1 %v1245_v17  ;;  %v787_v17 = vld [vmem:[#allocation2] sm:$0xff] }
  0x43   : > { %538 = vmatmul.mubr.bf16.vlgmr.msra.gmra.mxu0 %v1246_v18  ;;  %602 = vmatmul.mubr.bf16.vlgmr.msra.gmra.mxu1 %v1249_v19 }
  0x44   : > { %1159 = vmatprep.mubr.msk.bf16.mxu0 %vm449_vm1, %v1252_v20  ;;  %1167 = vmatprep.mubr.msk.bf16.mxu1 %vm449_vm1, %v1254_v21 }
  0x4b   : > { %546 = vmatmul.mubr.bf16.gmra.mxu0 %v1256_v22  ;;  %610 = vmatmul.mubr.bf16.gmra.mxu1 %v1257_v23 }
  0x4c   : > { %1160 = vmatprep.mubr.msk.bf16.mxu0 %vm449_vm1, %v1258_v24  ;;  %1168 = vmatprep.mubr.msk.bf16.mxu1 %vm449_vm1, %v1260_v25 }
  0x53   : > { %554 = vmatmul.mubr.bf16.gmra.mxu0 %v1262_v26  ;;  %618 = vmatmul.mubr.bf16.gmra.mxu1 %v1263_v27  ;;  %v788_v26 = vld [vmem:[#allocation2 + $0x8] sm:$0xff]  ;;  %v789_v27 = vld [vmem:[#allocation2 + $0x10] sm:$0x3] }
  0x54   : > { %1161 = vmatprep.mubr.msk.bf16.mxu0 %vm449_vm1, %v1264_v28  ;;  %1169 = vmatprep.mubr.msk.bf16.mxu1 %vm449_vm1, %v1266_v29 }
  0x5b   : > { %562 = vmatmul.mubr.bf16.gmra.mxu0 %v1268_v30  ;;  %626 = vmatmul.mubr.bf16.gmra.mxu1 %v1269_v31 }
  0x5c   : > { %1162 = vmatprep.mubr.msk.bf16.mxu0 %vm449_vm1, %v1270_v32  ;;  %1170 = vmatprep.mubr.msk.bf16.mxu1 %vm449_vm1, %v1272_v33 }
  0x63   : > { %570 = vmatmul.mubr.bf16.gmra.mxu0 %v1274_v34  ;;  %634 = vmatmul.mubr.bf16.gmra.mxu1 %v1275_v35 }
  0x64   : > { %1163 = vmatprep.mubr.msk.bf16.mxu0 %vm449_vm1, %v1276_v36  ;;  %1171 = vmatprep.mubr.msk.bf16.mxu1 %vm449_vm1, %v1278_v37 }
  0x6b   : > { %578 = vmatmul.mubr.bf16.gmra.mxu0 %v1280_v38  ;;  %642 = vmatmul.mubr.bf16.gmra.mxu1 %v1281_v39 }
  0x6c   : > { %1164 = vmatprep.mubr.msk.bf16.mxu0 %vm449_vm1, %v1282_v40  ;;  %1172 = vmatprep.mubr.msk.bf16.mxu1 %vm449_vm1, %v1284_v41 }
  0x73   : > { %586 = vmatmul.mubr.bf16.gmra.mxu0 %v1286_v42  ;;  %650 = vmatmul.mubr.bf16.gmra.mxu1 %v1287_v43 }
  0x74   : > { %1165 = vmatprep.mubr.msk.bf16.mxu0 %vm449_vm1, %v1288_v44  ;;  %1173 = vmatprep.mubr.msk.bf16.mxu1 %vm449_vm1, %v1290_v45 }
  0x7b   : > { %594 = vmatmul.mubr.bf16.gmra.mxu0 %v1292_v46  ;;  %658 = vmatmul.mubr.bf16.gmra.mxu1 %v1293_v47 }
 0x103   : > { %v539_v49 = vpop.f32.mrf.mxu0  ;;  %v603_v50 = vpop.f32.mrf.mxu1 }
 0x104   : > { %v540_v51 = vadd.f32 %v1590_v48, %v539_v49  ;;  %v604_v52 = vadd.f32 %v1590_v48, %v603_v50 }
 0x105   : > { %v541_v53 = vpop.f32.mrf.mxu0  ;;  %v605_v54 = vpop.f32.mrf.mxu1 }
 0x106   : > { %v666_v55 = vmax.f32 %v540_v51, 0.0  ;;  %v682_v56 = vmax.f32 %v604_v52, 0.0 }
 0x107   : > { %v542_v57 = vpop.f32.mrf.mxu0  ;;  %v606_v58 = vpop.f32.mrf.mxu1 }
 0x108   : > { %755 = vst.msk [vmem:[#allocation2 + $0x19] sm:$0xff] %vm698_vm0, %v666_v55  ;;  %771 = vst.msk [vmem:[#allocation2 + $0xd9] sm:$0xff] %vm698_vm0, %v682_v56  ;;  %v543_v59 = vadd.f32 %v1590_v48, %v542_v57  ;;  %v607_v60 = vadd.f32 %v1590_v48, %v606_v58 }
 0x109   : > { %v544_v61 = vpop.f32.mrf.mxu0  ;;  %v608_v62 = vpop.f32.mrf.mxu1 }
 0x10a   : > { %v667_v63 = vmax.f32 %v543_v59, 0.0  ;;  %v683_v0 = vmax.f32 %v607_v60, 0.0 }
 0x10b   : > { %v547_v1 = vpop.f32.mrf.mxu0  ;;  %v611_v2 = vpop.f32.mrf.mxu1 }
 0x10c   : > { %756 = vst.msk [vmem:[#allocation2 + $0x21] sm:$0xff] %vm698_vm0, %v667_v63  ;;  %772 = vst.msk [vmem:[#allocation2 + $0xe1] sm:$0xff] %vm698_vm0, %v683_v0  ;;  %v548_v3 = vadd.f32 %v1590_v48, %v547_v1  ;;  %v612_v4 = vadd.f32 %v1590_v48, %v611_v2 }
 0x10d   : > { %v549_v5 = vpop.f32.mrf.mxu0  ;;  %v613_v6 = vpop.f32.mrf.mxu1 }
 0x10e   : > { %v668_v7 = vmax.f32 %v548_v3, 0.0  ;;  %v684_v8 = vmax.f32 %v612_v4, 0.0 }
 0x10f   : > { %v550_v9 = vpop.f32.mrf.mxu0  ;;  %v614_v10 = vpop.f32.mrf.mxu1  ;;  %v811_v18 = vld [vmem:[#allocation2 + $0x18] sm:$0xff] }
 0x110   : > { %757 = vst.msk [vmem:[#allocation2 + $0x31] sm:$0xff] %vm698_vm0, %v668_v7  ;;  %773 = vst.msk [vmem:[#allocation2 + $0xf1] sm:$0xff] %vm698_vm0, %v684_v8  ;;  %v551_v11 = vadd.f32 %v1590_v48, %v550_v9  ;;  %v615_v12 = vadd.f32 %v1590_v48, %v614_v10  ;;  %v835_v25 = vmax.f32 %v787_v17, %v811_v18 }
 0x111   : > { %v552_v13 = vpop.f32.mrf.mxu0  ;;  %v616_v14 = vpop.f32.mrf.mxu1 }
 0x112   : > { %v669_v15 = vmax.f32 %v551_v11, 0.0  ;;  %v685_v16 = vmax.f32 %v615_v12, 0.0 }
 0x113   : > { %v555_v19 = vpop.f32.mrf.mxu0  ;;  %v619_v20 = vpop.f32.mrf.mxu1  ;;  %v812_v30 = vld [vmem:[#allocation2 + $0x20] sm:$0xff]  ;;  %v813_v31 = vld [vmem:[#allocation2 + $0x28] sm:$0x3] }
 0x114   : > { %758 = vst.msk [vmem:[#allocation2 + $0x39] sm:$0xff] %vm698_vm0, %v669_v15  ;;  %774 = vst.msk [vmem:[#allocation2 + $0xf9] sm:$0xff] %vm698_vm0, %v685_v16  ;;  %v556_v21 = vadd.f32 %v1590_v48, %v555_v19  ;;  %v620_v22 = vadd.f32 %v1590_v48, %v619_v20  ;;  %v836_v40 = vmax.f32 %v788_v26, %v812_v30 }
 0x115   : > { %v557_v23 = vpop.f32.mrf.mxu0  ;;  %v621_v24 = vpop.f32.mrf.mxu1  ;;  %v837_v41 = vmax.f32 %v789_v27, %v813_v31 }
 0x116   : > { %v670_v28 = vmax.f32 %v556_v21, 0.0  ;;  %v686_v29 = vmax.f32 %v620_v22, 0.0 }
 0x117   : > { %v1610_v32 = vld [vmem:[#allocation2 + $0x30] sm:$0xff]  ;;  %v558_v33 = vpop.f32.mrf.mxu0  ;;  %v622_v34 = vpop.f32.mrf.mxu1 }
 0x118   : > { %v884_v35 = vmax.f32 %v835_v25, %v1610_v32  ;;  %759 = vst.msk [vmem:[#allocation2 + $0x49] sm:$0xff] %vm698_vm0, %v670_v28  ;;  %775 = vst.msk [vmem:[#allocation2 + $0x109] sm:$0xff] %vm698_vm0, %v686_v29  ;;  %v559_v36 = vadd.f32 %v1590_v48, %v558_v33  ;;  %v623_v37 = vadd.f32 %v1590_v48, %v622_v34  ;;  %v1638_v6 = vld [vmem:[#allocation2 + $0xf0] sm:$0xff] }
 0x119   : > { %v560_v38 = vpop.f32.mrf.mxu0  ;;  %v624_v39 = vpop.f32.mrf.mxu1 }
 0x11a   : > { %908 = vst.msk [vmem:[#allocation3] sm:$0xff] %vm698_vm0, %v884_v35  ;;  %v671_v42 = vmax.f32 %v559_v36, 0.0  ;;  %v687_v43 = vmax.f32 %v623_v37, 0.0 }
 0x11b   : > { %v1618_v44 = vld [vmem:[#allocation2 + $0x38] sm:$0xff]  ;;  %v862_v45 = vld [vmem:[#allocation2 + $0x40] sm:$0x3]  ;;  %v563_v46 = vpop.f32.mrf.mxu0  ;;  %v627_v47 = vpop.f32.mrf.mxu1 }
 0x11c   : > { %v885_v49 = vmax.f32 %v836_v40, %v1618_v44  ;;  %v886_v50 = vmax.f32 %v837_v41, %v862_v45  ;;  %760 = vst.msk [vmem:[#allocation2 + $0x51] sm:$0xff] %vm698_vm0, %v671_v42  ;;  %776 = vst.msk [vmem:[#allocation2 + $0x111] sm:$0xff] %vm698_vm0, %v687_v43  ;;  %v564_v51 = vadd.f32 %v1590_v48, %v563_v46  ;;  %v792_v30 = vld [vmem:[#allocation2 + $0x40] sm:$0x3]  ;;  %v1659_v35 = vld [vmem:[#allocation2 + $0xf8] sm:$0xff] }
 0x11d   : > { %v628_v52 = vadd.f32 %v1590_v48, %v627_v47  ;;  %v565_v53 = vpop.f32.mrf.mxu0  ;;  %v629_v54 = vpop.f32.mrf.mxu1  ;;  %v804_v36 = vld [vmem:[#allocation2 + $0x100] sm:$0x3] }
 0x11e   : > { %909 = vst.msk [vmem:[#allocation3 + $0x8] sm:$0xff] %vm698_vm0, %v885_v49  ;;  %v672_v55 = vmax.f32 %v564_v51, 0.0 }
 0x11f   : > { %910 = vst.msk [vmem:[#allocation3 + $0x10] sm:$0x3] %vm701_vm4, %v886_v50  ;;  %v688_v56 = vmax.f32 %v628_v52, 0.0  ;;  %v566_v57 = vpop.f32.mrf.mxu0  ;;  %v630_v58 = vpop.f32.mrf.mxu1  ;;  %v814_v1 = vld [vmem:[#allocation2 + $0x48] sm:$0xff] }
 0x120   : > { %761 = vst.msk [vmem:[#allocation2 + $0x61] sm:$0xff] %vm698_vm0, %v672_v55  ;;  %v567_v59 = vadd.f32 %v1590_v48, %v566_v57  ;;  %v631_v60 = vadd.f32 %v1590_v48, %v630_v58  ;;  %v826_v2 = vld [vmem:[#allocation2 + $0x108] sm:$0xff]  ;;  %v838_v13 = vmax.f32 %v1610_v32, %v814_v1 }
 0x121   : > { %777 = vst.msk [vmem:[#allocation2 + $0x121] sm:$0xff] %vm698_vm0, %v688_v56  ;;  %v568_v61 = vpop.f32.mrf.mxu0  ;;  %v632_v62 = vpop.f32.mrf.mxu1  ;;  %v850_v14 = vmax.f32 %v1638_v6, %v826_v2 }
 0x122   : > { %v673_v63 = vmax.f32 %v567_v59, 0.0  ;;  %v689_v0 = vmax.f32 %v631_v60, 0.0 }
 0x123   : > { %v571_v3 = vpop.f32.mrf.mxu0  ;;  %v635_v4 = vpop.f32.mrf.mxu1  ;;  %v815_v15 = vld [vmem:[#allocation2 + $0x50] sm:$0xff]  ;;  %v816_v16 = vld [vmem:[#allocation2 + $0x58] sm:$0x3] }
 0x124   : > { %762 = vst.msk [vmem:[#allocation2 + $0x69] sm:$0xff] %vm698_vm0, %v673_v63  ;;  %778 = vst.msk [vmem:[#allocation2 + $0x129] sm:$0xff] %vm698_vm0, %v689_v0  ;;  %v572_v5 = vadd.f32 %v1590_v48, %v571_v3  ;;  %v636_v9 = vadd.f32 %v1590_v48, %v635_v4  ;;  %v827_v25 = vld [vmem:[#allocation2 + $0x110] sm:$0xff]  ;;  %v828_v26 = vld [vmem:[#allocation2 + $0x118] sm:$0x3]  ;;  %v839_v37 = vmax.f32 %v1618_v44, %v815_v15 }
 0x125   : > { %v932_v7 = vld [vmem:[#allocation3] ss:$2 sm:$0xff]  ;;  %v948_v8 = vld [vmem:[#allocation3 + $0x1] ss:$2 sm:$0xff]  ;;  %v573_v10 = vpop.f32.mrf.mxu0  ;;  %v637_v11 = vpop.f32.mrf.mxu1  ;;  %v840_v38 = vmax.f32 %v792_v30, %v816_v16  ;;  %v851_v40 = vmax.f32 %v1659_v35, %v827_v25  ;;  %v852_v41 = vmax.f32 %v804_v36, %v828_v26 }
 0x126   : > { %v963_v12 = vmax.f32 %v932_v7, %v948_v8  ;;  %v674_v17 = vmax.f32 %v572_v5, 0.0  ;;  %v972_v18 = vld [vmem:[#allocation3 + $0x2] ss:$2 sm:$0xff]  ;;  %v690_v21 = vmax.f32 %v636_v9, 0.0 }
 0x127   : > { %v1644_v19 = vld [vmem:[#allocation2 + $0x60] sm:$0xff]  ;;  %v574_v22 = vpop.f32.mrf.mxu0  ;;  %v638_v23 = vpop.f32.mrf.mxu1 }
 0x128   : > { %v1646_v20 = vld [vmem:[#allocation2 + $0x120] sm:$0xff]  ;;  %v987_v24 = vmax.f32 %v963_v12, %v972_v18  ;;  %v887_v27 = vmax.f32 %v838_v13, %v1644_v19  ;;  %763 = vst.msk [vmem:[#allocation2 + $0x79] sm:$0xff] %vm698_vm0, %v674_v17  ;;  %v575_v29 = vadd.f32 %v1590_v48, %v574_v22  ;;  %779 = vst.msk [vmem:[#allocation2 + $0x139] sm:$0xff] %vm698_vm0, %v690_v21 }
 0x129   : > { %v899_v28 = vmax.f32 %v850_v14, %v1646_v20  ;;  %v639_v31 = vadd.f32 %v1590_v48, %v638_v23  ;;  %v576_v32 = vpop.f32.mrf.mxu0  ;;  %v640_v33 = vpop.f32.mrf.mxu1 }
 0x12a   : > { %v1186_v34 = vpack.c.bf16 %v987_v24, %v987_v24  ;;  %911 = vst.msk [vmem:[#allocation3 + $0x18] sm:$0xff] %vm698_vm0, %v887_v27  ;;  %v675_v39 = vmax.f32 %v575_v29, 0.0 }
 0x12b   : > { %923 = vst.msk [vmem:[#allocation3 + $0x78] sm:$0xff] %vm698_vm0, %v899_v28  ;;  %v1665_v42 = vld [vmem:[#allocation2 + $0x68] sm:$0xff]  ;;  %v865_v43 = vld [vmem:[#allocation2 + $0x70] sm:$0x3]  ;;  %v691_v45 = vmax.f32 %v639_v31, 0.0  ;;  %v579_v46 = vpop.f32.mrf.mxu0  ;;  %v643_v47 = vpop.f32.mrf.mxu1 }
 0x12c   : > { %1028 = vst.msk [vmem:[%s1655_s23] sm:$0xf] %vm1027_vm5, %v1186_v34  ;;  %v888_v49 = vmax.f32 %v839_v37, %v1665_v42  ;;  %v889_v44 = vmax.f32 %v840_v38, %v865_v43  ;;  %v1670_v50 = vld [vmem:[#allocation2 + $0x128] sm:$0xff]  ;;  %v877_v51 = vld [vmem:[#allocation2 + $0x130] sm:$0x3]  ;;  %v580_v52 = vadd.f32 %v1590_v48, %v579_v46  ;;  %v644_v53 = vadd.f32 %v1590_v48, %v643_v47 }
 0x12d   : > { %764 = vst.msk [vmem:[#allocation2 + $0x81] sm:$0xff] %vm698_vm0, %v675_v39  ;;  %v900_v54 = vmax.f32 %v851_v40, %v1670_v50  ;;  %v901_v55 = vmax.f32 %v852_v41, %v877_v51  ;;  %780 = vst.msk [vmem:[#allocation2 + $0x141] sm:$0xff] %vm698_vm0, %v691_v45  ;;  %v581_v56 = vpop.f32.mrf.mxu0  ;;  %v645_v57 = vpop.f32.mrf.mxu1  ;;  %v795_v38 = vld [vmem:[#allocation2 + $0x70] sm:$0x3] }
 0x12e   : > { %912 = vst.msk [vmem:[#allocation3 + $0x20] sm:$0xff] %vm698_vm0, %v888_v49  ;;  %v676_v58 = vmax.f32 %v580_v52, 0.0  ;;  %v692_v59 = vmax.f32 %v644_v53, 0.0  ;;  %v807_v46 = vld [vmem:[#allocation2 + $0x130] sm:$0x3] }
 0x12f   : > { %913 = vst.msk [vmem:[#allocation3 + $0x28] sm:$0x3] %vm701_vm4, %v889_v44  ;;  %925 = vst.msk [vmem:[#allocation3 + $0x88] sm:$0x3] %vm701_vm4, %v901_v55  ;;  %v582_v60 = vpop.f32.mrf.mxu0  ;;  %v646_v61 = vpop.f32.mrf.mxu1  ;;  %v817_v4 = vld [vmem:[#allocation2 + $0x78] sm:$0xff] }
 0x130   : > { %924 = vst.msk [vmem:[#allocation3 + $0x80] sm:$0xff] %vm698_vm0, %v900_v54  ;;  %765 = vst.msk [vmem:[#allocation2 + $0x91] sm:$0xff] %vm698_vm0, %v676_v58  ;;  %v583_v62 = vadd.f32 %v1590_v48, %v582_v60  ;;  %v647_v63 = vadd.f32 %v1590_v48, %v646_v61  ;;  %v829_v5 = vld [vmem:[#allocation2 + $0x138] sm:$0xff]  ;;  %v841_v21 = vmax.f32 %v1644_v19, %v817_v4 }
 0x131   : > { %781 = vst.msk [vmem:[#allocation2 + $0x151] sm:$0xff] %vm698_vm0, %v692_v59  ;;  %v584_v0 = vpop.f32.mrf.mxu0  ;;  %v648_v1 = vpop.f32.mrf.mxu1  ;;  %v853_v22 = vmax.f32 %v1646_v20, %v829_v5 }
 0x132   : > { %v677_v2 = vmax.f32 %v583_v62, 0.0  ;;  %v693_v3 = vmax.f32 %v647_v63, 0.0 }
 0x133   : > { %v587_v7 = vpop.f32.mrf.mxu0  ;;  %v651_v8 = vpop.f32.mrf.mxu1 }
 0x134   : > { %766 = vst.msk [vmem:[#allocation2 + $0x99] sm:$0xff] %vm698_vm0, %v677_v2  ;;  %782 = vst.msk [vmem:[#allocation2 + $0x159] sm:$0xff] %vm698_vm0, %v693_v3  ;;  %v588_v9 = vadd.f32 %v1590_v48, %v587_v7  ;;  %v652_v10 = vadd.f32 %v1590_v48, %v651_v8  ;;  %v818_v13 = vld [vmem:[#allocation2 + $0x80] sm:$0xff]  ;;  %v819_v23 = vld [vmem:[#allocation2 + $0x88] sm:$0x3] }
 0x135   : > { %v934_v11 = vld [vmem:[#allocation3 + $0x18] ss:$2 sm:$0xff]  ;;  %v950_v12 = vld [vmem:[#allocation3 + $0x19] ss:$2 sm:$0xff]  ;;  %v589_v14 = vpop.f32.mrf.mxu0  ;;  %v653_v15 = vpop.f32.mrf.mxu1  ;;  %v830_v34 = vld [vmem:[#allocation2 + $0x140] sm:$0xff]  ;;  %v842_v47 = vmax.f32 %v1665_v42, %v818_v13  ;;  %v843_v49 = vmax.f32 %v795_v38, %v819_v23 }
 0x136   : > { %v964_v16 = vmax.f32 %v934_v11, %v950_v12  ;;  %v974_v24 = vld [vmem:[#allocation3 + $0x1a] ss:$2 sm:$0xff]  ;;  %v678_v28 = vmax.f32 %v588_v9, 0.0  ;;  %v694_v29 = vmax.f32 %v652_v10, 0.0  ;;  %v831_v36 = vld [vmem:[#allocation2 + $0x148] sm:$0x3]  ;;  %v854_v52 = vmax.f32 %v1670_v50, %v830_v34 }
 0x137   : > { %v942_v17 = vld [vmem:[#allocation3 + $0x78] ss:$2 sm:$0xff]  ;;  %v958_v18 = vld [vmem:[#allocation3 + $0x79] ss:$2 sm:$0xff]  ;;  %v590_v30 = vpop.f32.mrf.mxu0  ;;  %v654_v31 = vpop.f32.mrf.mxu1  ;;  %v855_v53 = vmax.f32 %v807_v46, %v831_v36 }
 0x138   : > { %v968_v25 = vmax.f32 %v942_v17, %v958_v18  ;;  %v1691_v26 = vld [vmem:[#allocation2 + $0x90] sm:$0xff]  ;;  %v988_v32 = vmax.f32 %v964_v16, %v974_v24  ;;  %v591_v20 = vadd.f32 %v1590_v48, %v590_v30  ;;  %767 = vst.msk [vmem:[#allocation2 + $0xa9] sm:$0xff] %vm698_vm0, %v678_v28  ;;  %783 = vst.msk [vmem:[#allocation2 + $0x169] sm:$0xff] %vm698_vm0, %v694_v29  ;;  %v823_v16 = vld [vmem:[#allocation2 + $0xd8] sm:$0xff] }
 0x139   : > { %v1693_v27 = vld [vmem:[#allocation2 + $0x150] sm:$0xff]  ;;  %v890_v37 = vmax.f32 %v841_v21, %v1691_v26  ;;  %v655_v40 = vadd.f32 %v1590_v48, %v654_v31  ;;  %v592_v41 = vpop.f32.mrf.mxu0  ;;  %v656_v43 = vpop.f32.mrf.mxu1 }
 0x13a   : > { %v982_v33 = vld [vmem:[#allocation3 + $0x7a] ss:$2 sm:$0xff]  ;;  %v902_v19 = vmax.f32 %v853_v22, %v1693_v27  ;;  %v1187_v45 = vpack.c.bf16 %v988_v32, %v988_v32  ;;  %v679_v44 = vmax.f32 %v591_v20, 0.0  ;;  %v824_v41 = vld [vmem:[#allocation2 + $0xe0] sm:$0xff]  ;;  %v825_v43 = vld [vmem:[#allocation2 + $0xe8] sm:$0x3] }
 0x13b   : > { %v992_v39 = vmax.f32 %v968_v25, %v982_v33  ;;  %914 = vst.msk [vmem:[#allocation3 + $0x30] sm:$0xff] %vm698_vm0, %v890_v37  ;;  %v1705_v54 = vld [vmem:[#allocation2 + $0x98] sm:$0xff]  ;;  %v868_v55 = vld [vmem:[#allocation2 + $0xa0] sm:$0x3]  ;;  %v695_v56 = vmax.f32 %v655_v40, 0.0  ;;  %v595_v57 = vpop.f32.mrf.mxu0  ;;  %v659_v58 = vpop.f32.mrf.mxu1 }
 0x13c   : > { %926 = vst.msk [vmem:[#allocation3 + $0x90] sm:$0xff] %vm698_vm0, %v902_v19  ;;  %v891_v42 = vmax.f32 %v842_v47, %v1705_v54  ;;  %v892_v59 = vmax.f32 %v843_v49, %v868_v55  ;;  %v1710_v60 = vld [vmem:[#allocation2 + $0x158] sm:$0xff]  ;;  %v880_v61 = vld [vmem:[#allocation2 + $0x160] sm:$0x3]  ;;  %768 = vst.msk [vmem:[#allocation2 + $0xb1] sm:$0xff] %vm698_vm0, %v679_v44  ;;  %v596_v62 = vadd.f32 %v1590_v48, %v595_v57 }
 0x13d   : > { %v1191_v51 = vpack.c.bf16 %v992_v39, %v992_v39  ;;  %1029 = vst.msk [vmem:[%s1655_s23 + $0x4] sm:$0xf] %vm1027_vm5, %v1187_v45  ;;  %v660_v50 = vadd.f32 %v1590_v48, %v659_v58  ;;  %v903_v63 = vmax.f32 %v854_v52, %v1710_v60  ;;  %v904_v0 = vmax.f32 %v855_v53, %v880_v61  ;;  %v597_v1 = vpop.f32.mrf.mxu0  ;;  %v661_v2 = vpop.f32.mrf.mxu1  ;;  %v798_v39 = vld [vmem:[#allocation2 + $0xa0] sm:$0x3] }
 0x13e   : > { %784 = vst.msk [vmem:[#allocation2 + $0x171] sm:$0xff] %vm698_vm0, %v695_v56  ;;  %915 = vst.msk [vmem:[#allocation3 + $0x38] sm:$0xff] %vm698_vm0, %v891_v42  ;;  %v680_v3 = vmax.f32 %v596_v62, 0.0  ;;  %v810_v45 = vld [vmem:[#allocation2 + $0x160] sm:$0x3] }
 0x13f   : > { %1033 = vst.msk [vmem:[%s1655_s23 + $0x14] sm:$0xf] %vm1027_vm5, %v1191_v51  ;;  %v696_v4 = vmax.f32 %v660_v50, 0.0  ;;  %v598_v5 = vpop.f32.mrf.mxu0  ;;  %v662_v7 = vpop.f32.mrf.mxu1  ;;  %v820_v14 = vld [vmem:[#allocation2 + $0xa8] sm:$0xff] }
 0x140   : > { %916 = vst.msk [vmem:[#allocation3 + $0x40] sm:$0x3] %vm701_vm4, %v892_v59  ;;  %928 = vst.msk [vmem:[#allocation3 + $0xa0] sm:$0x3] %vm701_vm4, %v904_v0  ;;  %v599_v8 = vadd.f32 %v1590_v48, %v598_v5  ;;  %v663_v9 = vadd.f32 %v1590_v48, %v662_v7  ;;  %v832_v15 = vld [vmem:[#allocation2 + $0x168] sm:$0xff]  ;;  %v844_v25 = vmax.f32 %v1691_v26, %v820_v14 }
 0x141   : > { %927 = vst.msk [vmem:[#allocation3 + $0x98] sm:$0xff] %vm698_vm0, %v903_v63  ;;  %769 = vst.msk [vmem:[#allocation2 + $0xc1] sm:$0xff] %vm698_vm0, %v680_v3  ;;  %v600_v10 = vpop.f32.mrf.mxu0  ;;  %v664_v11 = vpop.f32.mrf.mxu1  ;;  %v856_v48 = vmax.f32 %v1693_v27, %v832_v15  ;;  %v874_v59 = vld [vmem:[#allocation2 + $0x100] sm:$0x3] }
 0x142   : > { %785 = vst.msk [vmem:[#allocation2 + $0x181] sm:$0xff] %vm698_vm0, %v696_v4  ;;  %v681_v12 = vmax.f32 %v599_v8, 0.0  ;;  %v697_v13 = vmax.f32 %v663_v9, 0.0 }
 0x143   : > { %v821_v21 = vld [vmem:[#allocation2 + $0xb0] sm:$0xff]  ;;  %v822_v28 = vld [vmem:[#allocation2 + $0xb8] sm:$0x3] }
 0x144   : > { %770 = vst.msk [vmem:[#allocation2 + $0xc9] sm:$0xff] %vm698_vm0, %v681_v12  ;;  %786 = vst.msk [vmem:[#allocation2 + $0x189] sm:$0xff] %vm698_vm0, %v697_v13  ;;  %v845_v27 = vmax.f32 %v1705_v54, %v821_v21  ;;  %v846_v46 = vmax.f32 %v798_v39, %v822_v28 }
 0x145   : > { %v936_v17 = vld [vmem:[#allocation3 + $0x30] ss:$2 sm:$0xff]  ;;  %v952_v18 = vld [vmem:[#allocation3 + $0x31] ss:$2 sm:$0xff]  ;;  %v833_v36 = vld [vmem:[#allocation2 + $0x170] sm:$0xff] }
 0x146   : > { %v965_v22 = vmax.f32 %v936_v17, %v952_v18  ;;  %v834_v37 = vld [vmem:[#allocation2 + $0x178] sm:$0x3]  ;;  %v857_v44 = vmax.f32 %v1710_v60, %v833_v36 }
 0x147   : > { %v976_v29 = vld [vmem:[#allocation3 + $0x32] ss:$2 sm:$0xff]  ;;  %v858_v51 = vmax.f32 %v810_v45, %v834_v37 }
 0x148   : > { %v944_v23 = vld [vmem:[#allocation3 + $0x90] ss:$2 sm:$0xff]  ;;  %v960_v24 = vld [vmem:[#allocation3 + $0x91] ss:$2 sm:$0xff]  ;;  %v989_v33 = vmax.f32 %v965_v22, %v976_v29 }
 0x149   : > { %v969_v30 = vmax.f32 %v944_v23, %v960_v24  ;;  %v799_v31 = vld [vmem:[#allocation2 + $0xc0] sm:$0xff] }
 0x14a   : > { %v881_v32 = vld [vmem:[#allocation2 + $0x180] sm:$0xff]  ;;  %v847_v19 = vmax.f32 %v799_v31, %v823_v16  ;;  %v893_v20 = vmax.f32 %v844_v25, %v799_v31  ;;  %v1188_v26 = vpack.c.bf16 %v989_v33, %v989_v33 }
 0x14b   : > { %v984_v34 = vld [vmem:[#allocation3 + $0x92] ss:$2 sm:$0xff]  ;;  %v905_v38 = vmax.f32 %v856_v48, %v881_v32 }
 0x14c   : > { %v993_v40 = vmax.f32 %v969_v30, %v984_v34  ;;  %v896_v47 = vmax.f32 %v847_v19, %v1638_v6  ;;  %917 = vst.msk [vmem:[#allocation3 + $0x48] sm:$0xff] %vm698_vm0, %v893_v20  ;;  %v800_v52 = vld [vmem:[#allocation2 + $0xc8] sm:$0xff]  ;;  %v801_v53 = vld [vmem:[#allocation2 + $0xd0] sm:$0x3] }
 0x14d   : > { %929 = vst.msk [vmem:[#allocation3 + $0xa8] sm:$0xff] %vm698_vm0, %v905_v38  ;;  %v871_v55 = vld [vmem:[#allocation2 + $0xd0] sm:$0x3]  ;;  %v848_v54 = vmax.f32 %v800_v52, %v824_v41  ;;  %v849_v56 = vmax.f32 %v801_v53, %v825_v43  ;;  %v894_v57 = vmax.f32 %v845_v27, %v800_v52  ;;  %v882_v58 = vld [vmem:[#allocation2 + $0x188] sm:$0xff] }
 0x14e   : > { %v1192_v49 = vpack.c.bf16 %v993_v40, %v993_v40  ;;  %1030 = vst.msk [vmem:[%s1655_s23 + $0x8] sm:$0xf] %vm1027_vm5, %v1188_v26  ;;  %v895_v6 = vmax.f32 %v846_v46, %v871_v55  ;;  %v883_v42 = vld [vmem:[#allocation2 + $0x190] sm:$0x3]  ;;  %v906_v61 = vmax.f32 %v857_v44, %v882_v58 }
 0x14f   : > { %920 = vst.msk [vmem:[#allocation3 + $0x60] sm:$0xff] %vm698_vm0, %v896_v47  ;;  %v907_v62 = vmax.f32 %v858_v51, %v883_v42  ;;  %v897_v60 = vmax.f32 %v848_v54, %v1659_v35  ;;  %v898_v50 = vmax.f32 %v849_v56, %v874_v59  ;;  %918 = vst.msk [vmem:[#allocation3 + $0x50] sm:$0xff] %vm698_vm0, %v894_v57 }
 0x150   : > { %1034 = vst.msk [vmem:[%s1655_s23 + $0x18] sm:$0xf] %vm1027_vm5, %v1192_v49 }
 0x151   : > { %919 = vst.msk [vmem:[#allocation3 + $0x58] sm:$0x3] %vm701_vm4, %v895_v6  ;;  %931 = vst.msk [vmem:[#allocation3 + $0xb8] sm:$0x3] %vm701_vm4, %v907_v62 }
 0x152   : > { %930 = vst.msk [vmem:[#allocation3 + $0xb0] sm:$0xff] %vm698_vm0, %v906_v61  ;;  %921 = vst.msk [vmem:[#allocation3 + $0x68] sm:$0xff] %vm698_vm0, %v897_v60 }
 0x153   : > { %922 = vst.msk [vmem:[#allocation3 + $0x70] sm:$0x3] %vm701_vm4, %v898_v50 }
 0x156   : > { %v938_v63 = vld [vmem:[#allocation3 + $0x48] ss:$2 sm:$0xff]  ;;  %v954_v0 = vld [vmem:[#allocation3 + $0x49] ss:$2 sm:$0xff] }
 0x157   : > { %v966_v1 = vmax.f32 %v938_v63, %v954_v0 }
 0x158   : > { %v978_v5 = vld [vmem:[#allocation3 + $0x4a] ss:$2 sm:$0xff] }
 0x159   : > { %v946_v2 = vld [vmem:[#allocation3 + $0xa8] ss:$2 sm:$0xff]  ;;  %v962_v35 = vld [vmem:[#allocation3 + $0xa9] ss:$2 sm:$0xff]  ;;  %v990_v9 = vmax.f32 %v966_v1, %v978_v5 }
 0x15a   : > { %v940_v3 = vld [vmem:[#allocation3 + $0x60] ss:$2 sm:$0xff]  ;;  %v956_v4 = vld [vmem:[#allocation3 + $0x61] ss:$2 sm:$0xff]  ;;  %v970_v7 = vmax.f32 %v946_v2, %v962_v35 }
 0x15b   : > { %v967_v8 = vmax.f32 %v940_v3, %v956_v4  ;;  %v986_v10 = vld [vmem:[#allocation3 + $0xaa] ss:$2 sm:$0xff]  ;;  %v1189_v14 = vpack.c.bf16 %v990_v9, %v990_v9 }
 0x15c   : > { %v980_v11 = vld [vmem:[#allocation3 + $0x62] ss:$2 sm:$0xff]  ;;  %v994_v12 = vmax.f32 %v970_v7, %v986_v10 }
 0x15d   : > { %v991_v13 = vmax.f32 %v967_v8, %v980_v11  ;;  %1031 = vst.msk [vmem:[%s1655_s23 + $0xc] sm:$0xf] %vm1027_vm5, %v1189_v14 }
 0x15e   : > { %v1193_v15 = vpack.c.bf16 %v994_v12, %v994_v12 }
 0x15f   : > { %v1190_v16 = vpack.c.bf16 %v991_v13, %v991_v13 }
 0x160   : > { %1035 = vst.msk [vmem:[%s1655_s23 + $0x1c] sm:$0xf] %vm1027_vm5, %v1193_v15 }
 0x161   : > { %1032 = vst.msk [vmem:[%s1655_s23 + $0x10] sm:$0xf] %vm1027_vm5, %v1190_v16 }
 0x162 PF: > { %s14_s12 = sadd.s32 1, %s1330_s12  }
 0x163   : > { %p11_p2 = scmp.ge.s32.totalorder %s14_s12, 4  }
 0x165   :  { %13 = sbr.rel (!%p11_p2) target bundleno = 1 (0x1), region = 92 }
 0x16a   :  { %1057 = vsyncpa [#allocation5], 1 }
 0x16b   :  { %1059 = vsyncpa [#allocation5 + $0x1], 1 }

// kernel: chest_xray_forward.10
= control target key start
LH: loop header
LB: loop body
LE: loop exit
PB: predicated region body
PF: predicated region fallthrough
CT: control target
= control target key end

     0   :  { %s2642_s24 = smov 0   ;;  %s3318_s0 = inlined_call_operand.vmem [shape: bf16[2,64,16], index: 0, kind: input, shape index: {}]   ;;  %s3319_s1 = inlined_call_operand.vmem [shape: f32[2,1,32], index: 1, kind: input, shape index: {}]   ;;  %s3320_s2 = inlined_call_operand.vmem [shape: f32[2,1,32], index: 2, kind: input, shape index: {}]   ;;  %s3321_s3 = inlined_call_operand.vmem [shape: bf16[2,32,32], index: 3, kind: input, shape index: {}]   ;;  %s3322_s4 = inlined_call_operand.vmem [shape: f32[2,1,32], index: 4, kind: input, shape index: {}]   ;;  %s3323_s5 = inlined_call_operand.vmem [shape: f32[2,1,32], index: 5, kind: input, shape index: {}]   ;;  %s3324_s6 = inlined_call_operand.vmem [shape: bf16[2,288,8], index: 6, kind: input, shape index: {}]   ;;  %s3325_s7 = inlined_call_operand.vmem [shape: bf16[2,64,32], index: 7, kind: output, shape index: {}]  }
   0x1 LB: > { %s2226_s25 = sadd.s32 4294967295, %s2594_s24   ;;  %p2230_p0 = scmp.ge.s32.totalorder %s2594_s24, 1  ;;  %s2594_s24 = sphi %s2642_s24, %s17_s24  }
   0x2   : > { %p237_p1 = scmp.lt.s32.totalorder %s2594_s24, 3 }
   0x4   : > { %p238_p2 = pnand %p2230_p0, %p237_p1 }
   0x5   : > { %p269_p3 = scmp.lt.s32.totalorder (!%p238_p2), %s2226_s25, 1  ;;  %s2597_s15 = smov (!%p238_p2), 32  }
   0x6   : > { %241 = sbr.rel (%p238_p2) target bundleno = 1515 (0x5eb), region = 48  ;;  %s2598_s16 = smov (!%p238_p2), 64  }
   0x7   : > { %s2599_s27 = smov (!%p238_p2), 96   ;;  %s2600_s23 = smov (!%p238_p2), 16  }
   0xb   : > { %v2548_v0 = vld [vmem:[%s3321_s3 + $0x8] sm:$0xff]   ;;  %v2549_v1 = vld [vmem:[%s3321_s3] sm:$0xff]   ;;  %vm280_vm0 = vcmask 261120   ;;  %s3327_s25 = smov (!%p269_p3, %s2226_s25), 1  ;;  %vm290_vm1 = vcmask 254976   ;;  %v2596_v2 = vmov 0.0  }
   0xc   : > { %2486 = vmatprep.subr.bf16.mxu0 %v2548_v0  ;;  %281 = vst.msk [vmem:[#allocation2] sm:$0xff] %vm280_vm0, %v2596_v2  ;;  %282 = vst.msk [vmem:[#allocation2 + $0x8] sm:$0xff] %vm280_vm0, %v2596_v2  ;;  %s2353_s30 = sshll.u32 %s3327_s25, 5  ;;  %vm326_vm2 = vcmask 130048   ;;  %v2235_v15 = vld [vmem:[%s3319_s1] ss:$0 sm:$0xff] }
   0xd   : > { %2487 = vmatpush3.bf16.msra.mxu0 %v2548_v0  ;;  %283 = vst.msk [vmem:[#allocation2 + $0x10] sm:$0xff] %vm280_vm0, %v2596_v2  ;;  %284 = vst.msk [vmem:[#allocation2 + $0x18] sm:$0xff] %vm280_vm0, %v2596_v2  ;;  %s273_s10 = scalar_lea.vmem %s3318_s0, %s2353_s30  ;;  %v2236_v16 = vld [vmem:[%s3320_s2] ss:$0 sm:$0xff]  ;;  %v2550_v56 = vld [vmem:[%s3324_s6 + $0x88] sm:$0xff]   ;;  %vm581_vm3 = vcmask 523520   ;;  %s3291_s21 = scalar_lea.vmem %s3325_s7, %s2353_s30 }
   0xe   : > { %285 = vst.msk [vmem:[#allocation2 + $0x20] sm:$0xff] %vm280_vm0, %v2596_v2  ;;  %286 = vst.msk [vmem:[#allocation2 + $0x28] sm:$0xff] %vm280_vm0, %v2596_v2  ;;  %2488 = vmatprep.subr.bf16.mxu0 %v2549_v1  ;;  %v2364_v3 = vld [vmem:[%s273_s10] sm:$0xff]   ;;  %v2379_v4 = vld [vmem:[%s273_s10 + $0x8] sm:$0xff]   ;;  %vm630_vm4 = vcmask 785920   ;;  %vm679_vm5 = vcmask 1048320  }
   0xf   : > { %287 = vst.msk [vmem:[#allocation2 + $0x30] sm:$0xff] %vm280_vm0, %v2596_v2  ;;  %288 = vst.msk [vmem:[#allocation2 + $0x38] sm:$0xff] %vm280_vm0, %v2596_v2  ;;  %v2380_v5 = vld [vmem:[%s273_s10 + $0x10] sm:$0xff]   ;;  %v2365_v6 = vunpack.c.l.bf16 %v2364_v3  ;;  %v2366_v7 = vunpack.c.h.bf16 %v2364_v3  ;;  %v2369_v8 = vunpack.c.l.bf16 %v2379_v4  ;;  %v2370_v9 = vunpack.c.h.bf16 %v2379_v4  ;;  %v2381_v10 = vld [vmem:[%s273_s10 + $0x18] sm:$0xff]  }
  0x10   : > { %289 = vst.msk [vmem:[#allocation3] sm:$0xff] %vm280_vm0, %v2596_v2  ;;  %292 = vst.msk [vmem:[#allocation3 + $0x10] sm:$0xff] %vm280_vm0, %v2596_v2  ;;  %v2373_v11 = vunpack.c.l.bf16 %v2380_v5  ;;  %v2374_v12 = vunpack.c.h.bf16 %v2380_v5  ;;  %v2377_v13 = vunpack.c.l.bf16 %v2381_v10  ;;  %v2378_v14 = vunpack.c.h.bf16 %v2381_v10  ;;  %v2551_v57 = vld [vmem:[%s3324_s6 + $0x80] sm:$0xff]  }
  0x11   : > { %294 = vst.msk [vmem:[#allocation3 + $0x20] sm:$0xff] %vm280_vm0, %v2596_v2  ;;  %296 = vst.msk [vmem:[#allocation3 + $0x30] sm:$0xff] %vm280_vm0, %v2596_v2  ;;  %2489 = vmatpush3.bf16.msra.mxu0 %v2549_v1  ;;  %v2243_v63 = vld [vmem:[%s3322_s4] ss:$0 sm:$0xff]  ;;  %vm1219_vm6 = vcmask 195712   ;;  %vm2113_vm7 = vcmask 261312  }
  0x12   : > { %298 = vst.msk [vmem:[#allocation3 + $0x40] sm:$0xff] %vm280_vm0, %v2596_v2  ;;  %300 = vst.msk [vmem:[#allocation3 + $0x50] sm:$0xff] %vm280_vm0, %v2596_v2  ;;  %2498 = vmatprep.subr.bf16.mxu0 %v2550_v56  ;;  %v2244_v1 = vld [vmem:[%s3323_s5] ss:$0 sm:$0xff]  ;;  %vm2162_vm8 = vcmask 257024  }
  0x13   : > { %302 = vst.msk [vmem:[#allocation3 + $0x60] sm:$0xff] %vm280_vm0, %v2596_v2  ;;  %304 = vst.msk [vmem:[#allocation3 + $0x70] sm:$0xff] %vm280_vm0, %v2596_v2 }
  0x14   : > { %306 = vst.msk [vmem:[#allocation3 + $0x80] sm:$0xff] %vm280_vm0, %v2596_v2  ;;  %308 = vst.msk [vmem:[#allocation3 + $0x90] sm:$0xff] %vm280_vm0, %v2596_v2 }
  0x15   : > { %297 = vst.msk [vmem:[#allocation3 + $0x38] sm:$0x3] %vm290_vm1, %v2596_v2  ;;  %291 = vst.msk [vmem:[#allocation3 + $0x8] sm:$0x3] %vm290_vm1, %v2596_v2 }
  0x16   : > { %293 = vst.msk [vmem:[#allocation3 + $0x18] sm:$0x3] %vm290_vm1, %v2596_v2  ;;  %295 = vst.msk [vmem:[#allocation3 + $0x28] sm:$0x3] %vm290_vm1, %v2596_v2 }
  0x17   : > { %299 = vst.msk [vmem:[#allocation3 + $0x48] sm:$0x3] %vm290_vm1, %v2596_v2  ;;  %301 = vst.msk [vmem:[#allocation3 + $0x58] sm:$0x3] %vm290_vm1, %v2596_v2  ;;  %v525_v60 = vld [vmem:[#allocation3] sm:$0xff] }
  0x18   : > { %303 = vst.msk [vmem:[#allocation3 + $0x68] sm:$0x3] %vm290_vm1, %v2596_v2  ;;  %305 = vst.msk [vmem:[#allocation3 + $0x78] sm:$0x3] %vm290_vm1, %v2596_v2 }
  0x19   : > { %307 = vst.msk [vmem:[#allocation3 + $0x88] sm:$0x3] %vm290_vm1, %v2596_v2  ;;  %309 = vst.msk [vmem:[#allocation3 + $0x98] sm:$0x3] %vm290_vm1, %v2596_v2 }
  0x1a   : > { %327 = vst.msk [vmem:[#allocation2] sm:$0xff] %vm326_vm2, %v2365_v6  ;;  %328 = vst.msk [vmem:[#allocation2 + $0x8] sm:$0xff] %vm326_vm2, %v2366_v7 }
  0x1b   : > { %329 = vst.msk [vmem:[#allocation2 + $0x10] sm:$0xff] %vm326_vm2, %v2369_v8  ;;  %330 = vst.msk [vmem:[#allocation2 + $0x18] sm:$0xff] %vm326_vm2, %v2370_v9  ;;  %v2711_v55 = vld [vmem:[#allocation3 + $0x90] sm:$0xff] }
  0x1c   : > { %331 = vst.msk [vmem:[#allocation2 + $0x20] sm:$0xff] %vm326_vm2, %v2373_v11  ;;  %332 = vst.msk [vmem:[#allocation2 + $0x28] sm:$0xff] %vm326_vm2, %v2374_v12  ;;  %v541_v53 = vld [vmem:[#allocation3 + $0x1] sm:$0xff] }
  0x1d   : > { %333 = vst.msk [vmem:[#allocation2 + $0x30] sm:$0xff] %vm326_vm2, %v2377_v13  ;;  %334 = vst.msk [vmem:[#allocation2 + $0x38] sm:$0xff] %vm326_vm2, %v2378_v14  ;;  %557 = vrot.lane.b32.xlu1 %v541_v53, %s2597_s15  ;;  %v590_v54 = vld [vmem:[#allocation3 + $0x2] sm:$0xff] }
  0x1e   : > { %606 = vrot.lane.b32.xlu0 %v590_v54, %s2598_s16  ;;  %533 = vst.msk [vmem:[#allocation4] sm:$0xff] %vm280_vm0, %v525_v60  ;;  %v2555_v54 = vld [vmem:[%s3324_s6 + $0x30] sm:$0xff]   ;;  %v2556_v60 = vld [vmem:[%s3324_s6 + $0x68] sm:$0xff]  }
  0x20   : > { %v856_v58 = vld [vmem:[#allocation3 + $0x92] sm:$0xff] }
  0x21   : > { %v335_v17 = vld [vmem:[#allocation2] sm:$0xff]  ;;  %v336_v18 = vld [vmem:[#allocation2 + $0x8] sm:$0xff]  ;;  %783 = vrot.lane.b32.xlu1 %v2711_v55, %s2598_s16  ;;  %864 = vst.msk [vmem:[#allocation4 + $0xb8] sm:$0xff] %vm280_vm0, %v856_v58 }
  0x22   : > { %v337_v19 = vld [vmem:[#allocation2 + $0x10] sm:$0xff]  ;;  %v350_v20 = vmul.f32 %v2235_v15, %v335_v17  ;;  %v351_v21 = vmul.f32 %v2235_v15, %v336_v18  ;;  %v338_v22 = vld [vmem:[#allocation2 + $0x18] sm:$0xff] }
  0x23   : > { %v352_v23 = vmul.f32 %v2235_v15, %v337_v19  ;;  %v339_v24 = vld [vmem:[#allocation2 + $0x20] sm:$0xff]  ;;  %v340_v25 = vld [vmem:[#allocation2 + $0x28] sm:$0xff]  ;;  %v353_v26 = vmul.f32 %v2235_v15, %v338_v22 }
  0x24   : > { %v354_v27 = vmul.f32 %v2235_v15, %v339_v24  ;;  %v355_v28 = vmul.f32 %v2235_v15, %v340_v25  ;;  %v341_v29 = vld [vmem:[#allocation2 + $0x30] sm:$0xff]  ;;  %v342_v30 = vld [vmem:[#allocation2 + $0x38] sm:$0xff]  ;;  %v365_v31 = vadd.f32 %v2236_v16, %v350_v20  ;;  %v366_v32 = vadd.f32 %v2236_v16, %v351_v21 }
  0x25   : > { %v367_v33 = vadd.f32 %v2236_v16, %v352_v23  ;;  %v356_v34 = vmul.f32 %v2235_v15, %v341_v29  ;;  %v368_v35 = vadd.f32 %v2236_v16, %v353_v26  ;;  %v357_v38 = vmul.f32 %v2235_v15, %v342_v30 }
  0x26   : > { %v369_v36 = vadd.f32 %v2236_v16, %v354_v27  ;;  %v370_v37 = vadd.f32 %v2236_v16, %v355_v28  ;;  %v373_v39 = vmax.f32 %v365_v31, 0.0  ;;  %v374_v40 = vmax.f32 %v366_v32, 0.0 }
  0x27   : > { %v375_v41 = vmax.f32 %v367_v33, 0.0  ;;  %v371_v42 = vadd.f32 %v2236_v16, %v356_v34  ;;  %v376_v43 = vmax.f32 %v368_v35, 0.0  ;;  %v372_v46 = vadd.f32 %v2236_v16, %v357_v38 }
  0x28   : > { %v377_v44 = vmax.f32 %v369_v36, 0.0  ;;  %v378_v45 = vmax.f32 %v370_v37, 0.0  ;;  %v381_v47 = vpack.c.bf16 %v374_v40, %v373_v39  ;;  %v2723_v59 = vld [vmem:[#allocation4 + $0xb8] sm:$0xff] }
  0x29   : > { %v382_v48 = vpack.c.bf16 %v376_v43, %v375_v41  ;;  %v379_v50 = vmax.f32 %v371_v42, 0.0  ;;  %v380_v51 = vmax.f32 %v372_v46, 0.0  ;;  %1757 = vst.msk [vmem:[#allocation4 + $0xb8] sm:$0xff] %vm280_vm0, %v856_v58  ;;  %v2552_v41 = vld [vmem:[%s3324_s6 + $0x78] sm:$0xff]  }
  0x2a   : > { %v383_v49 = vpack.c.bf16 %v378_v45, %v377_v44  ;;  %2490 = vmatprep.mubr.msk.bf16.mxu0 %vm280_vm0, %v381_v47  ;;  %2388 = vmatprep.subr.bf16.mxu1 %v2552_v41  ;;  %v2553_v45 = vld [vmem:[%s3324_s6 + $0x38] sm:$0xff]  }
  0x2b   : > { %2491 = vmatmul.mubr.msk.bf16.vlgmr.msra.gmra.mxu0 %vm280_vm0, %v382_v48  ;;  %v384_v52 = vpack.c.bf16 %v380_v51, %v379_v50  ;;  %v2554_v50 = vld [vmem:[%s3324_s6 + $0x70] sm:$0xff]   ;;  %2389 = vmatpush3.bf16.msra.mxu1 %v2553_v45 }
  0x2c   : > { %2494 = vmatprep.mubr.msk.bf16.mxu0 %vm280_vm0, %v383_v49  ;;  %2499 = vmatpush3.bf16.msra.mxu0 %v2550_v56 }
  0x2d   : > { %2500 = vmatprep.subr.bf16.mxu0 %v2551_v57  ;;  %2390 = vmatprep.subr.bf16.mxu1 %v2554_v50 }
  0x2f   : > { %2391 = vmatpush3.bf16.msra.mxu1 %v2555_v54 }
  0x30   : > { %2501 = vmatpush3.bf16.msra.mxu0 %v2551_v57  ;;  %2392 = vmatprep.subr.bf16.mxu1 %v2556_v60 }
  0x33   : > { %2495 = vmatmul.mubr.msk.bf16.gmra.mxu0 %vm280_vm0, %v384_v52 }
  0x8f   : > { %v558_v61 = vpop.permute.xlu1 %557 }
  0x90   : > { %582 = vst.msk [vmem:[#allocation4] sm:$0xff] %vm581_vm3, %v558_v61  ;;  %v607_v62 = vpop.permute.xlu0 %606 }
  0x91   : > { %631 = vst.msk [vmem:[#allocation4] sm:$0xff] %vm630_vm4, %v607_v62 }
  0xeb   : > { %v2492_v0 = vpop.f32.mrf.mxu0 }
  0xec   : > { %v487_v2 = vmul.f32 %v2492_v0, %v2243_v63 }
  0xed   : > { %v447_v3 = vpop.f32.mrf.mxu0 }
  0xee   : > { %v502_v4 = vadd.f32 %v2244_v1, %v487_v2  ;;  %v485_v5 = vmul.f32 %v2243_v63, %v447_v3  ;;  %v2557_v2 = vld [vmem:[%s3324_s6 + $0x28] sm:$0xff]   ;;  %v2558_v3 = vld [vmem:[%s3324_s6 + $0x60] sm:$0xff]  }
  0xef   : > { %v2493_v6 = vpop.f32.mrf.mxu0  ;;  %2393 = vmatpush3.bf16.msra.mxu1 %v2557_v2 }
  0xf0   : > { %v510_v7 = vmax.f32 %v502_v4, 0.0  ;;  %v500_v8 = vadd.f32 %v2244_v1, %v485_v5  ;;  %v488_v9 = vmul.f32 %v2493_v6, %v2243_v63  ;;  %2394 = vmatprep.subr.bf16.mxu1 %v2558_v3 }
  0xf1   : > { %v450_v10 = vpop.f32.mrf.mxu0 }
  0xf2   : > { %519 = vst.msk [vmem:[#allocation3 + $0x31] sm:$0xff] %vm280_vm0, %v510_v7  ;;  %v508_v11 = vmax.f32 %v500_v8, 0.0  ;;  %v503_v12 = vadd.f32 %v2244_v1, %v488_v9  ;;  %v486_v13 = vmul.f32 %v2243_v63, %v450_v10  ;;  %v2559_v7 = vld [vmem:[%s3324_s6 + $0x20] sm:$0xff]   ;;  %v2560_v10 = vld [vmem:[%s3324_s6 + $0x58] sm:$0xff]  }
  0xf3   : > { %v2496_v14 = vpop.f32.mrf.mxu0  ;;  %2395 = vmatpush3.bf16.msra.mxu1 %v2559_v7 }
  0xf4   : > { %517 = vst.msk [vmem:[#allocation3 + $0x11] sm:$0xff] %vm280_vm0, %v508_v11  ;;  %v511_v15 = vmax.f32 %v503_v12, 0.0  ;;  %v501_v16 = vadd.f32 %v2244_v1, %v486_v13  ;;  %v491_v17 = vmul.f32 %v2496_v14, %v2243_v63  ;;  %v2561_v13 = vld [vmem:[%s3324_s6 + $0x18] sm:$0xff]   ;;  %2396 = vmatprep.subr.bf16.mxu1 %v2560_v10  ;;  %v2562_v14 = vld [vmem:[%s3324_s6 + $0x50] sm:$0xff]  }
  0xf5   : > { %v463_v18 = vpop.f32.mrf.mxu0 }
  0xf6   : > { %520 = vst.msk [vmem:[#allocation3 + $0x41] sm:$0xff] %vm280_vm0, %v511_v15  ;;  %v509_v19 = vmax.f32 %v501_v16, 0.0  ;;  %v506_v20 = vadd.f32 %v2244_v1, %v491_v17  ;;  %v489_v21 = vmul.f32 %v2243_v63, %v463_v18  ;;  %v2563_v16 = vld [vmem:[%s3324_s6 + $0x10] sm:$0xff]   ;;  %v2564_v17 = vld [vmem:[%s3324_s6 + $0x48] sm:$0xff]   ;;  %v2566_v18 = vld [vmem:[%s3324_s6 + $0x40] sm:$0xff]  }
  0xf7   : > { %v2497_v22 = vpop.f32.mrf.mxu0  ;;  %2397 = vmatpush3.bf16.msra.mxu1 %v2561_v13 }
  0xf8   : > { %518 = vst.msk [vmem:[#allocation3 + $0x21] sm:$0xff] %vm280_vm0, %v509_v19  ;;  %v514_v23 = vmax.f32 %v506_v20, 0.0  ;;  %v504_v24 = vadd.f32 %v2244_v1, %v489_v21  ;;  %v492_v25 = vmul.f32 %v2497_v22, %v2243_v63  ;;  %2398 = vmatprep.subr.bf16.mxu1 %v2562_v14  ;;  %v2567_v19 = vld [vmem:[%s3324_s6] sm:$0xff]   ;;  %v808_v21 = vld [vmem:[#allocation3 + $0x91] sm:$0xff]  ;;  %v2950_v22 = vpop.permute.xlu1 %783 }
  0xf9   : > { %v754_v26 = vld [vmem:[#allocation3 + $0x30] sm:$0xff]  ;;  %v466_v29 = vpop.f32.mrf.mxu0 }
  0xfa   : > { %v706_v27 = vld [vmem:[#allocation3 + $0x32] sm:$0xff]  ;;  %523 = vst.msk [vmem:[#allocation3 + $0x71] sm:$0xff] %vm280_vm0, %v514_v23  ;;  %v512_v30 = vmax.f32 %v504_v24, 0.0  ;;  %771 = vrot.lane.b32.xlu1 %v754_v26, %s2598_s16  ;;  %v507_v31 = vadd.f32 %v2244_v1, %v492_v25  ;;  %v490_v32 = vmul.f32 %v2243_v63, %v466_v29  ;;  %536 = vst.msk [vmem:[#allocation4 + $0x48] sm:$0xff] %vm280_vm0, %v754_v26 }
  0xfb   : > { %v802_v28 = vld [vmem:[#allocation3 + $0x31] sm:$0xff]  ;;  %724 = vrot.lane.b32.xlu0 %v706_v27, %s2597_s15  ;;  %858 = vst.msk [vmem:[#allocation4 + $0x28] sm:$0xff] %vm280_vm0, %v706_v27  ;;  %2399 = vmatpush3.bf16.msra.mxu1 %v2563_v16 }
  0xfc   : > { %698 = vst.msk [vmem:[#allocation4 + $0x38] sm:$0xff] %vm280_vm0, %v802_v28  ;;  %v639_v33 = vld [vmem:[#allocation3 + $0x10] sm:$0xff]  ;;  %521 = vst.msk [vmem:[#allocation3 + $0x51] sm:$0xff] %vm280_vm0, %v512_v30  ;;  %v515_v35 = vmax.f32 %v507_v31, 0.0  ;;  %v505_v36 = vadd.f32 %v2244_v1, %v490_v32  ;;  %2400 = vmatprep.subr.bf16.mxu1 %v2564_v17 }
  0xfd   : > { %v2745_v34 = vld [vmem:[#allocation3 + $0x11] sm:$0xff]  ;;  %534 = vst.msk [vmem:[#allocation4 + $0x18] sm:$0xff] %vm280_vm0, %v639_v33  ;;  %v2751_v37 = vld [vmem:[#allocation3 + $0x42] sm:$0xff] }
  0xfe   : > { %696 = vst.msk [vmem:[#allocation4 + $0x8] sm:$0xff] %vm280_vm0, %v2745_v34  ;;  %v2753_v38 = vld [vmem:[#allocation3 + $0x40] sm:$0xff]  ;;  %859 = vst.msk [vmem:[#allocation4 + $0x40] sm:$0xff] %vm280_vm0, %v2751_v37  ;;  %819 = vrot.lane.b32.xlu1 %v802_v28, %s2599_s27  ;;  %v513_v40 = vmax.f32 %v505_v36, 0.0  ;;  %v704_v46 = vld [vmem:[#allocation3 + $0x12] sm:$0xff] }
  0xff   : > { %v2755_v39 = vld [vmem:[#allocation3 + $0x41] sm:$0xff]  ;;  %659 = vrot.lane.b32.xlu0 %v754_v26, %s2599_s27  ;;  %524 = vst.msk [vmem:[#allocation3 + $0x81] sm:$0xff] %vm280_vm0, %v515_v35  ;;  %537 = vst.msk [vmem:[#allocation4 + $0x60] sm:$0xff] %vm280_vm0, %v2753_v38 }
 0x100   : > { %699 = vst.msk [vmem:[#allocation4 + $0x50] sm:$0xff] %vm280_vm0, %v2755_v39  ;;  %v2769_v42 = vld [vmem:[#allocation3 + $0x22] sm:$0xff]  ;;  %522 = vst.msk [vmem:[#allocation3 + $0x61] sm:$0xff] %vm280_vm0, %v513_v40 }
 0x101   : > { %v2771_v43 = vld [vmem:[#allocation3 + $0x20] sm:$0xff]  ;;  %857 = vst.msk [vmem:[#allocation4 + $0x10] sm:$0xff] %vm280_vm0, %v2769_v42  ;;  %v2785_v47 = vld [vmem:[#allocation3 + $0x70] sm:$0xff] }
 0x102   : > { %v2773_v44 = vld [vmem:[#allocation3 + $0x21] sm:$0xff]  ;;  %535 = vst.msk [vmem:[#allocation4 + $0x30] sm:$0xff] %vm280_vm0, %v2771_v43  ;;  %v2787_v48 = vld [vmem:[#allocation3 + $0x72] sm:$0xff]  ;;  %563 = vrot.lane.b32.xlu1 %v802_v28, %s2597_s15  ;;  %540 = vst.msk [vmem:[#allocation4 + $0xa8] sm:$0xff] %vm280_vm0, %v2785_v47 }
 0x103   : > { %697 = vst.msk [vmem:[#allocation4 + $0x20] sm:$0xff] %vm280_vm0, %v2773_v44  ;;  %720 = vrot.lane.b32.xlu0 %v704_v46, %s2597_s15  ;;  %862 = vst.msk [vmem:[#allocation4 + $0x88] sm:$0xff] %vm280_vm0, %v2787_v48  ;;  %v2793_v49 = vld [vmem:[#allocation3 + $0x71] sm:$0xff]  ;;  %v870_v57 = vld [vmem:[#allocation4 + $0x28] sm:$0xff] }
 0x104   : > { %v2800_v51 = vld [vmem:[#allocation3 + $0x52] sm:$0xff]  ;;  %702 = vst.msk [vmem:[#allocation4 + $0x98] sm:$0xff] %vm280_vm0, %v2793_v49 }
 0x105   : > { %v2802_v52 = vld [vmem:[#allocation3 + $0x50] sm:$0xff]  ;;  %860 = vst.msk [vmem:[#allocation4 + $0x58] sm:$0xff] %vm280_vm0, %v2800_v51  ;;  %v873_v4 = vld [vmem:[#allocation4 + $0x40] sm:$0xff] }
 0x106   : > { %v2804_v53 = vld [vmem:[#allocation3 + $0x51] sm:$0xff]  ;;  %538 = vst.msk [vmem:[#allocation4 + $0x78] sm:$0xff] %vm280_vm0, %v2802_v52  ;;  %v2817_v56 = vld [vmem:[#allocation3 + $0x82] sm:$0xff]  ;;  %612 = vrot.lane.b32.xlu1 %v706_v27, %s2598_s16 }
 0x107   : > { %700 = vst.msk [vmem:[#allocation4 + $0x68] sm:$0xff] %vm280_vm0, %v2804_v53  ;;  %655 = vrot.lane.b32.xlu0 %v639_v33, %s2599_s27  ;;  %863 = vst.msk [vmem:[#allocation4 + $0xa0] sm:$0xff] %vm280_vm0, %v2817_v56  ;;  %v2823_v58 = vld [vmem:[#allocation3 + $0x81] sm:$0xff] }
 0x108   : > { %v867_v61 = vld [vmem:[#allocation4 + $0x10] sm:$0xff]  ;;  %v2828_v62 = vld [vmem:[#allocation3 + $0x62] sm:$0xff]  ;;  %703 = vst.msk [vmem:[#allocation4 + $0xb0] sm:$0xff] %vm280_vm0, %v2823_v58 }
 0x109   : > { %v2830_v63 = vld [vmem:[#allocation3 + $0x60] sm:$0xff]  ;;  %v891_v0 = vpack.c.bf16 %v870_v57, %v867_v61  ;;  %861 = vst.msk [vmem:[#allocation4 + $0x70] sm:$0xff] %vm280_vm0, %v2828_v62 }
 0x10a   : > { %v2836_v1 = vld [vmem:[#allocation3 + $0x61] sm:$0xff]  ;;  %539 = vst.msk [vmem:[#allocation4 + $0x90] sm:$0xff] %vm280_vm0, %v2830_v63  ;;  %559 = vrot.lane.b32.xlu1 %v2745_v34, %s2597_s15 }
 0x10b   : > { %701 = vst.msk [vmem:[#allocation4 + $0x80] sm:$0xff] %vm280_vm0, %v2836_v1  ;;  %773 = vrot.lane.b32.xlu0 %v2753_v38, %s2598_s16  ;;  %2502 = vmatprep.mubr.msk.bf16.mxu0 %vm280_vm0, %v891_v0  ;;  %v882_v8 = vld [vmem:[#allocation4 + $0x88] sm:$0xff]  ;;  %v759_v20 = vld [vmem:[#allocation3 + $0x80] sm:$0xff] }
 0x10c   : > { %v876_v5 = vld [vmem:[#allocation4 + $0x58] sm:$0xff] }
 0x10d   : > { %v894_v6 = vpack.c.bf16 %v876_v5, %v873_v4 }
 0x10e   : > { %608 = vrot.lane.b32.xlu1 %v704_v46, %s2598_s16  ;;  %v885_v12 = vld [vmem:[#allocation4 + $0xa0] sm:$0xff] }
 0x10f   : > { %821 = vrot.lane.b32.xlu0 %v2755_v39, %s2599_s27  ;;  %2503 = vmatmul.mubr.msk.bf16.vlgmr.msra.gmra.mxu0 %vm280_vm0, %v894_v6  ;;  %v900_v15 = vpack.c.bf16 %v2723_v59, %v885_v12  ;;  %v2565_v59 = vld [vmem:[%s3324_s6 + $0x8] sm:$0xff]  }
 0x110   : > { %v879_v9 = vld [vmem:[#allocation4 + $0x70] sm:$0xff]  ;;  %2401 = vmatpush3.bf16.msra.mxu1 %v2565_v59 }
 0x111   : > { %v897_v11 = vpack.c.bf16 %v882_v8, %v879_v9  ;;  %2402 = vmatprep.subr.bf16.mxu1 %v2566_v18 }
 0x112   : > { %726 = vrot.lane.b32.xlu1 %v2751_v37, %s2597_s15 }
 0x113   : > { %565 = vrot.lane.b32.xlu0 %v2755_v39, %s2597_s15  ;;  %2506 = vmatprep.mubr.msk.bf16.mxu0 %vm280_vm0, %v897_v11 }
 0x114   : > { %2403 = vmatpush3.bf16.msra.mxu1 %v2567_v19 }
 0x116   : > { %661 = vrot.lane.b32.xlu1 %v2753_v38, %s2599_s27 }
 0x117   : > { %614 = vrot.lane.b32.xlu0 %v2751_v37, %s2598_s16  ;;  %2507 = vmatmul.mubr.msk.bf16.gmra.mxu0 %vm280_vm0, %v900_v15 }
 0x11a   : > { %657 = vrot.lane.b32.xlu1 %v2771_v43, %s2599_s27 }
 0x11b   : > { %722 = vrot.lane.b32.xlu0 %v2769_v42, %s2597_s15 }
 0x11e   : > { %779 = vrot.lane.b32.xlu1 %v2785_v47, %s2598_s16 }
 0x11f   : > { %769 = vrot.lane.b32.xlu0 %v2771_v43, %s2598_s16 }
 0x122   : > { %827 = vrot.lane.b32.xlu1 %v2793_v49, %s2599_s27 }
 0x123   : > { %817 = vrot.lane.b32.xlu0 %v2773_v44, %s2599_s27 }
 0x126   : > { %571 = vrot.lane.b32.xlu1 %v2793_v49, %s2597_s15 }
 0x127   : > { %561 = vrot.lane.b32.xlu0 %v2773_v44, %s2597_s15 }
 0x12a   : > { %620 = vrot.lane.b32.xlu1 %v2787_v48, %s2598_s16 }
 0x12b   : > { %610 = vrot.lane.b32.xlu0 %v2769_v42, %s2598_s16 }
 0x12e   : > { %775 = vrot.lane.b32.xlu1 %v2802_v52, %s2598_s16 }
 0x12f   : > { %732 = vrot.lane.b32.xlu0 %v2787_v48, %s2597_s15 }
 0x132   : > { %823 = vrot.lane.b32.xlu1 %v2804_v53, %s2599_s27 }
 0x133   : > { %728 = vrot.lane.b32.xlu0 %v2800_v51, %s2597_s15 }
 0x136   : > { %567 = vrot.lane.b32.xlu1 %v2804_v53, %s2597_s15 }
 0x137   : > { %663 = vrot.lane.b32.xlu0 %v2802_v52, %s2599_s27 }
 0x13a   : > { %616 = vrot.lane.b32.xlu1 %v2800_v51, %s2598_s16 }
 0x13b   : > { %781 = vrot.lane.b32.xlu0 %v759_v20, %s2598_s16 }
 0x13e   : > { %734 = vrot.lane.b32.xlu1 %v2817_v56, %s2597_s15 }
 0x13f   : > { %829 = vrot.lane.b32.xlu0 %v2823_v58, %s2599_s27 }
 0x142   : > { %730 = vrot.lane.b32.xlu1 %v2828_v62, %s2597_s15 }
 0x143   : > { %777 = vrot.lane.b32.xlu0 %v2830_v63, %s2598_s16 }
 0x146   : > { %665 = vrot.lane.b32.xlu1 %v2830_v63, %s2599_s27 }
 0x147   : > { %825 = vrot.lane.b32.xlu0 %v2836_v1, %s2599_s27 }
 0x14a   : > { %831 = vrot.lane.b32.xlu1 %v808_v21, %s2599_s27 }
 0x14b   : > { %569 = vrot.lane.b32.xlu0 %v2836_v1, %s2597_s15 }
 0x14e   : > { %669 = vrot.lane.b32.xlu1 %v759_v20, %s2599_s27 }
 0x14f   : > { %618 = vrot.lane.b32.xlu0 %v2828_v62, %s2598_s16 }
 0x153   : > { %667 = vrot.lane.b32.xlu0 %v2785_v47, %s2599_s27 }
 0x16c   : > { %v772_v23 = vpop.permute.xlu1 %771 }
 0x16d   : > { %v725_v24 = vpop.permute.xlu0 %724 }
 0x16e   : > { %746 = vst.msk [vmem:[#allocation4 + $0x38] sm:$0xff] %vm581_vm3, %v725_v24 }
 0x170   : > { %v820_v25 = vpop.permute.xlu1 %819 }
 0x171   : > { %v660_v26 = vpop.permute.xlu0 %659 }
 0x174   : > { %v564_v27 = vpop.permute.xlu1 %563 }
 0x175   : > { %v721_v28 = vpop.permute.xlu0 %720  ;;  %585 = vst.msk [vmem:[#allocation4 + $0x48] sm:$0xff] %vm581_vm3, %v564_v27 }
 0x176   : > { %744 = vst.msk [vmem:[#allocation4 + $0x8] sm:$0xff] %vm581_vm3, %v721_v28 }
 0x178   : > { %v613_v29 = vpop.permute.xlu1 %612 }
 0x179   : > { %v656_v30 = vpop.permute.xlu0 %655  ;;  %634 = vst.msk [vmem:[#allocation4 + $0x48] sm:$0xff] %vm630_vm4, %v613_v29 }
 0x17a   : > { %680 = vst.msk [vmem:[#allocation4] sm:$0xff] %vm679_vm5, %v656_v30 }
 0x17c   : > { %v560_v31 = vpop.permute.xlu1 %559 }
 0x17d   : > { %v774_v32 = vpop.permute.xlu0 %773  ;;  %583 = vst.msk [vmem:[#allocation4 + $0x18] sm:$0xff] %vm581_vm3, %v560_v31 }
 0x17e   : > { %795 = vst.msk [vmem:[#allocation4 + $0x38] sm:$0xff] %vm630_vm4, %v774_v32 }
 0x180   : > { %v609_v33 = vpop.permute.xlu1 %608 }
 0x181   : > { %v822_v34 = vpop.permute.xlu0 %821  ;;  %632 = vst.msk [vmem:[#allocation4 + $0x18] sm:$0xff] %vm630_vm4, %v609_v33  ;;  %v865_v53 = vld [vmem:[#allocation4] sm:$0xff] }
 0x182   : > { %843 = vst.msk [vmem:[#allocation4 + $0x38] sm:$0xff] %vm679_vm5, %v822_v34 }
 0x184   : > { %v727_v35 = vpop.permute.xlu1 %726 }
 0x185   : > { %v566_v36 = vpop.permute.xlu0 %565  ;;  %747 = vst.msk [vmem:[#allocation4 + $0x50] sm:$0xff] %vm581_vm3, %v727_v35 }
 0x186   : > { %586 = vst.msk [vmem:[#allocation4 + $0x60] sm:$0xff] %vm581_vm3, %v566_v36 }
 0x188   : > { %v662_v37 = vpop.permute.xlu1 %661 }
 0x189   : > { %v615_v38 = vpop.permute.xlu0 %614  ;;  %683 = vst.msk [vmem:[#allocation4 + $0x48] sm:$0xff] %vm679_vm5, %v662_v37  ;;  %v872_v2 = vld [vmem:[#allocation4 + $0x38] sm:$0xff] }
 0x18a   : > { %635 = vst.msk [vmem:[#allocation4 + $0x60] sm:$0xff] %vm630_vm4, %v615_v38 }
 0x18c   : > { %v658_v40 = vpop.permute.xlu1 %657 }
 0x18d   : > { %v723_v39 = vpop.permute.xlu0 %722  ;;  %681 = vst.msk [vmem:[#allocation4 + $0x18] sm:$0xff] %vm679_vm5, %v658_v40 }
 0x18e   : > { %745 = vst.msk [vmem:[#allocation4 + $0x20] sm:$0xff] %vm581_vm3, %v723_v39 }
 0x18f   : > { %794 = vst.msk [vmem:[#allocation4 + $0x20] sm:$0xff] %vm630_vm4, %v772_v23 }
 0x190   : > { %842 = vst.msk [vmem:[#allocation4 + $0x20] sm:$0xff] %vm679_vm5, %v820_v25  ;;  %v780_v42 = vpop.permute.xlu1 %779  ;;  %v874_v5 = vld [vmem:[#allocation4 + $0x48] sm:$0xff] }
 0x191   : > { %v770_v41 = vpop.permute.xlu0 %769 }
 0x192   : > { %793 = vst.msk [vmem:[#allocation4 + $0x8] sm:$0xff] %vm630_vm4, %v770_v41  ;;  %v2568_v41 = vld [vmem:[%s3321_s3 + $0x18] sm:$0xff]  }
 0x193   : > { %2510 = vmatprep.subr.bf16.mxu0 %v2568_v41 }
 0x194   : > { %v828_v44 = vpop.permute.xlu1 %827  ;;  %v868_v47 = vld [vmem:[#allocation4 + $0x18] sm:$0xff]  ;;  %2511 = vmatpush3.bf16.msra.mxu0 %v2568_v41 }
 0x195   : > { %v818_v43 = vpop.permute.xlu0 %817  ;;  %v889_v54 = vpack.c.bf16 %v868_v47, %v865_v53 }
 0x196   : > { %841 = vst.msk [vmem:[#allocation4 + $0x8] sm:$0xff] %vm679_vm5, %v818_v43 }
 0x197   : > { %v869_v51 = vld [vmem:[#allocation4 + $0x20] sm:$0xff] }
 0x198   : > { %v572_v46 = vpop.permute.xlu1 %571 }
 0x199   : > { %v562_v45 = vpop.permute.xlu0 %561  ;;  %589 = vst.msk [vmem:[#allocation4 + $0xa8] sm:$0xff] %vm581_vm3, %v572_v46 }
 0x19a   : > { %584 = vst.msk [vmem:[#allocation4 + $0x30] sm:$0xff] %vm581_vm3, %v562_v45 }
 0x19c   : > { %v621_v49 = vpop.permute.xlu1 %620 }
 0x19d   : > { %v611_v48 = vpop.permute.xlu0 %610  ;;  %v866_v50 = vld [vmem:[#allocation4 + $0x8] sm:$0xff]  ;;  %638 = vst.msk [vmem:[#allocation4 + $0xa8] sm:$0xff] %vm630_vm4, %v621_v49 }
 0x19e   : > { %633 = vst.msk [vmem:[#allocation4 + $0x30] sm:$0xff] %vm630_vm4, %v611_v48  ;;  %v890_v52 = vpack.c.bf16 %v869_v51, %v866_v50 }
 0x19f   : > { %682 = vst.msk [vmem:[#allocation4 + $0x30] sm:$0xff] %vm679_vm5, %v660_v26 }
 0x1a0   : > { %1089 = vmatprep.mubr.bf16.mxu1 %v890_v52  ;;  %v776_v57 = vpop.permute.xlu1 %775 }
 0x1a1   : > { %1090 = vmatmul.mubr.bf16.vlgmr.msra.gmra.mxu1 %v889_v54  ;;  %v733_v56 = vpop.permute.xlu0 %732  ;;  %796 = vst.msk [vmem:[#allocation4 + $0x50] sm:$0xff] %vm630_vm4, %v776_v57 }
 0x1a2   : > { %750 = vst.msk [vmem:[#allocation4 + $0x98] sm:$0xff] %vm581_vm3, %v733_v56 }
 0x1a4   : > { %v824_v58 = vpop.permute.xlu1 %823 }
 0x1a5   : > { %v729_v60 = vpop.permute.xlu0 %728  ;;  %844 = vst.msk [vmem:[#allocation4 + $0x50] sm:$0xff] %vm679_vm5, %v824_v58 }
 0x1a6   : > { %748 = vst.msk [vmem:[#allocation4 + $0x68] sm:$0xff] %vm581_vm3, %v729_v60  ;;  %v871_v63 = vld [vmem:[#allocation4 + $0x30] sm:$0xff] }
 0x1a7   : > { %v892_v6 = vpack.c.bf16 %v874_v5, %v871_v63 }
 0x1a8   : > { %v568_v62 = vpop.permute.xlu1 %567 }
 0x1a9   : > { %v664_v61 = vpop.permute.xlu0 %663  ;;  %587 = vst.msk [vmem:[#allocation4 + $0x78] sm:$0xff] %vm581_vm3, %v568_v62 }
 0x1aa   : > { %684 = vst.msk [vmem:[#allocation4 + $0x60] sm:$0xff] %vm679_vm5, %v664_v61 }
 0x1ac   : > { %v617_v0 = vpop.permute.xlu1 %616  ;;  %v875_v3 = vld [vmem:[#allocation4 + $0x50] sm:$0xff] }
 0x1ad   : > { %v782_v1 = vpop.permute.xlu0 %781  ;;  %636 = vst.msk [vmem:[#allocation4 + $0x78] sm:$0xff] %vm630_vm4, %v617_v0  ;;  %v893_v4 = vpack.c.bf16 %v875_v3, %v872_v2 }
 0x1ae   : > { %799 = vst.msk [vmem:[#allocation4 + $0x98] sm:$0xff] %vm630_vm4, %v782_v1 }
 0x1af   : > { %1097 = vmatprep.mubr.bf16.mxu1 %v893_v4 }
 0x1b0   : > { %1098 = vmatmul.mubr.bf16.gmra.mxu1 %v892_v6  ;;  %v735_v8 = vpop.permute.xlu1 %734 }
 0x1b1   : > { %v830_v7 = vpop.permute.xlu0 %829  ;;  %751 = vst.msk [vmem:[#allocation4 + $0xb0] sm:$0xff] %vm581_vm3, %v735_v8  ;;  %v877_v15 = vld [vmem:[#allocation4 + $0x60] sm:$0xff] }
 0x1b2   : > { %847 = vst.msk [vmem:[#allocation4 + $0x98] sm:$0xff] %vm679_vm5, %v830_v7 }
 0x1b3   : > { %800 = vst.msk [vmem:[#allocation4 + $0xb0] sm:$0xff] %vm630_vm4, %v2950_v22 }
 0x1b4   : > { %v731_v10 = vpop.permute.xlu1 %730 }
 0x1b5   : > { %v778_v9 = vpop.permute.xlu0 %777  ;;  %749 = vst.msk [vmem:[#allocation4 + $0x80] sm:$0xff] %vm581_vm3, %v731_v10 }
 0x1b6   : > { %797 = vst.msk [vmem:[#allocation4 + $0x68] sm:$0xff] %vm630_vm4, %v778_v9  ;;  %798 = vst.msk [vmem:[#allocation4 + $0x80] sm:$0xff] %vm630_vm4, %v780_v42  ;;  %v2569_v42 = vld [vmem:[%s3321_s3 + $0x10] sm:$0xff]  }
 0x1b7   : > { %846 = vst.msk [vmem:[#allocation4 + $0x80] sm:$0xff] %vm679_vm5, %v828_v44  ;;  %2512 = vmatprep.subr.bf16.mxu0 %v2569_v42 }
 0x1b8   : > { %v666_v12 = vpop.permute.xlu1 %665  ;;  %2513 = vmatpush3.bf16.msra.mxu0 %v2569_v42 }
 0x1b9   : > { %v826_v11 = vpop.permute.xlu0 %825  ;;  %685 = vst.msk [vmem:[#allocation4 + $0x78] sm:$0xff] %vm679_vm5, %v666_v12  ;;  %v884_v23 = vld [vmem:[#allocation4 + $0x98] sm:$0xff] }
 0x1ba   : > { %845 = vst.msk [vmem:[#allocation4 + $0x68] sm:$0xff] %vm679_vm5, %v826_v11  ;;  %v2268_v11 = vld [vmem:[%s3319_s1 + $0x1] ss:$0 sm:$0xff] }
 0x1bc   : > { %v832_v13 = vpop.permute.xlu1 %831 }
 0x1bd   : > { %v570_v14 = vpop.permute.xlu0 %569  ;;  %848 = vst.msk [vmem:[#allocation4 + $0xb0] sm:$0xff] %vm679_vm5, %v832_v13 }
 0x1be   : > { %588 = vst.msk [vmem:[#allocation4 + $0x90] sm:$0xff] %vm581_vm3, %v570_v14  ;;  %v881_v18 = vld [vmem:[#allocation4 + $0x80] sm:$0xff] }
 0x1bf   : > { %v2270_v14 = vld [vmem:[%s3320_s2 + $0x1] ss:$0 sm:$0xff] }
 0x1c0   : > { %v670_v16 = vpop.permute.xlu1 %669  ;;  %v880_v19 = vld [vmem:[#allocation4 + $0x78] sm:$0xff] }
 0x1c1   : > { %v619_v17 = vpop.permute.xlu0 %618  ;;  %v878_v59 = vld [vmem:[#allocation4 + $0x68] sm:$0xff]  ;;  %687 = vst.msk [vmem:[#allocation4 + $0xa8] sm:$0xff] %vm679_vm5, %v670_v16  ;;  %v895_v21 = vpack.c.bf16 %v880_v19, %v877_v15 }
 0x1c2   : > { %637 = vst.msk [vmem:[#allocation4 + $0x90] sm:$0xff] %vm630_vm4, %v619_v17  ;;  %v896_v20 = vpack.c.bf16 %v881_v18, %v878_v59 }
 0x1c4   : > { %1105 = vmatprep.mubr.bf16.mxu1 %v896_v20  ;;  %v887_v24 = vld [vmem:[#allocation4 + $0xb0] sm:$0xff] }
 0x1c5   : > { %1106 = vmatmul.mubr.bf16.gmra.mxu1 %v895_v21  ;;  %v668_v22 = vpop.permute.xlu0 %667  ;;  %v899_v25 = vpack.c.bf16 %v887_v24, %v884_v23 }
 0x1c6   : > { %686 = vst.msk [vmem:[#allocation4 + $0x90] sm:$0xff] %vm679_vm5, %v668_v22 }
 0x1c7   : > { %1113 = vmatprep.mubr.bf16.mxu1 %v899_v25 }
 0x1c8   : > { %v886_v27 = vld [vmem:[#allocation4 + $0xa8] sm:$0xff] }
 0x1cd   : > { %v883_v26 = vld [vmem:[#allocation4 + $0x90] sm:$0xff] }
 0x1ce   : > { %v898_v28 = vpack.c.bf16 %v886_v27, %v883_v26 }
 0x1cf   : > { %v2504_v29 = vpop.f32.mrf.mxu0 }
 0x1d0   : > { %1114 = vmatmul.mubr.bf16.gmra.mxu1 %v898_v28 }
 0x1d1   : > { %v1156_v30 = vpop.f32.mrf.mxu0 }
 0x1d3   : > { %v2505_v34 = vpop.f32.mrf.mxu0 }
 0x1d5   : > { %v1159_v39 = vpop.f32.mrf.mxu0 }
 0x1d7   : > { %v2508_v51 = vpop.f32.mrf.mxu0 }
 0x1d9   : > { %v1172_v52 = vpop.f32.mrf.mxu0 }
 0x1db   : > { %v2509_v57 = vpop.f32.mrf.mxu0 }
 0x1dd   : > { %v1175_v63 = vpop.f32.mrf.mxu0 }
 0x261   : > { %v2404_v31 = vpop.f32.mrf.mxu1 }
 0x263   : > { %v2405_v32 = vpop.f32.mrf.mxu1 }
 0x264   : > { %v2406_v33 = vadd.f32 %v2405_v32, %v2404_v31 }
 0x265   : > { %v2407_v35 = vpop.f32.mrf.mxu1 }
 0x266   : > { %v1157_v36 = vadd.f32 %v2406_v33, %v1156_v30 }
 0x267   : > { %v2408_v37 = vpop.f32.mrf.mxu1 }
 0x268   : > { %v2409_v38 = vadd.f32 %v2408_v37, %v2407_v35  ;;  %1195 = vrot.lane.b32.xlu0 %v1157_v36, %s2600_s23 }
 0x26a   : > { %v1160_v40 = vadd.f32 %v2409_v38, %v1159_v39 }
 0x26c   : > { %1197 = vrot.lane.b32.xlu1 %v1160_v40, %s2600_s23 }
 0x270   : > { %v2410_v43 = vpop.f32.mrf.mxu1 }
 0x272   : > { %v2411_v44 = vpop.f32.mrf.mxu1 }
 0x273   : > { %v2412_v45 = vadd.f32 %v2411_v44, %v2410_v43 }
 0x274   : > { %v2413_v46 = vpop.f32.mrf.mxu1 }
 0x275   : > { %v1165_v47 = vadd.f32 %v2504_v29, %v2412_v45 }
 0x276   : > { %v2414_v48 = vpop.f32.mrf.mxu1 }
 0x277   : > { %v2415_v49 = vadd.f32 %v2414_v48, %v2413_v46  ;;  %1199 = vrot.lane.b32.xlu0 %v1165_v47, %s2600_s23 }
 0x279   : > { %v1168_v50 = vadd.f32 %v2505_v34, %v2415_v49 }
 0x27b   : > { %1201 = vrot.lane.b32.xlu1 %v1168_v50, %s2600_s23 }
 0x285   : > { %v2416_v53 = vpop.f32.mrf.mxu1 }
 0x287   : > { %v2417_v54 = vpop.f32.mrf.mxu1 }
 0x288   : > { %v2418_v56 = vadd.f32 %v2417_v54, %v2416_v53  ;;  %v1438_v53 = vld [vmem:[#allocation3 + $0x1] sm:$0xff] }
 0x289   : > { %v2419_v58 = vpop.f32.mrf.mxu1  ;;  %v1486_v54 = vld [vmem:[#allocation3 + $0x2] sm:$0xff] }
 0x28a   : > { %v1173_v60 = vadd.f32 %v2418_v56, %v1172_v52  ;;  %v2570_v56 = vld [vmem:[%s3324_s6 + $0x118] sm:$0xff]  }
 0x28b   : > { %v2420_v61 = vpop.f32.mrf.mxu1  ;;  %2522 = vmatprep.subr.bf16.mxu0 %v2570_v56 }
 0x28c   : > { %v2421_v62 = vadd.f32 %v2420_v61, %v2419_v58  ;;  %1203 = vrot.lane.b32.xlu0 %v1173_v60, %s2600_s23  ;;  %v1422_v58 = vld [vmem:[#allocation3] sm:$0xff] }
 0x28d   : > { %1430 = vst.msk [vmem:[#allocation4] sm:$0xff] %vm280_vm0, %v1422_v58  ;;  %v3046_v61 = vld [vmem:[%s3322_s4 + $0x1] ss:$0 sm:$0xff]  ;;  %v2585_v58 = vld [vmem:[%s3324_s6 + $0x98] sm:$0xff]  }
 0x28e   : > { %v1176_v0 = vadd.f32 %v2421_v62, %v1175_v63 }
 0x290   : > { %1205 = vrot.lane.b32.xlu1 %v1176_v0, %s2600_s23  ;;  %v2422_v1 = vpop.f32.mrf.mxu1  ;;  %v3052_v0 = vld [vmem:[%s3323_s5 + $0x1] ss:$0 sm:$0xff] }
 0x292   : > { %v2423_v2 = vpop.f32.mrf.mxu1 }
 0x293   : > { %v2424_v3 = vadd.f32 %v2423_v2, %v2422_v1 }
 0x294   : > { %v2425_v4 = vpop.f32.mrf.mxu1 }
 0x295   : > { %v1181_v5 = vadd.f32 %v2508_v51, %v2424_v3 }
 0x296   : > { %v2426_v6 = vpop.f32.mrf.mxu1 }
 0x297   : > { %v2427_v7 = vadd.f32 %v2426_v6, %v2425_v4  ;;  %1207 = vrot.lane.b32.xlu0 %v1181_v5, %s2600_s23 }
 0x299   : > { %v1184_v8 = vadd.f32 %v2509_v57, %v2427_v7  ;;  %v2571_v57 = vld [vmem:[%s3324_s6 + $0x110] sm:$0xff]  }
 0x29b   : > { %1209 = vrot.lane.b32.xlu1 %v1184_v8, %s2600_s23  ;;  %1454 = vrot.lane.b32.xlu0 %v1438_v53, %s2597_s15 }
 0x29f   : > { %1676 = vrot.lane.b32.xlu1 %v2711_v55, %s2598_s16  ;;  %1502 = vrot.lane.b32.xlu0 %v1486_v54, %s2598_s16  ;;  %v2584_v54 = vld [vmem:[%s3324_s6 + $0xd8] sm:$0xff]  }
 0x2da   : > { %v1196_v9 = vpop.permute.xlu0 %1195 }
 0x2db   : > { %1220 = vst.msk [vmem:[#allocation2] sm:$0xff] %vm1219_vm6, %v1196_v9 }
 0x2de   : > { %v1198_v10 = vpop.permute.xlu1 %1197 }
 0x2df   : > { %1221 = vst.msk [vmem:[#allocation2 + $0x8] sm:$0xff] %vm1219_vm6, %v1198_v10 }
 0x2e2   : > { %v1228_v12 = vld [vmem:[#allocation2] sm:$0xff] }
 0x2e3   : > { %v1244_v13 = vmul.f32 %v2268_v11, %v1228_v12 }
 0x2e5   : > { %v1260_v55 = vadd.f32 %v2270_v14, %v1244_v13 }
 0x2e6   : > { %v1229_v15 = vld [vmem:[#allocation2 + $0x8] sm:$0xff] }
 0x2e7   : > { %v1245_v16 = vmul.f32 %v2268_v11, %v1229_v15  ;;  %v1268_v18 = vmax.f32 %v1260_v55, 0.0 }
 0x2e9   : > { %v1261_v17 = vadd.f32 %v2270_v14, %v1245_v16  ;;  %v1200_v59 = vpop.permute.xlu0 %1199 }
 0x2ea   : > { %1222 = vst.msk [vmem:[#allocation2 + $0x10] sm:$0xff] %vm1219_vm6, %v1200_v59  ;;  %v2572_v59 = vld [vmem:[%s3324_s6 + $0x108] sm:$0xff]  }
 0x2eb   : > { %v1269_v19 = vmax.f32 %v1261_v17, 0.0  ;;  %2440 = vmatprep.subr.bf16.mxu1 %v2572_v59 }
 0x2ed   : > { %v1276_v20 = vpack.c.bf16 %v1269_v19, %v1268_v18  ;;  %v1202_v21 = vpop.permute.xlu1 %1201 }
 0x2ee   : > { %1223 = vst.msk [vmem:[#allocation2 + $0x18] sm:$0xff] %vm1219_vm6, %v1202_v21 }
 0x2ef   : > { %2514 = vmatprep.mubr.msk.bf16.mxu0 %vm280_vm0, %v1276_v20  ;;  %v2573_v20 = vld [vmem:[%s3324_s6 + $0xc8] sm:$0xff]  }
 0x2f0   : > { %2441 = vmatpush3.bf16.msra.mxu1 %v2573_v20 }
 0x2f1   : > { %v1230_v22 = vld [vmem:[#allocation2 + $0x10] sm:$0xff] }
 0x2f2   : > { %v1246_v23 = vmul.f32 %v2268_v11, %v1230_v22 }
 0x2f4   : > { %v1262_v26 = vadd.f32 %v2270_v14, %v1246_v23 }
 0x2f5   : > { %v1231_v24 = vld [vmem:[#allocation2 + $0x18] sm:$0xff] }
 0x2f6   : > { %v1247_v25 = vmul.f32 %v2268_v11, %v1231_v24  ;;  %v1270_v28 = vmax.f32 %v1262_v26, 0.0  ;;  %v2574_v24 = vld [vmem:[%s3324_s6 + $0x100] sm:$0xff]  }
 0x2f7   : > { %2442 = vmatprep.subr.bf16.mxu1 %v2574_v24 }
 0x2f8   : > { %v1263_v27 = vadd.f32 %v2270_v14, %v1247_v25 }
 0x2fa   : > { %v1271_v29 = vmax.f32 %v1263_v27, 0.0 }
 0x2fc   : > { %v1277_v30 = vpack.c.bf16 %v1271_v29, %v1270_v28  ;;  %v2575_v28 = vld [vmem:[%s3324_s6 + $0xc0] sm:$0xff]  }
 0x2fd   : > { %2443 = vmatpush3.bf16.msra.mxu1 %v2575_v28 }
 0x2fe   : > { %v1204_v31 = vpop.permute.xlu0 %1203  ;;  %2515 = vmatmul.mubr.msk.bf16.vlgmr.msra.gmra.mxu0 %vm280_vm0, %v1277_v30  ;;  %v2576_v30 = vld [vmem:[%s3324_s6 + $0xf8] sm:$0xff]  }
 0x2ff   : > { %1224 = vst.msk [vmem:[#allocation2 + $0x20] sm:$0xff] %vm1219_vm6, %v1204_v31  ;;  %2523 = vmatpush3.bf16.msra.mxu0 %v2570_v56  ;;  %2444 = vmatprep.subr.bf16.mxu1 %v2576_v30  ;;  %v2577_v31 = vld [vmem:[%s3324_s6 + $0xb8] sm:$0xff]  }
 0x300   : > { %2524 = vmatprep.subr.bf16.mxu0 %v2571_v57 }
 0x301   : > { %2445 = vmatpush3.bf16.msra.mxu1 %v2577_v31 }
 0x302   : > { %v1206_v32 = vpop.permute.xlu1 %1205 }
 0x303   : > { %1225 = vst.msk [vmem:[#allocation2 + $0x28] sm:$0xff] %vm1219_vm6, %v1206_v32  ;;  %2525 = vmatpush3.bf16.msra.mxu0 %v2571_v57  ;;  %v2578_v32 = vld [vmem:[%s3324_s6 + $0xf0] sm:$0xff]  }
 0x304   : > { %2446 = vmatprep.subr.bf16.mxu1 %v2578_v32 }
 0x306   : > { %v1232_v33 = vld [vmem:[#allocation2 + $0x20] sm:$0xff] }
 0x307   : > { %v1248_v34 = vmul.f32 %v2268_v11, %v1232_v33 }
 0x309   : > { %v1208_v35 = vpop.permute.xlu0 %1207  ;;  %v1264_v38 = vadd.f32 %v2270_v14, %v1248_v34 }
 0x30a   : > { %1226 = vst.msk [vmem:[#allocation2 + $0x30] sm:$0xff] %vm1219_vm6, %v1208_v35  ;;  %v1233_v36 = vld [vmem:[#allocation2 + $0x28] sm:$0xff] }
 0x30b   : > { %v1249_v37 = vmul.f32 %v2268_v11, %v1233_v36  ;;  %v1272_v41 = vmax.f32 %v1264_v38, 0.0  ;;  %v2579_v36 = vld [vmem:[%s3324_s6 + $0xb0] sm:$0xff]  }
 0x30c   : > { %2447 = vmatpush3.bf16.msra.mxu1 %v2579_v36 }
 0x30d   : > { %v1210_v39 = vpop.permute.xlu1 %1209  ;;  %v1265_v40 = vadd.f32 %v2270_v14, %v1249_v37  ;;  %v1455_v60 = vpop.permute.xlu0 %1454  ;;  %v2580_v37 = vld [vmem:[%s3324_s6 + $0xe8] sm:$0xff]  }
 0x30e   : > { %1227 = vst.msk [vmem:[#allocation2 + $0x38] sm:$0xff] %vm1219_vm6, %v1210_v39  ;;  %2448 = vmatprep.subr.bf16.mxu1 %v2580_v37 }
 0x30f   : > { %v1273_v42 = vmax.f32 %v1265_v40, 0.0  ;;  %1478 = vst.msk [vmem:[#allocation4] sm:$0xff] %vm581_vm3, %v1455_v60 }
 0x311   : > { %v1278_v43 = vpack.c.bf16 %v1273_v42, %v1272_v41  ;;  %v1234_v44 = vld [vmem:[#allocation2 + $0x30] sm:$0xff]  ;;  %v1503_v62 = vpop.permute.xlu0 %1502  ;;  %v2581_v41 = vld [vmem:[%s3324_s6 + $0xa8] sm:$0xff]  }
 0x312   : > { %v1250_v45 = vmul.f32 %v2268_v11, %v1234_v44  ;;  %1526 = vst.msk [vmem:[#allocation4] sm:$0xff] %vm630_vm4, %v1503_v62  ;;  %2449 = vmatpush3.bf16.msra.mxu1 %v2581_v41 }
 0x313   : > { %2518 = vmatprep.mubr.msk.bf16.mxu0 %vm280_vm0, %v1278_v43 }
 0x314   : > { %v1266_v48 = vadd.f32 %v2270_v14, %v1250_v45 }
 0x315   : > { %v1235_v46 = vld [vmem:[#allocation2 + $0x38] sm:$0xff] }
 0x316   : > { %v1251_v47 = vmul.f32 %v2268_v11, %v1235_v46  ;;  %v1274_v50 = vmax.f32 %v1266_v48, 0.0  ;;  %v2582_v48 = vld [vmem:[%s3324_s6 + $0xe0] sm:$0xff]  }
 0x317   : > { %2450 = vmatprep.subr.bf16.mxu1 %v2582_v48 }
 0x318   : > { %v1267_v49 = vadd.f32 %v2270_v14, %v1251_v47 }
 0x31a   : > { %v1275_v51 = vmax.f32 %v1267_v49, 0.0 }
 0x31c   : > { %v1279_v52 = vpack.c.bf16 %v1275_v51, %v1274_v50  ;;  %v2583_v50 = vld [vmem:[%s3324_s6 + $0xa0] sm:$0xff]  }
 0x31d   : > { %2451 = vmatpush3.bf16.msra.mxu1 %v2583_v50 }
 0x31e   : > { %2519 = vmatmul.mubr.msk.bf16.gmra.mxu0 %vm280_vm0, %v1279_v52  ;;  %2452 = vmatprep.subr.bf16.mxu1 %v2584_v54 }
 0x321   : > { %2453 = vmatpush3.bf16.msra.mxu1 %v2585_v58 }
 0x3be   : > { %v2516_v63 = vpop.f32.mrf.mxu0 }
 0x3bf   : > { %v1384_v1 = vmul.f32 %v2516_v63, %v3046_v61 }
 0x3c0   : > { %v1343_v2 = vpop.f32.mrf.mxu0 }
 0x3c1   : > { %v1400_v3 = vadd.f32 %v3052_v0, %v1384_v1  ;;  %v1382_v4 = vmul.f32 %v3046_v61, %v1343_v2  ;;  %v2587_v1 = vld [vmem:[%s3324_s6 + $0x90] sm:$0xff]  }
 0x3c2   : > { %v2517_v5 = vpop.f32.mrf.mxu0 }
 0x3c3   : > { %v1408_v6 = vmax.f32 %v1400_v3, 0.0  ;;  %v1398_v7 = vadd.f32 %v3052_v0, %v1382_v4  ;;  %v1385_v8 = vmul.f32 %v2517_v5, %v3046_v61 }
 0x3c4   : > { %v1346_v9 = vpop.f32.mrf.mxu0 }
 0x3c5   : > { %1416 = vst.msk [vmem:[#allocation3 + $0x31] sm:$0xff] %vm280_vm0, %v1408_v6  ;;  %v1406_v10 = vmax.f32 %v1398_v7, 0.0  ;;  %v1401_v11 = vadd.f32 %v3052_v0, %v1385_v8  ;;  %v1383_v12 = vmul.f32 %v3046_v61, %v1346_v9 }
 0x3c7   : > { %1414 = vst.msk [vmem:[#allocation3 + $0x11] sm:$0xff] %vm280_vm0, %v1406_v10  ;;  %v1409_v13 = vmax.f32 %v1401_v11, 0.0  ;;  %v1399_v14 = vadd.f32 %v3052_v0, %v1383_v12 }
 0x3c9   : > { %1417 = vst.msk [vmem:[#allocation3 + $0x41] sm:$0xff] %vm280_vm0, %v1409_v13  ;;  %v1407_v15 = vmax.f32 %v1399_v14, 0.0 }
 0x3cb   : > { %1415 = vst.msk [vmem:[#allocation3 + $0x21] sm:$0xff] %vm280_vm0, %v1407_v15 }
 0x3cc   : > { %v1647_v16 = vld [vmem:[#allocation3 + $0x30] sm:$0xff] }
 0x3cd   : > { %v1600_v55 = vld [vmem:[#allocation3 + $0x32] sm:$0xff]  ;;  %1664 = vrot.lane.b32.xlu1 %v1647_v16, %s2598_s16  ;;  %1433 = vst.msk [vmem:[#allocation4 + $0x48] sm:$0xff] %vm280_vm0, %v1647_v16 }
 0x3ce   : > { %v1695_v17 = vld [vmem:[#allocation3 + $0x31] sm:$0xff]  ;;  %1618 = vrot.lane.b32.xlu0 %v1600_v55, %s2597_s15  ;;  %1751 = vst.msk [vmem:[#allocation4 + $0x28] sm:$0xff] %vm280_vm0, %v1600_v55 }
 0x3cf   : > { %1592 = vst.msk [vmem:[#allocation4 + $0x38] sm:$0xff] %vm280_vm0, %v1695_v17  ;;  %v1534_v18 = vld [vmem:[#allocation3 + $0x10] sm:$0xff] }
 0x3d0   : > { %v1439_v19 = vld [vmem:[#allocation3 + $0x11] sm:$0xff]  ;;  %1431 = vst.msk [vmem:[#allocation4 + $0x18] sm:$0xff] %vm280_vm0, %v1534_v18  ;;  %v3079_v21 = vld [vmem:[#allocation3 + $0x40] sm:$0xff] }
 0x3d1   : > { %1590 = vst.msk [vmem:[#allocation4 + $0x8] sm:$0xff] %vm280_vm0, %v1439_v19  ;;  %v1696_v22 = vld [vmem:[#allocation3 + $0x41] sm:$0xff]  ;;  %1712 = vrot.lane.b32.xlu1 %v1695_v17, %s2599_s27  ;;  %1434 = vst.msk [vmem:[#allocation4 + $0x60] sm:$0xff] %vm280_vm0, %v3079_v21  ;;  %v1598_v29 = vld [vmem:[#allocation3 + $0x12] sm:$0xff] }
 0x3d2   : > { %v3081_v23 = vld [vmem:[#allocation3 + $0x42] sm:$0xff]  ;;  %1554 = vrot.lane.b32.xlu0 %v1647_v16, %s2599_s27  ;;  %1593 = vst.msk [vmem:[#allocation4 + $0x50] sm:$0xff] %vm280_vm0, %v1696_v22 }
 0x3d3   : > { %1752 = vst.msk [vmem:[#allocation4 + $0x40] sm:$0xff] %vm280_vm0, %v3081_v23  ;;  %v3093_v25 = vld [vmem:[#allocation3 + $0x22] sm:$0xff] }
 0x3d4   : > { %v3095_v26 = vld [vmem:[#allocation3 + $0x20] sm:$0xff]  ;;  %1750 = vst.msk [vmem:[#allocation4 + $0x10] sm:$0xff] %vm280_vm0, %v3093_v25 }
 0x3d5   : > { %v3097_v27 = vld [vmem:[#allocation3 + $0x21] sm:$0xff]  ;;  %1432 = vst.msk [vmem:[#allocation4 + $0x30] sm:$0xff] %vm280_vm0, %v3095_v26  ;;  %1460 = vrot.lane.b32.xlu1 %v1695_v17, %s2597_s15 }
 0x3d6   : > { %1591 = vst.msk [vmem:[#allocation4 + $0x20] sm:$0xff] %vm280_vm0, %v3097_v27  ;;  %1614 = vrot.lane.b32.xlu0 %v1598_v29, %s2597_s15  ;;  %v1763_v34 = vld [vmem:[#allocation4 + $0x28] sm:$0xff] }
 0x3d9   : > { %1508 = vrot.lane.b32.xlu1 %v1600_v55, %s2598_s16  ;;  %v1781_v55 = vld [vmem:[#allocation4 + $0xb8] sm:$0xff] }
 0x3da   : > { %1550 = vrot.lane.b32.xlu0 %v1534_v18, %s2599_s27  ;;  %v1766_v10 = vld [vmem:[#allocation4 + $0x40] sm:$0xff]  ;;  %v1701_v18 = vld [vmem:[#allocation3 + $0x91] sm:$0xff] }
 0x3db   : > { %v1760_v33 = vld [vmem:[#allocation4 + $0x10] sm:$0xff] }
 0x3dc   : > { %v1784_v35 = vpack.c.bf16 %v1763_v34, %v1760_v33 }
 0x3dd   : > { %1456 = vrot.lane.b32.xlu1 %v1439_v19, %s2597_s15  ;;  %v3227_v19 = vpop.permute.xlu1 %1676 }
 0x3de   : > { %1666 = vrot.lane.b32.xlu0 %v3079_v21, %s2598_s16  ;;  %v2520_v38 = vpop.f32.mrf.mxu0  ;;  %2526 = vmatprep.mubr.msk.bf16.mxu0 %vm280_vm0, %v1784_v35 }
 0x3df   : > { %v1388_v39 = vmul.f32 %v2520_v38, %v3046_v61 }
 0x3e0   : > { %v1359_v40 = vpop.f32.mrf.mxu0 }
 0x3e1   : > { %v1404_v42 = vadd.f32 %v3052_v0, %v1388_v39  ;;  %v1386_v43 = vmul.f32 %v3046_v61, %v1359_v40  ;;  %1504 = vrot.lane.b32.xlu1 %v1598_v29, %s2598_s16 }
 0x3e2   : > { %1714 = vrot.lane.b32.xlu0 %v1696_v22, %s2599_s27  ;;  %v2521_v44 = vpop.f32.mrf.mxu0 }
 0x3e3   : > { %v1412_v45 = vmax.f32 %v1404_v42, 0.0  ;;  %v1402_v46 = vadd.f32 %v3052_v0, %v1386_v43  ;;  %v1389_v47 = vmul.f32 %v2521_v44, %v3046_v61 }
 0x3e4   : > { %v1362_v49 = vpop.f32.mrf.mxu0 }
 0x3e5   : > { %1420 = vst.msk [vmem:[#allocation3 + $0x71] sm:$0xff] %vm280_vm0, %v1412_v45  ;;  %v1410_v51 = vmax.f32 %v1402_v46, 0.0  ;;  %v1405_v52 = vadd.f32 %v3052_v0, %v1389_v47  ;;  %v1387_v53 = vmul.f32 %v3046_v61, %v1362_v49  ;;  %1620 = vrot.lane.b32.xlu1 %v3081_v23, %s2597_s15  ;;  %v2586_v61 = vld [vmem:[%s3324_s6 + $0xd0] sm:$0xff]  }
 0x3e6   : > { %1462 = vrot.lane.b32.xlu0 %v1696_v22, %s2597_s15  ;;  %2454 = vmatprep.subr.bf16.mxu1 %v2586_v61 }
 0x3e7   : > { %1418 = vst.msk [vmem:[#allocation3 + $0x51] sm:$0xff] %vm280_vm0, %v1410_v51  ;;  %v1413_v56 = vmax.f32 %v1405_v52, 0.0  ;;  %v1403_v57 = vadd.f32 %v3052_v0, %v1387_v53  ;;  %2455 = vmatpush3.bf16.msra.mxu1 %v2587_v1 }
 0x3e9   : > { %1421 = vst.msk [vmem:[#allocation3 + $0x81] sm:$0xff] %vm280_vm0, %v1413_v56  ;;  %v1411_v60 = vmax.f32 %v1403_v57, 0.0  ;;  %1556 = vrot.lane.b32.xlu1 %v3079_v21, %s2599_s27 }
 0x3ea   : > { %1510 = vrot.lane.b32.xlu0 %v3081_v23, %s2598_s16 }
 0x3eb   : > { %1419 = vst.msk [vmem:[#allocation3 + $0x61] sm:$0xff] %vm280_vm0, %v1411_v60 }
 0x3ec   : > { %v3170_v62 = vld [vmem:[#allocation3 + $0x70] sm:$0xff] }
 0x3ed   : > { %v1699_v63 = vld [vmem:[#allocation3 + $0x71] sm:$0xff]  ;;  %1437 = vst.msk [vmem:[#allocation4 + $0xa8] sm:$0xff] %vm280_vm0, %v3170_v62  ;;  %1616 = vrot.lane.b32.xlu1 %v3093_v25, %s2597_s15 }
 0x3ee   : > { %v1747_v0 = vld [vmem:[#allocation3 + $0x72] sm:$0xff]  ;;  %1596 = vst.msk [vmem:[#allocation4 + $0x98] sm:$0xff] %vm280_vm0, %v1699_v63  ;;  %1662 = vrot.lane.b32.xlu0 %v3095_v26, %s2598_s16 }
 0x3ef   : > { %1755 = vst.msk [vmem:[#allocation4 + $0x88] sm:$0xff] %vm280_vm0, %v1747_v0  ;;  %v1745_v2 = vld [vmem:[#allocation3 + $0x52] sm:$0xff] }
 0x3f0   : > { %v1649_v3 = vld [vmem:[#allocation3 + $0x50] sm:$0xff]  ;;  %1753 = vst.msk [vmem:[#allocation4 + $0x58] sm:$0xff] %vm280_vm0, %v1745_v2  ;;  %v1748_v5 = vld [vmem:[#allocation3 + $0x82] sm:$0xff] }
 0x3f1   : > { %v1697_v4 = vld [vmem:[#allocation3 + $0x51] sm:$0xff]  ;;  %1435 = vst.msk [vmem:[#allocation4 + $0x78] sm:$0xff] %vm280_vm0, %v1649_v3  ;;  %v1700_v6 = vld [vmem:[#allocation3 + $0x81] sm:$0xff]  ;;  %1756 = vst.msk [vmem:[#allocation4 + $0xa0] sm:$0xff] %vm280_vm0, %v1748_v5  ;;  %1552 = vrot.lane.b32.xlu1 %v3095_v26, %s2599_s27 }
 0x3f2   : > { %1594 = vst.msk [vmem:[#allocation4 + $0x68] sm:$0xff] %vm280_vm0, %v1697_v4  ;;  %1597 = vst.msk [vmem:[#allocation4 + $0xb0] sm:$0xff] %vm280_vm0, %v1700_v6  ;;  %1710 = vrot.lane.b32.xlu0 %v3097_v27, %s2599_s27  ;;  %v1746_v7 = vld [vmem:[#allocation3 + $0x62] sm:$0xff] }
 0x3f3   : > { %v1650_v8 = vld [vmem:[#allocation3 + $0x60] sm:$0xff]  ;;  %1754 = vst.msk [vmem:[#allocation4 + $0x70] sm:$0xff] %vm280_vm0, %v1746_v7 }
 0x3f4   : > { %v1698_v9 = vld [vmem:[#allocation3 + $0x61] sm:$0xff]  ;;  %1436 = vst.msk [vmem:[#allocation4 + $0x90] sm:$0xff] %vm280_vm0, %v1650_v8 }
 0x3f5   : > { %1595 = vst.msk [vmem:[#allocation4 + $0x80] sm:$0xff] %vm280_vm0, %v1698_v9  ;;  %1672 = vrot.lane.b32.xlu1 %v3170_v62, %s2598_s16  ;;  %v1652_v59 = vld [vmem:[#allocation3 + $0x80] sm:$0xff] }
 0x3f6   : > { %1458 = vrot.lane.b32.xlu0 %v3097_v27, %s2597_s15  ;;  %v1775_v14 = vld [vmem:[#allocation4 + $0x88] sm:$0xff] }
 0x3f7   : > { %v1769_v11 = vld [vmem:[#allocation4 + $0x58] sm:$0xff] }
 0x3f8   : > { %v1787_v12 = vpack.c.bf16 %v1769_v11, %v1766_v10  ;;  %v1778_v16 = vld [vmem:[#allocation4 + $0xa0] sm:$0xff] }
 0x3f9   : > { %1720 = vrot.lane.b32.xlu1 %v1699_v63, %s2599_s27  ;;  %v1793_v17 = vpack.c.bf16 %v1781_v55, %v1778_v16 }
 0x3fa   : > { %2527 = vmatmul.mubr.msk.bf16.vlgmr.msra.gmra.mxu0 %vm280_vm0, %v1787_v12  ;;  %1506 = vrot.lane.b32.xlu0 %v3093_v25, %s2598_s16  ;;  %v1772_v13 = vld [vmem:[#allocation4 + $0x70] sm:$0xff] }
 0x3fb   : > { %v1790_v15 = vpack.c.bf16 %v1775_v14, %v1772_v13 }
 0x3fd   : > { %2530 = vmatprep.mubr.msk.bf16.mxu0 %vm280_vm0, %v1790_v15  ;;  %1468 = vrot.lane.b32.xlu1 %v1699_v63, %s2597_s15 }
 0x3fe   : > { %1626 = vrot.lane.b32.xlu0 %v1747_v0, %s2597_s15 }
 0x401   : > { %1516 = vrot.lane.b32.xlu1 %v1747_v0, %s2598_s16 }
 0x402   : > { %2531 = vmatmul.mubr.msk.bf16.gmra.mxu0 %vm280_vm0, %v1793_v17  ;;  %1622 = vrot.lane.b32.xlu0 %v1745_v2, %s2597_s15 }
 0x405   : > { %1668 = vrot.lane.b32.xlu1 %v1649_v3, %s2598_s16 }
 0x406   : > { %1558 = vrot.lane.b32.xlu0 %v1649_v3, %s2599_s27 }
 0x409   : > { %1716 = vrot.lane.b32.xlu1 %v1697_v4, %s2599_s27 }
 0x40a   : > { %1674 = vrot.lane.b32.xlu0 %v1652_v59, %s2598_s16 }
 0x40d   : > { %1464 = vrot.lane.b32.xlu1 %v1697_v4, %s2597_s15 }
 0x40e   : > { %1722 = vrot.lane.b32.xlu0 %v1700_v6, %s2599_s27 }
 0x411   : > { %1512 = vrot.lane.b32.xlu1 %v1745_v2, %s2598_s16 }
 0x412   : > { %1670 = vrot.lane.b32.xlu0 %v1650_v8, %s2598_s16 }
 0x415   : > { %1628 = vrot.lane.b32.xlu1 %v1748_v5, %s2597_s15 }
 0x416   : > { %1718 = vrot.lane.b32.xlu0 %v1698_v9, %s2599_s27 }
 0x419   : > { %1624 = vrot.lane.b32.xlu1 %v1746_v7, %s2597_s15 }
 0x41a   : > { %1466 = vrot.lane.b32.xlu0 %v1698_v9, %s2597_s15  ;;  %s2601_s15 = smov 24  }
 0x41d   : > { %1560 = vrot.lane.b32.xlu1 %v1650_v8, %s2599_s27 }
 0x41e   : > { %1514 = vrot.lane.b32.xlu0 %v1746_v7, %s2598_s16 }
 0x421   : > { %1724 = vrot.lane.b32.xlu1 %v1701_v18, %s2599_s27 }
 0x422   : > { %1562 = vrot.lane.b32.xlu0 %v3170_v62, %s2599_s27 }
 0x425   : > { %1564 = vrot.lane.b32.xlu1 %v1652_v59, %s2599_s27 }
 0x43f   : > { %v1665_v20 = vpop.permute.xlu1 %1664 }
 0x440   : > { %v1619_v21 = vpop.permute.xlu0 %1618 }
 0x441   : > { %1640 = vst.msk [vmem:[#allocation4 + $0x38] sm:$0xff] %vm581_vm3, %v1619_v21 }
 0x443   : > { %v1713_v22 = vpop.permute.xlu1 %1712 }
 0x444   : > { %v1555_v23 = vpop.permute.xlu0 %1554 }
 0x447   : > { %v1461_v24 = vpop.permute.xlu1 %1460 }
 0x448   : > { %v1615_v25 = vpop.permute.xlu0 %1614  ;;  %1481 = vst.msk [vmem:[#allocation4 + $0x48] sm:$0xff] %vm581_vm3, %v1461_v24 }
 0x449   : > { %1638 = vst.msk [vmem:[#allocation4 + $0x8] sm:$0xff] %vm581_vm3, %v1615_v25 }
 0x44b   : > { %v1509_v26 = vpop.permute.xlu1 %1508 }
 0x44c   : > { %v1551_v27 = vpop.permute.xlu0 %1550  ;;  %1529 = vst.msk [vmem:[#allocation4 + $0x48] sm:$0xff] %vm630_vm4, %v1509_v26 }
 0x44d   : > { %1574 = vst.msk [vmem:[#allocation4] sm:$0xff] %vm679_vm5, %v1551_v27 }
 0x44f   : > { %v1457_v28 = vpop.permute.xlu1 %1456 }
 0x450   : > { %v1667_v29 = vpop.permute.xlu0 %1666  ;;  %1479 = vst.msk [vmem:[#allocation4 + $0x18] sm:$0xff] %vm581_vm3, %v1457_v28 }
 0x451   : > { %1688 = vst.msk [vmem:[#allocation4 + $0x38] sm:$0xff] %vm630_vm4, %v1667_v29 }
 0x453   : > { %v1505_v30 = vpop.permute.xlu1 %1504 }
 0x454   : > { %v1715_v31 = vpop.permute.xlu0 %1714  ;;  %1527 = vst.msk [vmem:[#allocation4 + $0x18] sm:$0xff] %vm630_vm4, %v1505_v30  ;;  %v1758_v42 = vld [vmem:[#allocation4] sm:$0xff] }
 0x455   : > { %1736 = vst.msk [vmem:[#allocation4 + $0x38] sm:$0xff] %vm679_vm5, %v1715_v31 }
 0x457   : > { %v1621_v32 = vpop.permute.xlu1 %1620 }
 0x458   : > { %v1463_v33 = vpop.permute.xlu0 %1462  ;;  %1641 = vst.msk [vmem:[#allocation4 + $0x50] sm:$0xff] %vm581_vm3, %v1621_v32 }
 0x459   : > { %1482 = vst.msk [vmem:[#allocation4 + $0x60] sm:$0xff] %vm581_vm3, %v1463_v33 }
 0x45b   : > { %v1557_v34 = vpop.permute.xlu1 %1556 }
 0x45c   : > { %v1511_v35 = vpop.permute.xlu0 %1510  ;;  %1577 = vst.msk [vmem:[#allocation4 + $0x48] sm:$0xff] %vm679_vm5, %v1557_v34  ;;  %v1765_v1 = vld [vmem:[#allocation4 + $0x38] sm:$0xff] }
 0x45d   : > { %1530 = vst.msk [vmem:[#allocation4 + $0x60] sm:$0xff] %vm630_vm4, %v1511_v35 }
 0x45f   : > { %v1617_v36 = vpop.permute.xlu1 %1616 }
 0x460   : > { %v1663_v37 = vpop.permute.xlu0 %1662  ;;  %1639 = vst.msk [vmem:[#allocation4 + $0x20] sm:$0xff] %vm581_vm3, %v1617_v36 }
 0x461   : > { %1686 = vst.msk [vmem:[#allocation4 + $0x8] sm:$0xff] %vm630_vm4, %v1663_v37  ;;  %1687 = vst.msk [vmem:[#allocation4 + $0x20] sm:$0xff] %vm630_vm4, %v1665_v20 }
 0x462   : > { %1735 = vst.msk [vmem:[#allocation4 + $0x20] sm:$0xff] %vm679_vm5, %v1713_v22 }
 0x463   : > { %v1553_v38 = vpop.permute.xlu1 %1552  ;;  %v1767_v4 = vld [vmem:[#allocation4 + $0x48] sm:$0xff] }
 0x464   : > { %v1711_v39 = vpop.permute.xlu0 %1710  ;;  %1575 = vst.msk [vmem:[#allocation4 + $0x18] sm:$0xff] %vm679_vm5, %v1553_v38 }
 0x465   : > { %1734 = vst.msk [vmem:[#allocation4 + $0x8] sm:$0xff] %vm679_vm5, %v1711_v39 }
 0x467   : > { %v1673_v40 = vpop.permute.xlu1 %1672 }
 0x468   : > { %v1459_v41 = vpop.permute.xlu0 %1458 }
 0x469   : > { %1480 = vst.msk [vmem:[#allocation4 + $0x30] sm:$0xff] %vm581_vm3, %v1459_v41  ;;  %v1762_v46 = vld [vmem:[#allocation4 + $0x20] sm:$0xff] }
 0x46b   : > { %v1721_v43 = vpop.permute.xlu1 %1720  ;;  %v1761_v47 = vld [vmem:[#allocation4 + $0x18] sm:$0xff] }
 0x46c   : > { %v1507_v44 = vpop.permute.xlu0 %1506  ;;  %v1759_v45 = vld [vmem:[#allocation4 + $0x8] sm:$0xff]  ;;  %v1782_v49 = vpack.c.bf16 %v1761_v47, %v1758_v42 }
 0x46d   : > { %1528 = vst.msk [vmem:[#allocation4 + $0x30] sm:$0xff] %vm630_vm4, %v1507_v44  ;;  %v1783_v48 = vpack.c.bf16 %v1762_v46, %v1759_v45 }
 0x46e   : > { %1576 = vst.msk [vmem:[#allocation4 + $0x30] sm:$0xff] %vm679_vm5, %v1555_v23 }
 0x46f   : > { %1983 = vmatprep.mubr.bf16.mxu1 %v1783_v48  ;;  %v1469_v50 = vpop.permute.xlu1 %1468 }
 0x470   : > { %1984 = vmatmul.mubr.bf16.vlgmr.msra.gmra.mxu1 %v1782_v49  ;;  %v1627_v51 = vpop.permute.xlu0 %1626  ;;  %1485 = vst.msk [vmem:[#allocation4 + $0xa8] sm:$0xff] %vm581_vm3, %v1469_v50 }
 0x471   : > { %1644 = vst.msk [vmem:[#allocation4 + $0x98] sm:$0xff] %vm581_vm3, %v1627_v51 }
 0x473   : > { %v1517_v52 = vpop.permute.xlu1 %1516 }
 0x474   : > { %v1623_v53 = vpop.permute.xlu0 %1622  ;;  %1533 = vst.msk [vmem:[#allocation4 + $0xa8] sm:$0xff] %vm630_vm4, %v1517_v52 }
 0x475   : > { %1642 = vst.msk [vmem:[#allocation4 + $0x68] sm:$0xff] %vm581_vm3, %v1623_v53  ;;  %v1764_v62 = vld [vmem:[#allocation4 + $0x30] sm:$0xff] }
 0x476   : > { %v1785_v5 = vpack.c.bf16 %v1767_v4, %v1764_v62 }
 0x477   : > { %v1669_v54 = vpop.permute.xlu1 %1668 }
 0x478   : > { %v1559_v56 = vpop.permute.xlu0 %1558  ;;  %1689 = vst.msk [vmem:[#allocation4 + $0x50] sm:$0xff] %vm630_vm4, %v1669_v54 }
 0x479   : > { %1578 = vst.msk [vmem:[#allocation4 + $0x60] sm:$0xff] %vm679_vm5, %v1559_v56 }
 0x47b   : > { %v1717_v57 = vpop.permute.xlu1 %1716 }
 0x47c   : > { %v1675_v58 = vpop.permute.xlu0 %1674  ;;  %1737 = vst.msk [vmem:[#allocation4 + $0x50] sm:$0xff] %vm679_vm5, %v1717_v57 }
 0x47d   : > { %1692 = vst.msk [vmem:[#allocation4 + $0x98] sm:$0xff] %vm630_vm4, %v1675_v58 }
 0x47f   : > { %v1465_v60 = vpop.permute.xlu1 %1464 }
 0x480   : > { %v1723_v61 = vpop.permute.xlu0 %1722  ;;  %1483 = vst.msk [vmem:[#allocation4 + $0x78] sm:$0xff] %vm581_vm3, %v1465_v60  ;;  %v1770_v17 = vld [vmem:[#allocation4 + $0x60] sm:$0xff] }
 0x481   : > { %1740 = vst.msk [vmem:[#allocation4 + $0x98] sm:$0xff] %vm679_vm5, %v1723_v61 }
 0x483   : > { %v1513_v63 = vpop.permute.xlu1 %1512  ;;  %v1768_v2 = vld [vmem:[#allocation4 + $0x50] sm:$0xff] }
 0x484   : > { %v1671_v0 = vpop.permute.xlu0 %1670  ;;  %1531 = vst.msk [vmem:[#allocation4 + $0x78] sm:$0xff] %vm630_vm4, %v1513_v63  ;;  %v1786_v3 = vpack.c.bf16 %v1768_v2, %v1765_v1 }
 0x485   : > { %1690 = vst.msk [vmem:[#allocation4 + $0x68] sm:$0xff] %vm630_vm4, %v1671_v0 }
 0x486   : > { %1991 = vmatprep.mubr.bf16.mxu1 %v1786_v3 }
 0x487   : > { %v1629_v6 = vpop.permute.xlu1 %1628  ;;  %1992 = vmatmul.mubr.bf16.gmra.mxu1 %v1785_v5 }
 0x488   : > { %v1719_v7 = vpop.permute.xlu0 %1718  ;;  %1645 = vst.msk [vmem:[#allocation4 + $0xb0] sm:$0xff] %vm581_vm3, %v1629_v6 }
 0x489   : > { %1738 = vst.msk [vmem:[#allocation4 + $0x68] sm:$0xff] %vm679_vm5, %v1719_v7 }
 0x48a   : > { %1693 = vst.msk [vmem:[#allocation4 + $0xb0] sm:$0xff] %vm630_vm4, %v3227_v19  ;;  %v1777_v19 = vld [vmem:[#allocation4 + $0x98] sm:$0xff] }
 0x48b   : > { %v1625_v8 = vpop.permute.xlu1 %1624 }
 0x48c   : > { %v1467_v9 = vpop.permute.xlu0 %1466  ;;  %1643 = vst.msk [vmem:[#allocation4 + $0x80] sm:$0xff] %vm581_vm3, %v1625_v8 }
 0x48d   : > { %1484 = vst.msk [vmem:[#allocation4 + $0x90] sm:$0xff] %vm581_vm3, %v1467_v9 }
 0x48e   : > { %1691 = vst.msk [vmem:[#allocation4 + $0x80] sm:$0xff] %vm630_vm4, %v1673_v40 }
 0x48f   : > { %1739 = vst.msk [vmem:[#allocation4 + $0x80] sm:$0xff] %vm679_vm5, %v1721_v43  ;;  %v1561_v10 = vpop.permute.xlu1 %1560 }
 0x490   : > { %v1515_v11 = vpop.permute.xlu0 %1514  ;;  %1579 = vst.msk [vmem:[#allocation4 + $0x78] sm:$0xff] %vm679_vm5, %v1561_v10  ;;  %v1771_v14 = vld [vmem:[#allocation4 + $0x68] sm:$0xff] }
 0x491   : > { %1532 = vst.msk [vmem:[#allocation4 + $0x90] sm:$0xff] %vm630_vm4, %v1515_v11 }
 0x493   : > { %v1725_v12 = vpop.permute.xlu1 %1724 }
 0x494   : > { %v1563_v13 = vpop.permute.xlu0 %1562  ;;  %1741 = vst.msk [vmem:[#allocation4 + $0xb0] sm:$0xff] %vm679_vm5, %v1725_v12 }
 0x495   : > { %1580 = vst.msk [vmem:[#allocation4 + $0x90] sm:$0xff] %vm679_vm5, %v1563_v13 }
 0x496   : > { %v1774_v15 = vld [vmem:[#allocation4 + $0x80] sm:$0xff] }
 0x497   : > { %v1789_v16 = vpack.c.bf16 %v1774_v15, %v1771_v14  ;;  %v1565_v55 = vpop.permute.xlu1 %1564  ;;  %v1773_v59 = vld [vmem:[#allocation4 + $0x78] sm:$0xff] }
 0x498   : > { %1581 = vst.msk [vmem:[#allocation4 + $0xa8] sm:$0xff] %vm679_vm5, %v1565_v55  ;;  %v1788_v18 = vpack.c.bf16 %v1773_v59, %v1770_v17 }
 0x499   : > { %1999 = vmatprep.mubr.bf16.mxu1 %v1789_v16 }
 0x49a   : > { %2000 = vmatmul.mubr.bf16.gmra.mxu1 %v1788_v18 }
 0x49b   : > { %v1780_v20 = vld [vmem:[#allocation4 + $0xb0] sm:$0xff] }
 0x49c   : > { %v1792_v21 = vpack.c.bf16 %v1780_v20, %v1777_v19  ;;  %v1776_v22 = vld [vmem:[#allocation4 + $0x90] sm:$0xff] }
 0x49e   : > { %2007 = vmatprep.mubr.bf16.mxu1 %v1792_v21 }
 0x49f   : > { %v1779_v23 = vld [vmem:[#allocation4 + $0xa8] sm:$0xff] }
 0x4a0   : > { %v1791_v24 = vpack.c.bf16 %v1779_v23, %v1776_v22 }
 0x4a2   : > { %2008 = vmatmul.mubr.bf16.gmra.mxu1 %v1791_v24 }
 0x4ba   : > { %v2528_v25 = vpop.f32.mrf.mxu0 }
 0x4bc   : > { %v2050_v26 = vpop.f32.mrf.mxu0 }
 0x4be   : > { %v2529_v30 = vpop.f32.mrf.mxu0 }
 0x4c0   : > { %v2053_v35 = vpop.f32.mrf.mxu0 }
 0x4c2   : > { %v2532_v45 = vpop.f32.mrf.mxu0 }
 0x4c4   : > { %v2066_v46 = vpop.f32.mrf.mxu0 }
 0x4c6   : > { %v2533_v50 = vpop.f32.mrf.mxu0 }
 0x4c8   : > { %v2069_v56 = vpop.f32.mrf.mxu0 }
 0x530   : > { %v2456_v27 = vpop.f32.mrf.mxu1 }
 0x532   : > { %v2457_v28 = vpop.f32.mrf.mxu1 }
 0x533   : > { %v2458_v29 = vadd.f32 %v2457_v28, %v2456_v27 }
 0x534   : > { %v2459_v31 = vpop.f32.mrf.mxu1 }
 0x535   : > { %v2051_v32 = vadd.f32 %v2458_v29, %v2050_v26 }
 0x536   : > { %v2460_v33 = vpop.f32.mrf.mxu1 }
 0x537   : > { %v2461_v34 = vadd.f32 %v2460_v33, %v2459_v31  ;;  %2089 = vrot.lane.b32.xlu0 %v2051_v32, %s2601_s15 }
 0x539   : > { %v2054_v36 = vadd.f32 %v2461_v34, %v2053_v35 }
 0x53b   : > { %2091 = vrot.lane.b32.xlu1 %v2054_v36, %s2601_s15 }
 0x547   : > { %v2462_v37 = vpop.f32.mrf.mxu1 }
 0x549   : > { %v2463_v38 = vpop.f32.mrf.mxu1 }
 0x54a   : > { %v2464_v39 = vadd.f32 %v2463_v38, %v2462_v37 }
 0x54b   : > { %v2465_v40 = vpop.f32.mrf.mxu1 }
 0x54c   : > { %v2059_v41 = vadd.f32 %v2528_v25, %v2464_v39 }
 0x54d   : > { %v2466_v42 = vpop.f32.mrf.mxu1 }
 0x54e   : > { %v2467_v43 = vadd.f32 %v2466_v42, %v2465_v40  ;;  %2093 = vrot.lane.b32.xlu0 %v2059_v41, %s2601_s15 }
 0x550   : > { %v2062_v44 = vadd.f32 %v2529_v30, %v2467_v43 }
 0x552   : > { %2095 = vrot.lane.b32.xlu1 %v2062_v44, %s2601_s15 }
 0x55a   : > { %v2468_v47 = vpop.f32.mrf.mxu1 }
 0x55c   : > { %v2469_v48 = vpop.f32.mrf.mxu1 }
 0x55d   : > { %v2470_v49 = vadd.f32 %v2469_v48, %v2468_v47 }
 0x55e   : > { %v2471_v51 = vpop.f32.mrf.mxu1 }
 0x55f   : > { %v2067_v52 = vadd.f32 %v2470_v49, %v2066_v46 }
 0x560   : > { %v2472_v53 = vpop.f32.mrf.mxu1 }
 0x561   : > { %v2473_v54 = vadd.f32 %v2472_v53, %v2471_v51  ;;  %2097 = vrot.lane.b32.xlu0 %v2067_v52, %s2601_s15 }
 0x562   : > { %v2474_v57 = vpop.f32.mrf.mxu1 }
 0x563   : > { %v2070_v58 = vadd.f32 %v2473_v54, %v2069_v56 }
 0x564   : > { %v2475_v60 = vpop.f32.mrf.mxu1 }
 0x565   : > { %v2476_v61 = vadd.f32 %v2475_v60, %v2474_v57  ;;  %2099 = vrot.lane.b32.xlu1 %v2070_v58, %s2601_s15 }
 0x566   : > { %v2477_v62 = vpop.f32.mrf.mxu1 }
 0x567   : > { %v2075_v63 = vadd.f32 %v2532_v45, %v2476_v61 }
 0x568   : > { %v2478_v0 = vpop.f32.mrf.mxu1 }
 0x569   : > { %v2479_v1 = vadd.f32 %v2478_v0, %v2477_v62  ;;  %2101 = vrot.lane.b32.xlu0 %v2075_v63, %s2601_s15 }
 0x56b   : > { %v2078_v2 = vadd.f32 %v2533_v50, %v2479_v1 }
 0x56d   : > { %2103 = vrot.lane.b32.xlu1 %v2078_v2, %s2601_s15 }
 0x5a9   : > { %v2090_v3 = vpop.permute.xlu0 %2089 }
 0x5aa   : > { %2114 = vst.msk [vmem:[#allocation2] sm:$0xff] %vm2113_vm7, %v2090_v3 }
 0x5ad   : > { %v2092_v4 = vpop.permute.xlu1 %2091 }
 0x5ae   : > { %2115 = vst.msk [vmem:[#allocation2 + $0x8] sm:$0xff] %vm2113_vm7, %v2092_v4 }
 0x5b1   : > { %v2122_v5 = vld [vmem:[#allocation2] sm:$0xff] }
 0x5b2   : > { %v2355_v6 = vpack.c.bf16 %v2122_v5, %v2122_v5 }
 0x5b4   : > { %2163 = vst.msk [vmem:[%s3291_s21] sm:$0xf] %vm2162_vm8, %v2355_v6 }
 0x5b5   : > { %v2123_v7 = vld [vmem:[#allocation2 + $0x8] sm:$0xff] }
 0x5b6   : > { %v2356_v8 = vpack.c.bf16 %v2123_v7, %v2123_v7 }
 0x5b8   : > { %2164 = vst.msk [vmem:[%s3291_s21 + $0x4] sm:$0xf] %vm2162_vm8, %v2356_v8 }
 0x5c0   : > { %v2094_v9 = vpop.permute.xlu0 %2093 }
 0x5c1   : > { %2116 = vst.msk [vmem:[#allocation2 + $0x10] sm:$0xff] %vm2113_vm7, %v2094_v9 }
 0x5c4   : > { %v2096_v10 = vpop.permute.xlu1 %2095 }
 0x5c5   : > { %2117 = vst.msk [vmem:[#allocation2 + $0x18] sm:$0xff] %vm2113_vm7, %v2096_v10 }
 0x5c8   : > { %v2124_v11 = vld [vmem:[#allocation2 + $0x10] sm:$0xff] }
 0x5c9   : > { %v2357_v12 = vpack.c.bf16 %v2124_v11, %v2124_v11 }
 0x5cb   : > { %2165 = vst.msk [vmem:[%s3291_s21 + $0x8] sm:$0xf] %vm2162_vm8, %v2357_v12 }
 0x5cc   : > { %v2125_v13 = vld [vmem:[#allocation2 + $0x18] sm:$0xff] }
 0x5cd   : > { %v2358_v14 = vpack.c.bf16 %v2125_v13, %v2125_v13 }
 0x5cf   : > { %2166 = vst.msk [vmem:[%s3291_s21 + $0xc] sm:$0xf] %vm2162_vm8, %v2358_v14 }
 0x5d3   : > { %v2098_v15 = vpop.permute.xlu0 %2097 }
 0x5d4   : > { %2118 = vst.msk [vmem:[#allocation2 + $0x20] sm:$0xff] %vm2113_vm7, %v2098_v15 }
 0x5d7   : > { %v2100_v16 = vpop.permute.xlu1 %2099 }
 0x5d8   : > { %2119 = vst.msk [vmem:[#allocation2 + $0x28] sm:$0xff] %vm2113_vm7, %v2100_v16 }
 0x5db   : > { %v2126_v55 = vld [vmem:[#allocation2 + $0x20] sm:$0xff]  ;;  %v2102_v17 = vpop.permute.xlu0 %2101 }
 0x5dc   : > { %v2359_v59 = vpack.c.bf16 %v2126_v55, %v2126_v55  ;;  %2120 = vst.msk [vmem:[#allocation2 + $0x30] sm:$0xff] %vm2113_vm7, %v2102_v17 }
 0x5de   : > { %2167 = vst.msk [vmem:[%s3291_s21 + $0x10] sm:$0xf] %vm2162_vm8, %v2359_v59 }
 0x5df   : > { %v2127_v18 = vld [vmem:[#allocation2 + $0x28] sm:$0xff]  ;;  %v2104_v19 = vpop.permute.xlu1 %2103 }
 0x5e0   : > { %v2360_v20 = vpack.c.bf16 %v2127_v18, %v2127_v18  ;;  %2121 = vst.msk [vmem:[#allocation2 + $0x38] sm:$0xff] %vm2113_vm7, %v2104_v19 }
 0x5e2   : > { %2168 = vst.msk [vmem:[%s3291_s21 + $0x14] sm:$0xf] %vm2162_vm8, %v2360_v20 }
 0x5e3   : > { %v2128_v21 = vld [vmem:[#allocation2 + $0x30] sm:$0xff] }
 0x5e4   : > { %v2361_v22 = vpack.c.bf16 %v2128_v21, %v2128_v21 }
 0x5e6   : > { %2169 = vst.msk [vmem:[%s3291_s21 + $0x18] sm:$0xf] %vm2162_vm8, %v2361_v22 }
 0x5e7   : > { %v2129_v23 = vld [vmem:[#allocation2 + $0x38] sm:$0xff] }
 0x5e8   : > { %v2362_v24 = vpack.c.bf16 %v2129_v23, %v2129_v23 }
 0x5ea   : > { %2170 = vst.msk [vmem:[%s3291_s21 + $0x1c] sm:$0xf] %vm2162_vm8, %v2362_v24 }
 0x5eb PF: > { %s17_s24 = sadd.s32 1, %s2594_s24  }
 0x5ec   : > { %p14_p4 = scmp.ge.s32.totalorder %s17_s24, 4  }
 0x5ee   :  { %16 = sbr.rel (!%p14_p4) target bundleno = 1 (0x1), region = 86 }

// kernel: chest_xray_forward.13
= control target key start
LH: loop header
LB: loop body
LE: loop exit
PB: predicated region body
PF: predicated region fallthrough
CT: control target
= control target key end

     0   :  { %s596_s15 = smov 0   ;;  %s644_s0 = inlined_call_operand.vmem [shape: bf16[2,16,32], index: 0, kind: input, shape index: {}]   ;;  %s645_s1 = inlined_call_operand.vmem [shape: f32[1,32], index: 1, kind: input, shape index: {}]   ;;  %s646_s2 = inlined_call_operand.vmem [shape: f32[1,32], index: 2, kind: input, shape index: {}]   ;;  %s647_s3 = inlined_call_operand.vmem [shape: bf16[32,16], index: 3, kind: input, shape index: {}]   ;;  %s648_s4 = inlined_call_operand.vmem [shape: bf16[2,4,16], index: 4, kind: output, shape index: {}]  }
   0x1 LB: > { %s508_s16 = sadd.s32 4294967295, %s566_s15   ;;  %p512_p0 = scmp.ge.s32.totalorder %s566_s15, 1  ;;  %s566_s15 = sphi %s596_s15, %s14_s15  }
   0x2   : > { %p162_p1 = scmp.lt.s32.totalorder %s566_s15, 3 }
   0x4   : > { %p163_p2 = pnand %p512_p0, %p162_p1 }
   0x5   : > { %p187_p3 = scmp.lt.s32.totalorder (!%p163_p2), %s508_s16, 1 }
   0x6   : > { %166 = sbr.rel (%p163_p2) target bundleno = 253 (0xfd), region = 36 }
   0xb   : > { %v558_v0 = vld [vmem:[%s647_s3 + $0x8] sm:$0xff]   ;;  %v568_v1 = vmov 0.0   ;;  %v559_v2 = vld [vmem:[%s647_s3] sm:$0xff]   ;;  %vm569_vm0 = vmmov 0   ;;  %s650_s16 = smov (!%p187_p3, %s508_s16), 1  ;;  %vm238_vm1 = vcmask 261120   ;;  %v289_v17 = vlaneseq }
   0xc   : > { %539 = vmatprep.subr.bf16.mxu0 %v568_v1  ;;  %543 = vmatprep.mubr.msk.bf16.mxu0 %vm569_vm0, %v568_v1  ;;  %s531_s21 = sshll.u32 %s650_s16, 3  ;;  %v516_v4 = vld [vmem:[%s645_s1] ss:$0 sm:$0xff]  ;;  %v570_v15 = vmov 1983009808   ;;  %vm436_vm2 = vcmask 1041409  }
   0xd   : > { %540 = vmatpush3.bf16.msra.mxu0 %v558_v0  ;;  %s191_s24 = scalar_lea.vmem %s644_s0, %s531_s21  ;;  %v517_v7 = vld [vmem:[%s646_s2] ss:$0 sm:$0xff]  ;;  %v287_v16 = vunpack.c.l.s4 %v570_v15  ;;  %v290_v19 = vshrl.u32 %v289_v17, 7  ;;  %vm439_vm3 = vcmask 1042434   ;;  %vm442_vm4 = vcmask 1043459   ;;  %s515_s29 = sshll.u32 %s650_s16, 1 }
   0xe   : > { %541 = vmatprep.subr.bf16.mxu0 %v568_v1  ;;  %v533_v3 = vld [vmem:[%s191_s24] sm:$0xff]   ;;  %s195_s6 = scalar_lea.vmem %s648_s4, %s515_s29  ;;  %vm453_vm5 = vcmask 123904  }
   0xf   : > { %v534_v5 = vunpack.c.l.bf16 %v533_v3  ;;  %v535_v6 = vunpack.c.h.bf16 %v533_v3  ;;  %v288_v18 = vunpack.c.0.s8 %v287_v16 }
  0x11   : > { %542 = vmatpush3.bf16.msra.mxu0 %v559_v2  ;;  %v208_v8 = vmul.f32 %v534_v5, %v516_v4  ;;  %v209_v9 = vmul.f32 %v535_v6, %v516_v4  ;;  %v622_v20 = vsub.s32 %v288_v18, %v290_v19 }
  0x13   : > { %v217_v10 = vadd.f32 %v517_v7, %v208_v8  ;;  %v218_v11 = vadd.f32 %v517_v7, %v209_v9 }
  0x15   : > { %v219_v12 = vmax.f32 %v217_v10, 0.0  ;;  %v220_v13 = vmax.f32 %v218_v11, 0.0 }
  0x17   : > { %v221_v14 = vpack.c.bf16 %v220_v13, %v219_v12 }
  0x19   : > { %544 = vmatmul.mubr.msk.bf16.vlgmr.msra.gmra.mxu0 %vm238_vm1, %v221_v14 }
  0xd9   : > { %v276_v21 = vpop.f32.mrf.mxu0 }
  0xda   : > { %v285_v22 = vcombine.high %v276_v21, %v276_v21  ;;  %v292_v23 = vrot.slane %v276_v21, %v622_v20 }
  0xdb   : > { %v545_v24 = vpop.f32.mrf.mxu0 }
  0xdc   : > { %v299_v25 = vrot.slane %v285_v22, %v622_v20  ;;  %v300_v26 = vcombine.high %v292_v23, %v292_v23  ;;  %v521_v27 = vrot.slane %v292_v23, 9 }
  0xdd   : > { %v279_v28 = vpop.f32.mrf.mxu0 }
  0xde   : > { %v301_v29 = vcombine.high %v299_v25, %v299_v25  ;;  %v522_v30 = vrot.slane %v300_v26, 9  ;;  %v339_v31 = vadd.f32 %v521_v27, %v292_v23  ;;  %v302_v32 = vcombine.high %v279_v28, %v279_v28 }
  0xdf   : > { %v309_v33 = vrot.slane %v279_v28, %v622_v20  ;;  %v546_v34 = vpop.f32.mrf.mxu0  ;;  %v525_v37 = vrot.slane %v299_v25, 9 }
  0xe0   : > { %v340_v35 = vadd.f32 %v522_v30, %v300_v26  ;;  %v343_v36 = vadd.f32 %v339_v31, %v299_v25  ;;  %v316_v38 = vrot.slane %v302_v32, %v622_v20  ;;  %v526_v42 = vrot.slane %v301_v29, 9 }
  0xe1   : > { %v317_v39 = vcombine.high %v309_v33, %v309_v33  ;;  %v523_v40 = vrot.slane %v309_v33, 9 }
  0xe2   : > { %v344_v41 = vadd.f32 %v340_v35, %v301_v29  ;;  %v359_v43 = vadd.f32 %v525_v37, %v343_v36  ;;  %v318_v44 = vcombine.high %v316_v38, %v316_v38  ;;  %v527_v51 = vrot.slane %v316_v38, 9 }
  0xe3   : > { %v524_v45 = vrot.slane %v317_v39, 9  ;;  %v341_v46 = vadd.f32 %v523_v40, %v309_v33 }
  0xe4   : > { %v360_v47 = vadd.f32 %v526_v42, %v344_v41  ;;  %v363_v48 = vmul.f32 0.25, %v359_v43  ;;  %v528_v55 = vrot.slane %v318_v44, 9 }
  0xe5   : > { %v342_v49 = vadd.f32 %v524_v45, %v317_v39  ;;  %v345_v50 = vadd.f32 %v341_v46, %v316_v38 }
  0xe6   : > { %v364_v52 = vmul.f32 0.25, %v360_v47  ;;  %v367_v53 = vpack.c.bf16 %v363_v48, %v363_v48 }
  0xe7   : > { %v346_v54 = vadd.f32 %v342_v49, %v318_v44  ;;  %v361_v56 = vadd.f32 %v527_v51, %v345_v50 }
  0xe8   : > { %v368_v57 = vpack.c.bf16 %v364_v52, %v364_v52  ;;  %v381_v58 = vrot.slane %v367_v53, %v622_v20 }
  0xe9   : > { %v362_v59 = vadd.f32 %v528_v55, %v346_v54  ;;  %v365_v60 = vmul.f32 0.25, %v361_v56 }
  0xea   : > { %v388_v61 = vrot.slane %v368_v57, %v622_v20  ;;  %v409_v0 = vrot.slane %v381_v58, %v622_v20 }
  0xeb   : > { %v366_v62 = vmul.f32 0.25, %v362_v59  ;;  %v369_v63 = vpack.c.bf16 %v365_v60, %v365_v60 }
  0xec   : > { %v416_v1 = vrot.slane %v388_v61, %v622_v20  ;;  %v431_v7 = vunpack.c.l.b16 %v409_v0 }
  0xed   : > { %v370_v2 = vpack.c.bf16 %v366_v62, %v366_v62  ;;  %v395_v3 = vrot.slane %v369_v63, %v622_v20 }
  0xee   : > { %v432_v4 = vunpack.c.l.b16 %v416_v1 }
  0xef   : > { %v402_v5 = vrot.slane %v370_v2, %v622_v20  ;;  %v423_v6 = vrot.slane %v395_v3, %v622_v20 }
  0xf0   : > { %v435_v8 = vrot.slane %v432_v4, 7 }
  0xf1   : > { %v430_v9 = vrot.slane %v402_v5, %v622_v20  ;;  %v433_v10 = vunpack.c.l.b16 %v423_v6 }
  0xf2   : > { %v437_v11 = vsel %vm436_vm2, %v435_v8, %v431_v7 }
  0xf3   : > { %v434_v12 = vunpack.c.l.b16 %v430_v9  ;;  %v438_v13 = vrot.slane %v433_v10, 6 }
  0xf5   : > { %v440_v14 = vsel %vm439_vm3, %v438_v13, %v437_v11  ;;  %v441_v15 = vrot.slane %v434_v12, 5 }
  0xf7   : > { %v443_v16 = vsel %vm442_vm4, %v441_v15, %v440_v14 }
  0xf8   : > { %v444_v17 = vpack.c.b16 %v443_v16, %v443_v16 }
  0xfa   : > { %v451_v18 = vrot.slane %v444_v17, %v622_v20 }
  0xfc   : > { %454 = vst.msk [vmem:[%s195_s6] sm:$0x3] %vm453_vm5, %v451_v18 }
  0xfd PF: > { %s14_s15 = sadd.s32 1, %s566_s15  }
  0xfe   : > { %p11_p4 = scmp.ge.s32.totalorder %s14_s15, 4  }
 0x100   :  { %13 = sbr.rel (!%p11_p4) target bundleno = 1 (0x1), region = 66 }

// kernel: chest_xray_forward.12
= control target key start
LH: loop header
LB: loop body
LE: loop exit
PB: predicated region body
PF: predicated region fallthrough
CT: control target
= control target key end

     0   :  { %s1811_s24 = smov 0   ;;  %s2139_s0 = inlined_call_operand.vmem [shape: bf16[2,16,16], index: 0, kind: input, shape index: {}]   ;;  %s2140_s1 = inlined_call_operand.vmem [shape: f32[2,1,32], index: 1, kind: input, shape index: {}]   ;;  %s2141_s2 = inlined_call_operand.vmem [shape: f32[2,1,32], index: 2, kind: input, shape index: {}]   ;;  %s2142_s3 = inlined_call_operand.vmem [shape: bf16[2,32,32], index: 3, kind: input, shape index: {}]   ;;  %s2143_s4 = inlined_call_operand.vmem [shape: f32[2,1,32], index: 4, kind: input, shape index: {}]   ;;  %s2144_s5 = inlined_call_operand.vmem [shape: f32[2,1,32], index: 5, kind: input, shape index: {}]   ;;  %s2145_s6 = inlined_call_operand.vmem [shape: bf16[2,288,8], index: 6, kind: input, shape index: {}]   ;;  %s2146_s7 = inlined_call_operand.vmem [shape: bf16[2,16,32], index: 7, kind: output, shape index: {}]  }
   0x1 LB: > { %s1480_s25 = sadd.s32 4294967295, %s1762_s24   ;;  %p1484_p0 = scmp.ge.s32.totalorder %s1762_s24, 1  ;;  %s1762_s24 = sphi %s1811_s24, %s17_s24  }
   0x2   : > { %p237_p1 = scmp.lt.s32.totalorder %s1762_s24, 3 }
   0x4   : > { %p238_p2 = pnand %p1484_p0, %p237_p1 }
   0x5   : > { %p269_p3 = scmp.lt.s32.totalorder (!%p238_p2), %s1480_s25, 1  ;;  %s1766_s15 = smov (!%p238_p2), 32  }
   0x6   : > { %241 = sbr.rel (%p238_p2) target bundleno = 1445 (0x5a5), region = 48  ;;  %s1767_s16 = smov (!%p238_p2), 64  }
   0x7   : > { %s1768_s27 = smov (!%p238_p2), 96   ;;  %s1769_s8 = smov (!%p238_p2), 16  }
   0xb   : > { %v1700_v0 = vld [vmem:[%s2142_s3 + $0x8] sm:$0xff]   ;;  %v1764_v1 = vmov 0.0   ;;  %v1701_v2 = vld [vmem:[%s2142_s3] sm:$0xff]   ;;  %vm1765_vm0 = vmmov 0   ;;  %vm280_vm1 = vcmask 261120   ;;  %vm283_vm2 = vcmask 259072  }
   0xc   : > { %1653 = vmatprep.subr.bf16.mxu1 %v1764_v1  ;;  %1661 = vmatprep.subr.bf16.mxu0 %v1764_v1  ;;  %281 = vst.msk [vmem:[#allocation2] sm:$0xff] %vm280_vm1, %v1764_v1  ;;  %282 = vst.msk [vmem:[#allocation2 + $0x8] sm:$0xff] %vm280_vm1, %v1764_v1  ;;  %s2148_s25 = smov (!%p269_p3, %s1480_s25), 1  ;;  %vm294_vm3 = vcmask 130048   ;;  %v1489_v6 = vld [vmem:[%s2140_s1] ss:$0 sm:$0xff] }
   0xd   : > { %1654 = vmatpush3.bf16.msra.mxu1 %v1700_v0  ;;  %1657 = vmatprep.mubr.msk.bf16.mxu1 %vm1765_vm0, %v1764_v1  ;;  %285 = vst.msk [vmem:[#allocation3 + $0x8] sm:$0x3f] %vm283_vm2, %v1764_v1  ;;  %286 = vst.msk [vmem:[#allocation3 + $0x10] sm:$0x3f] %vm283_vm2, %v1764_v1  ;;  %s1589_s30 = sshll.u32 %s2148_s25, 3  ;;  %vm407_vm4 = vcmask 257024  }
   0xe   : > { %1655 = vmatprep.subr.bf16.mxu1 %v1764_v1  ;;  %287 = vst.msk [vmem:[#allocation3 + $0x18] sm:$0x3f] %vm283_vm2, %v1764_v1  ;;  %284 = vst.msk [vmem:[#allocation3] sm:$0x3f] %vm283_vm2, %v1764_v1  ;;  %1665 = vmatprep.mubr.msk.bf16.mxu0 %vm1765_vm0, %v1764_v1  ;;  %s273_s10 = scalar_lea.vmem %s2139_s0, %s1589_s30  ;;  %v1490_v7 = vld [vmem:[%s2141_s2] ss:$0 sm:$0xff]  ;;  %s278_s21 = scalar_lea.vmem %s2146_s7, %s1589_s30 }
   0xf   : > { %288 = vst.msk [vmem:[#allocation3 + $0x20] sm:$0x3f] %vm283_vm2, %v1764_v1  ;;  %289 = vst.msk [vmem:[#allocation3 + $0x28] sm:$0x3f] %vm283_vm2, %v1764_v1  ;;  %v1594_v3 = vld [vmem:[%s273_s10] sm:$0xff]   ;;  %v1702_v21 = vld [vmem:[%s2145_s6 + $0x88] sm:$0xff]  }
  0x10   : > { %v1595_v4 = vunpack.c.l.bf16 %v1594_v3  ;;  %v1596_v5 = vunpack.c.h.bf16 %v1594_v3  ;;  %1662 = vmatpush3.bf16.msra.mxu0 %v1702_v21  ;;  %v1703_v22 = vld [vmem:[%s2145_s6 + $0x80] sm:$0xff]   ;;  %vm440_vm5 = vcmask 519424   ;;  %vm465_vm6 = vcmask 781824   ;;  %v1706_v54 = vld [vmem:[%s2145_s6 + $0x78] sm:$0xff]   ;;  %v1708_v61 = vld [vmem:[%s2145_s6 + $0x70] sm:$0xff]  }
  0x11   : > { %1656 = vmatpush3.bf16.msra.mxu1 %v1701_v2  ;;  %1663 = vmatprep.subr.bf16.mxu0 %v1764_v1  ;;  %v1494_v26 = vld [vmem:[%s2143_s4] ss:$0 sm:$0xff]  ;;  %v1707_v55 = vld [vmem:[%s2145_s6 + $0x38] sm:$0xff]   ;;  %v1709_v62 = vld [vmem:[%s2145_s6 + $0x30] sm:$0xff]   ;;  %vm490_vm7 = vcmask 1044224   ;;  %vm852_vm8 = vcmask 195712  }
  0x12   : > { %295 = vst.msk [vmem:[#allocation2] sm:$0xff] %vm294_vm3, %v1595_v4  ;;  %296 = vst.msk [vmem:[#allocation2 + $0x8] sm:$0xff] %vm294_vm3, %v1596_v5  ;;  %v1495_v28 = vld [vmem:[%s2144_s5] ss:$0 sm:$0xff]  ;;  %1600 = vmatprep.subr.bf16.mxu1 %v1706_v54  ;;  %v1710_v5 = vld [vmem:[%s2145_s6 + $0x68] sm:$0xff]   ;;  %vm1410_vm9 = vcmask 261312  }
  0x14   : > { %1664 = vmatpush3.bf16.msra.mxu0 %v1703_v22  ;;  %v1719_v22 = vld [vmem:[%s2145_s6 + $0x8] sm:$0xff]  }
  0x15   : > { %v420_v17 = vld [vmem:[#allocation3 + $0x1] sm:$0xf]  ;;  %1669 = vmatprep.subr.bf16.mxu0 %v1764_v1 }
  0x16   : > { %428 = vrot.lane.b32.xlu0 %v420_v17, %s1766_s15  ;;  %v531_v18 = vld [vmem:[#allocation3 + $0x28] sm:$0xf]  ;;  %v445_v19 = vld [vmem:[#allocation3 + $0x2] sm:$0xf] }
  0x17   : > { %542 = vrot.lane.b32.xlu1 %v531_v18, %s1767_s16  ;;  %v579_v20 = vld [vmem:[#allocation3 + $0x2a] sm:$0xf]  ;;  %v412_v23 = vld [vmem:[#allocation3] sm:$0xf] }
  0x18   : > { %583 = vst.msk [vmem:[#allocation4 + $0x2c] sm:$0xf] %vm407_vm4, %v579_v20  ;;  %416 = vst.msk [vmem:[#allocation4] sm:$0xf] %vm407_vm4, %v412_v23  ;;  %v1136_v59 = vld [vmem:[#allocation3 + $0x2a] sm:$0xf] }
  0x19   : > { %v297_v8 = vld [vmem:[#allocation2] sm:$0xff]  ;;  %v298_v9 = vld [vmem:[#allocation2 + $0x8] sm:$0xff]  ;;  %v1716_v17 = vld [vmem:[%s2145_s6 + $0x50] sm:$0xff]  }
  0x1a   : > { %v306_v10 = vmul.f32 %v1489_v6, %v297_v8  ;;  %v307_v11 = vmul.f32 %v1489_v6, %v298_v9  ;;  %453 = vrot.lane.b32.xlu0 %v445_v19, %s1767_s16  ;;  %v1711_v6 = vld [vmem:[%s2145_s6 + $0x28] sm:$0xff]   ;;  %v1712_v9 = vld [vmem:[%s2145_s6 + $0x60] sm:$0xff]   ;;  %v1717_v18 = vld [vmem:[%s2145_s6 + $0x10] sm:$0xff]  }
  0x1b   : > { %v1718_v19 = vld [vmem:[%s2145_s6 + $0x48] sm:$0xff]   ;;  %v1720_v23 = vld [vmem:[%s2145_s6 + $0x40] sm:$0xff]  }
  0x1c   : > { %v315_v12 = vadd.f32 %v1490_v7, %v306_v10  ;;  %v316_v13 = vadd.f32 %v1490_v7, %v307_v11  ;;  %v1713_v10 = vld [vmem:[%s2145_s6 + $0x20] sm:$0xff]  }
  0x1e   : > { %v317_v14 = vmax.f32 %v315_v12, 0.0  ;;  %v318_v15 = vmax.f32 %v316_v13, 0.0  ;;  %v1714_v13 = vld [vmem:[%s2145_s6 + $0x58] sm:$0xff]  }
  0x20   : > { %v319_v16 = vpack.c.bf16 %v318_v15, %v317_v14  ;;  %v1715_v14 = vld [vmem:[%s2145_s6 + $0x18] sm:$0xff]  }
  0x22   : > { %1658 = vmatmul.mubr.msk.bf16.vlgmr.msra.gmra.mxu1 %vm280_vm1, %v319_v16 }
  0x23   : > { %1601 = vmatpush3.bf16.msra.mxu1 %v1707_v55 }
  0x24   : > { %1602 = vmatprep.subr.bf16.mxu1 %v1708_v61 }
  0x27   : > { %1603 = vmatpush3.bf16.msra.mxu1 %v1709_v62  ;;  %v1729_v62 = vld [vmem:[%s2142_s3 + $0x10] sm:$0xff]  }
  0x28   : > { %1604 = vmatprep.subr.bf16.mxu1 %v1710_v5 }
  0x2b   : > { %1605 = vmatpush3.bf16.msra.mxu1 %v1711_v6 }
  0x2c   : > { %1606 = vmatprep.subr.bf16.mxu1 %v1712_v9  ;;  %v1516_v9 = vld [vmem:[%s2140_s1 + $0x1] ss:$0 sm:$0xff] }
  0x2f   : > { %1607 = vmatpush3.bf16.msra.mxu1 %v1713_v10 }
  0x30   : > { %1608 = vmatprep.subr.bf16.mxu1 %v1714_v13 }
  0x33   : > { %1609 = vmatpush3.bf16.msra.mxu1 %v1715_v14 }
  0x34   : > { %1610 = vmatprep.subr.bf16.mxu1 %v1716_v17 }
  0x37   : > { %1611 = vmatpush3.bf16.msra.mxu1 %v1717_v18 }
  0x38   : > { %1612 = vmatprep.subr.bf16.mxu1 %v1718_v19 }
  0x3b   : > { %1613 = vmatpush3.bf16.msra.mxu1 %v1719_v22  ;;  %v1005_v22 = vld [vmem:[#allocation3 + $0x2] sm:$0xf] }
  0x3c   : > { %1614 = vmatprep.subr.bf16.mxu1 %v1720_v23  ;;  %v1730_v23 = vld [vmem:[%s2145_s6 + $0x118] sm:$0xff]  }
  0x88   : > { %v429_v24 = vpop.permute.xlu0 %428 }
  0x89   : > { %441 = vst.msk [vmem:[#allocation4] sm:$0xf] %vm440_vm5, %v429_v24 }
  0x8c   : > { %v454_v25 = vpop.permute.xlu0 %453 }
  0x8d   : > { %466 = vst.msk [vmem:[#allocation4] sm:$0xf] %vm465_vm6, %v454_v25 }
  0xe2   : > { %v373_v27 = vpop.f32.mrf.mxu1 }
  0xe3   : > { %v387_v29 = vmul.f32 %v1494_v26, %v373_v27  ;;  %v555_v27 = vld [vmem:[#allocation3 + $0x29] sm:$0xf] }
  0xe4   : > { %v1659_v30 = vpop.f32.mrf.mxu1 }
  0xe5   : > { %v396_v31 = vadd.f32 %v1495_v28, %v387_v29 }
  0xe6   : > { %v376_v32 = vpop.f32.mrf.mxu1 }
  0xe7   : > { %v398_v33 = vmax.f32 %v396_v31, 0.0  ;;  %v388_v34 = vmul.f32 %v1494_v26, %v376_v32  ;;  %v1721_v26 = vld [vmem:[%s2145_s6] sm:$0xff]  }
  0xe8   : > { %v1660_v35 = vpop.f32.mrf.mxu1  ;;  %1615 = vmatpush3.bf16.msra.mxu1 %v1721_v26  ;;  %v1527_v26 = vld [vmem:[%s2143_s4 + $0x1] ss:$0 sm:$0xff] }
  0xe9   : > { %v402_v36 = vcombine.high %v398_v33, %v398_v33  ;;  %408 = vst.msk [vmem:[#allocation3 + $0x9] sm:$0xf] %vm407_vm4, %v398_v33  ;;  %v397_v37 = vadd.f32 %v1495_v28, %v388_v34  ;;  %1677 = vmatprep.subr.bf16.mxu1 %v1764_v1  ;;  %v543_v28 = vpop.permute.xlu1 %542 }
  0xeb   : > { %409 = vst.msk [vmem:[#allocation3 + $0x11] sm:$0xf] %vm407_vm4, %v402_v36  ;;  %v399_v38 = vmax.f32 %v397_v37, 0.0 }
  0xed   : > { %v403_v39 = vcombine.high %v399_v38, %v399_v38  ;;  %410 = vst.msk [vmem:[#allocation3 + $0x19] sm:$0xf] %vm407_vm4, %v399_v38 }
  0xef   : > { %411 = vst.msk [vmem:[#allocation3 + $0x21] sm:$0xf] %vm407_vm4, %v403_v39 }
  0xf0   : > { %v446_v40 = vld [vmem:[#allocation3 + $0xa] sm:$0xf] }
  0xf1   : > { %v421_v41 = vld [vmem:[#allocation3 + $0x9] sm:$0xf]  ;;  %455 = vrot.lane.b32.xlu1 %v446_v40, %s1767_s16 }
  0xf2   : > { %430 = vrot.lane.b32.xlu0 %v421_v41, %s1766_s15  ;;  %v413_v42 = vld [vmem:[#allocation3 + $0x8] sm:$0xf]  ;;  %v576_v44 = vld [vmem:[#allocation3 + $0x12] sm:$0xf] }
  0xf3   : > { %v495_v43 = vld [vmem:[#allocation3 + $0x9] sm:$0xf]  ;;  %417 = vst.msk [vmem:[#allocation4 + $0xc] sm:$0xf] %vm407_vm4, %v413_v42  ;;  %580 = vst.msk [vmem:[#allocation4 + $0x8] sm:$0xf] %vm407_vm4, %v576_v44 }
  0xf4   : > { %499 = vst.msk [vmem:[#allocation4 + $0x4] sm:$0xf] %vm407_vm4, %v495_v43  ;;  %v577_v45 = vld [vmem:[#allocation3 + $0x1a] sm:$0xf]  ;;  %v503_v46 = vld [vmem:[#allocation3 + $0xa] sm:$0xf] }
  0xf5   : > { %v422_v47 = vld [vmem:[#allocation3 + $0x11] sm:$0xf]  ;;  %581 = vst.msk [vmem:[#allocation4 + $0x14] sm:$0xf] %vm407_vm4, %v577_v45  ;;  %v470_v49 = vld [vmem:[#allocation3 + $0x8] sm:$0xf] }
  0xf6   : > { %511 = vrot.lane.b32.xlu0 %v503_v46, %s1766_s15  ;;  %432 = vrot.lane.b32.xlu1 %v422_v47, %s1766_s15  ;;  %v578_v48 = vld [vmem:[#allocation3 + $0x22] sm:$0xf]  ;;  %v504_v50 = vld [vmem:[#allocation3 + $0x12] sm:$0xf]  ;;  %v415_v53 = vld [vmem:[#allocation3 + $0x18] sm:$0xf] }
  0xf7   : > { %582 = vst.msk [vmem:[#allocation4 + $0x20] sm:$0xf] %vm407_vm4, %v578_v48  ;;  %v414_v51 = vld [vmem:[#allocation3 + $0x10] sm:$0xf]  ;;  %419 = vst.msk [vmem:[#allocation4 + $0x24] sm:$0xf] %vm407_vm4, %v415_v53 }
  0xf8   : > { %v496_v52 = vld [vmem:[#allocation3 + $0x11] sm:$0xf]  ;;  %418 = vst.msk [vmem:[#allocation4 + $0x18] sm:$0xf] %vm407_vm4, %v414_v51  ;;  %v497_v56 = vld [vmem:[#allocation3 + $0x19] sm:$0xf] }
  0xf9   : > { %500 = vst.msk [vmem:[#allocation4 + $0x10] sm:$0xf] %vm407_vm4, %v496_v52  ;;  %v498_v57 = vld [vmem:[#allocation3 + $0x21] sm:$0xf]  ;;  %v447_v58 = vld [vmem:[#allocation3 + $0x12] sm:$0xf] }
  0xfa   : > { %478 = vrot.lane.b32.xlu0 %v470_v49, %s1768_s27  ;;  %513 = vrot.lane.b32.xlu1 %v504_v50, %s1766_s15  ;;  %501 = vst.msk [vmem:[#allocation4 + $0x1c] sm:$0xf] %vm407_vm4, %v497_v56  ;;  %502 = vst.msk [vmem:[#allocation4 + $0x28] sm:$0xf] %vm407_vm4, %v498_v57  ;;  %v471_v60 = vld [vmem:[#allocation3 + $0x10] sm:$0xf] }
  0xfb   : > { %v528_v2 = vld [vmem:[#allocation3 + $0x10] sm:$0xf]  ;;  %v423_v3 = vld [vmem:[#allocation3 + $0x19] sm:$0xf]  ;;  %v530_v20 = vld [vmem:[#allocation3 + $0x20] sm:$0xf] }
  0xfc   : > { %v1704_v63 = vld [vmem:[#allocation4 + $0x8] ss:$12 sps:$4 sm:$0xff]   ;;  %v552_v7 = vld [vmem:[#allocation3 + $0x11] sm:$0xf]  ;;  %v473_v25 = vld [vmem:[#allocation3 + $0x20] sm:$0xf] }
  0xfd   : > { %v448_v8 = vld [vmem:[#allocation3 + $0x1a] sm:$0xf]  ;;  %v506_v21 = vld [vmem:[#allocation3 + $0x22] sm:$0xf] }
  0xfe   : > { %457 = vrot.lane.b32.xlu0 %v447_v58, %s1767_s16  ;;  %480 = vrot.lane.b32.xlu1 %v471_v60, %s1768_s27  ;;  %v1705_v0 = vld [vmem:[#allocation4 + $0x20] ss:$12 sps:$4 sm:$0xff]   ;;  %v529_v12 = vld [vmem:[#allocation3 + $0x18] sm:$0xf]  ;;  %v554_v24 = vld [vmem:[#allocation3 + $0x21] sm:$0xf] }
  0xff   : > { %1140 = vst.msk [vmem:[#allocation4 + $0x2c] sm:$0xf] %vm407_vm4, %v1136_v59  ;;  %v614_v4 = vpack.c.bf16 %v1705_v0, %v1704_v63  ;;  %v505_v11 = vld [vmem:[#allocation3 + $0x1a] sm:$0xf]  ;;  %v1728_v60 = vld [vmem:[%s2142_s3 + $0x18] sm:$0xff]  }
 0x100   : > { %v472_v15 = vld [vmem:[#allocation3 + $0x18] sm:$0xf] }
 0x101   : > { %1666 = vmatmul.mubr.msk.bf16.vlgmr.msra.gmra.mxu0 %vm280_vm1, %v614_v4  ;;  %v553_v16 = vld [vmem:[#allocation3 + $0x19] sm:$0xf] }
 0x102   : > { %536 = vrot.lane.b32.xlu0 %v528_v2, %s1767_s16  ;;  %434 = vrot.lane.b32.xlu1 %v423_v3, %s1766_s15 }
 0x103   : > { %1673 = vmatprep.mubr.msk.bf16.mxu0 %vm1765_vm0, %v1764_v1  ;;  %1670 = vmatpush3.bf16.msra.mxu0 %v1728_v60 }
 0x104   : > { %1671 = vmatprep.subr.bf16.mxu0 %v1764_v1 }
 0x106   : > { %560 = vrot.lane.b32.xlu0 %v552_v7, %s1768_s27  ;;  %459 = vrot.lane.b32.xlu1 %v448_v8, %s1767_s16 }
 0x107   : > { %1672 = vmatpush3.bf16.msra.mxu0 %v1729_v62  ;;  %v1737_v62 = vld [vmem:[%s2145_s6 + $0xc0] sm:$0xff]  }
 0x10a   : > { %515 = vrot.lane.b32.xlu0 %v505_v11, %s1766_s15  ;;  %538 = vrot.lane.b32.xlu1 %v529_v12, %s1767_s16  ;;  %v1518_v12 = vld [vmem:[%s2141_s2 + $0x1] ss:$0 sm:$0xff] }
 0x10e   : > { %482 = vrot.lane.b32.xlu0 %v472_v15, %s1768_s27  ;;  %562 = vrot.lane.b32.xlu1 %v553_v16, %s1768_s27 }
 0x112   : > { %540 = vrot.lane.b32.xlu0 %v530_v20, %s1767_s16  ;;  %517 = vrot.lane.b32.xlu1 %v506_v21, %s1766_s15  ;;  %v981_v20 = vld [vmem:[#allocation3 + $0x1] sm:$0xf]  ;;  %v1088_v21 = vld [vmem:[#allocation3 + $0x28] sm:$0xf] }
 0x116   : > { %564 = vrot.lane.b32.xlu0 %v554_v24, %s1768_s27  ;;  %484 = vrot.lane.b32.xlu1 %v473_v25, %s1768_s27  ;;  %v1731_v24 = vld [vmem:[%s2145_s6 + $0x110] sm:$0xff]  }
 0x117   : > { %v973_v25 = vld [vmem:[#allocation3] sm:$0xf] }
 0x11a   : > { %566 = vrot.lane.b32.xlu1 %v555_v27, %s1768_s27 }
 0x163   : > { %v456_v29 = vpop.permute.xlu1 %455 }
 0x164   : > { %v431_v30 = vpop.permute.xlu0 %430 }
 0x165   : > { %442 = vst.msk [vmem:[#allocation4 + $0xc] sm:$0xf] %vm440_vm5, %v431_v30 }
 0x166   : > { %467 = vst.msk [vmem:[#allocation4 + $0xc] sm:$0xf] %vm465_vm6, %v456_v29  ;;  %v1529_v29 = vld [vmem:[%s2144_s5 + $0x1] ss:$0 sm:$0xff] }
 0x168   : > { %v512_v31 = vpop.permute.xlu0 %511  ;;  %v433_v32 = vpop.permute.xlu1 %432 }
 0x169   : > { %523 = vst.msk [vmem:[#allocation4 + $0x4] sm:$0xf] %vm440_vm5, %v512_v31  ;;  %443 = vst.msk [vmem:[#allocation4 + $0x18] sm:$0xf] %vm440_vm5, %v433_v32 }
 0x16c   : > { %v479_v33 = vpop.permute.xlu0 %478  ;;  %v514_v34 = vpop.permute.xlu1 %513 }
 0x16d   : > { %491 = vst.msk [vmem:[#allocation4] sm:$0xf] %vm490_vm7, %v479_v33 }
 0x16e   : > { %524 = vst.msk [vmem:[#allocation4 + $0x10] sm:$0xf] %vm440_vm5, %v514_v34 }
 0x170   : > { %v458_v35 = vpop.permute.xlu0 %457  ;;  %v481_v36 = vpop.permute.xlu1 %480 }
 0x171   : > { %468 = vst.msk [vmem:[#allocation4 + $0x18] sm:$0xf] %vm465_vm6, %v458_v35 }
 0x172   : > { %492 = vst.msk [vmem:[#allocation4 + $0xc] sm:$0xf] %vm490_vm7, %v481_v36 }
 0x174   : > { %v537_v37 = vpop.permute.xlu0 %536  ;;  %v435_v38 = vpop.permute.xlu1 %434 }
 0x175   : > { %548 = vst.msk [vmem:[#allocation4 + $0x4] sm:$0xf] %vm465_vm6, %v537_v37 }
 0x176   : > { %444 = vst.msk [vmem:[#allocation4 + $0x24] sm:$0xf] %vm440_vm5, %v435_v38 }
 0x178   : > { %v561_v39 = vpop.permute.xlu0 %560  ;;  %v460_v40 = vpop.permute.xlu1 %459 }
 0x179   : > { %572 = vst.msk [vmem:[#allocation4 + $0x4] sm:$0xf] %vm490_vm7, %v561_v39  ;;  %v1726_v51 = vld [vmem:[#allocation4] ss:$12 sps:$4 sm:$0xff]  }
 0x17a   : > { %469 = vst.msk [vmem:[#allocation4 + $0x24] sm:$0xf] %vm465_vm6, %v460_v40 }
 0x17b   : > { %977 = vst.msk [vmem:[#allocation4] sm:$0xf] %vm407_vm4, %v973_v25 }
 0x17c   : > { %v516_v41 = vpop.permute.xlu0 %515  ;;  %v539_v42 = vpop.permute.xlu1 %538 }
 0x17d   : > { %525 = vst.msk [vmem:[#allocation4 + $0x1c] sm:$0xf] %vm440_vm5, %v516_v41 }
 0x17e   : > { %549 = vst.msk [vmem:[#allocation4 + $0x10] sm:$0xf] %vm465_vm6, %v539_v42 }
 0x180   : > { %v483_v43 = vpop.permute.xlu0 %482  ;;  %v563_v44 = vpop.permute.xlu1 %562 }
 0x181   : > { %493 = vst.msk [vmem:[#allocation4 + $0x18] sm:$0xf] %vm490_vm7, %v483_v43  ;;  %573 = vst.msk [vmem:[#allocation4 + $0x10] sm:$0xf] %vm490_vm7, %v563_v44 }
 0x184   : > { %v541_v45 = vpop.permute.xlu0 %540  ;;  %v518_v46 = vpop.permute.xlu1 %517 }
 0x185   : > { %550 = vst.msk [vmem:[#allocation4 + $0x1c] sm:$0xf] %vm465_vm6, %v541_v45 }
 0x186   : > { %526 = vst.msk [vmem:[#allocation4 + $0x28] sm:$0xf] %vm440_vm5, %v518_v46 }
 0x187   : > { %551 = vst.msk [vmem:[#allocation4 + $0x28] sm:$0xf] %vm465_vm6, %v543_v28 }
 0x188   : > { %v565_v47 = vpop.permute.xlu0 %564  ;;  %v485_v48 = vpop.permute.xlu1 %484  ;;  %v1722_v50 = vld [vmem:[#allocation4 + $0x4] ss:$12 sps:$4 sm:$0xff]  }
 0x189   : > { %574 = vst.msk [vmem:[#allocation4 + $0x1c] sm:$0xf] %vm490_vm7, %v565_v47  ;;  %494 = vst.msk [vmem:[#allocation4 + $0x24] sm:$0xf] %vm490_vm7, %v485_v48 }
 0x18c   : > { %v567_v49 = vpop.permute.xlu1 %566 }
 0x18d   : > { %575 = vst.msk [vmem:[#allocation4 + $0x28] sm:$0xf] %vm490_vm7, %v567_v49 }
 0x190   : > { %v1727_v53 = vld [vmem:[#allocation4 + $0x18] ss:$12 sps:$4 sm:$0xff]  }
 0x191   : > { %v612_v55 = vpack.c.bf16 %v1727_v53, %v1726_v51 }
 0x194   : > { %v1724_v52 = vld [vmem:[#allocation4 + $0x1c] ss:$12 sps:$4 sm:$0xff]  }
 0x195   : > { %v613_v54 = vpack.c.bf16 %v1724_v52, %v1722_v50 }
 0x197   : > { %794 = vmatprep.mubr.bf16.mxu1 %v613_v54 }
 0x198   : > { %795 = vmatmul.mubr.bf16.vlgmr.msra.gmra.mxu1 %v612_v55  ;;  %v1734_v55 = vld [vmem:[%s2145_s6 + $0x108] sm:$0xff]  }
 0x199   : > { %1681 = vmatprep.mubr.msk.bf16.mxu1 %vm1765_vm0, %v1764_v1  ;;  %1678 = vmatpush3.bf16.msra.mxu1 %v1730_v23  ;;  %v1748_v23 = vld [vmem:[%s2145_s6 + $0xd0] sm:$0xff]  }
 0x19a   : > { %1679 = vmatprep.subr.bf16.mxu1 %v1764_v1  ;;  %1628 = vmatprep.subr.bf16.mxu0 %v1734_v55 }
 0x19d   : > { %1680 = vmatpush3.bf16.msra.mxu1 %v1731_v24 }
 0x1c1   : > { %v837_v56 = vpop.f32.mrf.mxu0 }
 0x1c3   : > { %v1667_v57 = vpop.f32.mrf.mxu0 }
 0x1c5   : > { %v840_v58 = vpop.f32.mrf.mxu0 }
 0x1c7   : > { %v1668_v59 = vpop.f32.mrf.mxu0 }
 0x258   : > { %v1616_v61 = vpop.f32.mrf.mxu1 }
 0x25a   : > { %v1617_v63 = vpop.f32.mrf.mxu1 }
 0x25b   : > { %v1618_v0 = vadd.f32 %v1617_v63, %v1616_v61  ;;  %v1736_v61 = vld [vmem:[%s2145_s6 + $0x100] sm:$0xff]  }
 0x25c   : > { %v1619_v2 = vpop.f32.mrf.mxu1 }
 0x25d   : > { %v838_v3 = vadd.f32 %v1618_v0, %v837_v56  ;;  %v1735_v56 = vld [vmem:[%s2145_s6 + $0xc8] sm:$0xff]  }
 0x25e   : > { %v1620_v4 = vpop.f32.mrf.mxu1 }
 0x25f   : > { %v1621_v5 = vadd.f32 %v1620_v4, %v1619_v2  ;;  %846 = vrot.lane.b32.xlu0 %v838_v3, %s1769_s8 }
 0x261   : > { %v841_v6 = vadd.f32 %v1621_v5, %v840_v58  ;;  %v1738_v5 = vld [vmem:[%s2145_s6 + $0xf8] sm:$0xff]  }
 0x263   : > { %848 = vrot.lane.b32.xlu1 %v841_v6, %s1769_s8  ;;  %989 = vrot.lane.b32.xlu0 %v981_v20, %s1766_s15  ;;  %v1739_v6 = vld [vmem:[%s2145_s6 + $0xb8] sm:$0xff]  }
 0x267   : > { %1099 = vrot.lane.b32.xlu1 %v1088_v21, %s1767_s16  ;;  %1013 = vrot.lane.b32.xlu0 %v1005_v22, %s1767_s16  ;;  %v1747_v22 = vld [vmem:[%s2145_s6 + $0x98] sm:$0xff]  }
 0x2d1   : > { %v847_v7 = vpop.permute.xlu0 %846 }
 0x2d2   : > { %853 = vst.msk [vmem:[#allocation2] sm:$0xff] %vm852_vm8, %v847_v7 }
 0x2d5   : > { %v849_v8 = vpop.permute.xlu1 %848  ;;  %v990_v27 = vpop.permute.xlu0 %989 }
 0x2d6   : > { %854 = vst.msk [vmem:[#allocation2 + $0x8] sm:$0xff] %vm852_vm8, %v849_v8 }
 0x2d7   : > { %1001 = vst.msk [vmem:[#allocation4] sm:$0xf] %vm440_vm5, %v990_v27  ;;  %v1112_v27 = vld [vmem:[#allocation3 + $0x29] sm:$0xf] }
 0x2d9   : > { %v855_v10 = vld [vmem:[#allocation2] sm:$0xff]  ;;  %v1014_v32 = vpop.permute.xlu0 %1013 }
 0x2da   : > { %v865_v11 = vmul.f32 %v1516_v9, %v855_v10  ;;  %1025 = vst.msk [vmem:[#allocation4] sm:$0xf] %vm465_vm6, %v1014_v32  ;;  %v1741_v10 = vld [vmem:[%s2145_s6 + $0xb0] sm:$0xff]  }
 0x2dc   : > { %v875_v15 = vadd.f32 %v1518_v12, %v865_v11 }
 0x2dd   : > { %v856_v13 = vld [vmem:[#allocation2 + $0x8] sm:$0xff] }
 0x2de   : > { %v866_v14 = vmul.f32 %v1516_v9, %v856_v13  ;;  %v877_v17 = vmax.f32 %v875_v15, 0.0  ;;  %v1740_v9 = vld [vmem:[%s2145_s6 + $0xf0] sm:$0xff]   ;;  %v1742_v13 = vld [vmem:[%s2145_s6 + $0xe8] sm:$0xff]  }
 0x2e0   : > { %v876_v16 = vadd.f32 %v1518_v12, %v866_v14  ;;  %v1743_v14 = vld [vmem:[%s2145_s6 + $0xa8] sm:$0xff]  }
 0x2e2   : > { %v878_v18 = vmax.f32 %v876_v16, 0.0 }
 0x2e4   : > { %v879_v19 = vpack.c.bf16 %v878_v18, %v877_v17  ;;  %v1744_v17 = vld [vmem:[%s2145_s6 + $0xe0] sm:$0xff]  }
 0x2e5   : > { %v1745_v18 = vld [vmem:[%s2145_s6 + $0xa0] sm:$0xff]  }
 0x2e6   : > { %1674 = vmatmul.mubr.msk.bf16.vlgmr.msra.gmra.mxu0 %vm280_vm1, %v879_v19  ;;  %v1746_v19 = vld [vmem:[%s2145_s6 + $0xd8] sm:$0xff]  }
 0x2e7   : > { %1629 = vmatpush3.bf16.msra.mxu0 %v1735_v56 }
 0x2e8   : > { %1630 = vmatprep.subr.bf16.mxu0 %v1736_v61 }
 0x2eb   : > { %1631 = vmatpush3.bf16.msra.mxu0 %v1737_v62 }
 0x2ec   : > { %1632 = vmatprep.subr.bf16.mxu0 %v1738_v5 }
 0x2ef   : > { %1633 = vmatpush3.bf16.msra.mxu0 %v1739_v6 }
 0x2f0   : > { %1634 = vmatprep.subr.bf16.mxu0 %v1740_v9 }
 0x2f3   : > { %1635 = vmatpush3.bf16.msra.mxu0 %v1741_v10 }
 0x2f4   : > { %1636 = vmatprep.subr.bf16.mxu0 %v1742_v13 }
 0x2f7   : > { %1637 = vmatpush3.bf16.msra.mxu0 %v1743_v14 }
 0x2f8   : > { %1638 = vmatprep.subr.bf16.mxu0 %v1744_v17 }
 0x2fb   : > { %1639 = vmatpush3.bf16.msra.mxu0 %v1745_v18 }
 0x2fc   : > { %1640 = vmatprep.subr.bf16.mxu0 %v1746_v19 }
 0x2ff   : > { %1641 = vmatpush3.bf16.msra.mxu0 %v1747_v22 }
 0x300   : > { %1642 = vmatprep.subr.bf16.mxu0 %v1748_v23 }
 0x3a6   : > { %v934_v28 = vpop.f32.mrf.mxu0 }
 0x3a7   : > { %v949_v1 = vmul.f32 %v1527_v26, %v934_v28  ;;  %v1100_v28 = vpop.permute.xlu1 %1099 }
 0x3a8   : > { %v1675_v30 = vpop.f32.mrf.mxu0 }
 0x3a9   : > { %v959_v31 = vadd.f32 %v1529_v29, %v949_v1 }
 0x3aa   : > { %v937_v33 = vpop.f32.mrf.mxu0 }
 0x3ab   : > { %v961_v34 = vmax.f32 %v959_v31, 0.0  ;;  %v950_v35 = vmul.f32 %v1527_v26, %v937_v33  ;;  %v1749_v26 = vld [vmem:[%s2145_s6 + $0x90] sm:$0xff]  }
 0x3ac   : > { %v1676_v36 = vpop.f32.mrf.mxu0  ;;  %1643 = vmatpush3.bf16.msra.mxu0 %v1749_v26 }
 0x3ad   : > { %v965_v37 = vcombine.high %v961_v34, %v961_v34  ;;  %969 = vst.msk [vmem:[#allocation3 + $0x9] sm:$0xf] %vm407_vm4, %v961_v34  ;;  %v960_v38 = vadd.f32 %v1529_v29, %v950_v35 }
 0x3af   : > { %970 = vst.msk [vmem:[#allocation3 + $0x11] sm:$0xf] %vm407_vm4, %v965_v37  ;;  %v962_v39 = vmax.f32 %v960_v38, 0.0 }
 0x3b1   : > { %v966_v40 = vcombine.high %v962_v39, %v962_v39  ;;  %971 = vst.msk [vmem:[#allocation3 + $0x19] sm:$0xf] %vm407_vm4, %v962_v39 }
 0x3b3   : > { %972 = vst.msk [vmem:[#allocation3 + $0x21] sm:$0xf] %vm407_vm4, %v966_v40 }
 0x3b4   : > { %v1061_v41 = vld [vmem:[#allocation3 + $0xa] sm:$0xf] }
 0x3b5   : > { %v982_v42 = vld [vmem:[#allocation3 + $0x9] sm:$0xf]  ;;  %1069 = vrot.lane.b32.xlu0 %v1061_v41, %s1766_s15 }
 0x3b6   : > { %991 = vrot.lane.b32.xlu1 %v982_v42, %s1766_s15  ;;  %v974_v43 = vld [vmem:[#allocation3 + $0x8] sm:$0xf]  ;;  %v1133_v45 = vld [vmem:[#allocation3 + $0x12] sm:$0xf] }
 0x3b7   : > { %v1053_v44 = vld [vmem:[#allocation3 + $0x9] sm:$0xf]  ;;  %978 = vst.msk [vmem:[#allocation4 + $0xc] sm:$0xf] %vm407_vm4, %v974_v43  ;;  %1137 = vst.msk [vmem:[#allocation4 + $0x8] sm:$0xf] %vm407_vm4, %v1133_v45 }
 0x3b8   : > { %1057 = vst.msk [vmem:[#allocation4 + $0x4] sm:$0xf] %vm407_vm4, %v1053_v44  ;;  %v1029_v46 = vld [vmem:[#allocation3 + $0x8] sm:$0xf]  ;;  %v1134_v48 = vld [vmem:[#allocation3 + $0x1a] sm:$0xf] }
 0x3b9   : > { %v1006_v47 = vld [vmem:[#allocation3 + $0xa] sm:$0xf]  ;;  %1037 = vrot.lane.b32.xlu0 %v1029_v46, %s1768_s27  ;;  %1138 = vst.msk [vmem:[#allocation4 + $0x14] sm:$0xf] %vm407_vm4, %v1134_v48  ;;  %v1062_v50 = vld [vmem:[#allocation3 + $0x12] sm:$0xf] }
 0x3ba   : > { %1015 = vrot.lane.b32.xlu1 %v1006_v47, %s1767_s16  ;;  %v1135_v49 = vld [vmem:[#allocation3 + $0x22] sm:$0xf]  ;;  %v983_v51 = vld [vmem:[#allocation3 + $0x11] sm:$0xf]  ;;  %v976_v54 = vld [vmem:[#allocation3 + $0x18] sm:$0xf] }
 0x3bb   : > { %1139 = vst.msk [vmem:[#allocation4 + $0x20] sm:$0xf] %vm407_vm4, %v1135_v49  ;;  %v1054_v52 = vld [vmem:[#allocation3 + $0x11] sm:$0xf]  ;;  %980 = vst.msk [vmem:[#allocation4 + $0x24] sm:$0xf] %vm407_vm4, %v976_v54 }
 0x3bc   : > { %v975_v53 = vld [vmem:[#allocation3 + $0x10] sm:$0xf]  ;;  %1058 = vst.msk [vmem:[#allocation4 + $0x10] sm:$0xf] %vm407_vm4, %v1054_v52  ;;  %v1055_v57 = vld [vmem:[#allocation3 + $0x19] sm:$0xf] }
 0x3bd   : > { %993 = vrot.lane.b32.xlu0 %v983_v51, %s1766_s15  ;;  %979 = vst.msk [vmem:[#allocation4 + $0x18] sm:$0xf] %vm407_vm4, %v975_v53  ;;  %v1056_v58 = vld [vmem:[#allocation3 + $0x21] sm:$0xf]  ;;  %v1030_v59 = vld [vmem:[#allocation3 + $0x10] sm:$0xf] }
 0x3be   : > { %1071 = vrot.lane.b32.xlu1 %v1062_v50, %s1766_s15  ;;  %1059 = vst.msk [vmem:[#allocation4 + $0x1c] sm:$0xf] %vm407_vm4, %v1055_v57  ;;  %1060 = vst.msk [vmem:[#allocation4 + $0x28] sm:$0xf] %vm407_vm4, %v1056_v58  ;;  %v1007_v60 = vld [vmem:[#allocation3 + $0x12] sm:$0xf] }
 0x3bf   : > { %v1085_v2 = vld [vmem:[#allocation3 + $0x10] sm:$0xf]  ;;  %v984_v3 = vld [vmem:[#allocation3 + $0x19] sm:$0xf]  ;;  %v1087_v20 = vld [vmem:[#allocation3 + $0x20] sm:$0xf] }
 0x3c0   : > { %v1732_v63 = vld [vmem:[#allocation4 + $0x8] ss:$12 sps:$4 sm:$0xff]   ;;  %v1109_v7 = vld [vmem:[#allocation3 + $0x11] sm:$0xf]  ;;  %v1032_v25 = vld [vmem:[#allocation3 + $0x20] sm:$0xf] }
 0x3c1   : > { %1017 = vrot.lane.b32.xlu0 %v1007_v60, %s1767_s16  ;;  %v1008_v8 = vld [vmem:[#allocation3 + $0x1a] sm:$0xf]  ;;  %v1064_v21 = vld [vmem:[#allocation3 + $0x22] sm:$0xf] }
 0x3c2   : > { %1039 = vrot.lane.b32.xlu1 %v1030_v59, %s1768_s27  ;;  %v1733_v0 = vld [vmem:[#allocation4 + $0x20] ss:$12 sps:$4 sm:$0xff]   ;;  %v1086_v12 = vld [vmem:[#allocation3 + $0x18] sm:$0xf]  ;;  %v1111_v24 = vld [vmem:[#allocation3 + $0x21] sm:$0xf] }
 0x3c3   : > { %v1171_v4 = vpack.c.bf16 %v1733_v0, %v1732_v63  ;;  %v1063_v11 = vld [vmem:[#allocation3 + $0x1a] sm:$0xf] }
 0x3c4   : > { %v1031_v15 = vld [vmem:[#allocation3 + $0x18] sm:$0xf] }
 0x3c5   : > { %1093 = vrot.lane.b32.xlu0 %v1085_v2, %s1767_s16  ;;  %1682 = vmatmul.mubr.msk.bf16.vlgmr.msra.gmra.mxu1 %vm280_vm1, %v1171_v4  ;;  %v1110_v16 = vld [vmem:[#allocation3 + $0x19] sm:$0xf] }
 0x3c6   : > { %995 = vrot.lane.b32.xlu1 %v984_v3, %s1766_s15 }
 0x3c9   : > { %1117 = vrot.lane.b32.xlu0 %v1109_v7, %s1768_s27 }
 0x3ca   : > { %1019 = vrot.lane.b32.xlu1 %v1008_v8, %s1767_s16 }
 0x3cd   : > { %1073 = vrot.lane.b32.xlu0 %v1063_v11, %s1766_s15 }
 0x3ce   : > { %1095 = vrot.lane.b32.xlu1 %v1086_v12, %s1767_s16 }
 0x3d1   : > { %1041 = vrot.lane.b32.xlu0 %v1031_v15, %s1768_s27 }
 0x3d2   : > { %1119 = vrot.lane.b32.xlu1 %v1110_v16, %s1768_s27 }
 0x3d5   : > { %1097 = vrot.lane.b32.xlu0 %v1087_v20, %s1767_s16 }
 0x3d6   : > { %1075 = vrot.lane.b32.xlu1 %v1064_v21, %s1766_s15  ;;  %s1770_s15 = smov 24  }
 0x3d9   : > { %1121 = vrot.lane.b32.xlu0 %v1111_v24, %s1768_s27 }
 0x3da   : > { %1043 = vrot.lane.b32.xlu1 %v1032_v25, %s1768_s27 }
 0x3de   : > { %1123 = vrot.lane.b32.xlu1 %v1112_v27, %s1768_s27 }
 0x427   : > { %v1070_v1 = vpop.permute.xlu0 %1069 }
 0x428   : > { %v992_v29 = vpop.permute.xlu1 %991  ;;  %1081 = vst.msk [vmem:[#allocation4 + $0x4] sm:$0xf] %vm440_vm5, %v1070_v1 }
 0x429   : > { %1002 = vst.msk [vmem:[#allocation4 + $0xc] sm:$0xf] %vm440_vm5, %v992_v29 }
 0x42b   : > { %v1038_v31 = vpop.permute.xlu0 %1037 }
 0x42c   : > { %v1016_v30 = vpop.permute.xlu1 %1015  ;;  %1049 = vst.msk [vmem:[#allocation4] sm:$0xf] %vm490_vm7, %v1038_v31 }
 0x42d   : > { %1026 = vst.msk [vmem:[#allocation4 + $0xc] sm:$0xf] %vm465_vm6, %v1016_v30 }
 0x42f   : > { %v994_v33 = vpop.permute.xlu0 %993 }
 0x430   : > { %v1072_v32 = vpop.permute.xlu1 %1071  ;;  %1003 = vst.msk [vmem:[#allocation4 + $0x18] sm:$0xf] %vm440_vm5, %v994_v33 }
 0x431   : > { %1082 = vst.msk [vmem:[#allocation4 + $0x10] sm:$0xf] %vm440_vm5, %v1072_v32 }
 0x433   : > { %v1018_v35 = vpop.permute.xlu0 %1017 }
 0x434   : > { %v1040_v34 = vpop.permute.xlu1 %1039  ;;  %1027 = vst.msk [vmem:[#allocation4 + $0x18] sm:$0xf] %vm465_vm6, %v1018_v35 }
 0x435   : > { %1050 = vst.msk [vmem:[#allocation4 + $0xc] sm:$0xf] %vm490_vm7, %v1040_v34 }
 0x437   : > { %v1094_v37 = vpop.permute.xlu0 %1093 }
 0x438   : > { %v996_v36 = vpop.permute.xlu1 %995  ;;  %1105 = vst.msk [vmem:[#allocation4 + $0x4] sm:$0xf] %vm465_vm6, %v1094_v37 }
 0x439   : > { %1004 = vst.msk [vmem:[#allocation4 + $0x24] sm:$0xf] %vm440_vm5, %v996_v36 }
 0x43b   : > { %v1118_v39 = vpop.permute.xlu0 %1117 }
 0x43c   : > { %v1020_v38 = vpop.permute.xlu1 %1019  ;;  %1129 = vst.msk [vmem:[#allocation4 + $0x4] sm:$0xf] %vm490_vm7, %v1118_v39  ;;  %v1750_v49 = vld [vmem:[#allocation4] ss:$12 sps:$4 sm:$0xff]  }
 0x43d   : > { %1028 = vst.msk [vmem:[#allocation4 + $0x24] sm:$0xf] %vm465_vm6, %v1020_v38 }
 0x43f   : > { %v1074_v41 = vpop.permute.xlu0 %1073 }
 0x440   : > { %v1096_v40 = vpop.permute.xlu1 %1095  ;;  %1083 = vst.msk [vmem:[#allocation4 + $0x1c] sm:$0xf] %vm440_vm5, %v1074_v41 }
 0x441   : > { %1106 = vst.msk [vmem:[#allocation4 + $0x10] sm:$0xf] %vm465_vm6, %v1096_v40 }
 0x443   : > { %v1042_v43 = vpop.permute.xlu0 %1041 }
 0x444   : > { %v1120_v42 = vpop.permute.xlu1 %1119  ;;  %1051 = vst.msk [vmem:[#allocation4 + $0x18] sm:$0xf] %vm490_vm7, %v1042_v43 }
 0x445   : > { %1130 = vst.msk [vmem:[#allocation4 + $0x10] sm:$0xf] %vm490_vm7, %v1120_v42 }
 0x447   : > { %v1098_v45 = vpop.permute.xlu0 %1097 }
 0x448   : > { %v1076_v44 = vpop.permute.xlu1 %1075  ;;  %1107 = vst.msk [vmem:[#allocation4 + $0x1c] sm:$0xf] %vm465_vm6, %v1098_v45 }
 0x449   : > { %1084 = vst.msk [vmem:[#allocation4 + $0x28] sm:$0xf] %vm440_vm5, %v1076_v44 }
 0x44a   : > { %1108 = vst.msk [vmem:[#allocation4 + $0x28] sm:$0xf] %vm465_vm6, %v1100_v28 }
 0x44b   : > { %v1122_v47 = vpop.permute.xlu0 %1121 }
 0x44c   : > { %v1044_v46 = vpop.permute.xlu1 %1043  ;;  %1131 = vst.msk [vmem:[#allocation4 + $0x1c] sm:$0xf] %vm490_vm7, %v1122_v47  ;;  %v1752_v50 = vld [vmem:[#allocation4 + $0x4] ss:$12 sps:$4 sm:$0xff]  }
 0x44d   : > { %1052 = vst.msk [vmem:[#allocation4 + $0x24] sm:$0xf] %vm490_vm7, %v1044_v46 }
 0x450   : > { %v1124_v48 = vpop.permute.xlu1 %1123 }
 0x451   : > { %1132 = vst.msk [vmem:[#allocation4 + $0x28] sm:$0xf] %vm490_vm7, %v1124_v48 }
 0x454   : > { %v1753_v51 = vld [vmem:[#allocation4 + $0x18] ss:$12 sps:$4 sm:$0xff]  }
 0x455   : > { %v1169_v54 = vpack.c.bf16 %v1753_v51, %v1750_v49 }
 0x458   : > { %v1755_v52 = vld [vmem:[#allocation4 + $0x1c] ss:$12 sps:$4 sm:$0xff]  }
 0x459   : > { %v1170_v53 = vpack.c.bf16 %v1755_v52, %v1752_v50 }
 0x45b   : > { %1352 = vmatprep.mubr.bf16.mxu0 %v1170_v53 }
 0x45c   : > { %1353 = vmatmul.mubr.bf16.vlgmr.msra.gmra.mxu0 %v1169_v54 }
 0x485   : > { %v1395_v55 = vpop.f32.mrf.mxu1 }
 0x487   : > { %v1683_v56 = vpop.f32.mrf.mxu1 }
 0x489   : > { %v1398_v57 = vpop.f32.mrf.mxu1 }
 0x48b   : > { %v1684_v58 = vpop.f32.mrf.mxu1 }
 0x51c   : > { %v1644_v59 = vpop.f32.mrf.mxu0 }
 0x51e   : > { %v1645_v60 = vpop.f32.mrf.mxu0 }
 0x51f   : > { %v1646_v61 = vadd.f32 %v1645_v60, %v1644_v59 }
 0x520   : > { %v1647_v62 = vpop.f32.mrf.mxu0 }
 0x521   : > { %v1396_v63 = vadd.f32 %v1646_v61, %v1395_v55 }
 0x522   : > { %v1648_v0 = vpop.f32.mrf.mxu0 }
 0x523   : > { %v1649_v2 = vadd.f32 %v1648_v0, %v1647_v62  ;;  %1404 = vrot.lane.b32.xlu0 %v1396_v63, %s1770_s15 }
 0x525   : > { %v1399_v3 = vadd.f32 %v1649_v2, %v1398_v57 }
 0x527   : > { %1406 = vrot.lane.b32.xlu1 %v1399_v3, %s1770_s15 }
 0x595   : > { %v1405_v4 = vpop.permute.xlu0 %1404 }
 0x596   : > { %1411 = vst.msk [vmem:[#allocation2] sm:$0xff] %vm1410_vm9, %v1405_v4 }
 0x599   : > { %v1407_v5 = vpop.permute.xlu1 %1406 }
 0x59a   : > { %1412 = vst.msk [vmem:[#allocation2 + $0x8] sm:$0xff] %vm1410_vm9, %v1407_v5 }
 0x59d   : > { %v1413_v6 = vld [vmem:[#allocation2] sm:$0xff] }
 0x59e   : > { %v1591_v7 = vpack.c.bf16 %v1413_v6, %v1413_v6 }
 0x5a0   : > { %1423 = vst.msk [vmem:[%s278_s21] sm:$0xf] %vm407_vm4, %v1591_v7 }
 0x5a1   : > { %v1414_v8 = vld [vmem:[#allocation2 + $0x8] sm:$0xff] }
 0x5a2   : > { %v1592_v9 = vpack.c.bf16 %v1414_v8, %v1414_v8 }
 0x5a4   : > { %1424 = vst.msk [vmem:[%s278_s21 + $0x4] sm:$0xf] %vm407_vm4, %v1592_v9 }
 0x5a5 PF: > { %s17_s24 = sadd.s32 1, %s1762_s24  }
 0x5a6   : > { %p14_p4 = scmp.ge.s32.totalorder %s17_s24, 4  }
 0x5a8   :  { %16 = sbr.rel (!%p14_p4) target bundleno = 1 (0x1), region = 86 }

// kernel: chest_xray_forward.15
= control target key start
LH: loop header
LB: loop body
LE: loop exit
PB: predicated region body
PF: predicated region fallthrough
CT: control target
= control target key end

     0   :  { %s408_s15 = smov 0   ;;  %s437_s0 = inlined_call_operand.vmem [shape: bf16[2,4,32], index: 0, kind: input, shape index: {}]   ;;  %s438_s1 = inlined_call_operand.vmem [shape: f32[1,32], index: 1, kind: input, shape index: {}]   ;;  %s439_s2 = inlined_call_operand.vmem [shape: f32[1,32], index: 2, kind: input, shape index: {}]   ;;  %s440_s3 = inlined_call_operand.vmem [shape: bf16[32,16], index: 3, kind: input, shape index: {}]   ;;  %s441_s4 = inlined_call_operand.vmem [shape: bf16[2,1,16], index: 4, kind: output, shape index: {}]  }
   0x1 LB: > { %s337_s16 = sadd.s32 4294967295, %s379_s15   ;;  %p341_p0 = scmp.ge.s32.totalorder %s379_s15, 1  ;;  %s379_s15 = sphi %s408_s15, %s14_s15  }
   0x2   : > { %p161_p1 = scmp.lt.s32.totalorder %s379_s15, 3 }
   0x4   : > { %p162_p2 = pnand %p341_p0, %p161_p1 }
   0x5   : > { %p184_p3 = scmp.lt.s32.totalorder (!%p162_p2), %s337_s16, 1 }
   0x6   : > { %165 = sbr.rel (%p162_p2) target bundleno = 232 (0xe8), region = 36 }
   0xb   : > { %v371_v0 = vld [vmem:[%s440_s3 + $0x8] sm:$0xff]   ;;  %v381_v1 = vmov 0.0   ;;  %v372_v2 = vld [vmem:[%s440_s3] sm:$0xff]   ;;  %vm382_vm0 = vmmov 0   ;;  %s443_s16 = smov (!%p184_p3, %s337_s16), 1  ;;  %vm228_vm1 = vcmask 261120  }
   0xc   : > { %353 = vmatprep.subr.bf16.mxu0 %v381_v1  ;;  %357 = vmatprep.mubr.msk.bf16.mxu0 %vm382_vm0, %v381_v1  ;;  %s342_s21 = sshll.u32 %s443_s16, 1  ;;  %v343_v4 = vld [vmem:[%s438_s1] ss:$0 sm:$0xff]  ;;  %s190_s5 = scalar_lea.vmem %s441_s4, %s443_s16  ;;  %vm284_vm2 = vcmask 122880   ;;  %vm285_vm3 = vsmask.f32 256 }
   0xd   : > { %354 = vmatpush3.bf16.msra.mxu0 %v371_v0  ;;  %s187_s24 = scalar_lea.vmem %s437_s0, %s342_s21  ;;  %v344_v6 = vld [vmem:[%s439_s2] ss:$0 sm:$0xff]  ;;  %vm286_vm4 = vmand %vm284_vm2, %vm285_vm3 }
   0xe   : > { %355 = vmatprep.subr.bf16.mxu0 %v381_v1  ;;  %v192_v3 = vld [vmem:[%s187_s24] sm:$0x3] }
   0xf   : > { %v193_v5 = vunpack.c.l.bf16 %v192_v3  ;;  %v287_v22 = vld [vmem:[%s190_s5] sm:$0x1] }
  0x11   : > { %356 = vmatpush3.bf16.msra.mxu0 %v372_v2  ;;  %v201_v7 = vmul.f32 %v343_v4, %v193_v5 }
  0x13   : > { %v209_v8 = vadd.f32 %v344_v6, %v201_v7 }
  0x15   : > { %v210_v9 = vmax.f32 %v209_v8, 0.0 }
  0x17   : > { %v211_v10 = vpack.c.bf16 %v210_v9, %v210_v9 }
  0x19   : > { %358 = vmatmul.mubr.msk.bf16.vlgmr.msra.gmra.mxu0 %vm228_vm1, %v211_v10 }
  0xd9   : > { %v266_v11 = vpop.f32.mrf.mxu0 }
  0xda   : > { %v273_v12 = vrot.slane %v266_v11, 1  ;;  %v276_v15 = vrot.slane %v266_v11, 2  ;;  %v279_v18 = vrot.slane %v266_v11, 3 }
  0xdb   : > { %v359_v13 = vpop.f32.mrf.mxu0 }
  0xdc   : > { %v275_v14 = vadd.f32 %v273_v12, %v266_v11 }
  0xdd   : > { %v269_v16 = vpop.f32.mrf.mxu0 }
  0xde   : > { %v278_v17 = vadd.f32 %v276_v15, %v275_v14 }
  0xdf   : > { %v360_v19 = vpop.f32.mrf.mxu0 }
  0xe0   : > { %v281_v20 = vadd.f32 %v279_v18, %v278_v17 }
  0xe2   : > { %v282_v21 = vmul.f32 0.25, %v281_v20 }
  0xe4   : > { %v283_v23 = vpack.c.bf16 %v282_v21, %v282_v21 }
  0xe6   : > { %v288_v24 = vsel %vm286_vm4, %v283_v23, %v287_v22 }
  0xe7   : > { %289 = vst [vmem:[%s190_s5] sm:$0x1] %v288_v24 }
  0xe8 PF: > { %s14_s15 = sadd.s32 1, %s379_s15  }
  0xe9   : > { %p11_p4 = scmp.ge.s32.totalorder %s14_s15, 4  }
  0xeb   :  { %13 = sbr.rel (!%p11_p4) target bundleno = 1 (0x1), region = 66 }

// kernel: chest_xray_forward.14
= control target key start
LH: loop header
LB: loop body
LE: loop exit
PB: predicated region body
PF: predicated region fallthrough
CT: control target
= control target key end

     0   :  { %s1758_s24 = smov 0   ;;  %s2040_s0 = inlined_call_operand.vmem [shape: bf16[2,4,16], index: 0, kind: input, shape index: {}]   ;;  %s2041_s1 = inlined_call_operand.vmem [shape: f32[2,1,32], index: 1, kind: input, shape index: {}]   ;;  %s2042_s2 = inlined_call_operand.vmem [shape: f32[2,1,32], index: 2, kind: input, shape index: {}]   ;;  %s2043_s3 = inlined_call_operand.vmem [shape: bf16[2,32,32], index: 3, kind: input, shape index: {}]   ;;  %s2044_s4 = inlined_call_operand.vmem [shape: f32[2,1,32], index: 4, kind: input, shape index: {}]   ;;  %s2045_s5 = inlined_call_operand.vmem [shape: f32[2,1,32], index: 5, kind: input, shape index: {}]   ;;  %s2046_s6 = inlined_call_operand.vmem [shape: bf16[2,288,8], index: 6, kind: input, shape index: {}]   ;;  %s2047_s7 = inlined_call_operand.vmem [shape: bf16[2,4,32], index: 7, kind: output, shape index: {}]  }
   0x1 LB: > { %s1426_s25 = sadd.s32 4294967295, %s1708_s24   ;;  %p1430_p0 = scmp.ge.s32.totalorder %s1708_s24, 1  ;;  %s1708_s24 = sphi %s1758_s24, %s17_s24  }
   0x2   : > { %p236_p1 = scmp.lt.s32.totalorder %s1708_s24, 3 }
   0x4   : > { %p237_p2 = pnand %p1430_p0, %p236_p1 }
   0x5   : > { %p266_p3 = scmp.lt.s32.totalorder (!%p237_p2), %s1426_s25, 1  ;;  %s1712_s15 = smov (!%p237_p2), 32  }
   0x6   : > { %240 = sbr.rel (%p237_p2) target bundleno = 1402 (0x57a), region = 48  ;;  %s1713_s16 = smov (!%p237_p2), 64  }
   0x7   : > { %s1715_s19 = smov (!%p237_p2), 96   ;;  %s1716_s29 = smov (!%p237_p2), 16  }
   0xb   : > { %v1659_v0 = vld [vmem:[%s2043_s3 + $0x8] sm:$0xff]   ;;  %v1710_v1 = vmov 0.0   ;;  %v1660_v2 = vld [vmem:[%s2043_s3] sm:$0xff]   ;;  %vm1711_vm0 = vmmov 0   ;;  %vm275_vm1 = vcmask 257024   ;;  %s2049_s25 = smov (!%p266_p3, %s1426_s25), 1  ;;  %v385_v19 = vlaneseq }
   0xc   : > { %1611 = vmatprep.subr.bf16.mxu1 %v1710_v1  ;;  %1619 = vmatprep.subr.bf16.mxu0 %v1710_v1  ;;  %276 = vst.msk [vmem:[#allocation2] sm:$0xf] %vm275_vm1, %v1710_v1  ;;  %277 = vst.msk [vmem:[#allocation3] sm:$0xf] %vm275_vm1, %v1710_v1  ;;  %s1431_s30 = sshll.u32 %s2049_s25, 1  ;;  %vm283_vm2 = vcmask 125952  }
   0xd   : > { %1612 = vmatpush3.bf16.msra.mxu1 %v1659_v0  ;;  %1615 = vmatprep.mubr.msk.bf16.mxu1 %vm1711_vm0, %v1710_v1  ;;  %278 = vst.msk [vmem:[#allocation3 + $0x4] sm:$0xf] %vm275_vm1, %v1710_v1  ;;  %279 = vst.msk [vmem:[#allocation3 + $0x8] sm:$0xf] %vm275_vm1, %v1710_v1  ;;  %s269_s10 = scalar_lea.vmem %s2040_s0, %s1431_s30  ;;  %v1433_v5 = vld [vmem:[%s2041_s1] ss:$0 sm:$0xff]  ;;  %s273_s21 = scalar_lea.vmem %s2047_s7, %s1431_s30 }
   0xe   : > { %1613 = vmatprep.subr.bf16.mxu1 %v1710_v1  ;;  %280 = vst.msk [vmem:[#allocation3 + $0xc] sm:$0xf] %vm275_vm1, %v1710_v1  ;;  %1623 = vmatprep.mubr.msk.bf16.mxu0 %vm1711_vm0, %v1710_v1  ;;  %v281_v3 = vld [vmem:[%s269_s10] sm:$0x3]  ;;  %vm320_vm3 = vcmask 261120   ;;  %vm393_vm4 = vcmask 254976  }
   0xf   : > { %v282_v4 = vunpack.c.l.bf16 %v281_v3  ;;  %v1434_v6 = vld [vmem:[%s2042_s2] ss:$0 sm:$0xff]  ;;  %vm424_vm5 = vcmask 517376   ;;  %v1714_v17 = vmov 1983009808   ;;  %vm451_vm6 = vcmask 779776  }
  0x10   : > { %v383_v18 = vunpack.c.l.s4 %v1714_v17  ;;  %v1438_v21 = vld [vmem:[%s2044_s4] ss:$0 sm:$0xff]  ;;  %v386_v23 = vshrl.u32 %v385_v19, 7  ;;  %v1661_v33 = vld [vmem:[%s2046_s6 + $0x78] sm:$0xff]   ;;  %v1663_v38 = vld [vmem:[%s2046_s6 + $0x70] sm:$0xff]   ;;  %vm478_vm7 = vcmask 1042176  }
  0x11   : > { %1614 = vmatpush3.bf16.msra.mxu1 %v1660_v2  ;;  %284 = vst.msk [vmem:[#allocation2] sm:$0xf] %vm283_vm2, %v282_v4  ;;  %v1439_v25 = vld [vmem:[%s2045_s5] ss:$0 sm:$0xff]  ;;  %v1662_v34 = vld [vmem:[%s2046_s6 + $0x38] sm:$0xff]   ;;  %v1664_v39 = vld [vmem:[%s2046_s6 + $0x30] sm:$0xff]  }
  0x12   : > { %v384_v22 = vunpack.c.0.s8 %v383_v18  ;;  %1558 = vmatprep.subr.bf16.mxu1 %v1661_v33  ;;  %v1665_v40 = vld [vmem:[%s2046_s6 + $0x68] sm:$0xff]   ;;  %v1667_v48 = vld [vmem:[%s2046_s6 + $0x60] sm:$0xff]   ;;  %v1669_v51 = vld [vmem:[%s2046_s6 + $0x58] sm:$0xff]   ;;  %vm826_vm8 = vcmask 191616   ;;  %vm1368_vm9 = vcmask 257216  }
  0x13   : > { %v1799_v12 = vld.sshfl [vmem:[#allocation3 + $0x1] sm:$0x3 pattern:$0x76325410]  ;;  %v1666_v41 = vld [vmem:[%s2046_s6 + $0x28] sm:$0xff]   ;;  %v1670_v52 = vld [vmem:[%s2046_s6 + $0x18] sm:$0xff]  }
  0x14   : > { %418 = vrot.lane.b32.xlu0 %v1799_v12, %s1712_s15  ;;  %v1807_v14 = vld.sshfl [vmem:[#allocation3 + $0x2] sm:$0x3 pattern:$0x76325410]  ;;  %v396_v16 = vld [vmem:[#allocation3] sm:$0x3]  ;;  %v1821_v30 = vsub.s32 %v384_v22, %v386_v23 }
  0x15   : > { %v1803_v13 = vld.sshfl [vmem:[#allocation3 + $0xc] sm:$0x3 pattern:$0x76325410]  ;;  %v565_v15 = vld [vmem:[#allocation3 + $0xe] sm:$0x3] }
  0x16   : > { %532 = vrot.lane.b32.xlu1 %v1803_v13, %s1713_s16  ;;  %567 = vst.msk [vmem:[#allocation4 + $0xa] sm:$0x3] %vm393_vm4, %v565_v15  ;;  %398 = vst.msk [vmem:[#allocation4] sm:$0x3] %vm393_vm4, %v396_v16  ;;  %v1668_v49 = vld [vmem:[%s2046_s6 + $0x20] sm:$0xff]   ;;  %v1671_v55 = vld [vmem:[%s2046_s6 + $0x50] sm:$0xff]  }
  0x17   : > { %v1672_v56 = vld [vmem:[%s2046_s6 + $0x10] sm:$0xff]   ;;  %v1673_v57 = vld [vmem:[%s2046_s6 + $0x88] sm:$0xff]   ;;  %v1676_v60 = vld [vmem:[%s2046_s6 + $0x80] sm:$0xff]  }
  0x18   : > { %v285_v7 = vld [vmem:[#allocation2] sm:$0xf]  ;;  %445 = vrot.lane.b32.xlu0 %v1807_v14, %s1713_s16  ;;  %v1674_v58 = vld [vmem:[%s2046_s6 + $0x48] sm:$0xff]   ;;  %1620 = vmatpush3.bf16.msra.mxu0 %v1673_v57  ;;  %v1679_v23 = vld [vmem:[%s2043_s3 + $0x18] sm:$0xff]  }
  0x19   : > { %v293_v8 = vmul.f32 %v1433_v5, %v285_v7  ;;  %v1883_v61 = vld.sshfl [vmem:[#allocation3 + $0xd] sm:$0x3 pattern:$0x76325410]  ;;  %1621 = vmatprep.subr.bf16.mxu0 %v1710_v1  ;;  %v1675_v62 = vld [vmem:[%s2046_s6 + $0x8] sm:$0xff]   ;;  %v1677_v63 = vld [vmem:[%s2046_s6 + $0x40] sm:$0xff]  }
  0x1a   : > { %v1678_v0 = vld [vmem:[%s2046_s6] sm:$0xff]  }
  0x1b   : > { %v301_v9 = vadd.f32 %v1434_v6, %v293_v8 }
  0x1c   : > { %1622 = vmatpush3.bf16.msra.mxu0 %v1676_v60  ;;  %v1684_v60 = vld [vmem:[%s2046_s6 + $0xc0] sm:$0xff]  }
  0x1d   : > { %v302_v10 = vmax.f32 %v301_v9, 0.0  ;;  %1627 = vmatprep.subr.bf16.mxu0 %v1710_v1 }
  0x1f   : > { %v303_v11 = vpack.c.bf16 %v302_v10, %v302_v10 }
  0x21   : > { %1616 = vmatmul.mubr.msk.bf16.vlgmr.msra.gmra.mxu1 %vm320_vm3, %v303_v11 }
  0x22   : > { %1559 = vmatpush3.bf16.msra.mxu1 %v1662_v34 }
  0x23   : > { %1560 = vmatprep.subr.bf16.mxu1 %v1663_v38 }
  0x26   : > { %1561 = vmatpush3.bf16.msra.mxu1 %v1664_v39  ;;  %v1474_v39 = vld [vmem:[%s2042_s2 + $0x1] ss:$0 sm:$0xff] }
  0x27   : > { %1562 = vmatprep.subr.bf16.mxu1 %v1665_v40 }
  0x2a   : > { %1563 = vmatpush3.bf16.msra.mxu1 %v1666_v41 }
  0x2b   : > { %1564 = vmatprep.subr.bf16.mxu1 %v1667_v48  ;;  %v1485_v48 = vld [vmem:[%s2045_s5 + $0x1] ss:$0 sm:$0xff] }
  0x2e   : > { %1565 = vmatpush3.bf16.msra.mxu1 %v1668_v49 }
  0x2f   : > { %1566 = vmatprep.subr.bf16.mxu1 %v1669_v51 }
  0x32   : > { %1567 = vmatpush3.bf16.msra.mxu1 %v1670_v52 }
  0x33   : > { %1568 = vmatprep.subr.bf16.mxu1 %v1671_v55  ;;  %v1682_v55 = vld [vmem:[%s2046_s6 + $0xc8] sm:$0xff]  }
  0x36   : > { %1569 = vmatpush3.bf16.msra.mxu1 %v1672_v56 }
  0x37   : > { %1570 = vmatprep.subr.bf16.mxu1 %v1674_v58 }
  0x3a   : > { %1571 = vmatpush3.bf16.msra.mxu1 %v1675_v62  ;;  %v1685_v62 = vld [vmem:[%s2046_s6 + $0xf8] sm:$0xff]  }
  0x3b   : > { %1572 = vmatprep.subr.bf16.mxu1 %v1677_v63  ;;  %v1686_v63 = vld [vmem:[%s2046_s6 + $0xb8] sm:$0xff]  }
  0x3e   : > { %1573 = vmatpush3.bf16.msra.mxu1 %v1678_v0 }
  0x3f   : > { %1635 = vmatprep.subr.bf16.mxu1 %v1710_v1 }
  0x86   : > { %v419_v20 = vpop.permute.xlu0 %418 }
  0x87   : > { %425 = vst.msk [vmem:[#allocation4] sm:$0x3] %vm424_vm5, %v419_v20 }
  0x88   : > { %v533_v2 = vpop.permute.xlu1 %532 }
  0x8a   : > { %v446_v26 = vpop.permute.xlu0 %445 }
  0x8b   : > { %452 = vst.msk [vmem:[#allocation4] sm:$0x3] %vm451_vm6, %v446_v26 }
  0xe1   : > { %v358_v24 = vpop.f32.mrf.mxu1 }
  0xe2   : > { %v371_v27 = vmul.f32 %v1438_v21, %v358_v24  ;;  %v1680_v24 = vld [vmem:[%s2043_s3 + $0x10] sm:$0xff]  }
  0xe3   : > { %v1617_v28 = vpop.f32.mrf.mxu1 }
  0xe4   : > { %v379_v29 = vadd.f32 %v1439_v25, %v371_v27 }
  0xe5   : > { %v361_v31 = vpop.f32.mrf.mxu1 }
  0xe6   : > { %v380_v32 = vmax.f32 %v379_v29, 0.0 }
  0xe7   : > { %v1618_v35 = vpop.f32.mrf.mxu1 }
  0xe8   : > { %v388_v36 = vrot.slane %v380_v32, %v1821_v30 }
  0xea   : > { %v389_v37 = vcombine.high %v388_v36, %v388_v36  ;;  %394 = vst.msk [vmem:[#allocation3 + $0x5] sm:$0x3] %vm393_vm4, %v388_v36 }
  0xec   : > { %395 = vst.msk [vmem:[#allocation3 + $0x9] sm:$0x3] %vm393_vm4, %v389_v37  ;;  %v1472_v37 = vld [vmem:[%s2041_s1 + $0x1] ss:$0 sm:$0xff] }
  0xf1   : > { %v1446_v42 = vld.sshfl [vmem:[#allocation3 + $0x6] sm:$0x3 pattern:$0x76325410]  ;;  %v397_v45 = vld [vmem:[#allocation3 + $0x4] sm:$0x3] }
  0xf2   : > { %v481_v43 = vld [vmem:[#allocation3 + $0x5] sm:$0x3]  ;;  %503 = vrot.lane.b32.xlu1 %v1446_v42, %s1712_s15  ;;  %399 = vst.msk [vmem:[#allocation4 + $0x6] sm:$0x3] %vm393_vm4, %v397_v45 }
  0xf3   : > { %v1441_v44 = vld.sshfl [vmem:[#allocation3 + $0x5] sm:$0x3 pattern:$0x76325410]  ;;  %483 = vst.msk [vmem:[#allocation4 + $0x2] sm:$0x3] %vm393_vm4, %v481_v43 }
  0xf4   : > { %v564_v46 = vld [vmem:[#allocation3 + $0xa] sm:$0x3]  ;;  %420 = vrot.lane.b32.xlu0 %v1441_v44, %s1712_s15  ;;  %v1444_v50 = vld.sshfl [vmem:[#allocation3 + $0x4] sm:$0x3 pattern:$0x76325410] }
  0xf5   : > { %566 = vst.msk [vmem:[#allocation4 + $0x4] sm:$0x3] %vm393_vm4, %v564_v46  ;;  %v482_v47 = vld [vmem:[#allocation3 + $0x9] sm:$0x3]  ;;  %v941_v44 = vld [vmem:[#allocation3] sm:$0x3] }
  0xf6   : > { %484 = vst.msk [vmem:[#allocation4 + $0x8] sm:$0x3] %vm393_vm4, %v482_v47  ;;  %447 = vrot.lane.b32.xlu1 %v1446_v42, %s1713_s16  ;;  %v1447_v53 = vld.sshfl [vmem:[#allocation3 + $0xa] sm:$0x3 pattern:$0x76325410] }
  0xf7   : > { %v1448_v54 = vld.sshfl [vmem:[#allocation3 + $0x8] sm:$0x3 pattern:$0x76325410]  ;;  %v1483_v46 = vld [vmem:[%s2044_s4 + $0x1] ss:$0 sm:$0xff] }
  0xf8   : > { %472 = vrot.lane.b32.xlu0 %v1444_v50, %s1715_s19  ;;  %v1450_v59 = vld.sshfl [vmem:[#allocation3 + $0x9] sm:$0x3 pattern:$0x76325410] }
  0xfa   : > { %505 = vrot.lane.b32.xlu1 %v1447_v53, %s1712_s15 }
  0xfc   : > { %530 = vrot.lane.b32.xlu0 %v1448_v54, %s1713_s16 }
  0xfe   : > { %474 = vrot.lane.b32.xlu1 %v1448_v54, %s1715_s19  ;;  %v1681_v54 = vld [vmem:[%s2046_s6 + $0x108] sm:$0xff]  }
 0x100   : > { %556 = vrot.lane.b32.xlu0 %v1450_v59, %s1715_s19  ;;  %v1683_v59 = vld [vmem:[%s2046_s6 + $0x100] sm:$0xff]  }
 0x102   : > { %558 = vrot.lane.b32.xlu1 %v1883_v61, %s1715_s19 }
 0x106   : > { %963 = vrot.lane.b32.xlu1 %v1799_v12, %s1712_s15 }
 0x10a   : > { %989 = vrot.lane.b32.xlu1 %v1807_v14, %s1713_s16 }
 0x164   : > { %v504_v3 = vpop.permute.xlu1 %503 }
 0x165   : > { %509 = vst.msk [vmem:[#allocation4 + $0x2] sm:$0x3] %vm424_vm5, %v504_v3 }
 0x166   : > { %v421_v4 = vpop.permute.xlu0 %420 }
 0x167   : > { %426 = vst.msk [vmem:[#allocation4 + $0x6] sm:$0x3] %vm424_vm5, %v421_v4 }
 0x168   : > { %v448_v5 = vpop.permute.xlu1 %447 }
 0x169   : > { %453 = vst.msk [vmem:[#allocation4 + $0x6] sm:$0x3] %vm451_vm6, %v448_v5 }
 0x16a   : > { %v473_v6 = vpop.permute.xlu0 %472 }
 0x16b   : > { %479 = vst.msk [vmem:[#allocation4] sm:$0x3] %vm478_vm7, %v473_v6  ;;  %v1687_v6 = vld [vmem:[%s2046_s6 + $0xf0] sm:$0xff]  }
 0x16c   : > { %v506_v7 = vpop.permute.xlu1 %505 }
 0x16d   : > { %510 = vst.msk [vmem:[#allocation4 + $0x8] sm:$0x3] %vm424_vm5, %v506_v7  ;;  %v1688_v7 = vld [vmem:[%s2046_s6 + $0xb0] sm:$0xff]  }
 0x16e   : > { %v531_v8 = vpop.permute.xlu0 %530  ;;  %537 = vst.msk [vmem:[#allocation4 + $0x8] sm:$0x3] %vm451_vm6, %v533_v2 }
 0x16f   : > { %536 = vst.msk [vmem:[#allocation4 + $0x2] sm:$0x3] %vm451_vm6, %v531_v8 }
 0x170   : > { %v475_v9 = vpop.permute.xlu1 %474 }
 0x171   : > { %480 = vst.msk [vmem:[#allocation4 + $0x6] sm:$0x3] %vm478_vm7, %v475_v9 }
 0x172   : > { %v557_v10 = vpop.permute.xlu0 %556 }
 0x173   : > { %562 = vst.msk [vmem:[#allocation4 + $0x2] sm:$0x3] %vm478_vm7, %v557_v10  ;;  %v1689_v10 = vld [vmem:[%s2046_s6 + $0xe8] sm:$0xff]  }
 0x174   : > { %v559_v11 = vpop.permute.xlu1 %558 }
 0x175   : > { %563 = vst.msk [vmem:[#allocation4 + $0x8] sm:$0x3] %vm478_vm7, %v559_v11  ;;  %v1690_v11 = vld [vmem:[%s2046_s6 + $0xa8] sm:$0xff]  }
 0x17a   : > { %v568_v12 = vld [vmem:[#allocation4] sm:$0x3f] }
 0x17b   : > { %943 = vst.msk [vmem:[#allocation4] sm:$0x3] %vm393_vm4, %v941_v44 }
 0x17c   : > { %v569_v14 = vld [vmem:[#allocation4 + $0x6] sm:$0x3f] }
 0x17d   : > { %v573_v15 = vcombine.high %v568_v12, %v569_v14  ;;  %v572_v16 = vcombine.low %v568_v12, %v569_v14  ;;  %v1693_v12 = vld [vmem:[%s2046_s6 + $0x118] sm:$0xff]  }
 0x17f   : > { %v587_v17 = vrot.slane %v573_v15, %v1821_v30  ;;  %v580_v18 = vrot.slane %v572_v16, %v1821_v30  ;;  %v1691_v15 = vld [vmem:[%s2046_s6 + $0xe0] sm:$0xff]   ;;  %v1696_v16 = vld [vmem:[%s2046_s6 + $0x110] sm:$0xff]  }
 0x181   : > { %v594_v19 = vpack.c.bf16 %v587_v17, %v587_v17  ;;  %v588_v20 = vcombine.high %v580_v18, %v580_v18  ;;  %v592_v22 = vpack.c.bf16 %v580_v18, %v580_v18  ;;  %v1106_v17 = vld [vmem:[#allocation3 + $0xe] sm:$0x3] }
 0x182   : > { %1108 = vst.msk [vmem:[#allocation4 + $0xa] sm:$0x3] %vm393_vm4, %v1106_v17 }
 0x183   : > { %1624 = vmatmul.mubr.msk.bf16.vlgmr.msra.gmra.mxu0 %vm320_vm3, %v594_v19  ;;  %v593_v21 = vpack.c.bf16 %v588_v20, %v588_v20  ;;  %v1692_v19 = vld [vmem:[%s2046_s6 + $0xa0] sm:$0xff]   ;;  %v1694_v20 = vld [vmem:[%s2046_s6 + $0xd8] sm:$0xff]  }
 0x184   : > { %1631 = vmatprep.mubr.msk.bf16.mxu0 %vm1711_vm0, %v1710_v1  ;;  %1628 = vmatpush3.bf16.msra.mxu0 %v1679_v23  ;;  %v1698_v23 = vld [vmem:[%s2046_s6 + $0x90] sm:$0xff]  }
 0x185   : > { %774 = vmatprep.mubr.bf16.mxu1 %v593_v21  ;;  %1629 = vmatprep.subr.bf16.mxu0 %v1710_v1 }
 0x186   : > { %775 = vmatmul.mubr.bf16.vlgmr.msra.gmra.mxu1 %v592_v22  ;;  %v1697_v22 = vld [vmem:[%s2046_s6 + $0xd0] sm:$0xff]  }
 0x187   : > { %1639 = vmatprep.mubr.msk.bf16.mxu1 %vm1711_vm0, %v1710_v1  ;;  %1636 = vmatpush3.bf16.msra.mxu1 %v1693_v12 }
 0x188   : > { %1630 = vmatpush3.bf16.msra.mxu0 %v1680_v24  ;;  %1637 = vmatprep.subr.bf16.mxu1 %v1710_v1  ;;  %v1695_v1 = vld [vmem:[%s2046_s6 + $0x98] sm:$0xff]  }
 0x189   : > { %1586 = vmatprep.subr.bf16.mxu0 %v1681_v54 }
 0x18b   : > { %1638 = vmatpush3.bf16.msra.mxu1 %v1696_v16 }
 0x243   : > { %v816_v25 = vpop.f32.mrf.mxu0 }
 0x245   : > { %v1625_v26 = vpop.f32.mrf.mxu0 }
 0x246   : > { %v1574_v27 = vpop.f32.mrf.mxu1 }
 0x247   : > { %v819_v28 = vpop.f32.mrf.mxu0 }
 0x248   : > { %v1575_v29 = vpop.f32.mrf.mxu1 }
 0x249   : > { %v1576_v31 = vadd.f32 %v1575_v29, %v1574_v27  ;;  %v1626_v32 = vpop.f32.mrf.mxu0 }
 0x24a   : > { %v1577_v33 = vpop.f32.mrf.mxu1 }
 0x24b   : > { %v817_v34 = vadd.f32 %v1576_v31, %v816_v25 }
 0x24c   : > { %v1578_v35 = vpop.f32.mrf.mxu1 }
 0x24d   : > { %823 = vrot.lane.b32.xlu0 %v817_v34, %s1716_s29 }
 0x251   : > { %1073 = vrot.lane.b32.xlu0 %v1803_v13, %s1713_s16  ;;  %v964_v13 = vpop.permute.xlu1 %963 }
 0x252   : > { %969 = vst.msk [vmem:[#allocation4] sm:$0x3] %vm424_vm5, %v964_v13 }
 0x255   : > { %v990_v45 = vpop.permute.xlu1 %989 }
 0x256   : > { %995 = vst.msk [vmem:[#allocation4] sm:$0x3] %vm451_vm6, %v990_v45 }
 0x2bf   : > { %v824_v36 = vpop.permute.xlu0 %823 }
 0x2c0   : > { %827 = vst.msk [vmem:[#allocation2] sm:$0xf] %vm826_vm8, %v824_v36 }
 0x2c3   : > { %v1074_v24 = vpop.permute.xlu0 %1073 }
 0x2c7   : > { %v828_v38 = vld [vmem:[#allocation2] sm:$0xf] }
 0x2c8   : > { %v837_v40 = vmul.f32 %v1472_v37, %v828_v38 }
 0x2ca   : > { %v846_v41 = vadd.f32 %v1474_v39, %v837_v40 }
 0x2cc   : > { %v847_v42 = vmax.f32 %v846_v41, 0.0 }
 0x2ce   : > { %v848_v43 = vpack.c.bf16 %v847_v42, %v847_v42 }
 0x2d0   : > { %1632 = vmatmul.mubr.msk.bf16.vlgmr.msra.gmra.mxu0 %vm320_vm3, %v848_v43 }
 0x2d1   : > { %1587 = vmatpush3.bf16.msra.mxu0 %v1682_v55 }
 0x2d2   : > { %1588 = vmatprep.subr.bf16.mxu0 %v1683_v59 }
 0x2d5   : > { %1589 = vmatpush3.bf16.msra.mxu0 %v1684_v60 }
 0x2d6   : > { %1590 = vmatprep.subr.bf16.mxu0 %v1685_v62 }
 0x2d9   : > { %1591 = vmatpush3.bf16.msra.mxu0 %v1686_v63 }
 0x2da   : > { %1592 = vmatprep.subr.bf16.mxu0 %v1687_v6 }
 0x2dd   : > { %1593 = vmatpush3.bf16.msra.mxu0 %v1688_v7 }
 0x2de   : > { %1594 = vmatprep.subr.bf16.mxu0 %v1689_v10 }
 0x2e1   : > { %1595 = vmatpush3.bf16.msra.mxu0 %v1690_v11 }
 0x2e2   : > { %1596 = vmatprep.subr.bf16.mxu0 %v1691_v15 }
 0x2e5   : > { %1597 = vmatpush3.bf16.msra.mxu0 %v1692_v19 }
 0x2e6   : > { %1598 = vmatprep.subr.bf16.mxu0 %v1694_v20 }
 0x2e9   : > { %1599 = vmatpush3.bf16.msra.mxu0 %v1695_v1 }
 0x2ea   : > { %1600 = vmatprep.subr.bf16.mxu0 %v1697_v22 }
 0x2ed   : > { %1601 = vmatpush3.bf16.msra.mxu0 %v1698_v23 }
 0x390   : > { %v903_v47 = vpop.f32.mrf.mxu0 }
 0x391   : > { %v917_v49 = vmul.f32 %v1483_v46, %v903_v47 }
 0x392   : > { %v1633_v50 = vpop.f32.mrf.mxu0 }
 0x393   : > { %v926_v51 = vadd.f32 %v1485_v48, %v917_v49 }
 0x394   : > { %v906_v52 = vpop.f32.mrf.mxu0 }
 0x395   : > { %v927_v53 = vmax.f32 %v926_v51, 0.0 }
 0x396   : > { %v1634_v56 = vpop.f32.mrf.mxu0 }
 0x397   : > { %v935_v57 = vrot.slane %v927_v53, %v1821_v30 }
 0x399   : > { %v936_v58 = vcombine.high %v935_v57, %v935_v57  ;;  %939 = vst.msk [vmem:[#allocation3 + $0x5] sm:$0x3] %vm393_vm4, %v935_v57 }
 0x39b   : > { %940 = vst.msk [vmem:[#allocation3 + $0x9] sm:$0x3] %vm393_vm4, %v936_v58 }
 0x3a0   : > { %v1492_v0 = vld.sshfl [vmem:[#allocation3 + $0x6] sm:$0x3 pattern:$0x76325410]  ;;  %v942_v4 = vld [vmem:[#allocation3 + $0x4] sm:$0x3] }
 0x3a1   : > { %v1023_v2 = vld [vmem:[#allocation3 + $0x5] sm:$0x3]  ;;  %1045 = vrot.lane.b32.xlu1 %v1492_v0, %s1712_s15  ;;  %944 = vst.msk [vmem:[#allocation4 + $0x6] sm:$0x3] %vm393_vm4, %v942_v4 }
 0x3a2   : > { %v1487_v3 = vld.sshfl [vmem:[#allocation3 + $0x5] sm:$0x3 pattern:$0x76325410]  ;;  %1025 = vst.msk [vmem:[#allocation4 + $0x2] sm:$0x3] %vm393_vm4, %v1023_v2 }
 0x3a3   : > { %965 = vrot.lane.b32.xlu0 %v1487_v3, %s1712_s15  ;;  %v1024_v5 = vld [vmem:[#allocation3 + $0x9] sm:$0x3]  ;;  %v1490_v8 = vld.sshfl [vmem:[#allocation3 + $0x4] sm:$0x3 pattern:$0x76325410] }
 0x3a4   : > { %1026 = vst.msk [vmem:[#allocation4 + $0x8] sm:$0x3] %vm393_vm4, %v1024_v5  ;;  %v1105_v9 = vld [vmem:[#allocation3 + $0xa] sm:$0x3] }
 0x3a5   : > { %1015 = vrot.lane.b32.xlu1 %v1490_v8, %s1715_s19  ;;  %1107 = vst.msk [vmem:[#allocation4 + $0x4] sm:$0x3] %vm393_vm4, %v1105_v9  ;;  %v1494_v14 = vld.sshfl [vmem:[#allocation3 + $0x8] sm:$0x3 pattern:$0x76325410] }
 0x3a6   : > { %v1493_v18 = vld.sshfl [vmem:[#allocation3 + $0xa] sm:$0x3 pattern:$0x76325410] }
 0x3a7   : > { %991 = vrot.lane.b32.xlu0 %v1492_v0, %s1713_s16  ;;  %v1496_v21 = vld.sshfl [vmem:[#allocation3 + $0x9] sm:$0x3 pattern:$0x76325410] }
 0x3a9   : > { %1071 = vrot.lane.b32.xlu1 %v1494_v14, %s1713_s16 }
 0x3ab   : > { %1047 = vrot.lane.b32.xlu0 %v1493_v18, %s1712_s15 }
 0x3ac   : > { %v1699_v34 = vld [vmem:[#allocation4 + $0x4] ss:$6 sps:$4 sm:$0x33]  }
 0x3ad   : > { %1097 = vrot.lane.b32.xlu1 %v1496_v21, %s1715_s19  ;;  %v1128_v36 = vrot.slane %v1699_v34, %v1821_v30 }
 0x3af   : > { %1017 = vrot.lane.b32.xlu0 %v1494_v14, %s1715_s19  ;;  %v1135_v38 = vpack.c.bf16 %v1128_v36, %v1128_v36 }
 0x3b1   : > { %1640 = vmatmul.mubr.msk.bf16.vlgmr.msra.gmra.mxu1 %vm320_vm3, %v1135_v38 }
 0x3b3   : > { %1099 = vrot.lane.b32.xlu0 %v1883_v61, %s1715_s19  ;;  %s1717_s19 = smov 24  }
 0x413   : > { %v1046_v25 = vpop.permute.xlu1 %1045 }
 0x414   : > { %1051 = vst.msk [vmem:[#allocation4 + $0x2] sm:$0x3] %vm424_vm5, %v1046_v25 }
 0x415   : > { %v966_v26 = vpop.permute.xlu0 %965 }
 0x416   : > { %970 = vst.msk [vmem:[#allocation4 + $0x6] sm:$0x3] %vm424_vm5, %v966_v26 }
 0x417   : > { %v1016_v27 = vpop.permute.xlu1 %1015 }
 0x418   : > { %1021 = vst.msk [vmem:[#allocation4] sm:$0x3] %vm478_vm7, %v1016_v27 }
 0x419   : > { %v992_v28 = vpop.permute.xlu0 %991 }
 0x41a   : > { %996 = vst.msk [vmem:[#allocation4 + $0x6] sm:$0x3] %vm451_vm6, %v992_v28 }
 0x41b   : > { %v1072_v61 = vpop.permute.xlu1 %1071 }
 0x41c   : > { %1077 = vst.msk [vmem:[#allocation4 + $0x2] sm:$0x3] %vm451_vm6, %v1072_v61 }
 0x41d   : > { %v1048_v29 = vpop.permute.xlu0 %1047 }
 0x41e   : > { %1052 = vst.msk [vmem:[#allocation4 + $0x8] sm:$0x3] %vm424_vm5, %v1048_v29 }
 0x41f   : > { %1078 = vst.msk [vmem:[#allocation4 + $0x8] sm:$0x3] %vm451_vm6, %v1074_v24  ;;  %v1098_v31 = vpop.permute.xlu1 %1097 }
 0x420   : > { %1103 = vst.msk [vmem:[#allocation4 + $0x2] sm:$0x3] %vm478_vm7, %v1098_v31 }
 0x421   : > { %v1018_v32 = vpop.permute.xlu0 %1017 }
 0x422   : > { %1022 = vst.msk [vmem:[#allocation4 + $0x6] sm:$0x3] %vm478_vm7, %v1018_v32 }
 0x425   : > { %v1100_v33 = vpop.permute.xlu0 %1099 }
 0x426   : > { %1104 = vst.msk [vmem:[#allocation4 + $0x8] sm:$0x3] %vm478_vm7, %v1100_v33 }
 0x42d   : > { %v1701_v35 = vld [vmem:[#allocation4] ss:$6 sps:$4 sm:$0xff]  }
 0x42e   : > { %v1121_v37 = vrot.slane %v1701_v35, %v1821_v30 }
 0x430   : > { %v1129_v39 = vcombine.high %v1121_v37, %v1121_v37  ;;  %v1133_v41 = vpack.c.bf16 %v1121_v37, %v1121_v37 }
 0x432   : > { %v1134_v40 = vpack.c.bf16 %v1129_v39, %v1129_v39 }
 0x434   : > { %1316 = vmatprep.mubr.bf16.mxu0 %v1134_v40 }
 0x435   : > { %1317 = vmatmul.mubr.bf16.vlgmr.msra.gmra.mxu0 %v1133_v41 }
 0x471   : > { %v1358_v42 = vpop.f32.mrf.mxu1 }
 0x473   : > { %v1641_v43 = vpop.f32.mrf.mxu1 }
 0x475   : > { %v1361_v13 = vpop.f32.mrf.mxu1 }
 0x477   : > { %v1642_v46 = vpop.f32.mrf.mxu1 }
 0x4f5   : > { %v1602_v44 = vpop.f32.mrf.mxu0 }
 0x4f7   : > { %v1603_v45 = vpop.f32.mrf.mxu0 }
 0x4f8   : > { %v1604_v47 = vadd.f32 %v1603_v45, %v1602_v44 }
 0x4f9   : > { %v1605_v48 = vpop.f32.mrf.mxu0 }
 0x4fa   : > { %v1359_v49 = vadd.f32 %v1604_v47, %v1358_v42 }
 0x4fb   : > { %v1606_v50 = vpop.f32.mrf.mxu0 }
 0x4fc   : > { %1365 = vrot.lane.b32.xlu1 %v1359_v49, %s1717_s19 }
 0x56e   : > { %v1366_v30 = vpop.permute.xlu1 %1365 }
 0x56f   : > { %1369 = vst.msk [vmem:[#allocation2] sm:$0xf] %vm1368_vm9, %v1366_v30 }
 0x576   : > { %v1370_v51 = vld [vmem:[#allocation2] sm:$0xf] }
 0x577   : > { %v1371_v52 = vpack.c.bf16 %v1370_v51, %v1370_v51 }
 0x579   : > { %1372 = vst.msk [vmem:[%s273_s21] sm:$0x3] %vm393_vm4, %v1371_v52 }
 0x57a PF: > { %s17_s24 = sadd.s32 1, %s1708_s24  }
 0x57b   : > { %p14_p4 = scmp.ge.s32.totalorder %s17_s24, 4  }
 0x57d   :  { %16 = sbr.rel (!%p14_p4) target bundleno = 1 (0x1), region = 86 }

// kernel: chest_xray_forward.17
= control target key start
LH: loop header
LB: loop body
LE: loop exit
PB: predicated region body
PF: predicated region fallthrough
CT: control target
= control target key end

     0   :  { %v740_v2 = vmov 0   ;;  %vm79_vm0 = vcmask 1041409   ;;  %vm122_vm1 = vcmask 261120   ;;  %s923_s0 = inlined_call_operand.vmem [shape: bf16[2,1,32], index: 0, kind: input, shape index: {}]   ;;  %s924_s1 = inlined_call_operand.vmem [shape: f32[1,1,32], index: 1, kind: input, shape index: {}]   ;;  %s925_s2 = inlined_call_operand.vmem [shape: f32[1,1,32], index: 2, kind: input, shape index: {}]   ;;  %s926_s3 = inlined_call_operand.vmem [shape: bf16[32,512], index: 3, kind: input, shape index: {}]   ;;  %s927_s4 = inlined_call_operand.vmem [shape: f32[1,512], index: 4, kind: input, shape index: {}]   ;;  %s928_s5 = inlined_call_operand.vmem [shape: bf16[512,18], index: 5, kind: input, shape index: {}]   ;;  %s929_s6 = inlined_call_operand.vmem [shape: f32[1,18], index: 6, kind: input, shape index: {}]   ;;  %s930_s7 = inlined_call_operand.hbm [shape: f32[2,18], index: 7, kind: output, shape index: {}]  }
   0x1   :  { %v670_v0 = vld [vmem:[%s926_s3 + $0x24] ss:$16 sps:$4 sm:$0xff]   ;;  %v672_v1 = vld [vmem:[%s926_s3 + $0x2c] ss:$16 sps:$4 sm:$0xff]   ;;  %158 = vmatprep.mubr.bf16.mxu0 %v740_v2  ;;  %199 = vmatprep.mubr.bf16.mxu1 %v740_v2  ;;  %v674_v3 = vld [vmem:[%s926_s3 + $0x20] ss:$16 sps:$4 sm:$0xff]  }
   0x2   :  { %138 = vmatprep.subr.bf16.mxu0 %v670_v0  ;;  %v675_v4 = vld [vmem:[%s926_s3 + $0x28] ss:$16 sps:$4 sm:$0xff]   ;;  %179 = vmatprep.subr.bf16.mxu1 %v672_v1  ;;  %v676_v5 = vld [vmem:[%s926_s3 + $0x4] ss:$16 sps:$4 sm:$0xff]   ;;  %v678_v6 = vld [vmem:[%s926_s3 + $0xc] ss:$16 sps:$4 sm:$0xff]  }
   0x3   :  { %139 = vmatpush1.bf16.msra.mxu0 %v674_v3  ;;  %180 = vmatpush1.bf16.msra.mxu1 %v675_v4  ;;  %v680_v7 = vld [vmem:[%s926_s3] ss:$16 sps:$4 sm:$0xff]   ;;  %v681_v8 = vld [vmem:[%s926_s3 + $0x8] ss:$16 sps:$4 sm:$0xff]  }
   0x4   :  { %140 = vmatprep.subr.bf16.mxu0 %v676_v5  ;;  %v28_v9 = vld [vmem:[%s923_s0] sm:$0x1]  ;;  %v29_v10 = vld [vmem:[%s923_s0 + $0x1] sm:$0x1]  ;;  %181 = vmatprep.subr.bf16.mxu1 %v678_v6  ;;  %v682_v15 = vld [vmem:[%s928_s5 + $0x78] sm:$0xff]  }
   0x5   :  { %v30_v11 = vunpack.c.l.bf16 %v28_v9  ;;  %v31_v12 = vunpack.c.l.bf16 %v29_v10  ;;  %v32_v13 = vld [vmem:[%s924_s1] sm:$0x1]  ;;  %v683_v18 = vld [vmem:[%s928_s5 + $0xf8] sm:$0xff]   ;;  %v686_v31 = vld [vmem:[%s928_s5 + $0x70] sm:$0xff]  }
   0x6   :  { %v35_v14 = vld [vmem:[%s925_s2] sm:$0x1]  ;;  %v684_v28 = vld [vmem:[%s928_s5 + $0x38] sm:$0xff]   ;;  %v687_v33 = vld [vmem:[%s928_s5 + $0xf0] sm:$0xff]  }
   0x7   :  { %141 = vmatpush1.bf16.msra.mxu0 %v680_v7  ;;  %182 = vmatpush1.bf16.msra.mxu1 %v681_v8  ;;  %v33_v16 = vmul.f32 %v32_v13, %v30_v11  ;;  %v34_v17 = vmul.f32 %v32_v13, %v31_v12  ;;  %v685_v29 = vld [vmem:[%s928_s5 + $0xb8] sm:$0xff]   ;;  %v688_v34 = vld [vmem:[%s928_s5 + $0x30] sm:$0xff]   ;;  %v690_v36 = vld [vmem:[%s928_s5 + $0x68] sm:$0xff]  }
   0x8   :  { %624 = vmatprep.subr.bf16.mxu0 %v682_v15  ;;  %646 = vmatprep.subr.bf16.mxu1 %v683_v18  ;;  %v689_v35 = vld [vmem:[%s928_s5 + $0xb0] sm:$0xff]   ;;  %v691_v37 = vld [vmem:[%s928_s5 + $0xe8] sm:$0xff]   ;;  %v694_v40 = vld [vmem:[%s928_s5 + $0x60] sm:$0xff]  }
   0x9   :  { %v36_v19 = vadd.f32 %v35_v14, %v33_v16  ;;  %v37_v20 = vadd.f32 %v35_v14, %v34_v17  ;;  %v692_v38 = vld [vmem:[%s928_s5 + $0x28] sm:$0xff]   ;;  %v695_v41 = vld [vmem:[%s928_s5 + $0xe0] sm:$0xff]   ;;  %v698_v44 = vld [vmem:[%s928_s5 + $0x58] sm:$0xff]  }
   0xa   :  { %v693_v39 = vld [vmem:[%s928_s5 + $0xa8] sm:$0xff]   ;;  %v696_v42 = vld [vmem:[%s928_s5 + $0x20] sm:$0xff]   ;;  %v699_v45 = vld [vmem:[%s928_s5 + $0xd8] sm:$0xff]  }
   0xb   :  { %v38_v21 = vmax.f32 %v36_v19, 0.0  ;;  %v39_v22 = vmax.f32 %v37_v20, 0.0  ;;  %v697_v43 = vld [vmem:[%s928_s5 + $0xa0] sm:$0xff]   ;;  %v700_v46 = vld [vmem:[%s928_s5 + $0x18] sm:$0xff]  }
   0xc   :  { %v701_v47 = vld [vmem:[%s928_s5 + $0x98] sm:$0xff]  }
   0xd   :  { %v42_v23 = vpack.c.bf16 %v38_v21, %v38_v21  ;;  %v43_v24 = vpack.c.bf16 %v39_v22, %v39_v22 }
   0xf   :  { %v76_v25 = vunpack.c.l.b16 %v42_v23  ;;  %v77_v26 = vunpack.c.l.b16 %v43_v24 }
  0x11   :  { %v78_v27 = vrot.slane %v77_v26, 7 }
  0x13   :  { %v80_v30 = vsel %vm79_vm0, %v78_v27, %v76_v25 }
  0x14   :  { %v81_v32 = vpack.c.b16 %v80_v30, %v80_v30 }
  0x16   :  { %589 = vmatmul.mubr.msk.bf16.vlgmr.msra.gmra.mxu0 %vm122_vm1, %v81_v32  ;;  %590 = vmatmul.mubr.msk.bf16.vlgmr.msra.gmra.mxu1 %vm122_vm1, %v81_v32 }
  0x17   :  { %625 = vmatpush3.bf16.msra.mxu0 %v684_v28  ;;  %647 = vmatpush3.bf16.msra.mxu1 %v685_v29 }
  0x18   :  { %626 = vmatprep.subr.bf16.mxu0 %v686_v31  ;;  %648 = vmatprep.subr.bf16.mxu1 %v687_v33 }
  0x1b   :  { %627 = vmatpush3.bf16.msra.mxu0 %v688_v34  ;;  %649 = vmatpush3.bf16.msra.mxu1 %v689_v35 }
  0x1c   :  { %628 = vmatprep.subr.bf16.mxu0 %v690_v36  ;;  %650 = vmatprep.subr.bf16.mxu1 %v691_v37 }
  0x1f   :  { %629 = vmatpush3.bf16.msra.mxu0 %v692_v38  ;;  %651 = vmatpush3.bf16.msra.mxu1 %v693_v39 }
  0x20   :  { %630 = vmatprep.subr.bf16.mxu0 %v694_v40  ;;  %652 = vmatprep.subr.bf16.mxu1 %v695_v41 }
  0x23   :  { %631 = vmatpush3.bf16.msra.mxu0 %v696_v42  ;;  %653 = vmatpush3.bf16.msra.mxu1 %v697_v43 }
  0x24   :  { %12 = vsyncpa [#allocation3], 0  ;;  %632 = vmatprep.subr.bf16.mxu0 %v698_v44  ;;  %654 = vmatprep.subr.bf16.mxu1 %v699_v45  ;;  %v702_v48 = vld [vmem:[%s928_s5 + $0x50] sm:$0xff]   ;;  %v706_v52 = vld [vmem:[%s928_s5 + $0x48] sm:$0xff]   ;;  %v54_v60 = vlaneseq  ;;  %s741_s10 = smov [#allocation2]   ;;  %vm565_vm2 = vcmask 140288  }
  0x25   :  { %v703_v49 = vld [vmem:[%s928_s5 + $0xd0] sm:$0xff]   ;;  %v707_v53 = vld [vmem:[%s928_s5 + $0xc8] sm:$0xff]   ;;  %v710_v56 = vld [vmem:[%s928_s5 + $0x40] sm:$0xff]   ;;  %s573_s11 = sshll.u32 %s741_s10, 4  ;;  %s574_s11 = int_to_ptr.vmem [resolvable:$true] %s573_s11 }
  0x26   :  { %v704_v50 = vld [vmem:[%s928_s5 + $0x10] sm:$0xff]   ;;  %v708_v54 = vld [vmem:[%s928_s5 + $0x8] sm:$0xff]   ;;  %v711_v57 = vld [vmem:[%s928_s5 + $0xc0] sm:$0xff]   ;;  %v55_v61 = vshrl.u32 %v54_v60, 7  ;;  %p723_p1 = scmp.lt.s32.totalorder %s574_s11, %s574_s11 }
  0x27   :  { %633 = vmatpush3.bf16.msra.mxu0 %v700_v46  ;;  %655 = vmatpush3.bf16.msra.mxu1 %v701_v47  ;;  %v705_v51 = vld [vmem:[%s928_s5 + $0x90] sm:$0xff]   ;;  %v709_v55 = vld [vmem:[%s928_s5 + $0x88] sm:$0xff]   ;;  %v712_v58 = vld [vmem:[%s928_s5] sm:$0xff]  }
  0x28   :  { %634 = vmatprep.subr.bf16.mxu0 %v702_v48  ;;  %656 = vmatprep.subr.bf16.mxu1 %v703_v49  ;;  %v713_v59 = vld [vmem:[%s928_s5 + $0x80] sm:$0xff]   ;;  %v56_v62 = vsub.s32 0, %v55_v61  ;;  %v64_v63 = vsub.s32 2, %v55_v61  ;;  %v60_v1 = vsub.s32 1, %v55_v61  ;;  %v68_v2 = vsub.s32 3, %v55_v61 }
  0x29   :  { %v52_v0 = vld [vmem:[%s927_s4] sm:$0xf] }
  0x2a   :  { %v57_v3 = vrot.slane %v52_v0, %v56_v62  ;;  %v65_v4 = vrot.slane %v52_v0, %v64_v63  ;;  %v61_v5 = vrot.slane %v52_v0, %v60_v1  ;;  %v69_v6 = vrot.slane %v52_v0, %v68_v2  ;;  %v591_v29 = vld [vmem:[%s929_s6] ss:$0 sm:$0xff]  ;;  %s718_s6 = scalar_lea.vmem %s574_s11, 32 }
  0x2b   :  { %635 = vmatpush3.bf16.msra.mxu0 %v704_v50  ;;  %657 = vmatpush3.bf16.msra.mxu1 %v705_v51  ;;  %p719_p0 = scmp.ne.s32.totalorder %s574_s11, %s718_s6  ;;  %p724_p2 = scmp.lt.s32.totalorder %s718_s6, %s718_s6 }
  0x2c   :  { %636 = vmatprep.subr.bf16.mxu0 %v706_v52  ;;  %658 = vmatprep.subr.bf16.mxu1 %v707_v53 }
  0x2d   :  { %p725_p3 = por %p724_p2, %p723_p1 }
  0x2f   :  { %637 = vmatpush3.bf16.msra.mxu0 %v708_v54  ;;  %659 = vmatpush3.bf16.msra.mxu1 %v709_v55  ;;  %p726_p4 = pnand %p725_p3, %p719_p0 }
  0x30   :  { %638 = vmatprep.subr.bf16.mxu0 %v710_v56  ;;  %660 = vmatprep.subr.bf16.mxu1 %v711_v57 }
  0x33   :  { %639 = vmatpush3.bf16.msra.mxu0 %v712_v58  ;;  %661 = vmatpush3.bf16.msra.mxu1 %v713_v59 }
  0xd6   :  { %v160_v7 = vpop.f32.mrf.mxu0  ;;  %v201_v8 = vpop.f32.mrf.mxu1 }
  0xd7   :  { %v161_v9 = vadd.f32 %v160_v7, %v57_v3  ;;  %v202_v10 = vadd.f32 %v201_v8, %v65_v4 }
  0xd8   :  { %v162_v11 = vpop.f32.mrf.mxu0  ;;  %v203_v12 = vpop.f32.mrf.mxu1 }
  0xd9   :  { %v210_v13 = vmax.f32 %v202_v10, 0.0  ;;  %v163_v14 = vadd.f32 %v162_v11, %v61_v5  ;;  %v204_v15 = vadd.f32 %v203_v12, %v69_v6  ;;  %v208_v16 = vmax.f32 %v161_v9, 0.0 }
  0xda   :  { %v164_v17 = vpop.f32.mrf.mxu0  ;;  %v205_v18 = vpop.f32.mrf.mxu1 }
  0xdb   :  { %v209_v19 = vmax.f32 %v163_v14, 0.0  ;;  %v211_v20 = vmax.f32 %v204_v15, 0.0  ;;  %v214_v21 = vpack.c.bf16 %v210_v13, %v210_v13  ;;  %v212_v26 = vpack.c.bf16 %v208_v16, %v208_v16 }
  0xdc   :  { %v165_v22 = vpop.f32.mrf.mxu0  ;;  %v206_v23 = vpop.f32.mrf.mxu1 }
  0xdd   :  { %v213_v24 = vpack.c.bf16 %v209_v19, %v209_v19  ;;  %v215_v25 = vpack.c.bf16 %v211_v20, %v211_v20 }
  0xdf   :  { %511 = vmatprep.mubr.bf16.mxu0 %v213_v24  ;;  %551 = vmatprep.mubr.bf16.mxu1 %v215_v25 }
  0xe0   :  { %512 = vmatmul.mubr.bf16.vlgmr.msra.gmra.mxu0 %v212_v26  ;;  %552 = vmatmul.mubr.bf16.vlgmr.msra.gmra.mxu1 %v214_v21 }
 0x1a0   :  { %v640_v27 = vpop.f32.mrf.mxu0  ;;  %v662_v28 = vpop.f32.mrf.mxu1 }
 0x1a2   :  { %v641_v30 = vpop.f32.mrf.mxu0  ;;  %v663_v31 = vpop.f32.mrf.mxu1 }
 0x1a3   :  { %v642_v32 = vadd.f32 %v641_v30, %v640_v27  ;;  %v664_v36 = vadd.f32 %v663_v31, %v662_v28 }
 0x1a4   :  { %v643_v33 = vpop.f32.mrf.mxu0  ;;  %v665_v34 = vpop.f32.mrf.mxu1 }
 0x1a5   :  { %v514_v35 = vadd.f32 %v642_v32, %v591_v29 }
 0x1a6   :  { %v644_v37 = vpop.f32.mrf.mxu0  ;;  %v666_v38 = vpop.f32.mrf.mxu1 }
 0x1a7   :  { %v554_v39 = vadd.f32 %v664_v36, %v514_v35 }
 0x1a9   :  { %v559_v40 = vsub.f32 0.0, %v554_v39 }
 0x1ab   :  { %v560_v41 = vmul.f32 1.442695, %v559_v40 }
 0x1ad   :  { %714 = vpow2.f32 %v560_v41 }
 0x1ba   :  { %v715_v42 = vpop.eup %714 }
 0x1bb   :  { %v562_v43 = vadd.f32 1.0, %v715_v42 }
 0x1bd   :  { %716 = vrcp.f32 %v562_v43 }
 0x1ca   :  { %v717_v44 = vpop.eup %716 }
 0x1cb   :  { %566 = vst.msk [vmem:[#allocation2] sm:$0x3] %vm565_vm2, %v717_v44 }
 0x1cc   :  { %729 = shalt.err (!%p726_p4)
}
 0x1cd   :  { %576 = dma.vmem_to_hbm [thread:$0]  %s574_s11, 32, %s930_s7, [#allocation3]  }
 0x1ce   :  { %738 = dma.done.wait [#allocation3], 32  }
 0x1cf   :  { %739 = vsyncadd [#allocation3], 4294967264 }
 0x1d0   :  { %580 = vsyncpa [#allocation3], 1 }

// kernel: chest_xray_forward.16
= control target key start
LH: loop header
LB: loop body
LE: loop exit
PB: predicated region body
PF: predicated region fallthrough
CT: control target
= control target key end

     0   :  { %s1563_s24 = smov 0   ;;  %s1858_s0 = inlined_call_operand.vmem [shape: bf16[2,1,16], index: 0, kind: input, shape index: {}]   ;;  %s1859_s1 = inlined_call_operand.vmem [shape: f32[2,1,32], index: 1, kind: input, shape index: {}]   ;;  %s1860_s2 = inlined_call_operand.vmem [shape: f32[2,1,32], index: 2, kind: input, shape index: {}]   ;;  %s1861_s3 = inlined_call_operand.vmem [shape: bf16[2,32,32], index: 3, kind: input, shape index: {}]   ;;  %s1862_s4 = inlined_call_operand.vmem [shape: f32[2,1,32], index: 4, kind: input, shape index: {}]   ;;  %s1863_s5 = inlined_call_operand.vmem [shape: f32[2,1,32], index: 5, kind: input, shape index: {}]   ;;  %s1864_s6 = inlined_call_operand.vmem [shape: bf16[2,288,8], index: 6, kind: input, shape index: {}]   ;;  %s1865_s7 = inlined_call_operand.vmem [shape: bf16[2,1,32], index: 7, kind: output, shape index: {}]  }
   0x1 LB: > { %s1256_s25 = sadd.s32 4294967295, %s1513_s24   ;;  %p1260_p0 = scmp.ge.s32.totalorder %s1513_s24, 1  ;;  %s1513_s24 = sphi %s1563_s24, %s17_s24  }
   0x2   : > { %p235_p1 = scmp.lt.s32.totalorder %s1513_s24, 3 }
   0x4   : > { %p236_p2 = pnand %p1260_p0, %p235_p1 }
   0x5   : > { %p263_p3 = scmp.lt.s32.totalorder (!%p236_p2), %s1256_s25, 1  ;;  %s1518_s14 = smov (!%p236_p2), 32  }
   0x6   : > { %239 = sbr.rel (%p236_p2) target bundleno = 1135 (0x46f), region = 48  ;;  %s1519_s17 = smov (!%p236_p2), 64  }
   0x7   : > { %s1520_s18 = smov (!%p236_p2), 96   ;;  %s1521_s27 = smov (!%p236_p2), 16  }
   0x8   : > { %s1522_s30 = smov (!%p236_p2), 24  }
   0xb   : > { %v1467_v0 = vld [vmem:[%s1861_s3 + $0x8] sm:$0xff]   ;;  %v355_v1 = vlaneseq  ;;  %v1515_v2 = vmov 0.0   ;;  %v1468_v3 = vld [vmem:[%s1861_s3] sm:$0xff]   ;;  %vm1516_vm0 = vmmov 0   ;;  %vm270_vm1 = vcmask 253952   ;;  %s1875_s25 = smov (!%p263_p3, %s1256_s25), 1 }
   0xc   : > { %1419 = vmatprep.subr.bf16.mxu1 %v1515_v2  ;;  %1427 = vmatprep.subr.bf16.mxu0 %v1515_v2  ;;  %271 = vst.msk [vmem:[#allocation2] sm:$0x1] %vm270_vm1, %v1515_v2  ;;  %vm272_vm2 = vcmask 256000   ;;  %v1517_v5 = vmov 1966171168   ;;  %v1469_v7 = vld [vmem:[%s1864_s6 + $0x78] sm:$0xff]   ;;  %s265_s11 = scalar_lea.vmem %s1858_s0, %s1875_s25  ;;  %s268_s10 = scalar_lea.vmem %s1865_s7, %s1875_s25 }
   0xd   : > { %1420 = vmatpush3.bf16.msra.mxu1 %v1467_v0  ;;  %1423 = vmatprep.mubr.msk.bf16.mxu1 %vm1516_vm0, %v1515_v2  ;;  %v1585_v4 = vshrl.u32 %v355_v1, 7  ;;  %273 = vst.msk [vmem:[#allocation3] sm:$0x7] %vm272_vm2, %v1515_v2  ;;  %v370_v6 = vunpack.c.l.s4 %v1517_v5  ;;  %274 = vst.msk [vmem:[#allocation3 + $0x4] sm:$0x7] %vm272_vm2, %v1515_v2  ;;  %vm278_vm3 = vcmask 122880  }
   0xe   : > { %1421 = vmatprep.subr.bf16.mxu1 %v1515_v2  ;;  %1431 = vmatprep.mubr.msk.bf16.mxu0 %vm1516_vm0, %v1515_v2  ;;  %275 = vst.msk [vmem:[#allocation3 + $0x8] sm:$0x7] %vm272_vm2, %v1515_v2  ;;  %v276_v9 = vld [vmem:[%s265_s11] sm:$0x1]  ;;  %vm303_vm4 = vcmask 261120   ;;  %v1470_v31 = vld [vmem:[%s1864_s6 + $0x38] sm:$0xff]  }
   0xf   : > { %v371_v8 = vunpack.c.0.s8 %v370_v6  ;;  %v277_v10 = vunpack.c.l.bf16 %v276_v9  ;;  %v281_v15 = vld [vmem:[%s1859_s1] sm:$0x1]  ;;  %v1471_v32 = vld [vmem:[%s1864_s6 + $0x70] sm:$0xff]   ;;  %v1473_v34 = vld [vmem:[%s1864_s6 + $0x68] sm:$0xff]   ;;  %vm1643_vm5 = vcmp.lt.s32.totalorder %v355_v1, 32  ;;  %vm379_vm6 = vcmp.ge.s32.totalorder %v355_v1, 32 }
  0x10   : > { %v283_v19 = vld [vmem:[%s1860_s2] sm:$0x1]  ;;  %v1472_v33 = vld [vmem:[%s1864_s6 + $0x30] sm:$0xff]   ;;  %v1474_v35 = vld [vmem:[%s1864_s6 + $0x28] sm:$0xff]   ;;  %vm380_vm7 = vcmp.lt.s32.totalorder %v355_v1, 64  ;;  %vm402_vm8 = vcmp.ge.s32.totalorder %v355_v1, 64 }
  0x11   : > { %1422 = vmatpush3.bf16.msra.mxu1 %v1468_v3  ;;  %v374_v11 = vsub.s32 %v371_v8, %v1585_v4  ;;  %279 = vst.msk [vmem:[#allocation2] sm:$0x1] %vm278_vm3, %v277_v10  ;;  %v1475_v39 = vld [vmem:[%s1864_s6 + $0x60] sm:$0xff]   ;;  %v1477_v41 = vld [vmem:[%s1864_s6 + $0x58] sm:$0xff]   ;;  %v1479_v43 = vld [vmem:[%s1864_s6 + $0x50] sm:$0xff]   ;;  %vm403_vm9 = vcmp.lt.s32.totalorder %v355_v1, 96 }
  0x12   : > { %1366 = vmatprep.subr.bf16.mxu1 %v1469_v7  ;;  %v1476_v40 = vld [vmem:[%s1864_s6 + $0x20] sm:$0xff]   ;;  %v1478_v42 = vld [vmem:[%s1864_s6 + $0x18] sm:$0xff]   ;;  %v1480_v44 = vld [vmem:[%s1864_s6 + $0x10] sm:$0xff]   ;;  %vm425_vm12 = vcmp.ge.s32.totalorder %v355_v1, 96  ;;  %vm426_vm13 = vcmp.lt.s32.totalorder %v355_v1, 128  ;;  %v502_v8 = vsub.s32 1, %v1585_v4 }
  0x13   : > { %v1481_v45 = vld [vmem:[%s1864_s6 + $0x48] sm:$0xff]   ;;  %v1484_v48 = vld [vmem:[%s1864_s6 + $0x40] sm:$0xff]   ;;  %vm1694_vm10 = vmand %vm379_vm6, %vm380_vm7  ;;  %v506_v9 = vsub.s32 2, %v1585_v4  ;;  %v498_v10 = vsub.s32 0, %v1585_v4  ;;  %vm745_vm15 = vcmask 188544  }
  0x14   : > { %v1264_v12 = vld.sshfl [vmem:[#allocation3 + $0x1] sm:$0x1 pattern:$0x75316420]  ;;  %v354_v38 = vld [vmem:[#allocation3] sm:$0x1]  ;;  %vm1698_vm11 = vmand %vm402_vm8, %vm403_vm9 }
  0x15   : > { %v375_v13 = vrot.slane %v1264_v12, %v374_v11  ;;  %v1265_v14 = vld.sshfl [vmem:[#allocation3 + $0x2] sm:$0x1 pattern:$0x75316420]  ;;  %v492_v37 = vld [vmem:[#allocation3 + $0xa] sm:$0x1]  ;;  %vm1708_vm14 = vmand %vm425_vm12, %vm426_vm13 }
  0x16   : > { %v398_v16 = vrot.slane %v1265_v14, %v374_v11  ;;  %v1268_v17 = vld.sshfl [vmem:[#allocation3 + $0x8] sm:$0x1 pattern:$0x75316420]  ;;  %493 = vst.msk [vmem:[#allocation4 + $0x2] sm:$0x1] %vm1643_vm5, %v492_v37 }
  0x17   : > { %376 = vrot.lane.b32.xlu0 %v375_v13, %s1518_s14  ;;  %v1267_v18 = vld.sshfl [vmem:[#allocation3 + $0x6] sm:$0x1 pattern:$0x75316420]  ;;  %v1610_v20 = vrot.slane %v1268_v17, %v374_v11  ;;  %359 = vst.msk [vmem:[#allocation4] sm:$0x1] %vm1643_vm5, %v354_v38 }
  0x18   : > { %399 = vrot.lane.b32.xlu1 %v398_v16, %s1519_s17  ;;  %v1612_v21 = vrot.slane %v1267_v18, %v374_v11  ;;  %v1269_v22 = vld.sshfl [vmem:[#allocation3 + $0x9] sm:$0x1 pattern:$0x75316420]  ;;  %v280_v24 = vld [vmem:[#allocation2] sm:$0x1] }
  0x19   : > { %v1266_v23 = vld.sshfl [vmem:[#allocation3 + $0x4] sm:$0x1 pattern:$0x75316420]  ;;  %v282_v25 = vmul.f32 %v281_v15, %v280_v24  ;;  %v1618_v27 = vrot.slane %v1269_v22, %v374_v11  ;;  %v1482_v46 = vld [vmem:[%s1864_s6 + $0x88] sm:$0xff]   ;;  %v1488_v22 = vld [vmem:[%s1861_s3 + $0x10] sm:$0xff]  }
  0x1a   : > { %v421_v26 = vrot.slane %v1266_v23, %v374_v11  ;;  %v1483_v47 = vld [vmem:[%s1864_s6 + $0x8] sm:$0xff]   ;;  %1428 = vmatpush3.bf16.msra.mxu0 %v1482_v46  ;;  %v1485_v49 = vld [vmem:[%s1864_s6 + $0x80] sm:$0xff]   ;;  %vm1207_vm2 = vsmask.f32 256 }
  0x1b   : > { %447 = vrot.lane.b32.xlu0 %v1612_v21, %s1518_s14  ;;  %v284_v28 = vadd.f32 %v283_v19, %v282_v25  ;;  %1429 = vmatprep.subr.bf16.mxu0 %v1515_v2  ;;  %v1486_v50 = vld [vmem:[%s1864_s6] sm:$0xff]   ;;  %v1487_v19 = vld [vmem:[%s1861_s3 + $0x18] sm:$0xff]   ;;  %vm1208_vm3 = vmand %vm270_vm1, %vm1207_vm2 }
  0x1c   : > { %468 = vrot.lane.b32.xlu1 %v1610_v20, %s1519_s17  ;;  %v347_v58 = vld [vmem:[%s1862_s4] sm:$0x1]  ;;  %v824_v11 = vld [vmem:[#allocation3] sm:$0x1] }
  0x1d   : > { %v285_v29 = vmax.f32 %v284_v28, 0.0  ;;  %v349_v60 = vld [vmem:[%s1863_s5] sm:$0x1]  ;;  %v1289_v37 = vld [vmem:[%s1859_s1 + $0x1] sm:$0x1] }
  0x1e   : > { %1430 = vmatpush3.bf16.msra.mxu0 %v1485_v49 }
  0x1f   : > { %422 = vrot.lane.b32.xlu0 %v421_v26, %s1520_s18  ;;  %v286_v30 = vpack.c.bf16 %v285_v29, %v285_v29  ;;  %1435 = vmatprep.subr.bf16.mxu0 %v1515_v2 }
  0x20   : > { %488 = vrot.lane.b32.xlu1 %v1618_v27, %s1520_s18 }
  0x21   : > { %1424 = vmatmul.mubr.msk.bf16.vlgmr.msra.gmra.mxu1 %vm303_vm4, %v286_v30 }
  0x22   : > { %1367 = vmatpush3.bf16.msra.mxu1 %v1470_v31 }
  0x23   : > { %1368 = vmatprep.subr.bf16.mxu1 %v1471_v32 }
  0x24   : > { %842 = vrot.lane.b32.xlu1 %v375_v13, %s1518_s14 }
  0x26   : > { %1369 = vmatpush3.bf16.msra.mxu1 %v1472_v33 }
  0x27   : > { %1370 = vmatprep.subr.bf16.mxu1 %v1473_v34  ;;  %v1489_v34 = vld [vmem:[%s1864_s6 + $0x108] sm:$0xff]  }
  0x28   : > { %862 = vrot.lane.b32.xlu1 %v398_v16, %s1519_s17 }
  0x2a   : > { %1371 = vmatpush3.bf16.msra.mxu1 %v1474_v35 }
  0x2b   : > { %1372 = vmatprep.subr.bf16.mxu1 %v1475_v39  ;;  %v1290_v39 = vld [vmem:[%s1860_s2 + $0x1] sm:$0x1] }
  0x2c   : > { %882 = vrot.lane.b32.xlu1 %v421_v26, %s1520_s18 }
  0x2e   : > { %1373 = vmatpush3.bf16.msra.mxu1 %v1476_v40 }
  0x2f   : > { %1374 = vmatprep.subr.bf16.mxu1 %v1477_v41 }
  0x32   : > { %1375 = vmatpush3.bf16.msra.mxu1 %v1478_v42 }
  0x33   : > { %1376 = vmatprep.subr.bf16.mxu1 %v1479_v43  ;;  %v1492_v43 = vld [vmem:[%s1864_s6 + $0xc0] sm:$0xff]  }
  0x36   : > { %1377 = vmatpush3.bf16.msra.mxu1 %v1480_v44  ;;  %v1493_v44 = vld [vmem:[%s1864_s6 + $0xf8] sm:$0xff]  }
  0x37   : > { %1378 = vmatprep.subr.bf16.mxu1 %v1481_v45  ;;  %v1494_v45 = vld [vmem:[%s1864_s6 + $0xb8] sm:$0xff]  }
  0x3a   : > { %1379 = vmatpush3.bf16.msra.mxu1 %v1483_v47  ;;  %v1495_v47 = vld [vmem:[%s1864_s6 + $0xf0] sm:$0xff]  }
  0x3b   : > { %1380 = vmatprep.subr.bf16.mxu1 %v1484_v48  ;;  %v1496_v48 = vld [vmem:[%s1864_s6 + $0xb0] sm:$0xff]  }
  0x3e   : > { %1381 = vmatpush3.bf16.msra.mxu1 %v1486_v50  ;;  %v1497_v50 = vld [vmem:[%s1864_s6 + $0xe8] sm:$0xff]  }
  0x3f   : > { %1443 = vmatprep.subr.bf16.mxu1 %v1515_v2 }
  0x89   : > { %v377_v53 = vpop.permute.xlu0 %376 }
  0x8a   : > { %382 = vst.msk [vmem:[#allocation4] sm:$0x1] %vm1694_vm10, %v377_v53  ;;  %v400_v54 = vpop.permute.xlu1 %399  ;;  %v1498_v53 = vld [vmem:[%s1864_s6 + $0xa8] sm:$0xff]  }
  0x8b   : > { %405 = vst.msk [vmem:[#allocation4] sm:$0x1] %vm1698_vm11, %v400_v54 }
  0x8d   : > { %v448_v55 = vpop.permute.xlu0 %447 }
  0x8e   : > { %v469_v5 = vpop.permute.xlu1 %468 }
  0x91   : > { %v423_v57 = vpop.permute.xlu0 %422 }
  0x92   : > { %428 = vst.msk [vmem:[#allocation4] sm:$0x1] %vm1708_vm14, %v423_v57  ;;  %v489_v7 = vpop.permute.xlu1 %488  ;;  %v948_v57 = vld [vmem:[#allocation3 + $0xa] sm:$0x1] }
  0x96   : > { %v843_v46 = vpop.permute.xlu1 %842 }
  0x9a   : > { %v863_v49 = vpop.permute.xlu1 %862 }
  0x9e   : > { %v883_v54 = vpop.permute.xlu1 %882 }
  0xe1   : > { %v341_v59 = vpop.f32.mrf.mxu1 }
  0xe2   : > { %v348_v61 = vmul.f32 %v347_v58, %v341_v59  ;;  %v1500_v58 = vld [vmem:[%s1864_s6 + $0xa0] sm:$0xff]   ;;  %v1501_v59 = vld [vmem:[%s1864_s6 + $0xd8] sm:$0xff]  }
  0xe3   : > { %v1425_v62 = vpop.f32.mrf.mxu1 }
  0xe4   : > { %v350_v63 = vadd.f32 %v349_v60, %v348_v61  ;;  %v1502_v60 = vld [vmem:[%s1864_s6 + $0x118] sm:$0xff]   ;;  %v1505_v62 = vld [vmem:[%s1864_s6 + $0x110] sm:$0xff]  }
  0xe5   : > { %v344_v0 = vpop.f32.mrf.mxu1  ;;  %v1503_v61 = vld [vmem:[%s1864_s6 + $0x98] sm:$0xff]  }
  0xe6   : > { %v351_v1 = vmax.f32 %v350_v63, 0.0  ;;  %v1504_v63 = vld [vmem:[%s1864_s6 + $0xd0] sm:$0xff]  }
  0xe7   : > { %v1426_v3 = vpop.f32.mrf.mxu1  ;;  %v1506_v0 = vld [vmem:[%s1864_s6 + $0x90] sm:$0xff]  }
  0xe8   : > { %353 = vst.msk [vmem:[#allocation3 + $0x5] sm:$0x1] %vm270_vm1, %v351_v1  ;;  %v1298_v1 = vld [vmem:[%s1862_s4 + $0x1] sm:$0x1] }
  0xef   : > { %v429_v6 = vld [vmem:[#allocation3 + $0x5] sm:$0x1] }
  0xf0   : > { %430 = vst.msk [vmem:[#allocation4 + $0x1] sm:$0x1] %vm1643_vm5, %v429_v6 }
  0xf1   : > { %450 = vst.msk [vmem:[#allocation4 + $0x1] sm:$0x1] %vm1694_vm10, %v448_v55  ;;  %v1499_v55 = vld [vmem:[%s1864_s6 + $0xe0] sm:$0xff]  }
  0xf2   : > { %471 = vst.msk [vmem:[#allocation4 + $0x1] sm:$0x1] %vm1698_vm11, %v469_v5 }
  0xf3   : > { %491 = vst.msk [vmem:[#allocation4 + $0x1] sm:$0x1] %vm1708_vm14, %v489_v7 }
  0xfa   : > { %v494_v12 = vld [vmem:[#allocation4] sm:$0x7] }
  0xfb   : > { %825 = vst.msk [vmem:[#allocation4] sm:$0x1] %vm1643_vm5, %v824_v11  ;;  %v503_v13 = vrot.slane %v494_v12, %v502_v8  ;;  %v507_v14 = vrot.slane %v494_v12, %v506_v9  ;;  %v499_v15 = vrot.slane %v494_v12, %v498_v10  ;;  %949 = vst.msk [vmem:[#allocation4 + $0x2] sm:$0x1] %vm1643_vm5, %v948_v57 }
  0xfc   : > { %845 = vst.msk [vmem:[#allocation4] sm:$0x1] %vm1694_vm10, %v843_v46 }
  0xfd   : > { %v512_v16 = vpack.c.bf16 %v503_v13, %v503_v13  ;;  %v513_v17 = vpack.c.bf16 %v507_v14, %v507_v14  ;;  %v511_v18 = vpack.c.bf16 %v499_v15, %v499_v15  ;;  %865 = vst.msk [vmem:[#allocation4] sm:$0x1] %vm1698_vm11, %v863_v49 }
  0xfe   : > { %885 = vst.msk [vmem:[#allocation4] sm:$0x1] %vm1708_vm14, %v883_v54 }
  0xff   : > { %693 = vmatprep.mubr.bf16.mxu1 %v512_v16  ;;  %1432 = vmatmul.mubr.msk.bf16.vlgmr.msra.gmra.mxu0 %vm303_vm4, %v513_v17 }
 0x100   : > { %694 = vmatmul.mubr.bf16.vlgmr.msra.gmra.mxu1 %v511_v18  ;;  %1439 = vmatprep.mubr.msk.bf16.mxu0 %vm1516_vm0, %v1515_v2 }
 0x101   : > { %1447 = vmatprep.mubr.msk.bf16.mxu1 %vm1516_vm0, %v1515_v2  ;;  %1436 = vmatpush3.bf16.msra.mxu0 %v1487_v19  ;;  %vm1202_vm0 = vcmask 254144  }
 0x102   : > { %1437 = vmatprep.subr.bf16.mxu0 %v1515_v2  ;;  %1444 = vmatpush3.bf16.msra.mxu1 %v1502_v60 }
 0x103   : > { %1445 = vmatprep.subr.bf16.mxu1 %v1515_v2  ;;  %v1299_v2 = vld [vmem:[%s1863_s5 + $0x1] sm:$0x1] }
 0x105   : > { %1438 = vmatpush3.bf16.msra.mxu0 %v1488_v22 }
 0x106   : > { %1394 = vmatprep.subr.bf16.mxu0 %v1489_v34  ;;  %1446 = vmatpush3.bf16.msra.mxu1 %v1505_v62 }
 0x1bf   : > { %v735_v23 = vpop.f32.mrf.mxu0 }
 0x1c0   : > { %v1382_v24 = vpop.f32.mrf.mxu1 }
 0x1c1   : > { %v1433_v25 = vpop.f32.mrf.mxu0 }
 0x1c2   : > { %v1383_v26 = vpop.f32.mrf.mxu1 }
 0x1c3   : > { %v1384_v28 = vadd.f32 %v1383_v26, %v1382_v24  ;;  %v738_v29 = vpop.f32.mrf.mxu0 }
 0x1c4   : > { %v1385_v30 = vpop.f32.mrf.mxu1 }
 0x1c5   : > { %v736_v31 = vadd.f32 %v1384_v28, %v735_v23  ;;  %v1434_v32 = vpop.f32.mrf.mxu0 }
 0x1c6   : > { %v1386_v33 = vpop.f32.mrf.mxu1 }
 0x1c7   : > { %742 = vrot.lane.b32.xlu0 %v736_v31, %s1521_s27 }
 0x1cb   : > { %904 = vrot.lane.b32.xlu0 %v1612_v21, %s1518_s14 }
 0x1cf   : > { %924 = vrot.lane.b32.xlu0 %v1610_v20, %s1519_s17  ;;  %v1490_v20 = vld [vmem:[%s1864_s6 + $0xc8] sm:$0xff]  }
 0x1d3   : > { %944 = vrot.lane.b32.xlu0 %v1618_v27, %s1520_s18  ;;  %v1491_v27 = vld [vmem:[%s1864_s6 + $0x100] sm:$0xff]  }
 0x239   : > { %v743_v35 = vpop.permute.xlu0 %742 }
 0x23a   : > { %746 = vst.msk [vmem:[#allocation2] sm:$0x1] %vm745_vm15, %v743_v35 }
 0x23d   : > { %v905_v11 = vpop.permute.xlu0 %904 }
 0x241   : > { %v747_v38 = vld [vmem:[#allocation2] sm:$0x1]  ;;  %v925_v15 = vpop.permute.xlu0 %924 }
 0x242   : > { %v750_v21 = vmul.f32 %v1289_v37, %v747_v38 }
 0x244   : > { %v753_v40 = vadd.f32 %v1290_v39, %v750_v21 }
 0x245   : > { %v945_v17 = vpop.permute.xlu0 %944 }
 0x246   : > { %v754_v41 = vmax.f32 %v753_v40, 0.0 }
 0x248   : > { %v755_v42 = vpack.c.bf16 %v754_v41, %v754_v41 }
 0x24a   : > { %1440 = vmatmul.mubr.msk.bf16.vlgmr.msra.gmra.mxu0 %vm303_vm4, %v755_v42 }
 0x24b   : > { %1395 = vmatpush3.bf16.msra.mxu0 %v1490_v20 }
 0x24c   : > { %1396 = vmatprep.subr.bf16.mxu0 %v1491_v27 }
 0x24f   : > { %1397 = vmatpush3.bf16.msra.mxu0 %v1492_v43 }
 0x250   : > { %1398 = vmatprep.subr.bf16.mxu0 %v1493_v44 }
 0x253   : > { %1399 = vmatpush3.bf16.msra.mxu0 %v1494_v45 }
 0x254   : > { %1400 = vmatprep.subr.bf16.mxu0 %v1495_v47 }
 0x257   : > { %1401 = vmatpush3.bf16.msra.mxu0 %v1496_v48 }
 0x258   : > { %1402 = vmatprep.subr.bf16.mxu0 %v1497_v50 }
 0x25b   : > { %1403 = vmatpush3.bf16.msra.mxu0 %v1498_v53 }
 0x25c   : > { %1404 = vmatprep.subr.bf16.mxu0 %v1499_v55 }
 0x25f   : > { %1405 = vmatpush3.bf16.msra.mxu0 %v1500_v58 }
 0x260   : > { %1406 = vmatprep.subr.bf16.mxu0 %v1501_v59 }
 0x263   : > { %1407 = vmatpush3.bf16.msra.mxu0 %v1503_v61 }
 0x264   : > { %1408 = vmatprep.subr.bf16.mxu0 %v1504_v63 }
 0x267   : > { %1409 = vmatpush3.bf16.msra.mxu0 %v1506_v0 }
 0x30a   : > { %v810_v3 = vpop.f32.mrf.mxu0 }
 0x30b   : > { %v818_v5 = vmul.f32 %v1298_v1, %v810_v3 }
 0x30c   : > { %v1441_v6 = vpop.f32.mrf.mxu0 }
 0x30d   : > { %v821_v7 = vadd.f32 %v1299_v2, %v818_v5 }
 0x30e   : > { %v813_v12 = vpop.f32.mrf.mxu0 }
 0x30f   : > { %v822_v13 = vmax.f32 %v821_v7, 0.0 }
 0x310   : > { %v1442_v14 = vpop.f32.mrf.mxu0 }
 0x311   : > { %823 = vst.msk [vmem:[#allocation3 + $0x5] sm:$0x1] %vm270_vm1, %v822_v13 }
 0x318   : > { %v886_v16 = vld [vmem:[#allocation3 + $0x5] sm:$0x1] }
 0x319   : > { %887 = vst.msk [vmem:[#allocation4 + $0x1] sm:$0x1] %vm1643_vm5, %v886_v16 }
 0x31a   : > { %907 = vst.msk [vmem:[#allocation4 + $0x1] sm:$0x1] %vm1694_vm10, %v905_v11 }
 0x31b   : > { %927 = vst.msk [vmem:[#allocation4 + $0x1] sm:$0x1] %vm1698_vm11, %v925_v15 }
 0x31c   : > { %947 = vst.msk [vmem:[#allocation4 + $0x1] sm:$0x1] %vm1708_vm14, %v945_v17 }
 0x323   : > { %v950_v18 = vld [vmem:[#allocation4] sm:$0x7] }
 0x324   : > { %v959_v19 = vrot.slane %v950_v18, %v502_v8  ;;  %v963_v22 = vrot.slane %v950_v18, %v506_v9  ;;  %v955_v36 = vrot.slane %v950_v18, %v498_v10  ;;  %v1209_v10 = vld [vmem:[%s268_s10] sm:$0x1] }
 0x326   : > { %v968_v23 = vpack.c.bf16 %v959_v19, %v959_v19  ;;  %v969_v24 = vpack.c.bf16 %v963_v22, %v963_v22  ;;  %v967_v51 = vpack.c.bf16 %v955_v36, %v955_v36 }
 0x328   : > { %1150 = vmatprep.mubr.bf16.mxu0 %v968_v23  ;;  %1448 = vmatmul.mubr.msk.bf16.vlgmr.msra.gmra.mxu1 %vm303_vm4, %v969_v24 }
 0x329   : > { %1151 = vmatmul.mubr.bf16.vlgmr.msra.gmra.mxu0 %v967_v51 }
 0x3e8   : > { %v1192_v52 = vpop.f32.mrf.mxu1 }
 0x3e9   : > { %v1410_v56 = vpop.f32.mrf.mxu0 }
 0x3ea   : > { %v1449_v25 = vpop.f32.mrf.mxu1 }
 0x3eb   : > { %v1411_v26 = vpop.f32.mrf.mxu0 }
 0x3ec   : > { %v1412_v28 = vadd.f32 %v1411_v26, %v1410_v56  ;;  %v1195_v8 = vpop.f32.mrf.mxu1 }
 0x3ed   : > { %v1413_v29 = vpop.f32.mrf.mxu0 }
 0x3ee   : > { %v1193_v30 = vadd.f32 %v1412_v28, %v1192_v52  ;;  %v1450_v9 = vpop.f32.mrf.mxu1 }
 0x3ef   : > { %v1414_v31 = vpop.f32.mrf.mxu0 }
 0x3f0   : > { %1199 = vrot.lane.b32.xlu1 %v1193_v30, %s1522_s30 }
 0x462   : > { %v1200_v4 = vpop.permute.xlu1 %1199 }
 0x463   : > { %1203 = vst.msk [vmem:[#allocation2] sm:$0x1] %vm1202_vm0, %v1200_v4 }
 0x46a   : > { %v1204_v32 = vld [vmem:[#allocation2] sm:$0x1] }
 0x46b   : > { %v1205_v33 = vpack.c.bf16 %v1204_v32, %v1204_v32 }
 0x46d   : > { %v1210_v34 = vsel %vm1208_vm3, %v1205_v33, %v1209_v10 }
 0x46e   : > { %1211 = vst [vmem:[%s268_s10] sm:$0x1] %v1210_v34 }
 0x46f PF: > { %s17_s24 = sadd.s32 1, %s1513_s24  }
 0x470   : > { %p14_p4 = scmp.ge.s32.totalorder %s17_s24, 4  }
 0x472   :  { %16 = sbr.rel (!%p14_p4) target bundleno = 1 (0x1), region = 86 }

</bundles_post_ra>
